<compile_context>
chip_gen: v7x
topology: tpu7x:2x2x1
jax: 0.10.0
libtpu: 0.0.40
codegen_flags: <defaults>
</compile_context>

<pallas_src>
import numpy as np

import jax
import jax.numpy as jnp
from jax import lax
from jax.experimental import pallas as pl
from jax.experimental.pallas import tpu as pltpu

_H = 7
_W = 7
_HW = _H * _W       # 49 real pixels per image (dictated by fc1 = 16*7*7)
_ROWS = 56          # per-image row count, padded to a multiple of 8 sublanes


def _zero_index_map(ndim):
    def _map():
        return (0,) * ndim
    return _map


# ----------------------------------------------------------------------------
# In-kernel im2col: scatter the 9 shifted+masked copies of `src` (R, Cin) into
# the (R, 9*Cin) VMEM scratch.  A tap shift is a static sublane slice of the
# source value stored at a static (row, lane) offset — pure ld/st slots plus
# one VPU multiply per tap; no MXU permutation matmuls, no S operand.
# Rows whose shifted source would fall outside the array are exactly rows the
# border mask zeroes anyway, so they are covered by the zero-init.
# ----------------------------------------------------------------------------
def _build_im2col(src, masks, col_ref):
    rows, cin = src.shape
    col_ref[...] = jnp.zeros(col_ref.shape, col_ref.dtype)
    for k in range(9):
        dy, dx = k // 3 - 1, k % 3 - 1
        s = dy * _W + dx                       # row shift for this tap
        d0 = max(0, -s)                        # destination rows whose source is in-array
        d1 = rows - max(0, s)
        tap = src[d0 + s:d1 + s, :] * masks[d0:d1, k:k + 1]   # f32 mask multiply (VPU)
        col_ref[d0:d1, k * cin:(k + 1) * cin] = tap


# ----------------------------------------------------------------------------
# Fused forward kernel.  Activation rows are r = b*56 + h*7 + w, columns are
# channels, so both convs, the flatten and both FCs need only matmuls, FMAs,
# slices and a sublane reduction.
# ----------------------------------------------------------------------------
def _fused_cnn_kernel(x_ref, m_ref, w1_ref, b1_ref, w2_ref, b2_ref,
                      wf1_ref, bf1_ref, wf2_ref, bf2_ref,
                      o_ref, col1_ref, col2_ref, h3_ref):
    B = o_ref.shape[0]
    c2 = w2_ref.shape[1]            # conv2 out channels (16)
    nh = wf1_ref.shape[2]           # fc1 hidden size (32)

    masks = m_ref[...]              # (R, 9) f32 border/pad masks
    xv = x_ref[...]                 # (R, Cin) f32

    # ---- conv1 + ReLU: one (R, 9*Cin) @ (9*Cin, 8) MXU matmul ----
    _build_im2col(xv, masks, col1_ref)
    a1 = jnp.dot(col1_ref[...].astype(jnp.bfloat16), w1_ref[...],
                 preferred_element_type=jnp.float32)
    h1 = jnp.maximum(a1 + b1_ref[...], 0.0)                    # (R, 8) f32

    # ---- conv2 + ReLU: one (R, 72) @ (72, 16) MXU matmul ----
    _build_im2col(h1, masks, col2_ref)
    a2 = jnp.dot(col2_ref[...].astype(jnp.bfloat16), w2_ref[...],
                 preferred_element_type=jnp.float32)
    h2 = jnp.maximum(a2 + b2_ref[...], 0.0)                    # (R, 16) f32

    # ---- fc1 + ReLU: NCHW flatten folded into wf1 packing (pad rows zero);
    #      f32 per-channel FMAs + one sublane reduce per image (no B-broadcast
    #      weight, no P matmul) ----
    h2_b = [h2[b * _ROWS:(b + 1) * _ROWS, :] for b in range(B)]
    z = [jnp.zeros((_ROWS, nh), jnp.float32) for _ in range(B)]
    for c in range(c2):
        wc = wf1_ref[c].astype(jnp.float32)                    # (56, 32)
        for b in range(B):
            z[b] = z[b] + h2_b[b][:, c:c + 1] * wc
    for b in range(B):
        h3b = jnp.sum(z[b], axis=0, keepdims=True) + bf1_ref[...]
        h3_ref[b:b + 1, :] = jnp.maximum(h3b, 0.0)

    # ---- fc2 ----
    out = jnp.dot(h3_ref[...].astype(jnp.bfloat16), wf2_ref[...],
                  preferred_element_type=jnp.float32) + bf2_ref[...]
    o_ref[...] = out.astype(o_ref.dtype)


# ----------------------------------------------------------------------------
# Forward wrapper: one tiny input relayout (NCHW -> rows=(b,h,w) padded to
# 56/image, cols=channels), then a single fused pallas_call.
# TODO(synk): the relayout is left to XLA; fold it in-kernel if it ever shows
# up as a standalone HLO op in the profile.
# ----------------------------------------------------------------------------
def basic_cnn2m_forward(x_nchw, packed):
    B, Cin, H, W = x_nchw.shape
    assert H == _H and W == _W, "fc1 = 16*7*7 requires 7x7 spatial input"
    R = B * _ROWS

    x = jnp.transpose(x_nchw, (0, 2, 3, 1)).reshape(B, H * W, Cin)
    x = jnp.pad(x, ((0, 0), (0, _ROWS - H * W), (0, 0)))
    x = x.reshape(R, Cin).astype(jnp.float32)

    operands = (x, packed["mask"],
                packed["w1"], packed["b1"], packed["w2"], packed["b2"],
                packed["wf1"], packed["bf1"], packed["wf2"], packed["bf2"])
    c1 = packed["w2"].shape[0] // 9
    nh = packed["wf1"].shape[2]
    n_out = packed["wf2"].shape[1]

    return pl.pallas_call(
        _fused_cnn_kernel,
        out_shape=jax.ShapeDtypeStruct((B, n_out), jnp.float32),
        in_specs=[pl.BlockSpec(a.shape, _zero_index_map(a.ndim)) for a in operands],
        out_specs=pl.BlockSpec((B, n_out), _zero_index_map(2)),
        scratch_shapes=[
            pltpu.VMEM((R, 9 * Cin), jnp.float32),   # conv1 im2col
            pltpu.VMEM((R, 9 * c1), jnp.float32),    # conv2 im2col
            pltpu.VMEM((B, nh), jnp.float32),        # fc1 activations
        ],
        compiler_params=pltpu.CompilerParams(vmem_limit_bytes=32 * 1024 * 1024),
    )(*operands)


# ----------------------------------------------------------------------------
# Host-side constants / parameter repacking (off the hot path).
# ----------------------------------------------------------------------------
def build_masks(B):
    """(B*56, 9) f32: mask[r, k]=1 iff tap k of destination row r is in-bounds.
    Pad rows (h==7) are masked for every tap."""
    m = np.zeros((B * _ROWS, 9), np.float32)
    for b in range(B):
        for p in range(_HW):
            h, w = p // _W, p % _W
            for k in range(9):
                dy, dx = k // 3 - 1, k % 3 - 1
                if 0 <= h + dy < _H and 0 <= w + dx < _W:
                    m[b * _ROWS + p, k] = 1.0
    return jnp.asarray(m)


def pack_params(params, B):
    """torch layouts -> kernel layouts.
    Conv: (Cout,Cin,3,3) -> (9*Cin, Cout) with tap k=ky*3+kx major, ci minor.
    fc1:  (32, 784) -> (16, 56, 32) bf16 (NCHW flatten folded in, pad rows 0).
    fc2:  (out, 32) -> (32, out)."""
    cin = params["conv1_w"].shape[1]
    c1 = params["conv1_w"].shape[0]
    c2 = params["conv2_w"].shape[0]
    nh = params["fc1_w"].shape[0]
    n_out = params["fc2_w"].shape[0]

    w1 = jnp.transpose(params["conv1_w"], (2, 3, 1, 0)).reshape(9 * cin, c1)
    w2 = jnp.transpose(params["conv2_w"], (2, 3, 1, 0)).reshape(9 * c1, c2)

    wf1 = params["fc1_w"].T.reshape(c2, _HW, nh)                 # (16, 49, 32)
    wf1 = jnp.pad(wf1, ((0, 0), (0, _ROWS - _HW), (0, 0)))       # (16, 56, 32)
    wf2 = params["fc2_w"].T                                      # (32, n_out)

    return {
        "mask": build_masks(B),
        "w1": w1.astype(jnp.bfloat16),
        "b1": params["conv1_b"].reshape(1, c1).astype(jnp.float32),
        "w2": w2.astype(jnp.bfloat16),
        "b2": params["conv2_b"].reshape(1, c2).astype(jnp.float32),
        "wf1": wf1.astype(jnp.bfloat16),
        "bf1": params["fc1_b"].reshape(1, nh).astype(jnp.float32),
        "wf2": wf2.astype(jnp.bfloat16),
        "bf2": params["fc2_b"].reshape(1, n_out).astype(jnp.float32),
    }


# ----------------------------------------------------------------------------
# Deterministic synthetic parameters in torch layouts (shapes from __init__).
# ----------------------------------------------------------------------------
def init_params(input_channels, output_size, key):
    ks = jax.random.split(key, 8)
    s = 0.1
    return {
        "conv1_w": s * jax.random.normal(ks[0], (8, input_channels, 3, 3), jnp.float32),
        "conv1_b": s * jax.random.normal(ks[1], (8,), jnp.float32),
        "conv2_w": s * jax.random.normal(ks[2], (16, 8, 3, 3), jnp.float32),
        "conv2_b": s * jax.random.normal(ks[3], (16,), jnp.float32),
        "fc1_w": s * jax.random.normal(ks[4], (32, 16 * _HW), jnp.float32),
        "fc1_b": s * jax.random.normal(ks[5], (32,), jnp.float32),
        "fc2_w": s * jax.random.normal(ks[6], (output_size, 32), jnp.float32),
        "fc2_b": s * jax.random.normal(ks[7], (output_size,), jnp.float32),
    }


# Pure-JAX reference (mirrors the PyTorch module exactly).
def reference_forward(x, params):
    dn = ("NCHW", "OIHW", "NCHW")
    y = lax.conv_general_dilated(x, params["conv1_w"], (1, 1), "SAME",
                                 dimension_numbers=dn)
    y = jax.nn.relu(y + params["conv1_b"][None, :, None, None])
    y = lax.conv_general_dilated(y, params["conv2_w"], (1, 1), "SAME",
                                 dimension_numbers=dn)
    y = jax.nn.relu(y + params["conv2_b"][None, :, None, None])
    flat = y.reshape(y.shape[0], -1)
    h = jax.nn.relu(flat @ params["fc1_w"].T + params["fc1_b"])
    return h @ params["fc2_w"].T + params["fc2_b"]


if __name__ == "__main__":
    input_channels = 4
    output_size = 10
    B = 2                      # 7x7 spatial is required by fc1 (16*7*7 inputs)

    key = jax.random.PRNGKey(0)
    k_x, k_p = jax.random.split(key)
    x = jax.random.normal(k_x, (B, input_channels, _H, _W), jnp.float32)
    params = init_params(input_channels, output_size, k_p)
    packed = pack_params(params, B)

    fwd = jax.jit(basic_cnn2m_forward)
    out = jax.block_until_ready(fwd(x, packed))

    assert out.shape == (B, output_size), out.shape
    assert bool(jnp.all(jnp.isfinite(out)))

    ref = reference_forward(x, params)
    max_err = float(jnp.max(jnp.abs(out - ref)))
    assert max_err < 5e-2, f"max abs error vs reference: {max_err}"

    print("KERNEL_OK")
</pallas_src>

<mosaic_0001>
module attributes {stable_mosaic.version = 11 : i64} {
  func.func @_fused_cnn_kernel(%arg0: memref<112x4xf32, #tpu.memory_space<vmem>>, %arg1: memref<112x9xf32, #tpu.memory_space<vmem>>, %arg2: memref<36x8xbf16, #tpu.memory_space<vmem>>, %arg3: memref<1x8xf32, #tpu.memory_space<vmem>>, %arg4: memref<72x16xbf16, #tpu.memory_space<vmem>>, %arg5: memref<1x16xf32, #tpu.memory_space<vmem>>, %arg6: memref<16x56x32xbf16, #tpu.memory_space<vmem>>, %arg7: memref<1x32xf32, #tpu.memory_space<vmem>>, %arg8: memref<32x10xbf16, #tpu.memory_space<vmem>>, %arg9: memref<1x10xf32, #tpu.memory_space<vmem>>, %arg10: memref<2x10xf32, #tpu.memory_space<vmem>>, %arg11: memref<112x36xf32, #tpu.memory_space<vmem>>, %arg12: memref<112x72xf32, #tpu.memory_space<vmem>>, %arg13: memref<2x32xf32, #tpu.memory_space<vmem>>) attributes {dimension_semantics = [], scalar_prefetch = 0 : i64, scratch_operands = 3 : i64, tpu.core_type = #tpu.core_type<tc>} {
    %c0 = arith.constant 0 : index
    %c0_0 = arith.constant 0 : index
    %0 = vector.load %arg1[%c0, %c0_0] : memref<112x9xf32, #tpu.memory_space<vmem>>, vector<112x9xf32>
    %c0_1 = arith.constant 0 : index
    %c0_2 = arith.constant 0 : index
    %1 = vector.load %arg0[%c0_1, %c0_2] : memref<112x4xf32, #tpu.memory_space<vmem>>, vector<112x4xf32>
    %cst = arith.constant 0.000000e+00 : f32
    %2 = vector.broadcast %cst : f32 to vector<112x36xf32>
    %c0_3 = arith.constant 0 : index
    %c0_4 = arith.constant 0 : index
    %3 = vector.load %arg11[%c0_3, %c0_4] : memref<112x36xf32, #tpu.memory_space<vmem>>, vector<112x36xf32>
    tpu.vector_store %arg11[%c0_3, %c0_4], %2 {strides = array<i32>} : memref<112x36xf32, #tpu.memory_space<vmem>>, vector<112x36xf32>,
    %4 = vector.extract_strided_slice %1 {offsets = [0, 0], sizes = [104, 4], strides = [1, 1]} : vector<112x4xf32> to vector<104x4xf32>
    %5 = vector.extract_strided_slice %0 {offsets = [8, 0], sizes = [104, 1], strides = [1, 1]} : vector<112x9xf32> to vector<104x1xf32>
    %6 = vector.broadcast %5 : vector<104x1xf32> to vector<104x4xf32>
    %7 = arith.mulf %4, %6 : vector<104x4xf32>
    %c8 = arith.constant 8 : index
    %c0_5 = arith.constant 0 : index
    %8 = vector.load %arg11[%c8, %c0_5] : memref<112x36xf32, #tpu.memory_space<vmem>>, vector<104x4xf32>
    tpu.vector_store %arg11[%c8, %c0_5], %7 {strides = array<i32>} : memref<112x36xf32, #tpu.memory_space<vmem>>, vector<104x4xf32>,
    %9 = vector.extract_strided_slice %1 {offsets = [0, 0], sizes = [105, 4], strides = [1, 1]} : vector<112x4xf32> to vector<105x4xf32>
    %10 = vector.extract_strided_slice %0 {offsets = [7, 1], sizes = [105, 1], strides = [1, 1]} : vector<112x9xf32> to vector<105x1xf32>
    %11 = vector.broadcast %10 : vector<105x1xf32> to vector<105x4xf32>
    %12 = arith.mulf %9, %11 : vector<105x4xf32>
    %c7 = arith.constant 7 : index
    %c4 = arith.constant 4 : index
    %13 = vector.load %arg11[%c7, %c4] : memref<112x36xf32, #tpu.memory_space<vmem>>, vector<105x4xf32>
    tpu.vector_store %arg11[%c7, %c4], %12 {strides = array<i32>} : memref<112x36xf32, #tpu.memory_space<vmem>>, vector<105x4xf32>,
    %14 = vector.extract_strided_slice %1 {offsets = [0, 0], sizes = [106, 4], strides = [1, 1]} : vector<112x4xf32> to vector<106x4xf32>
    %15 = vector.extract_strided_slice %0 {offsets = [6, 2], sizes = [106, 1], strides = [1, 1]} : vector<112x9xf32> to vector<106x1xf32>
    %16 = vector.broadcast %15 : vector<106x1xf32> to vector<106x4xf32>
    %17 = arith.mulf %14, %16 : vector<106x4xf32>
    %c6 = arith.constant 6 : index
    %c8_6 = arith.constant 8 : index
    %18 = vector.load %arg11[%c6, %c8_6] : memref<112x36xf32, #tpu.memory_space<vmem>>, vector<106x4xf32>
    tpu.vector_store %arg11[%c6, %c8_6], %17 {strides = array<i32>} : memref<112x36xf32, #tpu.memory_space<vmem>>, vector<106x4xf32>,
    %19 = vector.extract_strided_slice %1 {offsets = [0, 0], sizes = [111, 4], strides = [1, 1]} : vector<112x4xf32> to vector<111x4xf32>
    %20 = vector.extract_strided_slice %0 {offsets = [1, 3], sizes = [111, 1], strides = [1, 1]} : vector<112x9xf32> to vector<111x1xf32>
    %21 = vector.broadcast %20 : vector<111x1xf32> to vector<111x4xf32>
    %22 = arith.mulf %19, %21 : vector<111x4xf32>
    %c1 = arith.constant 1 : index
    %c12 = arith.constant 12 : index
    %23 = vector.load %arg11[%c1, %c12] : memref<112x36xf32, #tpu.memory_space<vmem>>, vector<111x4xf32>
    tpu.vector_store %arg11[%c1, %c12], %22 {strides = array<i32>} : memref<112x36xf32, #tpu.memory_space<vmem>>, vector<111x4xf32>,
    %24 = vector.extract_strided_slice %0 {offsets = [0, 4], sizes = [112, 1], strides = [1, 1]} : vector<112x9xf32> to vector<112x1xf32>
    %25 = vector.broadcast %24 : vector<112x1xf32> to vector<112x4xf32>
    %26 = arith.mulf %1, %25 : vector<112x4xf32>
    %c0_7 = arith.constant 0 : index
    %c16 = arith.constant 16 : index
    %27 = vector.load %arg11[%c0_7, %c16] : memref<112x36xf32, #tpu.memory_space<vmem>>, vector<112x4xf32>
    tpu.vector_store %arg11[%c0_7, %c16], %26 {strides = array<i32>} : memref<112x36xf32, #tpu.memory_space<vmem>>, vector<112x4xf32>,
    %28 = vector.extract_strided_slice %1 {offsets = [1, 0], sizes = [111, 4], strides = [1, 1]} : vector<112x4xf32> to vector<111x4xf32>
    %29 = vector.extract_strided_slice %0 {offsets = [0, 5], sizes = [111, 1], strides = [1, 1]} : vector<112x9xf32> to vector<111x1xf32>
    %30 = vector.broadcast %29 : vector<111x1xf32> to vector<111x4xf32>
    %31 = arith.mulf %28, %30 : vector<111x4xf32>
    %c0_8 = arith.constant 0 : index
    %c20 = arith.constant 20 : index
    %32 = vector.load %arg11[%c0_8, %c20] : memref<112x36xf32, #tpu.memory_space<vmem>>, vector<111x4xf32>
    tpu.vector_store %arg11[%c0_8, %c20], %31 {strides = array<i32>} : memref<112x36xf32, #tpu.memory_space<vmem>>, vector<111x4xf32>,
    %33 = vector.extract_strided_slice %1 {offsets = [6, 0], sizes = [106, 4], strides = [1, 1]} : vector<112x4xf32> to vector<106x4xf32>
    %34 = vector.extract_strided_slice %0 {offsets = [0, 6], sizes = [106, 1], strides = [1, 1]} : vector<112x9xf32> to vector<106x1xf32>
    %35 = vector.broadcast %34 : vector<106x1xf32> to vector<106x4xf32>
    %36 = arith.mulf %33, %35 : vector<106x4xf32>
    %c0_9 = arith.constant 0 : index
    %c24 = arith.constant 24 : index
    %37 = vector.load %arg11[%c0_9, %c24] : memref<112x36xf32, #tpu.memory_space<vmem>>, vector<106x4xf32>
    tpu.vector_store %arg11[%c0_9, %c24], %36 {strides = array<i32>} : memref<112x36xf32, #tpu.memory_space<vmem>>, vector<106x4xf32>,
    %38 = vector.extract_strided_slice %1 {offsets = [7, 0], sizes = [105, 4], strides = [1, 1]} : vector<112x4xf32> to vector<105x4xf32>
    %39 = vector.extract_strided_slice %0 {offsets = [0, 7], sizes = [105, 1], strides = [1, 1]} : vector<112x9xf32> to vector<105x1xf32>
    %40 = vector.broadcast %39 : vector<105x1xf32> to vector<105x4xf32>
    %41 = arith.mulf %38, %40 : vector<105x4xf32>
    %c0_10 = arith.constant 0 : index
    %c28 = arith.constant 28 : index
    %42 = vector.load %arg11[%c0_10, %c28] : memref<112x36xf32, #tpu.memory_space<vmem>>, vector<105x4xf32>
    tpu.vector_store %arg11[%c0_10, %c28], %41 {strides = array<i32>} : memref<112x36xf32, #tpu.memory_space<vmem>>, vector<105x4xf32>,
    %43 = vector.extract_strided_slice %1 {offsets = [8, 0], sizes = [104, 4], strides = [1, 1]} : vector<112x4xf32> to vector<104x4xf32>
    %44 = vector.extract_strided_slice %0 {offsets = [0, 8], sizes = [104, 1], strides = [1, 1]} : vector<112x9xf32> to vector<104x1xf32>
    %45 = vector.broadcast %44 : vector<104x1xf32> to vector<104x4xf32>
    %46 = arith.mulf %43, %45 : vector<104x4xf32>
    %c0_11 = arith.constant 0 : index
    %c32 = arith.constant 32 : index
    %47 = vector.load %arg11[%c0_11, %c32] : memref<112x36xf32, #tpu.memory_space<vmem>>, vector<104x4xf32>
    tpu.vector_store %arg11[%c0_11, %c32], %46 {strides = array<i32>} : memref<112x36xf32, #tpu.memory_space<vmem>>, vector<104x4xf32>,
    %c0_12 = arith.constant 0 : index
    %c0_13 = arith.constant 0 : index
    %48 = vector.load %arg11[%c0_12, %c0_13] : memref<112x36xf32, #tpu.memory_space<vmem>>, vector<112x36xf32>
    %49 = arith.truncf %48 : vector<112x36xf32> to vector<112x36xbf16>
    %c0_14 = arith.constant 0 : index
    %c0_15 = arith.constant 0 : index
    %50 = vector.load %arg2[%c0_14, %c0_15] : memref<36x8xbf16, #tpu.memory_space<vmem>>, vector<36x8xbf16>
    %cst_16 = arith.constant dense<0.000000e+00> : vector<112x8xf32>
    %51 = tpu.matmul %49, %50, %cst_16 {dimension_numbers = #tpu.dot_dimension_numbers<[1], [0], [0], [1], [0, 0, 1, 1], [], []>} : vector<112x36xbf16>, vector<36x8xbf16>, vector<112x8xf32> -> vector<112x8xf32>
    %c0_17 = arith.constant 0 : index
    %c0_18 = arith.constant 0 : index
    %52 = vector.load %arg3[%c0_17, %c0_18] : memref<1x8xf32, #tpu.memory_space<vmem>>, vector<1x8xf32>
    %53 = vector.broadcast %52 : vector<1x8xf32> to vector<112x8xf32>
    %54 = arith.addf %51, %53 : vector<112x8xf32>
    %cst_19 = arith.constant 0.000000e+00 : f32
    %55 = vector.broadcast %cst_19 : f32 to vector<112x8xf32>
    %56 = arith.maximumf %54, %55 : vector<112x8xf32>
    %cst_20 = arith.constant 0.000000e+00 : f32
    %57 = vector.broadcast %cst_20 : f32 to vector<112x72xf32>
    %c0_21 = arith.constant 0 : index
    %c0_22 = arith.constant 0 : index
    %58 = vector.load %arg12[%c0_21, %c0_22] : memref<112x72xf32, #tpu.memory_space<vmem>>, vector<112x72xf32>
    tpu.vector_store %arg12[%c0_21, %c0_22], %57 {strides = array<i32>} : memref<112x72xf32, #tpu.memory_space<vmem>>, vector<112x72xf32>,
    %59 = vector.extract_strided_slice %56 {offsets = [0, 0], sizes = [104, 8], strides = [1, 1]} : vector<112x8xf32> to vector<104x8xf32>
    %60 = vector.extract_strided_slice %0 {offsets = [8, 0], sizes = [104, 1], strides = [1, 1]} : vector<112x9xf32> to vector<104x1xf32>
    %61 = vector.broadcast %60 : vector<104x1xf32> to vector<104x8xf32>
    %62 = arith.mulf %59, %61 : vector<104x8xf32>
    %c8_23 = arith.constant 8 : index
    %c0_24 = arith.constant 0 : index
    %63 = vector.load %arg12[%c8_23, %c0_24] : memref<112x72xf32, #tpu.memory_space<vmem>>, vector<104x8xf32>
    tpu.vector_store %arg12[%c8_23, %c0_24], %62 {strides = array<i32>} : memref<112x72xf32, #tpu.memory_space<vmem>>, vector<104x8xf32>,
    %64 = vector.extract_strided_slice %56 {offsets = [0, 0], sizes = [105, 8], strides = [1, 1]} : vector<112x8xf32> to vector<105x8xf32>
    %65 = vector.extract_strided_slice %0 {offsets = [7, 1], sizes = [105, 1], strides = [1, 1]} : vector<112x9xf32> to vector<105x1xf32>
    %66 = vector.broadcast %65 : vector<105x1xf32> to vector<105x8xf32>
    %67 = arith.mulf %64, %66 : vector<105x8xf32>
    %c7_25 = arith.constant 7 : index
    %c8_26 = arith.constant 8 : index
    %68 = vector.load %arg12[%c7_25, %c8_26] : memref<112x72xf32, #tpu.memory_space<vmem>>, vector<105x8xf32>
    tpu.vector_store %arg12[%c7_25, %c8_26], %67 {strides = array<i32>} : memref<112x72xf32, #tpu.memory_space<vmem>>, vector<105x8xf32>,
    %69 = vector.extract_strided_slice %56 {offsets = [0, 0], sizes = [106, 8], strides = [1, 1]} : vector<112x8xf32> to vector<106x8xf32>
    %70 = vector.extract_strided_slice %0 {offsets = [6, 2], sizes = [106, 1], strides = [1, 1]} : vector<112x9xf32> to vector<106x1xf32>
    %71 = vector.broadcast %70 : vector<106x1xf32> to vector<106x8xf32>
    %72 = arith.mulf %69, %71 : vector<106x8xf32>
    %c6_27 = arith.constant 6 : index
    %c16_28 = arith.constant 16 : index
    %73 = vector.load %arg12[%c6_27, %c16_28] : memref<112x72xf32, #tpu.memory_space<vmem>>, vector<106x8xf32>
    tpu.vector_store %arg12[%c6_27, %c16_28], %72 {strides = array<i32>} : memref<112x72xf32, #tpu.memory_space<vmem>>, vector<106x8xf32>,
    %74 = vector.extract_strided_slice %56 {offsets = [0, 0], sizes = [111, 8], strides = [1, 1]} : vector<112x8xf32> to vector<111x8xf32>
    %75 = vector.extract_strided_slice %0 {offsets = [1, 3], sizes = [111, 1], strides = [1, 1]} : vector<112x9xf32> to vector<111x1xf32>
    %76 = vector.broadcast %75 : vector<111x1xf32> to vector<111x8xf32>
    %77 = arith.mulf %74, %76 : vector<111x8xf32>
    %c1_29 = arith.constant 1 : index
    %c24_30 = arith.constant 24 : index
    %78 = vector.load %arg12[%c1_29, %c24_30] : memref<112x72xf32, #tpu.memory_space<vmem>>, vector<111x8xf32>
    tpu.vector_store %arg12[%c1_29, %c24_30], %77 {strides = array<i32>} : memref<112x72xf32, #tpu.memory_space<vmem>>, vector<111x8xf32>,
    %79 = vector.extract_strided_slice %0 {offsets = [0, 4], sizes = [112, 1], strides = [1, 1]} : vector<112x9xf32> to vector<112x1xf32>
    %80 = vector.broadcast %79 : vector<112x1xf32> to vector<112x8xf32>
    %81 = arith.mulf %56, %80 : vector<112x8xf32>
    %c0_31 = arith.constant 0 : index
    %c32_32 = arith.constant 32 : index
    %82 = vector.load %arg12[%c0_31, %c32_32] : memref<112x72xf32, #tpu.memory_space<vmem>>, vector<112x8xf32>
    tpu.vector_store %arg12[%c0_31, %c32_32], %81 {strides = array<i32>} : memref<112x72xf32, #tpu.memory_space<vmem>>, vector<112x8xf32>,
    %83 = vector.extract_strided_slice %56 {offsets = [1, 0], sizes = [111, 8], strides = [1, 1]} : vector<112x8xf32> to vector<111x8xf32>
    %84 = vector.extract_strided_slice %0 {offsets = [0, 5], sizes = [111, 1], strides = [1, 1]} : vector<112x9xf32> to vector<111x1xf32>
    %85 = vector.broadcast %84 : vector<111x1xf32> to vector<111x8xf32>
    %86 = arith.mulf %83, %85 : vector<111x8xf32>
    %c0_33 = arith.constant 0 : index
    %c40 = arith.constant 40 : index
    %87 = vector.load %arg12[%c0_33, %c40] : memref<112x72xf32, #tpu.memory_space<vmem>>, vector<111x8xf32>
    tpu.vector_store %arg12[%c0_33, %c40], %86 {strides = array<i32>} : memref<112x72xf32, #tpu.memory_space<vmem>>, vector<111x8xf32>,
    %88 = vector.extract_strided_slice %56 {offsets = [6, 0], sizes = [106, 8], strides = [1, 1]} : vector<112x8xf32> to vector<106x8xf32>
    %89 = vector.extract_strided_slice %0 {offsets = [0, 6], sizes = [106, 1], strides = [1, 1]} : vector<112x9xf32> to vector<106x1xf32>
    %90 = vector.broadcast %89 : vector<106x1xf32> to vector<106x8xf32>
    %91 = arith.mulf %88, %90 : vector<106x8xf32>
    %c0_34 = arith.constant 0 : index
    %c48 = arith.constant 48 : index
    %92 = vector.load %arg12[%c0_34, %c48] : memref<112x72xf32, #tpu.memory_space<vmem>>, vector<106x8xf32>
    tpu.vector_store %arg12[%c0_34, %c48], %91 {strides = array<i32>} : memref<112x72xf32, #tpu.memory_space<vmem>>, vector<106x8xf32>,
    %93 = vector.extract_strided_slice %56 {offsets = [7, 0], sizes = [105, 8], strides = [1, 1]} : vector<112x8xf32> to vector<105x8xf32>
    %94 = vector.extract_strided_slice %0 {offsets = [0, 7], sizes = [105, 1], strides = [1, 1]} : vector<112x9xf32> to vector<105x1xf32>
    %95 = vector.broadcast %94 : vector<105x1xf32> to vector<105x8xf32>
    %96 = arith.mulf %93, %95 : vector<105x8xf32>
    %c0_35 = arith.constant 0 : index
    %c56 = arith.constant 56 : index
    %97 = vector.load %arg12[%c0_35, %c56] : memref<112x72xf32, #tpu.memory_space<vmem>>, vector<105x8xf32>
    tpu.vector_store %arg12[%c0_35, %c56], %96 {strides = array<i32>} : memref<112x72xf32, #tpu.memory_space<vmem>>, vector<105x8xf32>,
    %98 = vector.extract_strided_slice %56 {offsets = [8, 0], sizes = [104, 8], strides = [1, 1]} : vector<112x8xf32> to vector<104x8xf32>
    %99 = vector.extract_strided_slice %0 {offsets = [0, 8], sizes = [104, 1], strides = [1, 1]} : vector<112x9xf32> to vector<104x1xf32>
    %100 = vector.broadcast %99 : vector<104x1xf32> to vector<104x8xf32>
    %101 = arith.mulf %98, %100 : vector<104x8xf32>
    %c0_36 = arith.constant 0 : index
    %c64 = arith.constant 64 : index
    %102 = vector.load %arg12[%c0_36, %c64] : memref<112x72xf32, #tpu.memory_space<vmem>>, vector<104x8xf32>
    tpu.vector_store %arg12[%c0_36, %c64], %101 {strides = array<i32>} : memref<112x72xf32, #tpu.memory_space<vmem>>, vector<104x8xf32>,
    %c0_37 = arith.constant 0 : index
    %c0_38 = arith.constant 0 : index
    %103 = vector.load %arg12[%c0_37, %c0_38] : memref<112x72xf32, #tpu.memory_space<vmem>>, vector<112x72xf32>
    %104 = arith.truncf %103 : vector<112x72xf32> to vector<112x72xbf16>
    %c0_39 = arith.constant 0 : index
    %c0_40 = arith.constant 0 : index
    %105 = vector.load %arg4[%c0_39, %c0_40] : memref<72x16xbf16, #tpu.memory_space<vmem>>, vector<72x16xbf16>
    %cst_41 = arith.constant dense<0.000000e+00> : vector<112x16xf32>
    %106 = tpu.matmul %104, %105, %cst_41 {dimension_numbers = #tpu.dot_dimension_numbers<[1], [0], [0], [1], [0, 0, 1, 1], [], []>} : vector<112x72xbf16>, vector<72x16xbf16>, vector<112x16xf32> -> vector<112x16xf32>
    %c0_42 = arith.constant 0 : index
    %c0_43 = arith.constant 0 : index
    %107 = vector.load %arg5[%c0_42, %c0_43] : memref<1x16xf32, #tpu.memory_space<vmem>>, vector<1x16xf32>
    %108 = vector.broadcast %107 : vector<1x16xf32> to vector<112x16xf32>
    %109 = arith.addf %106, %108 : vector<112x16xf32>
    %cst_44 = arith.constant 0.000000e+00 : f32
    %110 = vector.broadcast %cst_44 : f32 to vector<112x16xf32>
    %111 = arith.maximumf %109, %110 : vector<112x16xf32>
    %112 = vector.extract_strided_slice %111 {offsets = [0, 0], sizes = [56, 16], strides = [1, 1]} : vector<112x16xf32> to vector<56x16xf32>
    %113 = vector.extract_strided_slice %111 {offsets = [56, 0], sizes = [56, 16], strides = [1, 1]} : vector<112x16xf32> to vector<56x16xf32>
    %cst_45 = arith.constant 0.000000e+00 : f32
    %114 = vector.broadcast %cst_45 : f32 to vector<56x32xf32>
    %cst_46 = arith.constant 0.000000e+00 : f32
    %115 = vector.broadcast %cst_46 : f32 to vector<56x32xf32>
    %c0_47 = arith.constant 0 : index
    %c0_48 = arith.constant 0 : index
    %c0_49 = arith.constant 0 : index
    %116 = vector.load %arg6[%c0_47, %c0_48, %c0_49] : memref<16x56x32xbf16, #tpu.memory_space<vmem>>, vector<1x56x32xbf16>
    %117 = vector.shape_cast %116 : vector<1x56x32xbf16> to vector<56x32xbf16>
    %118 = arith.extf %117 : vector<56x32xbf16> to vector<56x32xf32>
    %119 = vector.extract_strided_slice %112 {offsets = [0, 0], sizes = [56, 1], strides = [1, 1]} : vector<56x16xf32> to vector<56x1xf32>
    %120 = vector.broadcast %119 : vector<56x1xf32> to vector<56x32xf32>
    %121 = arith.mulf %120, %118 : vector<56x32xf32>
    %122 = arith.addf %114, %121 : vector<56x32xf32>
    %123 = vector.extract_strided_slice %113 {offsets = [0, 0], sizes = [56, 1], strides = [1, 1]} : vector<56x16xf32> to vector<56x1xf32>
    %124 = vector.broadcast %123 : vector<56x1xf32> to vector<56x32xf32>
    %125 = arith.mulf %124, %118 : vector<56x32xf32>
    %126 = arith.addf %115, %125 : vector<56x32xf32>
    %c1_50 = arith.constant 1 : index
    %c0_51 = arith.constant 0 : index
    %c0_52 = arith.constant 0 : index
    %127 = vector.load %arg6[%c1_50, %c0_51, %c0_52] : memref<16x56x32xbf16, #tpu.memory_space<vmem>>, vector<1x56x32xbf16>
    %128 = vector.shape_cast %127 : vector<1x56x32xbf16> to vector<56x32xbf16>
    %129 = arith.extf %128 : vector<56x32xbf16> to vector<56x32xf32>
    %130 = vector.extract_strided_slice %112 {offsets = [0, 1], sizes = [56, 1], strides = [1, 1]} : vector<56x16xf32> to vector<56x1xf32>
    %131 = vector.broadcast %130 : vector<56x1xf32> to vector<56x32xf32>
    %132 = arith.mulf %131, %129 : vector<56x32xf32>
    %133 = arith.addf %122, %132 : vector<56x32xf32>
    %134 = vector.extract_strided_slice %113 {offsets = [0, 1], sizes = [56, 1], strides = [1, 1]} : vector<56x16xf32> to vector<56x1xf32>
    %135 = vector.broadcast %134 : vector<56x1xf32> to vector<56x32xf32>
    %136 = arith.mulf %135, %129 : vector<56x32xf32>
    %137 = arith.addf %126, %136 : vector<56x32xf32>
    %c2 = arith.constant 2 : index
    %c0_53 = arith.constant 0 : index
    %c0_54 = arith.constant 0 : index
    %138 = vector.load %arg6[%c2, %c0_53, %c0_54] : memref<16x56x32xbf16, #tpu.memory_space<vmem>>, vector<1x56x32xbf16>
    %139 = vector.shape_cast %138 : vector<1x56x32xbf16> to vector<56x32xbf16>
    %140 = arith.extf %139 : vector<56x32xbf16> to vector<56x32xf32>
    %141 = vector.extract_strided_slice %112 {offsets = [0, 2], sizes = [56, 1], strides = [1, 1]} : vector<56x16xf32> to vector<56x1xf32>
    %142 = vector.broadcast %141 : vector<56x1xf32> to vector<56x32xf32>
    %143 = arith.mulf %142, %140 : vector<56x32xf32>
    %144 = arith.addf %133, %143 : vector<56x32xf32>
    %145 = vector.extract_strided_slice %113 {offsets = [0, 2], sizes = [56, 1], strides = [1, 1]} : vector<56x16xf32> to vector<56x1xf32>
    %146 = vector.broadcast %145 : vector<56x1xf32> to vector<56x32xf32>
    %147 = arith.mulf %146, %140 : vector<56x32xf32>
    %148 = arith.addf %137, %147 : vector<56x32xf32>
    %c3 = arith.constant 3 : index
    %c0_55 = arith.constant 0 : index
    %c0_56 = arith.constant 0 : index
    %149 = vector.load %arg6[%c3, %c0_55, %c0_56] : memref<16x56x32xbf16, #tpu.memory_space<vmem>>, vector<1x56x32xbf16>
    %150 = vector.shape_cast %149 : vector<1x56x32xbf16> to vector<56x32xbf16>
    %151 = arith.extf %150 : vector<56x32xbf16> to vector<56x32xf32>
    %152 = vector.extract_strided_slice %112 {offsets = [0, 3], sizes = [56, 1], strides = [1, 1]} : vector<56x16xf32> to vector<56x1xf32>
    %153 = vector.broadcast %152 : vector<56x1xf32> to vector<56x32xf32>
    %154 = arith.mulf %153, %151 : vector<56x32xf32>
    %155 = arith.addf %144, %154 : vector<56x32xf32>
    %156 = vector.extract_strided_slice %113 {offsets = [0, 3], sizes = [56, 1], strides = [1, 1]} : vector<56x16xf32> to vector<56x1xf32>
    %157 = vector.broadcast %156 : vector<56x1xf32> to vector<56x32xf32>
    %158 = arith.mulf %157, %151 : vector<56x32xf32>
    %159 = arith.addf %148, %158 : vector<56x32xf32>
    %c4_57 = arith.constant 4 : index
    %c0_58 = arith.constant 0 : index
    %c0_59 = arith.constant 0 : index
    %160 = vector.load %arg6[%c4_57, %c0_58, %c0_59] : memref<16x56x32xbf16, #tpu.memory_space<vmem>>, vector<1x56x32xbf16>
    %161 = vector.shape_cast %160 : vector<1x56x32xbf16> to vector<56x32xbf16>
    %162 = arith.extf %161 : vector<56x32xbf16> to vector<56x32xf32>
    %163 = vector.extract_strided_slice %112 {offsets = [0, 4], sizes = [56, 1], strides = [1, 1]} : vector<56x16xf32> to vector<56x1xf32>
    %164 = vector.broadcast %163 : vector<56x1xf32> to vector<56x32xf32>
    %165 = arith.mulf %164, %162 : vector<56x32xf32>
    %166 = arith.addf %155, %165 : vector<56x32xf32>
    %167 = vector.extract_strided_slice %113 {offsets = [0, 4], sizes = [56, 1], strides = [1, 1]} : vector<56x16xf32> to vector<56x1xf32>
    %168 = vector.broadcast %167 : vector<56x1xf32> to vector<56x32xf32>
    %169 = arith.mulf %168, %162 : vector<56x32xf32>
    %170 = arith.addf %159, %169 : vector<56x32xf32>
    %c5 = arith.constant 5 : index
    %c0_60 = arith.constant 0 : index
    %c0_61 = arith.constant 0 : index
    %171 = vector.load %arg6[%c5, %c0_60, %c0_61] : memref<16x56x32xbf16, #tpu.memory_space<vmem>>, vector<1x56x32xbf16>
    %172 = vector.shape_cast %171 : vector<1x56x32xbf16> to vector<56x32xbf16>
    %173 = arith.extf %172 : vector<56x32xbf16> to vector<56x32xf32>
    %174 = vector.extract_strided_slice %112 {offsets = [0, 5], sizes = [56, 1], strides = [1, 1]} : vector<56x16xf32> to vector<56x1xf32>
    %175 = vector.broadcast %174 : vector<56x1xf32> to vector<56x32xf32>
    %176 = arith.mulf %175, %173 : vector<56x32xf32>
    %177 = arith.addf %166, %176 : vector<56x32xf32>
    %178 = vector.extract_strided_slice %113 {offsets = [0, 5], sizes = [56, 1], strides = [1, 1]} : vector<56x16xf32> to vector<56x1xf32>
    %179 = vector.broadcast %178 : vector<56x1xf32> to vector<56x32xf32>
    %180 = arith.mulf %179, %173 : vector<56x32xf32>
    %181 = arith.addf %170, %180 : vector<56x32xf32>
    %c6_62 = arith.constant 6 : index
    %c0_63 = arith.constant 0 : index
    %c0_64 = arith.constant 0 : index
    %182 = vector.load %arg6[%c6_62, %c0_63, %c0_64] : memref<16x56x32xbf16, #tpu.memory_space<vmem>>, vector<1x56x32xbf16>
    %183 = vector.shape_cast %182 : vector<1x56x32xbf16> to vector<56x32xbf16>
    %184 = arith.extf %183 : vector<56x32xbf16> to vector<56x32xf32>
    %185 = vector.extract_strided_slice %112 {offsets = [0, 6], sizes = [56, 1], strides = [1, 1]} : vector<56x16xf32> to vector<56x1xf32>
    %186 = vector.broadcast %185 : vector<56x1xf32> to vector<56x32xf32>
    %187 = arith.mulf %186, %184 : vector<56x32xf32>
    %188 = arith.addf %177, %187 : vector<56x32xf32>
    %189 = vector.extract_strided_slice %113 {offsets = [0, 6], sizes = [56, 1], strides = [1, 1]} : vector<56x16xf32> to vector<56x1xf32>
    %190 = vector.broadcast %189 : vector<56x1xf32> to vector<56x32xf32>
    %191 = arith.mulf %190, %184 : vector<56x32xf32>
    %192 = arith.addf %181, %191 : vector<56x32xf32>
    %c7_65 = arith.constant 7 : index
    %c0_66 = arith.constant 0 : index
    %c0_67 = arith.constant 0 : index
    %193 = vector.load %arg6[%c7_65, %c0_66, %c0_67] : memref<16x56x32xbf16, #tpu.memory_space<vmem>>, vector<1x56x32xbf16>
    %194 = vector.shape_cast %193 : vector<1x56x32xbf16> to vector<56x32xbf16>
    %195 = arith.extf %194 : vector<56x32xbf16> to vector<56x32xf32>
    %196 = vector.extract_strided_slice %112 {offsets = [0, 7], sizes = [56, 1], strides = [1, 1]} : vector<56x16xf32> to vector<56x1xf32>
    %197 = vector.broadcast %196 : vector<56x1xf32> to vector<56x32xf32>
    %198 = arith.mulf %197, %195 : vector<56x32xf32>
    %199 = arith.addf %188, %198 : vector<56x32xf32>
    %200 = vector.extract_strided_slice %113 {offsets = [0, 7], sizes = [56, 1], strides = [1, 1]} : vector<56x16xf32> to vector<56x1xf32>
    %201 = vector.broadcast %200 : vector<56x1xf32> to vector<56x32xf32>
    %202 = arith.mulf %201, %195 : vector<56x32xf32>
    %203 = arith.addf %192, %202 : vector<56x32xf32>
    %c8_68 = arith.constant 8 : index
    %c0_69 = arith.constant 0 : index
    %c0_70 = arith.constant 0 : index
    %204 = vector.load %arg6[%c8_68, %c0_69, %c0_70] : memref<16x56x32xbf16, #tpu.memory_space<vmem>>, vector<1x56x32xbf16>
    %205 = vector.shape_cast %204 : vector<1x56x32xbf16> to vector<56x32xbf16>
    %206 = arith.extf %205 : vector<56x32xbf16> to vector<56x32xf32>
    %207 = vector.extract_strided_slice %112 {offsets = [0, 8], sizes = [56, 1], strides = [1, 1]} : vector<56x16xf32> to vector<56x1xf32>
    %208 = vector.broadcast %207 : vector<56x1xf32> to vector<56x32xf32>
    %209 = arith.mulf %208, %206 : vector<56x32xf32>
    %210 = arith.addf %199, %209 : vector<56x32xf32>
    %211 = vector.extract_strided_slice %113 {offsets = [0, 8], sizes = [56, 1], strides = [1, 1]} : vector<56x16xf32> to vector<56x1xf32>
    %212 = vector.broadcast %211 : vector<56x1xf32> to vector<56x32xf32>
    %213 = arith.mulf %212, %206 : vector<56x32xf32>
    %214 = arith.addf %203, %213 : vector<56x32xf32>
    %c9 = arith.constant 9 : index
    %c0_71 = arith.constant 0 : index
    %c0_72 = arith.constant 0 : index
    %215 = vector.load %arg6[%c9, %c0_71, %c0_72] : memref<16x56x32xbf16, #tpu.memory_space<vmem>>, vector<1x56x32xbf16>
    %216 = vector.shape_cast %215 : vector<1x56x32xbf16> to vector<56x32xbf16>
    %217 = arith.extf %216 : vector<56x32xbf16> to vector<56x32xf32>
    %218 = vector.extract_strided_slice %112 {offsets = [0, 9], sizes = [56, 1], strides = [1, 1]} : vector<56x16xf32> to vector<56x1xf32>
    %219 = vector.broadcast %218 : vector<56x1xf32> to vector<56x32xf32>
    %220 = arith.mulf %219, %217 : vector<56x32xf32>
    %221 = arith.addf %210, %220 : vector<56x32xf32>
    %222 = vector.extract_strided_slice %113 {offsets = [0, 9], sizes = [56, 1], strides = [1, 1]} : vector<56x16xf32> to vector<56x1xf32>
    %223 = vector.broadcast %222 : vector<56x1xf32> to vector<56x32xf32>
    %224 = arith.mulf %223, %217 : vector<56x32xf32>
    %225 = arith.addf %214, %224 : vector<56x32xf32>
    %c10 = arith.constant 10 : index
    %c0_73 = arith.constant 0 : index
    %c0_74 = arith.constant 0 : index
    %226 = vector.load %arg6[%c10, %c0_73, %c0_74] : memref<16x56x32xbf16, #tpu.memory_space<vmem>>, vector<1x56x32xbf16>
    %227 = vector.shape_cast %226 : vector<1x56x32xbf16> to vector<56x32xbf16>
    %228 = arith.extf %227 : vector<56x32xbf16> to vector<56x32xf32>
    %229 = vector.extract_strided_slice %112 {offsets = [0, 10], sizes = [56, 1], strides = [1, 1]} : vector<56x16xf32> to vector<56x1xf32>
    %230 = vector.broadcast %229 : vector<56x1xf32> to vector<56x32xf32>
    %231 = arith.mulf %230, %228 : vector<56x32xf32>
    %232 = arith.addf %221, %231 : vector<56x32xf32>
    %233 = vector.extract_strided_slice %113 {offsets = [0, 10], sizes = [56, 1], strides = [1, 1]} : vector<56x16xf32> to vector<56x1xf32>
    %234 = vector.broadcast %233 : vector<56x1xf32> to vector<56x32xf32>
    %235 = arith.mulf %234, %228 : vector<56x32xf32>
    %236 = arith.addf %225, %235 : vector<56x32xf32>
    %c11 = arith.constant 11 : index
    %c0_75 = arith.constant 0 : index
    %c0_76 = arith.constant 0 : index
    %237 = vector.load %arg6[%c11, %c0_75, %c0_76] : memref<16x56x32xbf16, #tpu.memory_space<vmem>>, vector<1x56x32xbf16>
    %238 = vector.shape_cast %237 : vector<1x56x32xbf16> to vector<56x32xbf16>
    %239 = arith.extf %238 : vector<56x32xbf16> to vector<56x32xf32>
    %240 = vector.extract_strided_slice %112 {offsets = [0, 11], sizes = [56, 1], strides = [1, 1]} : vector<56x16xf32> to vector<56x1xf32>
    %241 = vector.broadcast %240 : vector<56x1xf32> to vector<56x32xf32>
    %242 = arith.mulf %241, %239 : vector<56x32xf32>
    %243 = arith.addf %232, %242 : vector<56x32xf32>
    %244 = vector.extract_strided_slice %113 {offsets = [0, 11], sizes = [56, 1], strides = [1, 1]} : vector<56x16xf32> to vector<56x1xf32>
    %245 = vector.broadcast %244 : vector<56x1xf32> to vector<56x32xf32>
    %246 = arith.mulf %245, %239 : vector<56x32xf32>
    %247 = arith.addf %236, %246 : vector<56x32xf32>
    %c12_77 = arith.constant 12 : index
    %c0_78 = arith.constant 0 : index
    %c0_79 = arith.constant 0 : index
    %248 = vector.load %arg6[%c12_77, %c0_78, %c0_79] : memref<16x56x32xbf16, #tpu.memory_space<vmem>>, vector<1x56x32xbf16>
    %249 = vector.shape_cast %248 : vector<1x56x32xbf16> to vector<56x32xbf16>
    %250 = arith.extf %249 : vector<56x32xbf16> to vector<56x32xf32>
    %251 = vector.extract_strided_slice %112 {offsets = [0, 12], sizes = [56, 1], strides = [1, 1]} : vector<56x16xf32> to vector<56x1xf32>
    %252 = vector.broadcast %251 : vector<56x1xf32> to vector<56x32xf32>
    %253 = arith.mulf %252, %250 : vector<56x32xf32>
    %254 = arith.addf %243, %253 : vector<56x32xf32>
    %255 = vector.extract_strided_slice %113 {offsets = [0, 12], sizes = [56, 1], strides = [1, 1]} : vector<56x16xf32> to vector<56x1xf32>
    %256 = vector.broadcast %255 : vector<56x1xf32> to vector<56x32xf32>
    %257 = arith.mulf %256, %250 : vector<56x32xf32>
    %258 = arith.addf %247, %257 : vector<56x32xf32>
    %c13 = arith.constant 13 : index
    %c0_80 = arith.constant 0 : index
    %c0_81 = arith.constant 0 : index
    %259 = vector.load %arg6[%c13, %c0_80, %c0_81] : memref<16x56x32xbf16, #tpu.memory_space<vmem>>, vector<1x56x32xbf16>
    %260 = vector.shape_cast %259 : vector<1x56x32xbf16> to vector<56x32xbf16>
    %261 = arith.extf %260 : vector<56x32xbf16> to vector<56x32xf32>
    %262 = vector.extract_strided_slice %112 {offsets = [0, 13], sizes = [56, 1], strides = [1, 1]} : vector<56x16xf32> to vector<56x1xf32>
    %263 = vector.broadcast %262 : vector<56x1xf32> to vector<56x32xf32>
    %264 = arith.mulf %263, %261 : vector<56x32xf32>
    %265 = arith.addf %254, %264 : vector<56x32xf32>
    %266 = vector.extract_strided_slice %113 {offsets = [0, 13], sizes = [56, 1], strides = [1, 1]} : vector<56x16xf32> to vector<56x1xf32>
    %267 = vector.broadcast %266 : vector<56x1xf32> to vector<56x32xf32>
    %268 = arith.mulf %267, %261 : vector<56x32xf32>
    %269 = arith.addf %258, %268 : vector<56x32xf32>
    %c14 = arith.constant 14 : index
    %c0_82 = arith.constant 0 : index
    %c0_83 = arith.constant 0 : index
    %270 = vector.load %arg6[%c14, %c0_82, %c0_83] : memref<16x56x32xbf16, #tpu.memory_space<vmem>>, vector<1x56x32xbf16>
    %271 = vector.shape_cast %270 : vector<1x56x32xbf16> to vector<56x32xbf16>
    %272 = arith.extf %271 : vector<56x32xbf16> to vector<56x32xf32>
    %273 = vector.extract_strided_slice %112 {offsets = [0, 14], sizes = [56, 1], strides = [1, 1]} : vector<56x16xf32> to vector<56x1xf32>
    %274 = vector.broadcast %273 : vector<56x1xf32> to vector<56x32xf32>
    %275 = arith.mulf %274, %272 : vector<56x32xf32>
    %276 = arith.addf %265, %275 : vector<56x32xf32>
    %277 = vector.extract_strided_slice %113 {offsets = [0, 14], sizes = [56, 1], strides = [1, 1]} : vector<56x16xf32> to vector<56x1xf32>
    %278 = vector.broadcast %277 : vector<56x1xf32> to vector<56x32xf32>
    %279 = arith.mulf %278, %272 : vector<56x32xf32>
    %280 = arith.addf %269, %279 : vector<56x32xf32>
    %c15 = arith.constant 15 : index
    %c0_84 = arith.constant 0 : index
    %c0_85 = arith.constant 0 : index
    %281 = vector.load %arg6[%c15, %c0_84, %c0_85] : memref<16x56x32xbf16, #tpu.memory_space<vmem>>, vector<1x56x32xbf16>
    %282 = vector.shape_cast %281 : vector<1x56x32xbf16> to vector<56x32xbf16>
    %283 = arith.extf %282 : vector<56x32xbf16> to vector<56x32xf32>
    %284 = vector.extract_strided_slice %112 {offsets = [0, 15], sizes = [56, 1], strides = [1, 1]} : vector<56x16xf32> to vector<56x1xf32>
    %285 = vector.broadcast %284 : vector<56x1xf32> to vector<56x32xf32>
    %286 = arith.mulf %285, %283 : vector<56x32xf32>
    %287 = arith.addf %276, %286 : vector<56x32xf32>
    %288 = vector.extract_strided_slice %113 {offsets = [0, 15], sizes = [56, 1], strides = [1, 1]} : vector<56x16xf32> to vector<56x1xf32>
    %289 = vector.broadcast %288 : vector<56x1xf32> to vector<56x32xf32>
    %290 = arith.mulf %289, %283 : vector<56x32xf32>
    %291 = arith.addf %280, %290 : vector<56x32xf32>
    %cst_86 = arith.constant dense<0.000000e+00> : vector<32xf32>
    %292 = vector.multi_reduction <add>, %287, %cst_86 [0] : vector<56x32xf32> to vector<32xf32>
    %293 = vector.shape_cast %292 : vector<32xf32> to vector<1x32xf32>
    %c0_87 = arith.constant 0 : index
    %c0_88 = arith.constant 0 : index
    %294 = vector.load %arg7[%c0_87, %c0_88] : memref<1x32xf32, #tpu.memory_space<vmem>>, vector<1x32xf32>
    %295 = arith.addf %293, %294 : vector<1x32xf32>
    %cst_89 = arith.constant 0.000000e+00 : f32
    %296 = vector.broadcast %cst_89 : f32 to vector<1x32xf32>
    %297 = arith.maximumf %295, %296 : vector<1x32xf32>
    %c0_90 = arith.constant 0 : index
    %c0_91 = arith.constant 0 : index
    %298 = vector.load %arg13[%c0_90, %c0_91] : memref<2x32xf32, #tpu.memory_space<vmem>>, vector<1x32xf32>
    tpu.vector_store %arg13[%c0_90, %c0_91], %297 {strides = array<i32>} : memref<2x32xf32, #tpu.memory_space<vmem>>, vector<1x32xf32>,
    %cst_92 = arith.constant dense<0.000000e+00> : vector<32xf32>
    %299 = vector.multi_reduction <add>, %291, %cst_92 [0] : vector<56x32xf32> to vector<32xf32>
    %300 = vector.shape_cast %299 : vector<32xf32> to vector<1x32xf32>
    %c0_93 = arith.constant 0 : index
    %c0_94 = arith.constant 0 : index
    %301 = vector.load %arg7[%c0_93, %c0_94] : memref<1x32xf32, #tpu.memory_space<vmem>>, vector<1x32xf32>
    %302 = arith.addf %300, %301 : vector<1x32xf32>
    %cst_95 = arith.constant 0.000000e+00 : f32
    %303 = vector.broadcast %cst_95 : f32 to vector<1x32xf32>
    %304 = arith.maximumf %302, %303 : vector<1x32xf32>
    %c1_96 = arith.constant 1 : index
    %c0_97 = arith.constant 0 : index
    %305 = vector.load %arg13[%c1_96, %c0_97] : memref<2x32xf32, #tpu.memory_space<vmem>>, vector<1x32xf32>
    tpu.vector_store %arg13[%c1_96, %c0_97], %304 {strides = array<i32>} : memref<2x32xf32, #tpu.memory_space<vmem>>, vector<1x32xf32>,
    %c0_98 = arith.constant 0 : index
    %c0_99 = arith.constant 0 : index
    %306 = vector.load %arg13[%c0_98, %c0_99] : memref<2x32xf32, #tpu.memory_space<vmem>>, vector<2x32xf32>
    %307 = arith.truncf %306 : vector<2x32xf32> to vector<2x32xbf16>
    %c0_100 = arith.constant 0 : index
    %c0_101 = arith.constant 0 : index
    %308 = vector.load %arg8[%c0_100, %c0_101] : memref<32x10xbf16, #tpu.memory_space<vmem>>, vector<32x10xbf16>
    %cst_102 = arith.constant dense<0.000000e+00> : vector<2x10xf32>
    %309 = tpu.matmul %307, %308, %cst_102 {dimension_numbers = #tpu.dot_dimension_numbers<[1], [0], [0], [1], [0, 0, 1, 1], [], []>} : vector<2x32xbf16>, vector<32x10xbf16>, vector<2x10xf32> -> vector<2x10xf32>
    %c0_103 = arith.constant 0 : index
    %c0_104 = arith.constant 0 : index
    %310 = vector.load %arg9[%c0_103, %c0_104] : memref<1x10xf32, #tpu.memory_space<vmem>>, vector<1x10xf32>
    %311 = vector.broadcast %310 : vector<1x10xf32> to vector<2x10xf32>
    %312 = arith.addf %309, %311 : vector<2x10xf32>
    %c0_105 = arith.constant 0 : index
    %c0_106 = arith.constant 0 : index
    %313 = vector.load %arg10[%c0_105, %c0_106] : memref<2x10xf32, #tpu.memory_space<vmem>>, vector<2x10xf32>
    tpu.vector_store %arg10[%c0_105, %c0_106], %312 {strides = array<i32>} : memref<2x10xf32, #tpu.memory_space<vmem>>, vector<2x10xf32>,
    return
  }
}

</mosaic_0001>

<bundles_post_ra>
// kernel: basic_cnn2m_forward.1
= control target key start
LH: loop header
LB: loop body
LE: loop exit
PB: predicated region body
PF: predicated region fallthrough
CT: control target
= control target key end

     0   :  { %v9098_v1 = vmov 0   ;;  %v9096_v2 = vmov 1   ;;  %vm65_vm0 = vcmask 293888   ;;  %v9094_v5 = vmov 0.0   ;;  %s9079_s0 = inlined_call_operand.vmem [shape: f32[112,4], index: 0, kind: input, shape index: {}]   ;;  %s9080_s1 = inlined_call_operand.vmem [shape: f32[112,9], index: 1, kind: input, shape index: {}]   ;;  %s9081_s2 = inlined_call_operand.vmem [shape: bf16[36,8], index: 2, kind: input, shape index: {}]   ;;  %s9082_s3 = inlined_call_operand.vmem [shape: f32[1,8], index: 3, kind: input, shape index: {}]   ;;  %s9083_s4 = inlined_call_operand.vmem [shape: bf16[72,16], index: 4, kind: input, shape index: {}]   ;;  %s9084_s5 = inlined_call_operand.vmem [shape: f32[1,16], index: 5, kind: input, shape index: {}]   ;;  %s9085_s6 = inlined_call_operand.vmem [shape: bf16[16,56,32], index: 6, kind: input, shape index: {}]   ;;  %s9086_s7 = inlined_call_operand.vmem [shape: f32[1,32], index: 7, kind: input, shape index: {}]   ;;  %s9087_s8 = inlined_call_operand.vmem [shape: bf16[32,10], index: 8, kind: input, shape index: {}]   ;;  %s9088_s9 = inlined_call_operand.vmem [shape: f32[1,10], index: 9, kind: input, shape index: {}]   ;;  %s9089_s10 = inlined_call_operand.hbm [shape: f32[2,10], index: 10, kind: output, shape index: {}]  }
   0x1   :  { %v5090_v0 = vld [vmem:[%s9080_s1 + $0x18] sm:$0xff]  ;;  %4789 = vset.pattern.permute.xlu1 %v9098_v1  ;;  %4791 = vset.pattern.permute.xlu0 %v9096_v2  ;;  %v5098_v3 = vld [vmem:[%s9080_s1 + $0x8] sm:$0xff]  ;;  %v5103_v4 = vld [vmem:[%s9080_s1 + $0x20] sm:$0xff]  ;;  %72 = vst.msk [vmem:[#allocation2 + $0x30] sm:$0xff] %vm65_vm0, %v9094_v5 }
   0x2   :  { %92 = vperm.xlu1 %4789, %v5090_v0   ;;  %177 = vperm.xlu0 %4791, %v5098_v3   ;;  %66 = vst.msk [vmem:[#allocation2] sm:$0xff] %vm65_vm0, %v9094_v5  ;;  %67 = vst.msk [vmem:[#allocation2 + $0x8] sm:$0xff] %vm65_vm0, %v9094_v5  ;;  %v5140_v6 = vld [vmem:[%s9080_s1 + $0x30] sm:$0xff]  ;;  %v5146_v7 = vld [vmem:[%s9080_s1 + $0x40] sm:$0xff] }
   0x3   :  { %68 = vst.msk [vmem:[#allocation2 + $0x10] sm:$0xff] %vm65_vm0, %v9094_v5  ;;  %69 = vst.msk [vmem:[#allocation2 + $0x18] sm:$0xff] %vm65_vm0, %v9094_v5  ;;  %4678 = vmatprep.subr.bf16.mxu0 %v9094_v5  ;;  %4712 = vmatprep.subr.bf16.mxu1 %v9094_v5 }
   0x4   :  { %70 = vst.msk [vmem:[#allocation2 + $0x20] sm:$0xff] %vm65_vm0, %v9094_v5  ;;  %71 = vst.msk [vmem:[#allocation2 + $0x28] sm:$0xff] %vm65_vm0, %v9094_v5 }
   0x5   :  { %73 = vst.msk [vmem:[#allocation2 + $0x38] sm:$0xff] %vm65_vm0, %v9094_v5  ;;  %74 = vst.msk [vmem:[#allocation2 + $0x40] sm:$0xff] %vm65_vm0, %v9094_v5 }
   0x6   :  { %75 = vst.msk [vmem:[#allocation2 + $0x48] sm:$0xff] %vm65_vm0, %v9094_v5  ;;  %76 = vst.msk [vmem:[#allocation2 + $0x50] sm:$0xff] %vm65_vm0, %v9094_v5  ;;  %97 = vperm.xlu1 %4789, %v5103_v4   ;;  %186 = vperm.xlu0 %4791, %v5103_v4  }
   0x7   :  { %77 = vst.msk [vmem:[#allocation2 + $0x58] sm:$0xff] %vm65_vm0, %v9094_v5  ;;  %78 = vst.msk [vmem:[#allocation2 + $0x60] sm:$0xff] %vm65_vm0, %v9094_v5 }
   0x8   :  { %79 = vst.msk [vmem:[#allocation2 + $0x68] sm:$0xff] %vm65_vm0, %v9094_v5 }
   0xa   :  { %107 = vperm.xlu1 %4789, %v5140_v6   ;;  %192 = vperm.xlu0 %4791, %v5140_v6  }
   0xb   :  { %15 = vsyncpa [#allocation6], 0  ;;  %v5154_v8 = vld [vmem:[%s9080_s1 + $0x50] sm:$0xff]  ;;  %v5161_v9 = vld [vmem:[%s9080_s1 + $0x60] sm:$0xff]  ;;  %v9090_v11 = vmov 2   ;;  %v9092_v18 = vmov 3  }
   0xc   :  { %v5169_v10 = vld [vmem:[%s9080_s1] sm:$0xff]  ;;  %v5177_v12 = vld [vmem:[%s9080_s1 + $0x10] sm:$0xff]  ;;  %v5186_v13 = vld [vmem:[%s9080_s1 + $0x28] sm:$0xff]  ;;  %vm158_vm1 = vcmask 31744   ;;  %vm215_vm2 = vcmask 1040384   ;;  %s5006_s15 = smov 4  }
   0xd   :  { %v5193_v14 = vld [vmem:[%s9080_s1 + $0x38] sm:$0xff]  ;;  %v5200_v15 = vld [vmem:[%s9080_s1 + $0x48] sm:$0xff]  ;;  %v5231_v19 = vld [vmem:[%s9079_s0 + $0x10] sm:$0xff]  ;;  %vm385_vm3 = vcmask 1041408   ;;  %s5007_s30 = smov 8   ;;  %vm327_vm4 = vcmask 64544  }
   0xe   :  { %117 = vperm.xlu1 %4789, %v5146_v7   ;;  %198 = vperm.xlu0 %4791, %v5146_v7   ;;  %v5207_v16 = vld [vmem:[%s9080_s1 + $0x58] sm:$0xff]  ;;  %v5214_v17 = vld [vmem:[%s9080_s1 + $0x68] sm:$0xff]  ;;  %v5298_v43 = vld [vmem:[%s9079_s0] sm:$0xff]  ;;  %vm555_vm5 = vcmask 1046528   ;;  %s5009_s11 = smov 12   ;;  %s5011_s12 = smov 16  }
   0xf   :  { %v5240_v22 = vld [vmem:[%s9079_s0 + $0x18] sm:$0xff]  ;;  %v5250_v25 = vld [vmem:[%s9079_s0 + $0x28] sm:$0xff]  ;;  %v5319_v57 = vld [vmem:[%s9079_s0 + $0x20] sm:$0xff]  ;;  %s5013_s13 = smov 20   ;;  %vm1035_vm6 = vcmask 1045504   ;;  %s5015_s28 = smov 24  }
  0x10   :  { %v5260_v28 = vld [vmem:[%s9079_s0 + $0x38] sm:$0xff]  ;;  %v5270_v31 = vld [vmem:[%s9079_s0 + $0x48] sm:$0xff]  ;;  %v5334_v63 = vld [vmem:[%s9079_s0 + $0x30] sm:$0xff]  ;;  %s5017_s23 = smov 28   ;;  %vm5019_vm7 = vmmov 0   ;;  %vm497_vm8 = vcmask 97344  }
  0x11   :  { %v5282_v35 = vld [vmem:[%s9079_s0 + $0x58] sm:$0xff]  ;;  %vm667_vm9 = vcmask 130144   ;;  %vm809_vm10 = vcmask 162944   ;;  %vm977_vm11 = vcmask 195745   ;;  %vm1147_vm12 = vcmask 228550   ;;  %s5023_s17 = smov 64  }
  0x12   :  { %127 = vperm.xlu1 %4789, %v5154_v8   ;;  %204 = vperm.xlu0 %4791, %v5154_v8   ;;  %vm1316_vm13 = vcmask 261351   ;;  %vm979_vm14 = vcmask 195744   ;;  %vm1149_vm15 = vcmask 228544   ;;  %s5031_s27 = smov [#allocation5]  }
  0x13   :  { %s4273_s29 = sshll.u32 %s5031_s27, 4  ;;  %s4274_s29 = int_to_ptr.vmem [resolvable:$true] %s4273_s29 }
  0x14   :  { %p4982_p1 = scmp.lt.s32.totalorder %s4274_s29, %s4274_s29 }
  0x16   :  { %137 = vperm.xlu1 %4789, %v5161_v9   ;;  %210 = vperm.xlu0 %4791, %v5161_v9  }
  0x1a   :  { %4790 = vset.pattern.permute.xlu1 %v9096_v2  ;;  %4792 = vset.pattern.permute.xlu0 %v9090_v11 }
  0x1b   :  { %174 = vperm.xlu1 %4790, %v5169_v10   ;;  %344 = vperm.xlu0 %4792, %v5169_v10  }
  0x1f   :  { %180 = vperm.xlu1 %4790, %v5177_v12   ;;  %353 = vperm.xlu0 %4792, %v5090_v0  }
  0x23   :  { %183 = vperm.xlu1 %4790, %v5090_v0   ;;  %359 = vperm.xlu0 %4792, %v5186_v13  }
  0x27   :  { %189 = vperm.xlu1 %4790, %v5186_v13   ;;  %365 = vperm.xlu0 %4792, %v5193_v14  }
  0x2b   :  { %195 = vperm.xlu1 %4790, %v5193_v14   ;;  %371 = vperm.xlu0 %4792, %v5200_v15  }
  0x2f   :  { %201 = vperm.xlu1 %4790, %v5200_v15   ;;  %377 = vperm.xlu0 %4792, %v5207_v16  }
  0x33   :  { %207 = vperm.xlu1 %4790, %v5207_v16   ;;  %383 = vperm.xlu0 %4792, %v5214_v17  }
  0x37   :  { %213 = vperm.xlu1 %4790, %v5214_v17   ;;  %4795 = vset.pattern.permute.xlu0 %v9092_v18 }
  0x3b   :  { %4793 = vset.pattern.permute.xlu1 %v9090_v11 }
  0x3c   :  { %347 = vperm.xlu1 %4793, %v5098_v3  }
  0x40   :  { %350 = vperm.xlu1 %4793, %v5177_v12  }
  0x44   :  { %356 = vperm.xlu1 %4793, %v5103_v4  }
  0x48   :  { %362 = vperm.xlu1 %4793, %v5140_v6  }
  0x4c   :  { %368 = vperm.xlu1 %4793, %v5146_v7  }
  0x50   :  { %374 = vperm.xlu1 %4793, %v5154_v8  }
  0x54   :  { %380 = vperm.xlu1 %4793, %v5161_v9  }
  0x58   :  { %4794 = vset.pattern.permute.xlu1 %v9092_v18 }
  0x81   :  { %v5233_v20 = vpop.permute.xlu1 %92  ;;  %v5273_v32 = vpop.permute.xlu0 %177 }
  0x82   :  { %9302 = vst [vmem:[#allocation8_spill] sm:$0xff] %v5233_v20  ;;  %v147_v21 = vmul.f32 %v5233_v20, %v5231_v19  ;;  %v217_v39 = vrot.slane %v5273_v32, 7 }
  0x84   :  { %161 = vst.msk [vmem:[#allocation2 + $0x18] sm:$0xff] %vm158_vm1, %v147_v21 }
  0x85   :  { %v5243_v23 = vpop.permute.xlu1 %97  ;;  %v5285_v36 = vpop.permute.xlu0 %186 }
  0x86   :  { %9303 = vst [vmem:[#allocation9_spill] sm:$0xff] %v5243_v23  ;;  %v148_v24 = vmul.f32 %v5243_v23, %v5240_v22  ;;  %v223_v55 = vrot.slane %v5285_v36, 7  ;;  %v5351_v36 = vld [vmem:[%s9079_s0 + $0x40] sm:$0xff] }
  0x88   :  { %162 = vst.msk [vmem:[#allocation2 + $0x20] sm:$0xff] %vm158_vm1, %v148_v24 }
  0x89   :  { %v5253_v26 = vpop.permute.xlu1 %107  ;;  %v5293_v41 = vpop.permute.xlu0 %192 }
  0x8a   :  { %9304 = vst [vmem:[#allocation10_spill] sm:$0xff] %v5253_v26  ;;  %v150_v27 = vmul.f32 %v5253_v26, %v5250_v25  ;;  %v227_v61 = vrot.slane %v5293_v41, 7 }
  0x8c   :  { %164 = vst.msk [vmem:[#allocation2 + $0x30] sm:$0xff] %vm158_vm1, %v150_v27 }
  0x8d   :  { %v5263_v29 = vpop.permute.xlu1 %117  ;;  %v5306_v47 = vpop.permute.xlu0 %198 }
  0x8e   :  { %9305 = vst [vmem:[#allocation11_spill] sm:$0xff] %v5263_v29  ;;  %v152_v30 = vmul.f32 %v5263_v29, %v5260_v28  ;;  %v231_v32 = vrot.slane %v5306_v47, 7  ;;  %v5368_v47 = vld [vmem:[%s9079_s0 + $0x50] sm:$0xff] }
  0x90   :  { %166 = vst.msk [vmem:[#allocation2 + $0x40] sm:$0xff] %vm158_vm1, %v152_v30 }
  0x91   :  { %v5275_v33 = vpop.permute.xlu1 %127  ;;  %v5313_v54 = vpop.permute.xlu0 %204 }
  0x92   :  { %9306 = vst [vmem:[#allocation12_spill] sm:$0xff] %v5275_v33  ;;  %v154_v34 = vmul.f32 %v5275_v33, %v5270_v31 }
  0x94   :  { %168 = vst.msk [vmem:[#allocation2 + $0x50] sm:$0xff] %vm158_vm1, %v154_v34 }
  0x95   :  { %v5287_v37 = vpop.permute.xlu1 %137  ;;  %v5337_v21 = vpop.permute.xlu0 %210 }
  0x96   :  { %9307 = vst [vmem:[#allocation13_spill] sm:$0xff] %v5287_v37  ;;  %v156_v38 = vmul.f32 %v5287_v37, %v5282_v35 }
  0x98   :  { %170 = vst.msk [vmem:[#allocation2 + $0x60] sm:$0xff] %vm158_vm1, %v156_v38 }
  0x9a   :  { %v175_v40 = vpop.permute.xlu1 %174  ;;  %v5354_v38 = vpop.permute.xlu0 %344 }
  0x9b   :  { %v216_v42 = vrot.slane %v175_v40, 7 }
  0x9d   :  { %v5301_v44 = vsel %vm215_vm2, %v216_v42, %v217_v39 }
  0x9e   :  { %9308 = vst [vmem:[#allocation14_spill] sm:$0xff] %v5301_v44  ;;  %v181_v45 = vpop.permute.xlu1 %180  ;;  %v257_v46 = vmul.f32 %v5301_v44, %v5298_v43 }
  0x9f   :  { %v219_v49 = vrot.slane %v181_v45, 7  ;;  %v235_v45 = vrot.slane %v5313_v54, 7  ;;  %v5381_v54 = vld [vmem:[%s9079_s0 + $0x68] sm:$0xff] }
  0xa0   :  { %285 = vrot.lane.b32.xlu0 %v257_v46, %s5006_s15 }
  0xa2   :  { %v184_v48 = vpop.permute.xlu1 %183 }
  0xa3   :  { %v221_v50 = vrot.slane %v184_v48, 7 }
  0xa5   :  { %v5309_v51 = vsel %vm215_vm2, %v219_v49, %v221_v50 }
  0xa6   :  { %9309 = vst [vmem:[#allocation15_spill] sm:$0xff] %v5309_v51  ;;  %v190_v52 = vpop.permute.xlu1 %189  ;;  %v259_v53 = vmul.f32 %v5309_v51, %v5231_v19 }
  0xa7   :  { %v225_v56 = vrot.slane %v190_v52, 7 }
  0xa8   :  { %289 = vrot.lane.b32.xlu0 %v259_v53, %s5006_s15 }
  0xa9   :  { %v5323_v58 = vsel %vm215_vm2, %v223_v55, %v225_v56 }
  0xaa   :  { %9310 = vst [vmem:[#allocation16_spill] sm:$0xff] %v5323_v58  ;;  %v5325_v59 = vpop.permute.xlu1 %195  ;;  %v261_v60 = vmul.f32 %v5323_v58, %v5319_v57 }
  0xab   :  { %v229_v62 = vrot.slane %v5325_v59, 7  ;;  %v5383_v59 = vpop.permute.xlu0 %353 }
  0xac   :  { %293 = vrot.lane.b32.xlu0 %v261_v60, %s5006_s15  ;;  %v239_v60 = vrot.slane %v5337_v21, 7  ;;  %v5405_v21 = vld [vmem:[%s9079_s0 + $0x8] sm:$0xff] }
  0xad   :  { %v5340_v24 = vsel %vm215_vm2, %v227_v61, %v229_v62 }
  0xae   :  { %9311 = vst [vmem:[#allocation17_spill] sm:$0xff] %v5340_v24  ;;  %v5342_v27 = vpop.permute.xlu1 %201  ;;  %v263_v30 = vmul.f32 %v5340_v24, %v5334_v63 }
  0xaf   :  { %v233_v34 = vrot.slane %v5342_v27, 7  ;;  %v5412_v5 = vpop.permute.xlu0 %359 }
  0xb0   :  { %297 = vrot.lane.b32.xlu0 %v263_v30, %s5006_s15  ;;  %v5391_v30 = vld [vmem:[%s9079_s0 + $0x60] sm:$0xff] }
  0xb1   :  { %v5357_v40 = vsel %vm215_vm2, %v231_v32, %v233_v34 }
  0xb2   :  { %9312 = vst [vmem:[#allocation18_spill] sm:$0xff] %v5357_v40  ;;  %v5359_v41 = vpop.permute.xlu1 %207  ;;  %v265_v42 = vmul.f32 %v5357_v40, %v5351_v36 }
  0xb3   :  { %v9100_v46 = vrot.slane %v5359_v41, 7 }
  0xb4   :  { %301 = vrot.lane.b32.xlu0 %v265_v42, %s5006_s15 }
  0xb5   :  { %v5374_v48 = vsel %vm215_vm2, %v235_v45, %v9100_v46  ;;  %v5417_v46 = vsel %vm215_vm2, %v221_v50, %v223_v55 }
  0xb6   :  { %9313 = vst [vmem:[#allocation19_spill] sm:$0xff] %v5374_v48  ;;  %v214_v52 = vpop.permute.xlu1 %213  ;;  %v267_v53 = vmul.f32 %v5374_v48, %v5368_v47  ;;  %9317 = vst [vmem:[#allocation23_spill] sm:$0xff] %v5417_v46 }
  0xb7   :  { %v5386_v27 = vrot.slane %v214_v52, 7  ;;  %v5408_v52 = vsel %vm215_vm2, %v217_v39, %v219_v49  ;;  %v260_v49 = vmul.f32 %v5417_v46, %v5240_v22 }
  0xb8   :  { %305 = vrot.lane.b32.xlu0 %v267_v53, %s5006_s15  ;;  %9316 = vst [vmem:[#allocation22_spill] sm:$0xff] %v5408_v52  ;;  %v258_v2 = vmul.f32 %v5408_v52, %v5405_v21 }
  0xb9   :  { %9314 = vst [vmem:[#allocation20_spill] sm:$0xff] %v5386_v27  ;;  %v270_v42 = vmul.f32 %v5386_v27, %v5381_v54  ;;  %v5398_v11 = vsel %vm215_vm2, %v239_v60, %v5386_v27 }
  0xba   :  { %9315 = vst [vmem:[#allocation21_spill] sm:$0xff] %v5398_v11  ;;  %v269_v18 = vmul.f32 %v5398_v11, %v5391_v30 }
  0xbb   :  { %311 = vrot.lane.b32.xlu1 %v270_v42, %s5006_s15  ;;  %v348_v53 = vpop.permute.xlu1 %347  ;;  %v391_v42 = vrot.slane %v5383_v59, 6 }
  0xbc   :  { %309 = vrot.lane.b32.xlu0 %v269_v18, %s5006_s15  ;;  %v387_v1 = vrot.slane %v348_v53, 6  ;;  %v5423_v18 = vpop.permute.xlu0 %365  ;;  %v5429_v53 = vsel %vm215_vm2, %v225_v56, %v227_v61  ;;  %v5442_v56 = vsel %vm215_vm2, %v229_v62, %v231_v32  ;;  %v5455_v62 = vsel %vm215_vm2, %v233_v34, %v235_v45 }
  0xbd   :  { %9319 = vst [vmem:[#allocation25_spill] sm:$0xff] %v5429_v53  ;;  %v262_v59 = vmul.f32 %v5429_v53, %v5250_v25  ;;  %9321 = vst [vmem:[#allocation27_spill] sm:$0xff] %v5442_v56  ;;  %v9325_v34 = vrot.slane %v5359_v41, 7 }
  0xbe   :  { %9323 = vst [vmem:[#allocation29_spill] sm:$0xff] %v5455_v62 }
  0xbf   :  { %287 = vrot.lane.b32.xlu1 %v258_v2, %s5006_s15  ;;  %v351_v27 = vpop.permute.xlu1 %350  ;;  %v5470_v45 = vsel %vm215_vm2, %v9325_v34, %v239_v60 }
  0xc0   :  { %v389_v39 = vrot.slane %v351_v27, 6  ;;  %v395_v27 = vrot.slane %v5412_v5, 6  ;;  %v372_v48 = vpop.permute.xlu0 %371  ;;  %v399_v5 = vrot.slane %v5423_v18, 6  ;;  %v266_v18 = vmul.f32 %v5455_v62, %v5270_v31  ;;  %9326 = vst [vmem:[#allocation31_spill] sm:$0xff] %v5470_v45 }
  0xc1   :  { %v403_v40 = vrot.slane %v372_v48, 6  ;;  %v268_v48 = vmul.f32 %v5470_v45, %v5282_v35 }
  0xc2   :  { %v5426_v11 = vsel %vm385_vm3, %v387_v1, %v389_v39  ;;  %v5494_v45 = vsel %vm385_vm3, %v389_v39, %v391_v42 }
  0xc3   :  { %9318 = vst [vmem:[#allocation24_spill] sm:$0xff] %v5426_v11  ;;  %291 = vrot.lane.b32.xlu1 %v260_v49, %s5006_s15  ;;  %v357_v50 = vpop.permute.xlu1 %356  ;;  %v428_v2 = vmul.f32 %v5426_v11, %v5405_v21  ;;  %9330 = vst [vmem:[#allocation35_spill] sm:$0xff] %v5494_v45 }
  0xc4   :  { %v393_v55 = vrot.slane %v357_v50, 6  ;;  %v378_v29 = vpop.permute.xlu0 %377 }
  0xc5   :  { %457 = vrot.lane.b32.xlu0 %v428_v2, %s5007_s30  ;;  %v264_v2 = vmul.f32 %v5442_v56, %v5260_v28 }
  0xc6   :  { %v5439_v37 = vsel %vm385_vm3, %v391_v42, %v393_v55 }
  0xc7   :  { %9320 = vst [vmem:[#allocation26_spill] sm:$0xff] %v5439_v37  ;;  %295 = vrot.lane.b32.xlu1 %v262_v59, %s5006_s15  ;;  %v363_v61 = vpop.permute.xlu1 %362  ;;  %v430_v49 = vmul.f32 %v5439_v37, %v5240_v22 }
  0xc8   :  { %v397_v50 = vrot.slane %v363_v61, 6  ;;  %v386_v61 = vrot.slane %v5354_v38, 6 }
  0xc9   :  { %461 = vrot.lane.b32.xlu0 %v430_v49, %s5007_s30 }
  0xca   :  { %v5452_v33 = vsel %vm385_vm3, %v395_v27, %v397_v50 }
  0xcb   :  { %9322 = vst [vmem:[#allocation28_spill] sm:$0xff] %v5452_v33  ;;  %299 = vrot.lane.b32.xlu1 %v264_v2, %s5006_s15  ;;  %v369_v32 = vpop.permute.xlu1 %368  ;;  %v432_v59 = vmul.f32 %v5452_v33, %v5250_v25 }
  0xcc   :  { %v401_v49 = vrot.slane %v369_v32, 6 }
  0xcd   :  { %465 = vrot.lane.b32.xlu0 %v432_v59, %s5007_s30  ;;  %v5476_v59 = vsel %vm385_vm3, %v386_v61, %v387_v1  ;;  %v384_v1 = vpop.permute.xlu0 %383 }
  0xce   :  { %v5465_v56 = vsel %vm385_vm3, %v399_v5, %v401_v49  ;;  %9327 = vst [vmem:[#allocation32_spill] sm:$0xff] %v5476_v59  ;;  %v427_v34 = vmul.f32 %v5476_v59, %v5298_v43 }
  0xcf   :  { %9324 = vst [vmem:[#allocation30_spill] sm:$0xff] %v5465_v56  ;;  %303 = vrot.lane.b32.xlu1 %v266_v18, %s5006_s15  ;;  %v375_v2 = vpop.permute.xlu1 %374  ;;  %v434_v38 = vmul.f32 %v5465_v56, %v5260_v28  ;;  %v5496_v56 = vrot.slane %v384_v1, 6 }
  0xd0   :  { %v405_v32 = vrot.slane %v375_v2, 6  ;;  %v407_v2 = vrot.slane %v378_v29, 6  ;;  %v429_v29 = vmul.f32 %v5494_v45, %v5231_v19 }
  0xd1   :  { %469 = vrot.lane.b32.xlu0 %v434_v38, %s5007_s30  ;;  %9331 = vst [vmem:[#allocation36_spill] sm:$0xff] %v5496_v56  ;;  %v440_v39 = vmul.f32 %v5496_v56, %v5381_v54 }
  0xd2   :  { %v5482_v41 = vsel %vm385_vm3, %v403_v40, %v405_v32 }
  0xd3   :  { %9328 = vst [vmem:[#allocation33_spill] sm:$0xff] %v5482_v41  ;;  %307 = vrot.lane.b32.xlu1 %v268_v48, %s5006_s15  ;;  %v381_v60 = vpop.permute.xlu1 %380  ;;  %v436_v18 = vmul.f32 %v5482_v41, %v5270_v31 }
  0xd4   :  { %v409_v61 = vrot.slane %v381_v60, 6  ;;  %v5505_v60 = vsel %vm385_vm3, %v393_v55, %v395_v27  ;;  %v5521_v55 = vsel %vm385_vm3, %v401_v49, %v403_v40 }
  0xd5   :  { %473 = vrot.lane.b32.xlu0 %v436_v18, %s5007_s30  ;;  %9332 = vst [vmem:[#allocation37_spill] sm:$0xff] %v5505_v60  ;;  %v431_v42 = vmul.f32 %v5505_v60, %v5319_v57  ;;  %v5514_v18 = vsel %vm385_vm3, %v397_v50, %v399_v5  ;;  %9334 = vst [vmem:[#allocation39_spill] sm:$0xff] %v5521_v55  ;;  %v435_v27 = vmul.f32 %v5521_v55, %v5351_v36 }
  0xd6   :  { %v5491_v38 = vsel %vm385_vm3, %v407_v2, %v409_v61  ;;  %9333 = vst [vmem:[#allocation38_spill] sm:$0xff] %v5514_v18  ;;  %v5528_v50 = vsel %vm385_vm3, %v405_v32, %v407_v2  ;;  %v5536_v40 = vsel %vm385_vm3, %v409_v61, %v5496_v56  ;;  %v9111_v32 = vmov 4  }
  0xd7   :  { %9329 = vst [vmem:[#allocation34_spill] sm:$0xff] %v5491_v38  ;;  %455 = vrot.lane.b32.xlu1 %v427_v34, %s5007_s30  ;;  %v438_v48 = vmul.f32 %v5491_v38, %v5282_v35  ;;  %v433_v34 = vmul.f32 %v5514_v18, %v5334_v63  ;;  %9335 = vst [vmem:[#allocation40_spill] sm:$0xff] %v5528_v50  ;;  %v437_v5 = vmul.f32 %v5528_v50, %v5368_v47 }
  0xd8   :  { %9336 = vst [vmem:[#allocation41_spill] sm:$0xff] %v5536_v40  ;;  %v439_v49 = vmul.f32 %v5536_v40, %v5391_v30 }
  0xd9   :  { %477 = vrot.lane.b32.xlu0 %v438_v48, %s5007_s30 }
  0xdb   :  { %459 = vrot.lane.b32.xlu1 %v429_v29, %s5007_s30 }
  0xdd   :  { %481 = vrot.lane.b32.xlu0 %v440_v39, %s5007_s30 }
  0xdf   :  { %463 = vrot.lane.b32.xlu1 %v431_v42, %s5007_s30 }
  0xe1   :  { %517 = vperm.xlu0 %4795, %v5098_v3  }
  0xe3   :  { %467 = vrot.lane.b32.xlu1 %v433_v34, %s5007_s30 }
  0xe5   :  { %526 = vperm.xlu0 %4795, %v5103_v4  }
  0xe7   :  { %471 = vrot.lane.b32.xlu1 %v435_v27, %s5007_s30 }
  0xe9   :  { %532 = vperm.xlu0 %4795, %v5140_v6  }
  0xeb   :  { %475 = vrot.lane.b32.xlu1 %v437_v5, %s5007_s30 }
  0xed   :  { %538 = vperm.xlu0 %4795, %v5146_v7  }
  0xef   :  { %479 = vrot.lane.b32.xlu1 %v439_v49, %s5007_s30 }
  0xf1   :  { %544 = vperm.xlu0 %4795, %v5154_v8  }
  0xf3   :  { %514 = vperm.xlu1 %4794, %v5169_v10  }
  0xf5   :  { %550 = vperm.xlu0 %4795, %v5161_v9  }
  0xf7   :  { %520 = vperm.xlu1 %4794, %v5177_v12  }
  0xf9   :  { %4796 = vset.pattern.permute.xlu0 %v9111_v32 }
  0xfb   :  { %523 = vperm.xlu1 %4794, %v5090_v0  }
  0xff   :  { %529 = vperm.xlu1 %4794, %v5186_v13  }
 0x103   :  { %535 = vperm.xlu1 %4794, %v5193_v14  }
 0x107   :  { %541 = vperm.xlu1 %4794, %v5200_v15  }
 0x10b   :  { %547 = vperm.xlu1 %4794, %v5207_v16  }
 0x10f   :  { %553 = vperm.xlu1 %4794, %v5214_v17  }
 0x112   :  { %v5555_v2 = vpop.permute.xlu0 %285 }
 0x113   :  { %4797 = vset.pattern.permute.xlu1 %v9111_v32 }
 0x11a   :  { %v5557_v1 = vpop.permute.xlu0 %289 }
 0x11e   :  { %v5559_v61 = vpop.permute.xlu0 %293 }
 0x122   :  { %v5561_v48 = vpop.permute.xlu0 %297 }
 0x123   :  { %9337 = vst [vmem:[#allocation42_spill] sm:$0xff] %v5561_v48 }
 0x126   :  { %v5567_v42 = vpop.permute.xlu0 %301 }
 0x127   :  { %9339 = vst [vmem:[#allocation44_spill] sm:$0xff] %v5567_v42 }
 0x12a   :  { %v5570_v27 = vpop.permute.xlu0 %305 }
 0x12b   :  { %9340 = vst [vmem:[#allocation45_spill] sm:$0xff] %v5570_v27 }
 0x12d   :  { %v5563_v29 = vpop.permute.xlu1 %311 }
 0x12e   :  { %9338 = vst [vmem:[#allocation43_spill] sm:$0xff] %v5563_v29  ;;  %v5576_v32 = vpop.permute.xlu0 %309 }
 0x12f   :  { %9342 = vst [vmem:[#allocation47_spill] sm:$0xff] %v5576_v32 }
 0x131   :  { %v5565_v39 = vpop.permute.xlu1 %287 }
 0x135   :  { %v292_v34 = vpop.permute.xlu1 %291 }
 0x136   :  { %331 = vst.msk [vmem:[#allocation2 + $0x1f] sm:$0xff] %vm327_vm4, %v292_v34 }
 0x137   :  { %v5580_v38 = vpop.permute.xlu0 %457 }
 0x139   :  { %v5572_v5 = vpop.permute.xlu1 %295 }
 0x13b   :  { %v5584_v41 = vpop.permute.xlu0 %461 }
 0x13d   :  { %v5574_v49 = vpop.permute.xlu1 %299 }
 0x13e   :  { %9341 = vst [vmem:[#allocation46_spill] sm:$0xff] %v5574_v49 }
 0x13f   :  { %v5588_v55 = vpop.permute.xlu0 %465 }
 0x141   :  { %v5578_v56 = vpop.permute.xlu1 %303 }
 0x142   :  { %9343 = vst [vmem:[#allocation48_spill] sm:$0xff] %v5578_v56 }
 0x143   :  { %v5592_v62 = vpop.permute.xlu0 %469 }
 0x144   :  { %9345 = vst [vmem:[#allocation50_spill] sm:$0xff] %v5592_v62 }
 0x145   :  { %v5582_v40 = vpop.permute.xlu1 %307 }
 0x146   :  { %9344 = vst [vmem:[#allocation49_spill] sm:$0xff] %v5582_v40 }
 0x147   :  { %v5596_v18 = vpop.permute.xlu0 %473 }
 0x148   :  { %9346 = vst [vmem:[#allocation51_spill] sm:$0xff] %v5596_v18 }
 0x149   :  { %v5586_v50 = vpop.permute.xlu1 %455 }
 0x14b   :  { %v5600_v37 = vpop.permute.xlu0 %477 }
 0x14c   :  { %9348 = vst [vmem:[#allocation53_spill] sm:$0xff] %v5600_v37 }
 0x14d   :  { %v5590_v34 = vpop.permute.xlu1 %459 }
 0x14f   :  { %v5604_v26 = vpop.permute.xlu0 %481 }
 0x150   :  { %9350 = vst [vmem:[#allocation55_spill] sm:$0xff] %v5604_v26 }
 0x151   :  { %v5594_v33 = vpop.permute.xlu1 %463 }
 0x155   :  { %v5598_v24 = vpop.permute.xlu1 %467 }
 0x156   :  { %9347 = vst [vmem:[#allocation52_spill] sm:$0xff] %v5598_v24 }
 0x159   :  { %v5602_v60 = vpop.permute.xlu1 %471 }
 0x15a   :  { %9349 = vst [vmem:[#allocation54_spill] sm:$0xff] %v5602_v60 }
 0x15d   :  { %v5606_v53 = vpop.permute.xlu1 %475 }
 0x15e   :  { %9351 = vst [vmem:[#allocation56_spill] sm:$0xff] %v5606_v53 }
 0x160   :  { %v518_v58 = vpop.permute.xlu0 %517 }
 0x161   :  { %v5608_v11 = vpop.permute.xlu1 %479  ;;  %v557_v23 = vrot.slane %v518_v58, 1 }
 0x162   :  { %9352 = vst [vmem:[#allocation57_spill] sm:$0xff] %v5608_v11 }
 0x164   :  { %v527_v45 = vpop.permute.xlu0 %526 }
 0x168   :  { %v533_v59 = vpop.permute.xlu0 %532 }
 0x169   :  { %v567_v53 = vrot.slane %v533_v59, 1 }
 0x172   :  { %v515_v46 = vpop.permute.xlu1 %514 }
 0x173   :  { %v556_v20 = vrot.slane %v515_v46, 1  ;;  %v563_v46 = vrot.slane %v527_v45, 1 }
 0x175   :  { %v5611_v51 = vsel %vm555_vm5, %v556_v20, %v557_v23  ;;  %v539_v20 = vpop.permute.xlu0 %538 }
 0x176   :  { %9353 = vst [vmem:[#allocation58_spill] sm:$0xff] %v5611_v51  ;;  %v521_v52 = vpop.permute.xlu1 %520  ;;  %v597_v44 = vmul.f32 %v5611_v51, %v5298_v43  ;;  %v571_v59 = vrot.slane %v539_v20, 1 }
 0x177   :  { %v559_v29 = vrot.slane %v521_v52, 1 }
 0x178   :  { %625 = vrot.lane.b32.xlu0 %v597_v44, %s5009_s11 }
 0x179   :  { %v5617_v26 = vsel %vm555_vm5, %v557_v23, %v559_v29 }
 0x17a   :  { %9354 = vst [vmem:[#allocation59_spill] sm:$0xff] %v5617_v26  ;;  %v524_v11 = vpop.permute.xlu1 %523  ;;  %v598_v58 = vmul.f32 %v5617_v26, %v5405_v21 }
 0x17b   :  { %v561_v32 = vrot.slane %v524_v11, 1 }
 0x17c   :  { %627 = vrot.lane.b32.xlu1 %v598_v58, %s5009_s11 }
 0x17d   :  { %v5623_v37 = vsel %vm555_vm5, %v561_v32, %v563_v46  ;;  %v5626_v52 = vsel %vm555_vm5, %v559_v29, %v561_v32  ;;  %v545_v32 = vpop.permute.xlu0 %544 }
 0x17e   :  { %9355 = vst [vmem:[#allocation60_spill] sm:$0xff] %v5623_v37  ;;  %9356 = vst [vmem:[#allocation61_spill] sm:$0xff] %v5626_v52  ;;  %v530_v51 = vpop.permute.xlu1 %529  ;;  %v600_v23 = vmul.f32 %v5623_v37, %v5240_v22  ;;  %v599_v44 = vmul.f32 %v5626_v52, %v5231_v19 }
 0x17f   :  { %v565_v26 = vrot.slane %v530_v51, 1 }
 0x180   :  { %631 = vrot.lane.b32.xlu1 %v600_v23, %s5009_s11  ;;  %629 = vrot.lane.b32.xlu0 %v599_v44, %s5009_s11 }
 0x181   :  { %v5635_v11 = vsel %vm555_vm5, %v565_v26, %v567_v53  ;;  %v5638_v45 = vsel %vm555_vm5, %v563_v46, %v565_v26 }
 0x182   :  { %9357 = vst [vmem:[#allocation62_spill] sm:$0xff] %v5635_v11  ;;  %9358 = vst [vmem:[#allocation63_spill] sm:$0xff] %v5638_v45  ;;  %v536_v29 = vpop.permute.xlu1 %535  ;;  %v602_v58 = vmul.f32 %v5635_v11, %v5250_v25  ;;  %v601_v37 = vmul.f32 %v5638_v45, %v5319_v57  ;;  %v575_v45 = vrot.slane %v545_v32, 1 }
 0x183   :  { %v569_v51 = vrot.slane %v536_v29, 1  ;;  %v551_v29 = vpop.permute.xlu0 %550 }
 0x184   :  { %635 = vrot.lane.b32.xlu1 %v602_v58, %s5009_s11  ;;  %633 = vrot.lane.b32.xlu0 %v601_v37, %s5009_s11  ;;  %v579_v32 = vrot.slane %v551_v29, 1 }
 0x185   :  { %v5647_v23 = vsel %vm555_vm5, %v569_v51, %v571_v59  ;;  %v5650_v26 = vsel %vm555_vm5, %v567_v53, %v569_v51 }
 0x186   :  { %9359 = vst [vmem:[#allocation64_spill] sm:$0xff] %v5647_v23  ;;  %9360 = vst [vmem:[#allocation65_spill] sm:$0xff] %v5650_v26  ;;  %v542_v46 = vpop.permute.xlu1 %541  ;;  %v604_v44 = vmul.f32 %v5647_v23, %v5260_v28  ;;  %v603_v11 = vmul.f32 %v5650_v26, %v5334_v63 }
 0x187   :  { %v573_v20 = vrot.slane %v542_v46, 1 }
 0x188   :  { %639 = vrot.lane.b32.xlu1 %v604_v44, %s5009_s11  ;;  %637 = vrot.lane.b32.xlu0 %v603_v11, %s5009_s11 }
 0x189   :  { %v5659_v37 = vsel %vm555_vm5, %v573_v20, %v575_v45  ;;  %v5662_v53 = vsel %vm555_vm5, %v571_v59, %v573_v20 }
 0x18a   :  { %9361 = vst [vmem:[#allocation66_spill] sm:$0xff] %v5659_v37  ;;  %9362 = vst [vmem:[#allocation67_spill] sm:$0xff] %v5662_v53  ;;  %v548_v58 = vpop.permute.xlu1 %547  ;;  %v606_v51 = vmul.f32 %v5659_v37, %v5270_v31  ;;  %v605_v23 = vmul.f32 %v5662_v53, %v5351_v36 }
 0x18b   :  { %v577_v46 = vrot.slane %v548_v58, 1 }
 0x18c   :  { %643 = vrot.lane.b32.xlu1 %v606_v51, %s5009_s11  ;;  %641 = vrot.lane.b32.xlu0 %v605_v23, %s5009_s11 }
 0x18d   :  { %v5671_v11 = vsel %vm555_vm5, %v577_v46, %v579_v32  ;;  %v5674_v44 = vsel %vm555_vm5, %v575_v45, %v577_v46 }
 0x18e   :  { %9363 = vst [vmem:[#allocation68_spill] sm:$0xff] %v5671_v11  ;;  %9364 = vst [vmem:[#allocation69_spill] sm:$0xff] %v5674_v44  ;;  %v554_v59 = vpop.permute.xlu1 %553  ;;  %v608_v20 = vmul.f32 %v5671_v11, %v5282_v35  ;;  %v607_v37 = vmul.f32 %v5674_v44, %v5368_v47 }
 0x18f   :  { %v5680_v53 = vrot.slane %v554_v59, 1 }
 0x190   :  { %647 = vrot.lane.b32.xlu1 %v608_v20, %s5009_s11  ;;  %645 = vrot.lane.b32.xlu0 %v607_v37, %s5009_s11  ;;  %v9147_v37 = vmov 5  }
 0x191   :  { %9365 = vst [vmem:[#allocation70_spill] sm:$0xff] %v5680_v53  ;;  %v610_v23 = vmul.f32 %v5680_v53, %v5381_v54  ;;  %v5688_v45 = vsel %vm555_vm5, %v579_v32, %v5680_v53 }
 0x192   :  { %9366 = vst [vmem:[#allocation71_spill] sm:$0xff] %v5688_v45  ;;  %v609_v29 = vmul.f32 %v5688_v45, %v5391_v30 }
 0x194   :  { %651 = vrot.lane.b32.xlu1 %v610_v23, %s5009_s11  ;;  %649 = vrot.lane.b32.xlu0 %v609_v29, %s5009_s11 }
 0x198   :  { %688 = vperm.xlu1 %4797, %v5098_v3   ;;  %684 = vperm.xlu0 %4796, %v5169_v10  }
 0x19c   :  { %692 = vperm.xlu1 %4797, %v5177_v12   ;;  %696 = vperm.xlu0 %4796, %v5090_v0  }
 0x1a0   :  { %700 = vperm.xlu1 %4797, %v5103_v4   ;;  %704 = vperm.xlu0 %4796, %v5186_v13  }
 0x1a4   :  { %708 = vperm.xlu1 %4797, %v5140_v6   ;;  %712 = vperm.xlu0 %4796, %v5193_v14  }
 0x1a8   :  { %716 = vperm.xlu1 %4797, %v5146_v7   ;;  %720 = vperm.xlu0 %4796, %v5200_v15  }
 0x1ac   :  { %724 = vperm.xlu1 %4797, %v5154_v8   ;;  %728 = vperm.xlu0 %4796, %v5207_v16  }
 0x1b0   :  { %732 = vperm.xlu1 %4797, %v5161_v9   ;;  %736 = vperm.xlu0 %4796, %v5214_v17  }
 0x1b4   :  { %4798 = vset.pattern.permute.xlu1 %v9147_v37  ;;  %4799 = vset.pattern.permute.xlu0 %v9147_v37 }
 0x1ea   :  { %v5712_v51 = vpop.permute.xlu0 %625 }
 0x1ee   :  { %v5710_v58 = vpop.permute.xlu1 %627 }
 0x1f2   :  { %v5714_v32 = vpop.permute.xlu0 %629  ;;  %v5716_v46 = vpop.permute.xlu1 %631 }
 0x1f6   :  { %v5718_v59 = vpop.permute.xlu0 %633  ;;  %v5720_v20 = vpop.permute.xlu1 %635 }
 0x1f7   :  { %9367 = vst [vmem:[#allocation72_spill] sm:$0xff] %v5718_v59  ;;  %9368 = vst [vmem:[#allocation73_spill] sm:$0xff] %v5720_v20 }
 0x1fa   :  { %v5722_v23 = vpop.permute.xlu0 %637  ;;  %v5724_v29 = vpop.permute.xlu1 %639 }
 0x1fb   :  { %9369 = vst [vmem:[#allocation74_spill] sm:$0xff] %v5722_v23  ;;  %9370 = vst [vmem:[#allocation75_spill] sm:$0xff] %v5724_v29 }
 0x1fe   :  { %v5726_v53 = vpop.permute.xlu0 %641  ;;  %v5728_v11 = vpop.permute.xlu1 %643 }
 0x1ff   :  { %9371 = vst [vmem:[#allocation76_spill] sm:$0xff] %v5726_v53  ;;  %9372 = vst [vmem:[#allocation77_spill] sm:$0xff] %v5728_v11 }
 0x202   :  { %v5730_v37 = vpop.permute.xlu0 %645  ;;  %v5732_v45 = vpop.permute.xlu1 %647 }
 0x203   :  { %9373 = vst [vmem:[#allocation78_spill] sm:$0xff] %v5730_v37  ;;  %9374 = vst [vmem:[#allocation79_spill] sm:$0xff] %v5732_v45 }
 0x206   :  { %v5734_v44 = vpop.permute.xlu0 %649  ;;  %v5736_v26 = vpop.permute.xlu1 %651 }
 0x207   :  { %9375 = vst [vmem:[#allocation80_spill] sm:$0xff] %v5734_v44  ;;  %9376 = vst [vmem:[#allocation81_spill] sm:$0xff] %v5736_v26 }
 0x217   :  { %v5738_v52 = vpop.permute.xlu0 %684  ;;  %v5740_v40 = vpop.permute.xlu1 %688 }
 0x218   :  { %9377 = vst [vmem:[#allocation82_spill] sm:$0xff] %v5738_v52  ;;  %9378 = vst [vmem:[#allocation83_spill] sm:$0xff] %v5740_v40  ;;  %v739_v27 = vmul.f32 %v5738_v52, %v5298_v43  ;;  %v740_v53 = vmul.f32 %v5740_v40, %v5405_v21 }
 0x21a   :  { %767 = vrot.lane.b32.xlu1 %v739_v27, %s5011_s12  ;;  %769 = vrot.lane.b32.xlu0 %v740_v53, %s5011_s12 }
 0x21b   :  { %v5748_v45 = vpop.permute.xlu0 %696  ;;  %v5750_v44 = vpop.permute.xlu1 %692 }
 0x21c   :  { %9379 = vst [vmem:[#allocation84_spill] sm:$0xff] %v5748_v45  ;;  %9380 = vst [vmem:[#allocation85_spill] sm:$0xff] %v5750_v44  ;;  %v742_v26 = vmul.f32 %v5748_v45, %v5240_v22  ;;  %v741_v37 = vmul.f32 %v5750_v44, %v5231_v19 }
 0x21e   :  { %773 = vrot.lane.b32.xlu0 %v742_v26, %s5011_s12  ;;  %771 = vrot.lane.b32.xlu1 %v741_v37, %s5011_s12 }
 0x21f   :  { %v5758_v40 = vpop.permute.xlu0 %704  ;;  %v5760_v52 = vpop.permute.xlu1 %700 }
 0x220   :  { %9381 = vst [vmem:[#allocation86_spill] sm:$0xff] %v5758_v40  ;;  %9382 = vst [vmem:[#allocation87_spill] sm:$0xff] %v5760_v52  ;;  %v744_v27 = vmul.f32 %v5758_v40, %v5250_v25  ;;  %v743_v53 = vmul.f32 %v5760_v52, %v5319_v57 }
 0x222   :  { %777 = vrot.lane.b32.xlu0 %v744_v27, %s5011_s12  ;;  %775 = vrot.lane.b32.xlu1 %v743_v53, %s5011_s12 }
 0x223   :  { %v5768_v45 = vpop.permute.xlu0 %712  ;;  %v5770_v44 = vpop.permute.xlu1 %708 }
 0x224   :  { %9383 = vst [vmem:[#allocation88_spill] sm:$0xff] %v5768_v45  ;;  %9384 = vst [vmem:[#allocation89_spill] sm:$0xff] %v5770_v44  ;;  %v746_v26 = vmul.f32 %v5768_v45, %v5260_v28  ;;  %v745_v37 = vmul.f32 %v5770_v44, %v5334_v63 }
 0x226   :  { %781 = vrot.lane.b32.xlu0 %v746_v26, %s5011_s12  ;;  %779 = vrot.lane.b32.xlu1 %v745_v37, %s5011_s12 }
 0x227   :  { %v5778_v40 = vpop.permute.xlu0 %720  ;;  %v5780_v52 = vpop.permute.xlu1 %716 }
 0x228   :  { %9385 = vst [vmem:[#allocation90_spill] sm:$0xff] %v5778_v40  ;;  %9386 = vst [vmem:[#allocation91_spill] sm:$0xff] %v5780_v52  ;;  %v748_v27 = vmul.f32 %v5778_v40, %v5270_v31  ;;  %v747_v53 = vmul.f32 %v5780_v52, %v5351_v36 }
 0x22a   :  { %785 = vrot.lane.b32.xlu0 %v748_v27, %s5011_s12  ;;  %783 = vrot.lane.b32.xlu1 %v747_v53, %s5011_s12 }
 0x22b   :  { %v5788_v45 = vpop.permute.xlu0 %728  ;;  %v5790_v44 = vpop.permute.xlu1 %724 }
 0x22c   :  { %9387 = vst [vmem:[#allocation92_spill] sm:$0xff] %v5788_v45  ;;  %9388 = vst [vmem:[#allocation93_spill] sm:$0xff] %v5790_v44  ;;  %v750_v26 = vmul.f32 %v5788_v45, %v5282_v35  ;;  %v749_v37 = vmul.f32 %v5790_v44, %v5368_v47 }
 0x22e   :  { %789 = vrot.lane.b32.xlu0 %v750_v26, %s5011_s12  ;;  %787 = vrot.lane.b32.xlu1 %v749_v37, %s5011_s12 }
 0x22f   :  { %v5798_v40 = vpop.permute.xlu0 %736  ;;  %v5800_v52 = vpop.permute.xlu1 %732 }
 0x230   :  { %9389 = vst [vmem:[#allocation94_spill] sm:$0xff] %v5798_v40  ;;  %9390 = vst [vmem:[#allocation95_spill] sm:$0xff] %v5800_v52  ;;  %v752_v27 = vmul.f32 %v5798_v40, %v5381_v54  ;;  %v751_v53 = vmul.f32 %v5800_v52, %v5391_v30 }
 0x232   :  { %793 = vrot.lane.b32.xlu0 %v752_v27, %s5011_s12  ;;  %791 = vrot.lane.b32.xlu1 %v751_v53, %s5011_s12 }
 0x236   :  { %828 = vperm.xlu0 %4799, %v5098_v3   ;;  %825 = vperm.xlu1 %4798, %v5169_v10   ;;  %v9163_v3 = vmov 6  }
 0x23a   :  { %837 = vperm.xlu0 %4799, %v5103_v4   ;;  %831 = vperm.xlu1 %4798, %v5177_v12  }
 0x23e   :  { %843 = vperm.xlu0 %4799, %v5140_v6   ;;  %834 = vperm.xlu1 %4798, %v5090_v0  }
 0x242   :  { %849 = vperm.xlu0 %4799, %v5146_v7   ;;  %840 = vperm.xlu1 %4798, %v5186_v13  }
 0x246   :  { %855 = vperm.xlu0 %4799, %v5154_v8   ;;  %846 = vperm.xlu1 %4798, %v5193_v14  }
 0x24a   :  { %861 = vperm.xlu0 %4799, %v5161_v9   ;;  %852 = vperm.xlu1 %4798, %v5200_v15  }
 0x24e   :  { %858 = vperm.xlu1 %4798, %v5207_v16   ;;  %4800 = vset.pattern.permute.xlu0 %v9163_v3 }
 0x252   :  { %864 = vperm.xlu1 %4798, %v5214_v17  }
 0x256   :  { %4801 = vset.pattern.permute.xlu1 %v9163_v3 }
 0x28c   :  { %v5824_v0 = vpop.permute.xlu0 %769  ;;  %v5826_v4 = vpop.permute.xlu1 %767 }
 0x290   :  { %v5828_v6 = vpop.permute.xlu0 %773  ;;  %v5830_v7 = vpop.permute.xlu1 %771 }
 0x294   :  { %v5832_v8 = vpop.permute.xlu0 %777  ;;  %v5834_v9 = vpop.permute.xlu1 %775 }
 0x295   :  { %9391 = vst [vmem:[#allocation96_spill] sm:$0xff] %v5832_v8  ;;  %9392 = vst [vmem:[#allocation97_spill] sm:$0xff] %v5834_v9 }
 0x298   :  { %v5836_v26 = vpop.permute.xlu0 %781  ;;  %v5838_v37 = vpop.permute.xlu1 %779 }
 0x299   :  { %9393 = vst [vmem:[#allocation98_spill] sm:$0xff] %v5836_v26  ;;  %9394 = vst [vmem:[#allocation99_spill] sm:$0xff] %v5838_v37 }
 0x29c   :  { %v5840_v27 = vpop.permute.xlu0 %785  ;;  %v5842_v53 = vpop.permute.xlu1 %783 }
 0x29d   :  { %9395 = vst [vmem:[#allocation100_spill] sm:$0xff] %v5840_v27  ;;  %9396 = vst [vmem:[#allocation101_spill] sm:$0xff] %v5842_v53 }
 0x2a0   :  { %v5844_v3 = vpop.permute.xlu0 %789  ;;  %v5846_v40 = vpop.permute.xlu1 %787 }
 0x2a1   :  { %9397 = vst [vmem:[#allocation102_spill] sm:$0xff] %v5844_v3  ;;  %9398 = vst [vmem:[#allocation103_spill] sm:$0xff] %v5846_v40 }
 0x2a4   :  { %v5848_v45 = vpop.permute.xlu0 %793  ;;  %v5850_v52 = vpop.permute.xlu1 %791 }
 0x2a5   :  { %9399 = vst [vmem:[#allocation104_spill] sm:$0xff] %v5848_v45  ;;  %9400 = vst [vmem:[#allocation105_spill] sm:$0xff] %v5850_v52 }
 0x2b5   :  { %v829_v44 = vpop.permute.xlu0 %828  ;;  %v826_v11 = vpop.permute.xlu1 %825 }
 0x2b6   :  { %v867_v18 = vrot.slane %v829_v44, 7  ;;  %v5852_v60 = vrot.slane %v826_v11, 7 }
 0x2b8   :  { %9401 = vst [vmem:[#allocation106_spill] sm:$0xff] %v5852_v60  ;;  %v5856_v56 = vsel %vm215_vm2, %v5852_v60, %v867_v18  ;;  %v907_v27 = vmul.f32 %v5852_v60, %v5298_v43 }
 0x2b9   :  { %9402 = vst [vmem:[#allocation107_spill] sm:$0xff] %v5856_v56  ;;  %v908_v3 = vmul.f32 %v5856_v56, %v5405_v21  ;;  %v838_v40 = vpop.permute.xlu0 %837  ;;  %v832_v53 = vpop.permute.xlu1 %831 }
 0x2ba   :  { %v869_v45 = vrot.slane %v832_v53, 7  ;;  %935 = vrot.lane.b32.xlu0 %v907_v27, %s5013_s13  ;;  %v873_v60 = vrot.slane %v838_v40, 7 }
 0x2bb   :  { %937 = vrot.lane.b32.xlu1 %v908_v3, %s5013_s13 }
 0x2bc   :  { %v5865_v11 = vsel %vm215_vm2, %v867_v18, %v869_v45 }
 0x2bd   :  { %9403 = vst [vmem:[#allocation108_spill] sm:$0xff] %v5865_v11  ;;  %v909_v44 = vmul.f32 %v5865_v11, %v5231_v19  ;;  %v844_v52 = vpop.permute.xlu0 %843  ;;  %v835_v42 = vpop.permute.xlu1 %834 }
 0x2be   :  { %v871_v26 = vrot.slane %v835_v42, 7  ;;  %v877_v11 = vrot.slane %v844_v52, 7 }
 0x2bf   :  { %939 = vrot.lane.b32.xlu0 %v909_v44, %s5013_s13 }
 0x2c0   :  { %v5871_v56 = vsel %vm215_vm2, %v869_v45, %v871_v26  ;;  %v5874_v53 = vsel %vm215_vm2, %v871_v26, %v873_v60 }
 0x2c1   :  { %9404 = vst [vmem:[#allocation109_spill] sm:$0xff] %v5871_v56  ;;  %9405 = vst [vmem:[#allocation110_spill] sm:$0xff] %v5874_v53  ;;  %v910_v3 = vmul.f32 %v5871_v56, %v5240_v22  ;;  %v911_v18 = vmul.f32 %v5874_v53, %v5319_v57  ;;  %v850_v27 = vpop.permute.xlu0 %849  ;;  %v841_v19 = vpop.permute.xlu1 %840 }
 0x2c2   :  { %v875_v37 = vrot.slane %v841_v19, 7  ;;  %v881_v52 = vrot.slane %v850_v27, 7 }
 0x2c3   :  { %943 = vrot.lane.b32.xlu0 %v911_v18, %s5013_s13  ;;  %941 = vrot.lane.b32.xlu1 %v910_v3, %s5013_s13 }
 0x2c4   :  { %v5883_v40 = vsel %vm215_vm2, %v873_v60, %v875_v37  ;;  %v5886_v42 = vsel %vm215_vm2, %v875_v37, %v877_v11 }
 0x2c5   :  { %9406 = vst [vmem:[#allocation111_spill] sm:$0xff] %v5883_v40  ;;  %9407 = vst [vmem:[#allocation112_spill] sm:$0xff] %v5886_v42  ;;  %v912_v22 = vmul.f32 %v5883_v40, %v5250_v25  ;;  %v913_v45 = vmul.f32 %v5886_v42, %v5334_v63  ;;  %v856_v26 = vpop.permute.xlu0 %855  ;;  %v847_v44 = vpop.permute.xlu1 %846 }
 0x2c6   :  { %v879_v19 = vrot.slane %v847_v44, 7  ;;  %v885_v40 = vrot.slane %v856_v26, 7 }
 0x2c7   :  { %947 = vrot.lane.b32.xlu0 %v913_v45, %s5013_s13  ;;  %945 = vrot.lane.b32.xlu1 %v912_v22, %s5013_s13 }
 0x2c8   :  { %v5895_v60 = vsel %vm215_vm2, %v877_v11, %v879_v19  ;;  %v5898_v37 = vsel %vm215_vm2, %v879_v19, %v881_v52 }
 0x2c9   :  { %9408 = vst [vmem:[#allocation113_spill] sm:$0xff] %v5895_v60  ;;  %9409 = vst [vmem:[#allocation114_spill] sm:$0xff] %v5898_v37  ;;  %v914_v25 = vmul.f32 %v5895_v60, %v5260_v28  ;;  %v915_v3 = vmul.f32 %v5898_v37, %v5351_v36  ;;  %v853_v18 = vpop.permute.xlu1 %852  ;;  %v862_v44 = vpop.permute.xlu0 %861 }
 0x2ca   :  { %v883_v27 = vrot.slane %v853_v18, 7  ;;  %v889_v26 = vrot.slane %v862_v44, 7 }
 0x2cb   :  { %951 = vrot.lane.b32.xlu0 %v915_v3, %s5013_s13  ;;  %949 = vrot.lane.b32.xlu1 %v914_v25, %s5013_s13 }
 0x2cc   :  { %v5907_v11 = vsel %vm215_vm2, %v881_v52, %v883_v27  ;;  %v5910_v22 = vsel %vm215_vm2, %v883_v27, %v885_v40 }
 0x2cd   :  { %9410 = vst [vmem:[#allocation115_spill] sm:$0xff] %v5907_v11  ;;  %9411 = vst [vmem:[#allocation116_spill] sm:$0xff] %v5910_v22  ;;  %v916_v28 = vmul.f32 %v5907_v11, %v5270_v31  ;;  %v917_v45 = vmul.f32 %v5910_v22, %v5368_v47  ;;  %v859_v19 = vpop.permute.xlu1 %858 }
 0x2ce   :  { %v887_v18 = vrot.slane %v859_v19, 7 }
 0x2cf   :  { %955 = vrot.lane.b32.xlu0 %v917_v45, %s5013_s13  ;;  %953 = vrot.lane.b32.xlu1 %v916_v28, %s5013_s13  ;;  %v5946_v28 = vld [vmem:[%s9080_s1 + $0x8] sm:$0xff] }
 0x2d0   :  { %v5919_v25 = vsel %vm215_vm2, %v885_v40, %v887_v18  ;;  %v5922_v52 = vsel %vm215_vm2, %v887_v18, %v889_v26 }
 0x2d1   :  { %9412 = vst [vmem:[#allocation117_spill] sm:$0xff] %v5919_v25  ;;  %9413 = vst [vmem:[#allocation118_spill] sm:$0xff] %v5922_v52  ;;  %v918_v3 = vmul.f32 %v5919_v25, %v5282_v35  ;;  %v919_v31 = vmul.f32 %v5922_v52, %v5391_v30  ;;  %v865_v27 = vpop.permute.xlu1 %864  ;;  %v5940_v35 = vld [vmem:[%s9080_s1 + $0x18] sm:$0xff] }
 0x2d2   :  { %v891_v11 = vrot.slane %v865_v27, 7 }
 0x2d3   :  { %959 = vrot.lane.b32.xlu0 %v919_v31, %s5013_s13  ;;  %957 = vrot.lane.b32.xlu1 %v918_v3, %s5013_s13 }
 0x2d4   :  { %v5931_v44 = vsel %vm215_vm2, %v889_v26, %v891_v11  ;;  %v5962_v11 = vld [vmem:[%s9080_s1 + $0x30] sm:$0xff]  ;;  %vm1318_vm2 = vcmask 261344  }
 0x2d5   :  { %9414 = vst [vmem:[#allocation119_spill] sm:$0xff] %v5931_v44  ;;  %v920_v40 = vmul.f32 %v5931_v44, %v5381_v54 }
 0x2d7   :  { %994 = vperm.xlu0 %4800, %v5169_v10   ;;  %961 = vrot.lane.b32.xlu1 %v920_v40, %s5013_s13  ;;  %v5955_v10 = vld [vmem:[%s9080_s1 + $0x20] sm:$0xff] }
 0x2db   :  { %1003 = vperm.xlu0 %4800, %v5940_v35   ;;  %997 = vperm.xlu1 %4801, %v5946_v28  }
 0x2df   :  { %1009 = vperm.xlu0 %4800, %v5186_v13   ;;  %1000 = vperm.xlu1 %4801, %v5177_v12   ;;  %v5969_v12 = vld [vmem:[%s9080_s1 + $0x40] sm:$0xff]  ;;  %v5976_v13 = vld [vmem:[%s9080_s1 + $0x50] sm:$0xff] }
 0x2e3   :  { %1015 = vperm.xlu0 %4800, %v5193_v14   ;;  %1006 = vperm.xlu1 %4801, %v5955_v10   ;;  %v5982_v14 = vld [vmem:[%s9080_s1 + $0x60] sm:$0xff] }
 0x2e7   :  { %1021 = vperm.xlu0 %4800, %v5200_v15   ;;  %1012 = vperm.xlu1 %4801, %v5962_v11   ;;  %v9174_v15 = vmov 7  }
 0x2eb   :  { %1027 = vperm.xlu0 %4800, %v5207_v16   ;;  %1018 = vperm.xlu1 %4801, %v5969_v12  }
 0x2ef   :  { %1033 = vperm.xlu0 %4800, %v5214_v17   ;;  %1024 = vperm.xlu1 %4801, %v5976_v13  }
 0x2f3   :  { %1030 = vperm.xlu1 %4801, %v5982_v14   ;;  %4803 = vset.pattern.permute.xlu0 %v9174_v15 }
 0x2f7   :  { %4802 = vset.pattern.permute.xlu1 %v9174_v15 }
 0x32c   :  { %v5987_v16 = vpop.permute.xlu0 %935 }
 0x32d   :  { %v5989_v17 = vpop.permute.xlu1 %937 }
 0x331   :  { %v5991_v45 = vpop.permute.xlu0 %939 }
 0x335   :  { %v5993_v19 = vpop.permute.xlu1 %941  ;;  %v5995_v26 = vpop.permute.xlu0 %943 }
 0x336   :  { %9415 = vst [vmem:[#allocation120_spill] sm:$0xff] %v5995_v26 }
 0x339   :  { %v5997_v18 = vpop.permute.xlu1 %945  ;;  %v5999_v3 = vpop.permute.xlu0 %947 }
 0x33a   :  { %9416 = vst [vmem:[#allocation121_spill] sm:$0xff] %v5997_v18  ;;  %9417 = vst [vmem:[#allocation122_spill] sm:$0xff] %v5999_v3 }
 0x33d   :  { %v6001_v31 = vpop.permute.xlu1 %949  ;;  %v6003_v27 = vpop.permute.xlu0 %951 }
 0x33e   :  { %9418 = vst [vmem:[#allocation123_spill] sm:$0xff] %v6001_v31  ;;  %9419 = vst [vmem:[#allocation124_spill] sm:$0xff] %v6003_v27 }
 0x341   :  { %v6005_v40 = vpop.permute.xlu1 %953  ;;  %v6007_v15 = vpop.permute.xlu0 %955 }
 0x342   :  { %9420 = vst [vmem:[#allocation125_spill] sm:$0xff] %v6005_v40  ;;  %9421 = vst [vmem:[#allocation126_spill] sm:$0xff] %v6007_v15 }
 0x345   :  { %v6009_v44 = vpop.permute.xlu1 %957  ;;  %v6011_v25 = vpop.permute.xlu0 %959 }
 0x346   :  { %9422 = vst [vmem:[#allocation127_spill] sm:$0xff] %v6009_v44  ;;  %9423 = vst [vmem:[#allocation128_spill] sm:$0xff] %v6011_v25 }
 0x349   :  { %v6013_v52 = vpop.permute.xlu1 %961 }
 0x34a   :  { %9424 = vst [vmem:[#allocation129_spill] sm:$0xff] %v6013_v52 }
 0x356   :  { %v995_v22 = vpop.permute.xlu0 %994 }
 0x357   :  { %v6015_v60 = vrot.slane %v995_v22, 2 }
 0x359   :  { %9425 = vst [vmem:[#allocation130_spill] sm:$0xff] %v6015_v60  ;;  %v1077_v37 = vmul.f32 %v6015_v60, %v5298_v43 }
 0x35a   :  { %v1004_v42 = vpop.permute.xlu0 %1003  ;;  %v998_v56 = vpop.permute.xlu1 %997 }
 0x35b   :  { %v1037_v53 = vrot.slane %v998_v56, 2  ;;  %1105 = vrot.lane.b32.xlu1 %v1077_v37, %s5015_s28  ;;  %v1041_v15 = vrot.slane %v1004_v42, 2  ;;  %v6036_v37 = vld [vmem:[%s9079_s0 + $0x10] sm:$0xff]  ;;  %v6043_v42 = vld [vmem:[%s9079_s0 + $0x18] sm:$0xff] }
 0x35d   :  { %v6022_v44 = vsel %vm1035_vm6, %v6015_v60, %v1037_v53 }
 0x35e   :  { %9426 = vst [vmem:[#allocation131_spill] sm:$0xff] %v6022_v44  ;;  %v1078_v52 = vmul.f32 %v6022_v44, %v5405_v21  ;;  %v1010_v25 = vpop.permute.xlu0 %1009  ;;  %v1001_v22 = vpop.permute.xlu1 %1000 }
 0x35f   :  { %v1039_v40 = vrot.slane %v1001_v22, 2 }
 0x360   :  { %1107 = vrot.lane.b32.xlu0 %v1078_v52, %s5015_s28 }
 0x361   :  { %v6028_v43 = vsel %vm1035_vm6, %v1037_v53, %v1039_v40  ;;  %v6031_v56 = vsel %vm1035_vm6, %v1039_v40, %v1041_v15  ;;  %v1045_v40 = vrot.slane %v1010_v25, 2 }
 0x362   :  { %9427 = vst [vmem:[#allocation132_spill] sm:$0xff] %v6028_v43  ;;  %9428 = vst [vmem:[#allocation133_spill] sm:$0xff] %v6031_v56  ;;  %v1079_v21 = vmul.f32 %v6036_v37, %v6028_v43  ;;  %v1080_v53 = vmul.f32 %v6043_v42, %v6031_v56  ;;  %v1016_v52 = vpop.permute.xlu0 %1015  ;;  %v1007_v22 = vpop.permute.xlu1 %1006  ;;  %v6060_v56 = vld [vmem:[%s9079_s0 + $0x28] sm:$0xff] }
 0x363   :  { %v1043_v44 = vrot.slane %v1007_v22, 2 }
 0x364   :  { %1111 = vrot.lane.b32.xlu0 %v1080_v53, %s5015_s28  ;;  %1109 = vrot.lane.b32.xlu1 %v1079_v21, %s5015_s28  ;;  %v1049_v21 = vrot.slane %v1016_v52, 2 }
 0x365   :  { %v6050_v60 = vsel %vm1035_vm6, %v1041_v15, %v1043_v44  ;;  %v6053_v43 = vsel %vm1035_vm6, %v1043_v44, %v1045_v40 }
 0x366   :  { %9429 = vst [vmem:[#allocation134_spill] sm:$0xff] %v6050_v60  ;;  %9430 = vst [vmem:[#allocation135_spill] sm:$0xff] %v6053_v43  ;;  %v1081_v27 = vmul.f32 %v6050_v60, %v5319_v57  ;;  %v1082_v25 = vmul.f32 %v6060_v56, %v6053_v43  ;;  %v1022_v53 = vpop.permute.xlu0 %1021  ;;  %v1013_v22 = vpop.permute.xlu1 %1012  ;;  %v6077_v43 = vld [vmem:[%s9079_s0 + $0x38] sm:$0xff] }
 0x367   :  { %v1047_v31 = vrot.slane %v1013_v22, 2 }
 0x368   :  { %1115 = vrot.lane.b32.xlu0 %v1082_v25, %s5015_s28  ;;  %1113 = vrot.lane.b32.xlu1 %v1081_v27, %s5015_s28  ;;  %v1053_v27 = vrot.slane %v1022_v53, 2 }
 0x369   :  { %v6067_v44 = vsel %vm1035_vm6, %v1045_v40, %v1047_v31  ;;  %v6070_v57 = vsel %vm1035_vm6, %v1047_v31, %v1049_v21 }
 0x36a   :  { %9431 = vst [vmem:[#allocation136_spill] sm:$0xff] %v6067_v44  ;;  %9432 = vst [vmem:[#allocation137_spill] sm:$0xff] %v6070_v57  ;;  %v1083_v15 = vmul.f32 %v6067_v44, %v5334_v63  ;;  %v1084_v52 = vmul.f32 %v6077_v43, %v6070_v57  ;;  %v1028_v25 = vpop.permute.xlu0 %1027  ;;  %v1019_v22 = vpop.permute.xlu1 %1018  ;;  %v6094_v57 = vld [vmem:[%s9079_s0 + $0x48] sm:$0xff] }
 0x36b   :  { %v1051_v60 = vrot.slane %v1019_v22, 2  ;;  %v1057_v22 = vrot.slane %v1028_v25, 2 }
 0x36c   :  { %1119 = vrot.lane.b32.xlu0 %v1084_v52, %s5015_s28  ;;  %1117 = vrot.lane.b32.xlu1 %v1083_v15, %s5015_s28 }
 0x36d   :  { %v6084_v31 = vsel %vm1035_vm6, %v1049_v21, %v1051_v60  ;;  %v6087_v63 = vsel %vm1035_vm6, %v1051_v60, %v1053_v27 }
 0x36e   :  { %9433 = vst [vmem:[#allocation138_spill] sm:$0xff] %v6084_v31  ;;  %9434 = vst [vmem:[#allocation139_spill] sm:$0xff] %v6087_v63  ;;  %v1085_v40 = vmul.f32 %v6084_v31, %v5351_v36  ;;  %v1086_v53 = vmul.f32 %v6094_v57, %v6087_v63  ;;  %v1025_v52 = vpop.permute.xlu1 %1024  ;;  %v1034_v44 = vpop.permute.xlu0 %1033  ;;  %v6111_v63 = vld [vmem:[%s9079_s0 + $0x58] sm:$0xff] }
 0x36f   :  { %v1055_v15 = vrot.slane %v1025_v52, 2  ;;  %v1061_v52 = vrot.slane %v1034_v44, 2  ;;  %v6133_v44 = vld [vmem:[%s9080_s1] sm:$0xff] }
 0x370   :  { %1123 = vrot.lane.b32.xlu0 %v1086_v53, %s5015_s28  ;;  %1121 = vrot.lane.b32.xlu1 %v1085_v40, %s5015_s28 }
 0x371   :  { %v6101_v60 = vsel %vm1035_vm6, %v1053_v27, %v1055_v15  ;;  %v6104_v36 = vsel %vm1035_vm6, %v1055_v15, %v1057_v22 }
 0x372   :  { %9435 = vst [vmem:[#allocation140_spill] sm:$0xff] %v6101_v60  ;;  %9436 = vst [vmem:[#allocation141_spill] sm:$0xff] %v6104_v36  ;;  %v1087_v21 = vmul.f32 %v6101_v60, %v5368_v47  ;;  %v1088_v25 = vmul.f32 %v6111_v63, %v6104_v36  ;;  %v1031_v53 = vpop.permute.xlu1 %1030 }
 0x373   :  { %v1059_v40 = vrot.slane %v1031_v53, 2  ;;  %v9199_v53 = vmov 8  }
 0x374   :  { %1127 = vrot.lane.b32.xlu0 %v1088_v25, %s5015_s28  ;;  %1125 = vrot.lane.b32.xlu1 %v1087_v21, %s5015_s28  ;;  %v6169_v21 = vld [vmem:[%s9080_s1 + $0x58] sm:$0xff]  ;;  %v6175_v25 = vld [vmem:[%s9080_s1 + $0x68] sm:$0xff] }
 0x375   :  { %v6118_v27 = vsel %vm1035_vm6, %v1057_v22, %v1059_v40  ;;  %v6121_v47 = vsel %vm1035_vm6, %v1059_v40, %v1061_v52  ;;  %v6156_v22 = vld [vmem:[%s9080_s1 + $0x38] sm:$0xff]  ;;  %vm681_vm6 = vcmask 129120  }
 0x376   :  { %9437 = vst [vmem:[#allocation142_spill] sm:$0xff] %v6118_v27  ;;  %9438 = vst [vmem:[#allocation143_spill] sm:$0xff] %v6121_v47  ;;  %v1089_v15 = vmul.f32 %v6118_v27, %v5391_v30  ;;  %v1090_v60 = vmul.f32 %v6121_v47, %v5381_v54  ;;  %v6140_v30 = vld [vmem:[%s9080_s1 + $0x10] sm:$0xff]  ;;  %v6149_v54 = vld [vmem:[%s9080_s1 + $0x28] sm:$0xff] }
 0x378   :  { %1131 = vrot.lane.b32.xlu0 %v1090_v60, %s5015_s28  ;;  %1129 = vrot.lane.b32.xlu1 %v1089_v15, %s5015_s28  ;;  %v6163_v60 = vld [vmem:[%s9080_s1 + $0x48] sm:$0xff] }
 0x37c   :  { %1167 = vperm.xlu0 %4803, %v5946_v28   ;;  %1164 = vperm.xlu1 %4802, %v6133_v44  }
 0x380   :  { %1176 = vperm.xlu0 %4803, %v5955_v10   ;;  %1170 = vperm.xlu1 %4802, %v6140_v30  }
 0x384   :  { %1182 = vperm.xlu0 %4803, %v5962_v11   ;;  %1173 = vperm.xlu1 %4802, %v5940_v35  }
 0x388   :  { %1188 = vperm.xlu0 %4803, %v5969_v12   ;;  %1179 = vperm.xlu1 %4802, %v6149_v54  }
 0x38c   :  { %1194 = vperm.xlu0 %4803, %v5976_v13   ;;  %1185 = vperm.xlu1 %4802, %v6156_v22  }
 0x390   :  { %1200 = vperm.xlu0 %4803, %v5982_v14   ;;  %1191 = vperm.xlu1 %4802, %v6163_v60  }
 0x394   :  { %1197 = vperm.xlu1 %4802, %v6169_v21   ;;  %4804 = vset.pattern.permute.xlu0 %v9199_v53 }
 0x398   :  { %1203 = vperm.xlu1 %4802, %v6175_v25  }
 0x39c   :  { %4805 = vset.pattern.permute.xlu1 %v9199_v53 }
 0x3cd   :  { %v6182_v40 = vpop.permute.xlu1 %1105 }
 0x3d2   :  { %v6180_v52 = vpop.permute.xlu0 %1107 }
 0x3d6   :  { %v6184_v15 = vpop.permute.xlu0 %1111  ;;  %v6186_v47 = vpop.permute.xlu1 %1109 }
 0x3da   :  { %v6188_v36 = vpop.permute.xlu0 %1115  ;;  %v6190_v27 = vpop.permute.xlu1 %1113 }
 0x3db   :  { %9439 = vst [vmem:[#allocation144_spill] sm:$0xff] %v6188_v36  ;;  %9440 = vst [vmem:[#allocation145_spill] sm:$0xff] %v6190_v27 }
 0x3de   :  { %v6192_v31 = vpop.permute.xlu0 %1119  ;;  %v6194_v3 = vpop.permute.xlu1 %1117 }
 0x3df   :  { %9441 = vst [vmem:[#allocation146_spill] sm:$0xff] %v6192_v31  ;;  %9442 = vst [vmem:[#allocation147_spill] sm:$0xff] %v6194_v3 }
 0x3e2   :  { %v6196_v29 = vpop.permute.xlu0 %1123  ;;  %v6198_v23 = vpop.permute.xlu1 %1121 }
 0x3e3   :  { %9443 = vst [vmem:[#allocation148_spill] sm:$0xff] %v6196_v29  ;;  %9444 = vst [vmem:[#allocation149_spill] sm:$0xff] %v6198_v23  ;;  %v6217_v29 = vld [vmem:[%s9079_s0] sm:$0xff] }
 0x3e6   :  { %v6200_v53 = vpop.permute.xlu0 %1127  ;;  %v6202_v62 = vpop.permute.xlu1 %1125 }
 0x3e7   :  { %9445 = vst [vmem:[#allocation150_spill] sm:$0xff] %v6200_v53  ;;  %9446 = vst [vmem:[#allocation151_spill] sm:$0xff] %v6202_v62 }
 0x3ea   :  { %v6204_v24 = vpop.permute.xlu0 %1131  ;;  %v6206_v18 = vpop.permute.xlu1 %1129 }
 0x3eb   :  { %9447 = vst [vmem:[#allocation152_spill] sm:$0xff] %v6204_v24  ;;  %9448 = vst [vmem:[#allocation153_spill] sm:$0xff] %v6206_v18  ;;  %v6224_v24 = vld [vmem:[%s9079_s0 + $0x8] sm:$0xff] }
 0x3fb   :  { %v1168_v26 = vpop.permute.xlu0 %1167  ;;  %v1165_v36 = vpop.permute.xlu1 %1164 }
 0x3fc   :  { %v1206_v49 = vrot.slane %v1168_v26, 1  ;;  %v6208_v27 = vrot.slane %v1165_v36, 1 }
 0x3fe   :  { %9449 = vst [vmem:[#allocation154_spill] sm:$0xff] %v6208_v27  ;;  %v6212_v31 = vsel %vm555_vm5, %v6208_v27, %v1206_v49  ;;  %v1246_v53 = vmul.f32 %v6217_v29, %v6208_v27 }
 0x3ff   :  { %9450 = vst [vmem:[#allocation155_spill] sm:$0xff] %v6212_v31  ;;  %v1247_v26 = vmul.f32 %v6224_v24, %v6212_v31  ;;  %v1177_v36 = vpop.permute.xlu0 %1176  ;;  %v1171_v18 = vpop.permute.xlu1 %1170 }
 0x400   :  { %v1208_v62 = vrot.slane %v1171_v18, 1  ;;  %1274 = vrot.lane.b32.xlu0 %v1246_v53, %s5017_s23  ;;  %v1212_v8 = vrot.slane %v1177_v36, 1 }
 0x401   :  { %1276 = vrot.lane.b32.xlu1 %v1247_v26, %s5017_s23 }
 0x402   :  { %v6231_v23 = vsel %vm555_vm5, %v1206_v49, %v1208_v62  ;;  %v6247_v49 = vld [vmem:[%s9079_s0 + $0x20] sm:$0xff] }
 0x403   :  { %9451 = vst [vmem:[#allocation156_spill] sm:$0xff] %v6231_v23  ;;  %v1248_v27 = vmul.f32 %v6036_v37, %v6231_v23  ;;  %v1183_v3 = vpop.permute.xlu0 %1182  ;;  %v1174_v48 = vpop.permute.xlu1 %1173 }
 0x404   :  { %v1210_v9 = vrot.slane %v1174_v48, 1 }
 0x405   :  { %1278 = vrot.lane.b32.xlu0 %v1248_v27, %s5017_s23  ;;  %v1216_v27 = vrot.slane %v1183_v3, 1 }
 0x406   :  { %v6237_v31 = vsel %vm555_vm5, %v1208_v62, %v1210_v9  ;;  %v6240_v18 = vsel %vm555_vm5, %v1210_v9, %v1212_v8 }
 0x407   :  { %9452 = vst [vmem:[#allocation157_spill] sm:$0xff] %v6237_v31  ;;  %9453 = vst [vmem:[#allocation158_spill] sm:$0xff] %v6240_v18  ;;  %v1249_v53 = vmul.f32 %v6043_v42, %v6237_v31  ;;  %v1250_v26 = vmul.f32 %v6247_v49, %v6240_v18  ;;  %v1189_v48 = vpop.permute.xlu0 %1188  ;;  %v1180_v36 = vpop.permute.xlu1 %1179  ;;  %v6264_v18 = vld [vmem:[%s9079_s0 + $0x30] sm:$0xff] }
 0x408   :  { %v1214_v23 = vrot.slane %v1180_v36, 1 }
 0x409   :  { %1282 = vrot.lane.b32.xlu0 %v1250_v26, %s5017_s23  ;;  %1280 = vrot.lane.b32.xlu1 %v1249_v53, %s5017_s23  ;;  %v1220_v53 = vrot.slane %v1189_v48, 1 }
 0x40a   :  { %v6254_v62 = vsel %vm555_vm5, %v1212_v8, %v1214_v23  ;;  %v6257_v9 = vsel %vm555_vm5, %v1214_v23, %v1216_v27 }
 0x40b   :  { %9454 = vst [vmem:[#allocation159_spill] sm:$0xff] %v6254_v62  ;;  %9455 = vst [vmem:[#allocation160_spill] sm:$0xff] %v6257_v9  ;;  %v1251_v31 = vmul.f32 %v6060_v56, %v6254_v62  ;;  %v1252_v3 = vmul.f32 %v6264_v18, %v6257_v9  ;;  %v1195_v26 = vpop.permute.xlu0 %1194  ;;  %v1186_v36 = vpop.permute.xlu1 %1185  ;;  %v6281_v9 = vld [vmem:[%s9079_s0 + $0x40] sm:$0xff] }
 0x40c   :  { %v1218_v20 = vrot.slane %v1186_v36, 1  ;;  %v1224_v36 = vrot.slane %v1195_v26, 1 }
 0x40d   :  { %1286 = vrot.lane.b32.xlu0 %v1252_v3, %s5017_s23  ;;  %1284 = vrot.lane.b32.xlu1 %v1251_v31, %s5017_s23 }
 0x40e   :  { %v6271_v23 = vsel %vm555_vm5, %v1216_v27, %v1218_v20  ;;  %v6274_v8 = vsel %vm555_vm5, %v1218_v20, %v1220_v53 }
 0x40f   :  { %9456 = vst [vmem:[#allocation161_spill] sm:$0xff] %v6271_v23  ;;  %9457 = vst [vmem:[#allocation162_spill] sm:$0xff] %v6274_v8  ;;  %v1253_v62 = vmul.f32 %v6077_v43, %v6271_v23  ;;  %v1254_v48 = vmul.f32 %v6281_v9, %v6274_v8  ;;  %v1192_v3 = vpop.permute.xlu1 %1191  ;;  %v1201_v59 = vpop.permute.xlu0 %1200  ;;  %v6298_v8 = vld [vmem:[%s9079_s0 + $0x50] sm:$0xff] }
 0x410   :  { %v1222_v31 = vrot.slane %v1192_v3, 1  ;;  %v1228_v3 = vrot.slane %v1201_v59, 1 }
 0x411   :  { %1290 = vrot.lane.b32.xlu0 %v1254_v48, %s5017_s23  ;;  %1288 = vrot.lane.b32.xlu1 %v1253_v62, %s5017_s23 }
 0x412   :  { %v6288_v20 = vsel %vm555_vm5, %v1220_v53, %v1222_v31  ;;  %v6291_v27 = vsel %vm555_vm5, %v1222_v31, %v1224_v36 }
 0x413   :  { %9458 = vst [vmem:[#allocation163_spill] sm:$0xff] %v6288_v20  ;;  %9459 = vst [vmem:[#allocation164_spill] sm:$0xff] %v6291_v27  ;;  %v1255_v23 = vmul.f32 %v6094_v57, %v6288_v20  ;;  %v1256_v26 = vmul.f32 %v6298_v8, %v6291_v27  ;;  %v1198_v48 = vpop.permute.xlu1 %1197  ;;  %v6315_v27 = vld [vmem:[%s9079_s0 + $0x60] sm:$0xff] }
 0x414   :  { %v1226_v62 = vrot.slane %v1198_v48, 1 }
 0x415   :  { %1294 = vrot.lane.b32.xlu0 %v1256_v26, %s5017_s23  ;;  %1292 = vrot.lane.b32.xlu1 %v1255_v23, %s5017_s23 }
 0x416   :  { %v6305_v53 = vsel %vm555_vm5, %v1224_v36, %v1226_v62  ;;  %v6308_v31 = vsel %vm555_vm5, %v1226_v62, %v1228_v3  ;;  %v6327_v36 = vld [vmem:[%s9079_s0 + $0x68] sm:$0xff] }
 0x417   :  { %9460 = vst [vmem:[#allocation165_spill] sm:$0xff] %v6305_v53  ;;  %9461 = vst [vmem:[#allocation166_spill] sm:$0xff] %v6308_v31  ;;  %v1257_v20 = vmul.f32 %v6111_v63, %v6305_v53  ;;  %v1258_v59 = vmul.f32 %v6315_v27, %v6308_v31  ;;  %v1204_v26 = vpop.permute.xlu1 %1203 }
 0x418   :  { %v1230_v48 = vrot.slane %v1204_v26, 1 }
 0x419   :  { %1298 = vrot.lane.b32.xlu0 %v1258_v59, %s5017_s23  ;;  %1296 = vrot.lane.b32.xlu1 %v1257_v20, %s5017_s23  ;;  %v4940_v59 = vld [vmem:[%s9081_s2 + $0x8] sm:$0xff]  }
 0x41a   :  { %v6322_v23 = vsel %vm555_vm5, %v1228_v3, %v1230_v48  ;;  %v4941_v48 = vld [vmem:[%s9081_s2 + $0x10] ss:$0 sps:$4 sm:$0x33]   ;;  %vm511_vm5 = vcmask 91200  }
 0x41b   :  { %9462 = vst [vmem:[#allocation167_spill] sm:$0xff] %v6322_v23  ;;  %v1259_v62 = vmul.f32 %v6327_v36, %v6322_v23 }
 0x41d   :  { %1333 = vperm.xlu0 %4804, %v6133_v44   ;;  %1300 = vrot.lane.b32.xlu1 %v1259_v62, %s5017_s23  ;;  %v9463_v44 = vmov 0   ;;  %s5018_s23 = smov 32  }
 0x421   :  { %1345 = vperm.xlu0 %4804, %v5940_v35   ;;  %1337 = vperm.xlu1 %4805, %v5946_v28   ;;  %v9464_v35 = vmov 1  }
 0x425   :  { %1353 = vperm.xlu0 %4804, %v6149_v54   ;;  %1341 = vperm.xlu1 %4805, %v6140_v30  }
 0x429   :  { %1361 = vperm.xlu0 %4804, %v6156_v22   ;;  %1349 = vperm.xlu1 %4805, %v5955_v10   ;;  %v9465_v10 = vmov 0.0  }
 0x42a   :  { %4684 = vmatprep.mubr.msk.bf16.mxu0 %vm5019_vm7, %v9465_v10  ;;  %4722 = vmatprep.mubr.msk.bf16.mxu1 %vm5019_vm7, %v9465_v10 }
 0x42d   :  { %1369 = vperm.xlu0 %4804, %v6163_v60   ;;  %1357 = vperm.xlu1 %4805, %v5962_v11  }
 0x431   :  { %1377 = vperm.xlu0 %4804, %v6169_v21   ;;  %1365 = vperm.xlu1 %4805, %v5969_v12  }
 0x435   :  { %4806 = vset.pattern.permute.xlu0 %v9463_v44  ;;  %1373 = vperm.xlu1 %4805, %v5976_v13  }
 0x436   :  { %82 = vperm.xlu0 %4806, %v5946_v28   ;;  %v4939_v28 = vld [vmem:[%s9081_s2] sm:$0xff]  }
 0x437   :  { %4679 = vmatpush3.bf16.msra.mxu0 %v4939_v28 }
 0x438   :  { %4680 = vmatprep.subr.bf16.mxu0 %v9465_v10 }
 0x439   :  { %1381 = vperm.xlu1 %4805, %v5982_v14  }
 0x43a   :  { %87 = vperm.xlu0 %4806, %v6140_v30  }
 0x43b   :  { %4681 = vmatpush3.bf16.msra.mxu0 %v4940_v59 }
 0x43c   :  { %4682 = vmatprep.subr.bf16.mxu0 %v9465_v10 }
 0x43d   :  { %4807 = vset.pattern.permute.xlu1 %v9464_v35  ;;  %v1533_v35 = vsel %vm385_vm3, %v4941_v48, 0  ;;  %vm341_vm3 = vcmask 57376  }
 0x43e   :  { %102 = vperm.xlu0 %4806, %v6149_v54  }
 0x43f   :  { %4683 = vmatpush3.bf16.msra.mxu0 %v1533_v35 }
 0x440   :  { %4750 = vmatprep.subr.bf16.mxu0 %v9465_v10 }
 0x442   :  { %112 = vperm.xlu0 %4806, %v6156_v22  }
 0x446   :  { %122 = vperm.xlu0 %4806, %v6163_v60  }
 0x44a   :  { %132 = vperm.xlu0 %4806, %v6169_v21  }
 0x44e   :  { %142 = vperm.xlu0 %4806, %v6175_v25  }
 0x472   :  { %v6358_v11 = vpop.permute.xlu0 %1274 }
 0x473   :  { %v6360_v12 = vpop.permute.xlu1 %1276 }
 0x477   :  { %v6362_v13 = vpop.permute.xlu0 %1278 }
 0x47b   :  { %v6364_v14 = vpop.permute.xlu1 %1280  ;;  %v6366_v30 = vpop.permute.xlu0 %1282 }
 0x47f   :  { %v6368_v54 = vpop.permute.xlu1 %1284  ;;  %v6370_v22 = vpop.permute.xlu0 %1286 }
 0x483   :  { %v6372_v60 = vpop.permute.xlu1 %1288  ;;  %v6374_v21 = vpop.permute.xlu0 %1290 }
 0x487   :  { %v6376_v25 = vpop.permute.xlu1 %1292  ;;  %v6378_v20 = vpop.permute.xlu0 %1294 }
 0x48b   :  { %v6380_v3 = vpop.permute.xlu1 %1296  ;;  %v6385_v26 = vpop.permute.xlu0 %1298 }
 0x48f   :  { %v6391_v62 = vpop.permute.xlu1 %1300 }
 0x49c   :  { %v6393_v28 = vpop.permute.xlu0 %1333 }
 0x49d   :  { %9466 = vst [vmem:[#allocation168_spill] sm:$0xff] %v6393_v28  ;;  %v1384_v44 = vmul.f32 %v6224_v24, %v6393_v28 }
 0x49f   :  { %1410 = vrot.lane.b32.xlu0 %v1384_v44, %s5018_s23 }
 0x4a0   :  { %v6402_v59 = vpop.permute.xlu0 %1345  ;;  %v6404_v23 = vpop.permute.xlu1 %1337 }
 0x4a1   :  { %9467 = vst [vmem:[#allocation169_spill] sm:$0xff] %v6402_v59  ;;  %v1385_v48 = vmul.f32 %v6036_v37, %v6404_v23  ;;  %v1387_v44 = vmul.f32 %v6247_v49, %v6402_v59 }
 0x4a3   :  { %1412 = vrot.lane.b32.xlu1 %v1385_v48, %s5018_s23 }
 0x4a4   :  { %v6411_v35 = vpop.permute.xlu0 %1353  ;;  %v6413_v28 = vpop.permute.xlu1 %1341 }
 0x4a5   :  { %9468 = vst [vmem:[#allocation170_spill] sm:$0xff] %v6411_v35  ;;  %v1386_v53 = vmul.f32 %v6043_v42, %v6413_v28  ;;  %v1389_v37 = vmul.f32 %v6264_v18, %v6411_v35 }
 0x4a7   :  { %1416 = vrot.lane.b32.xlu1 %v1387_v44, %s5018_s23  ;;  %1414 = vrot.lane.b32.xlu0 %v1386_v53, %s5018_s23 }
 0x4a8   :  { %v6421_v31 = vpop.permute.xlu0 %1361  ;;  %v6423_v10 = vpop.permute.xlu1 %1349 }
 0x4a9   :  { %9469 = vst [vmem:[#allocation171_spill] sm:$0xff] %v6421_v31  ;;  %v1388_v48 = vmul.f32 %v6060_v56, %v6423_v10  ;;  %v1391_v53 = vmul.f32 %v6281_v9, %v6421_v31 }
 0x4ab   :  { %1420 = vrot.lane.b32.xlu1 %v1389_v37, %s5018_s23  ;;  %1418 = vrot.lane.b32.xlu0 %v1388_v48, %s5018_s23 }
 0x4ac   :  { %v6431_v59 = vpop.permute.xlu0 %1369  ;;  %v6433_v42 = vpop.permute.xlu1 %1357 }
 0x4ad   :  { %9470 = vst [vmem:[#allocation172_spill] sm:$0xff] %v6431_v59  ;;  %v1390_v44 = vmul.f32 %v6077_v43, %v6433_v42  ;;  %v1393_v37 = vmul.f32 %v6298_v8, %v6431_v59 }
 0x4af   :  { %1424 = vrot.lane.b32.xlu1 %v1391_v53, %s5018_s23  ;;  %1422 = vrot.lane.b32.xlu0 %v1390_v44, %s5018_s23 }
 0x4b0   :  { %v6441_v35 = vpop.permute.xlu0 %1377  ;;  %v6443_v56 = vpop.permute.xlu1 %1365 }
 0x4b1   :  { %v1392_v48 = vmul.f32 %v6094_v57, %v6443_v56  ;;  %v1395_v43 = vmul.f32 %v6315_v27, %v6441_v35 }
 0x4b3   :  { %1428 = vrot.lane.b32.xlu1 %v1393_v37, %s5018_s23  ;;  %1426 = vrot.lane.b32.xlu0 %v1392_v48, %s5018_s23  ;;  %v9504_v48 = vld [vmem:[#allocation53_spill] sm:$0xff] }
 0x4b4   :  { %v6451_v31 = vpop.permute.xlu1 %1373 }
 0x4b5   :  { %v1394_v53 = vmul.f32 %v6111_v63, %v6451_v31  ;;  %v6457_v44 = vpop.permute.xlu0 %82 }
 0x4b6   :  { %v145_v59 = vmul.f32 %v6217_v29, %v6457_v44 }
 0x4b7   :  { %1432 = vrot.lane.b32.xlu1 %v1395_v43, %s5018_s23  ;;  %1430 = vrot.lane.b32.xlu0 %v1394_v53, %s5018_s23  ;;  %v9505_v53 = vld [vmem:[#allocation149_spill] sm:$0xff] }
 0x4b8   :  { %159 = vst.msk [vmem:[#allocation2 + $0x8] sm:$0xff] %vm158_vm1, %v145_v59  ;;  %v6464_v57 = vpop.permute.xlu1 %1381  ;;  %v9503_v59 = vld [vmem:[#allocation56_spill] sm:$0xff] }
 0x4b9   :  { %328 = vst.msk [vmem:[#allocation2 + $0x7] sm:$0xff] %vm327_vm4, %v5555_v2  ;;  %v1396_v63 = vmul.f32 %v6327_v36, %v6464_v57  ;;  %v6470_v37 = vpop.permute.xlu0 %87  ;;  %v9471_v2 = vld [vmem:[#allocation72_spill] sm:$0xff]  ;;  %v9494_v36 = vld [vmem:[#allocation146_spill] sm:$0xff] }
 0x4ba   :  { %498 = vst.msk [vmem:[#allocation2 + $0x6] sm:$0xff] %vm497_vm8, %v5586_v50  ;;  %v146_v29 = vmul.f32 %v6224_v24, %v6470_v37 }
 0x4bb   :  { %668 = vst.msk [vmem:[#allocation2 + $0x1] sm:$0xff] %vm667_vm9, %v5712_v51  ;;  %1434 = vrot.lane.b32.xlu0 %v1396_v63, %s5018_s23  ;;  %v9479_v51 = vld [vmem:[#allocation52_spill] sm:$0xff] }
 0x4bc   :  { %160 = vst.msk [vmem:[#allocation2 + $0x10] sm:$0xff] %vm158_vm1, %v146_v29  ;;  %v9506_v63 = vld [vmem:[#allocation148_spill] sm:$0xff]  ;;  %v9507_v29 = vld [vmem:[#allocation78_spill] sm:$0xff] }
 0x4bd   :  { %810 = vst.msk [vmem:[#allocation2] sm:$0xff] %vm809_vm10, %v5826_v4  ;;  %v6486_v24 = vpop.permute.xlu0 %102  ;;  %v9482_v4 = vld [vmem:[#allocation144_spill] sm:$0xff] }
 0x4be   :  { %329 = vst.msk [vmem:[#allocation2 + $0xf] sm:$0xff] %vm327_vm4, %v5565_v39  ;;  %330 = vst.msk [vmem:[#allocation2 + $0x17] sm:$0xff] %vm327_vm4, %v5557_v1  ;;  %v149_v50 = vmul.f32 %v6247_v49, %v6486_v24  ;;  %v9472_v1 = vld [vmem:[#allocation73_spill] sm:$0xff]  ;;  %v9476_v39 = vld [vmem:[#allocation46_spill] sm:$0xff] }
 0x4bf   :  { %978 = vst.msk [vmem:[#allocation2 - $0x1] sm:$0xfe] %vm977_vm11, %v5987_v16  ;;  %v9485_v16 = vld [vmem:[#allocation99_spill] sm:$0xff]  ;;  %vm1922_vm11 = vcmask 261312  }
 0x4c0   :  { %499 = vst.msk [vmem:[#allocation2 + $0xe] sm:$0xff] %vm497_vm8, %v5580_v38  ;;  %500 = vst.msk [vmem:[#allocation2 + $0x16] sm:$0xff] %vm497_vm8, %v5590_v34  ;;  %v9477_v34 = vld [vmem:[#allocation120_spill] sm:$0xff] }
 0x4c1   :  { %501 = vst.msk [vmem:[#allocation2 + $0x1e] sm:$0xff] %vm497_vm8, %v5584_v41  ;;  %v6516_v41 = vpop.permute.xlu0 %112 }
 0x4c2   :  { %1148 = vst.msk [vmem:[#allocation2 - $0x6] sm:$0xc0] %vm1147_vm12, %v6182_v40  ;;  %v151_v38 = vmul.f32 %v6264_v18, %v6516_v41  ;;  %v9490_v40 = vld [vmem:[#allocation123_spill] sm:$0xff]  ;;  %vm1850_vm12 = vcmask 189568  }
 0x4c3   :  { %669 = vst.msk [vmem:[#allocation2 + $0x9] sm:$0xff] %vm667_vm9, %v5710_v58  ;;  %670 = vst.msk [vmem:[#allocation2 + $0x11] sm:$0xff] %vm667_vm9, %v5714_v32  ;;  %v9478_v58 = vld [vmem:[#allocation121_spill] sm:$0xff]  ;;  %v9480_v32 = vld [vmem:[#allocation50_spill] sm:$0xff] }
 0x4c4   :  { %671 = vst.msk [vmem:[#allocation2 + $0x19] sm:$0xff] %vm667_vm9, %v5716_v46  ;;  %v9492_v18 = vld [vmem:[#allocation51_spill] sm:$0xff] }
 0x4c5   :  { %1317 = vst.msk [vmem:[#allocation2 - $0x7] sm:$0x80] %vm1316_vm13, %v6358_v11  ;;  %v9495_v11 = vld [vmem:[#allocation76_spill] sm:$0xff]  ;;  %vm2445_vm13 = vcmask 1043456  }
 0x4c6   :  { %163 = vst.msk [vmem:[#allocation2 + $0x28] sm:$0xff] %vm158_vm1, %v149_v50  ;;  %165 = vst.msk [vmem:[#allocation2 + $0x38] sm:$0xff] %vm158_vm1, %v151_v38  ;;  %v9508_v50 = vld [vmem:[#allocation79_spill] sm:$0xff]  ;;  %v9510_v38 = vld [vmem:[#allocation102_spill] sm:$0xff] }
 0x4c7   :  { %811 = vst.msk [vmem:[#allocation2 + $0x8] sm:$0xff] %vm809_vm10, %v5824_v0  ;;  %812 = vst.msk [vmem:[#allocation2 + $0x10] sm:$0xff] %vm809_vm10, %v5830_v7  ;;  %v9481_v0 = vld [vmem:[#allocation145_spill] sm:$0xff]  ;;  %v9484_v7 = vld [vmem:[#allocation75_spill] sm:$0xff] }
 0x4c8   :  { %813 = vst.msk [vmem:[#allocation2 + $0x18] sm:$0xff] %vm809_vm10, %v5828_v6  ;;  %v9483_v6 = vld [vmem:[#allocation74_spill] sm:$0xff] }
 0x4c9   :  { %332 = vst.msk [vmem:[#allocation2 + $0x27] sm:$0xff] %vm327_vm4, %v5559_v61  ;;  %333 = vst.msk [vmem:[#allocation2 + $0x2f] sm:$0xff] %vm327_vm4, %v5572_v5  ;;  %v9475_v61 = vld [vmem:[#allocation42_spill] sm:$0xff]  ;;  %v6555_v5 = vpop.permute.xlu0 %122 }
 0x4ca   :  { %980 = vst.msk [vmem:[#allocation2 + $0x7] sm:$0xff] %vm979_vm14, %v5989_v17  ;;  %981 = vst.msk [vmem:[#allocation2 + $0xf] sm:$0xff] %vm979_vm14, %v5991_v45  ;;  %v153_v46 = vmul.f32 %v6281_v9, %v6555_v5  ;;  %v9486_v17 = vld [vmem:[#allocation98_spill] sm:$0xff]  ;;  %v9487_v45 = vld [vmem:[#allocation44_spill] sm:$0xff] }
 0x4cb   :  { %982 = vst.msk [vmem:[#allocation2 + $0x17] sm:$0xff] %vm979_vm14, %v5993_v19  ;;  %v9488_v19 = vld [vmem:[#allocation48_spill] sm:$0xff]  ;;  %v9493_v9 = vld [vmem:[#allocation147_spill] sm:$0xff] }
 0x4cc   :  { %502 = vst.msk [vmem:[#allocation2 + $0x26] sm:$0xff] %vm497_vm8, %v5594_v33  ;;  %503 = vst.msk [vmem:[#allocation2 + $0x2e] sm:$0xff] %vm497_vm8, %v5588_v55  ;;  %v9473_v33 = vld [vmem:[#allocation97_spill] sm:$0xff]  ;;  %v9474_v55 = vld [vmem:[#allocation96_spill] sm:$0xff] }
 0x4cd   :  { %1150 = vst.msk [vmem:[#allocation2 + $0x2] sm:$0xff] %vm1149_vm15, %v6180_v52  ;;  %1151 = vst.msk [vmem:[#allocation2 + $0xa] sm:$0xff] %vm1149_vm15, %v6186_v47  ;;  %v6588_v47 = vpop.permute.xlu0 %132  ;;  %v9489_v52 = vld [vmem:[#allocation122_spill] sm:$0xff] }
 0x4ce   :  { %1152 = vst.msk [vmem:[#allocation2 + $0x12] sm:$0xff] %vm1149_vm15, %v6184_v15  ;;  %v9491_v15 = vld [vmem:[#allocation54_spill] sm:$0xff]  ;;  %v155_v49 = vmul.f32 %v6298_v8, %v6588_v47  ;;  %v9497_v8 = vld [vmem:[#allocation101_spill] sm:$0xff] }
 0x4cf   :  { %672 = vst.msk [vmem:[#allocation2 + $0x21] sm:$0xff] %vm667_vm9, %v9471_v2  ;;  %673 = vst.msk [vmem:[#allocation2 + $0x29] sm:$0xff] %vm667_vm9, %v9472_v1  ;;  %v9511_v2 = vld [vmem:[#allocation47_spill] sm:$0xff] }
 0x4d0   :  { %1319 = vst.msk [vmem:[#allocation2 + $0x1] sm:$0xff] %vm1318_vm2, %v6360_v12  ;;  %1320 = vst.msk [vmem:[#allocation2 + $0x9] sm:$0xff] %vm1318_vm2, %v6362_v13  ;;  %v9496_v12 = vld [vmem:[#allocation77_spill] sm:$0xff]  ;;  %v9498_v13 = vld [vmem:[#allocation100_spill] sm:$0xff] }
 0x4d1   :  { %1321 = vst.msk [vmem:[#allocation2 + $0x11] sm:$0xff] %vm1318_vm2, %v6364_v14  ;;  %v9499_v14 = vld [vmem:[#allocation45_spill] sm:$0xff]  ;;  %v9512_v1 = vld [vmem:[#allocation43_spill] sm:$0xff] }
 0x4d2   :  { %814 = vst.msk [vmem:[#allocation2 + $0x20] sm:$0xff] %vm809_vm10, %v9473_v33  ;;  %815 = vst.msk [vmem:[#allocation2 + $0x28] sm:$0xff] %vm809_vm10, %v9474_v55  ;;  %v9513_v33 = vld [vmem:[#allocation126_spill] sm:$0xff]  ;;  %v9516_v55 = vld [vmem:[#allocation55_spill] sm:$0xff] }
 0x4d3   :  { %334 = vst.msk [vmem:[#allocation2 + $0x37] sm:$0xff] %vm327_vm4, %v9475_v61  ;;  %335 = vst.msk [vmem:[#allocation2 + $0x3f] sm:$0xff] %vm327_vm4, %v9476_v39  ;;  %v9517_v61 = vld [vmem:[#allocation151_spill] sm:$0xff]  ;;  %v9518_v39 = vld [vmem:[#allocation150_spill] sm:$0xff] }
 0x4d4   :  { %983 = vst.msk [vmem:[#allocation2 + $0x1f] sm:$0xff] %vm979_vm14, %v9477_v34  ;;  %984 = vst.msk [vmem:[#allocation2 + $0x27] sm:$0xff] %vm979_vm14, %v9478_v58  ;;  %v9519_v34 = vld [vmem:[#allocation80_spill] sm:$0xff]  ;;  %v9520_v58 = vld [vmem:[#allocation81_spill] sm:$0xff] }
 0x4d5   :  { %504 = vst.msk [vmem:[#allocation2 + $0x36] sm:$0xff] %vm497_vm8, %v9479_v51  ;;  %505 = vst.msk [vmem:[#allocation2 + $0x3e] sm:$0xff] %vm497_vm8, %v9480_v32  ;;  %v9521_v51 = vld [vmem:[#allocation105_spill] sm:$0xff]  ;;  %v9522_v32 = vld [vmem:[#allocation104_spill] sm:$0xff] }
 0x4d6   :  { %1153 = vst.msk [vmem:[#allocation2 + $0x1a] sm:$0xff] %vm1149_vm15, %v9481_v0  ;;  %1154 = vst.msk [vmem:[#allocation2 + $0x22] sm:$0xff] %vm1149_vm15, %v9482_v4  ;;  %v9524_v0 = vld [vmem:[#allocation129_spill] sm:$0xff] }
 0x4d7   :  { %674 = vst.msk [vmem:[#allocation2 + $0x31] sm:$0xff] %vm667_vm9, %v9483_v6  ;;  %675 = vst.msk [vmem:[#allocation2 + $0x39] sm:$0xff] %vm667_vm9, %v9484_v7  ;;  %v9525_v4 = vld [vmem:[#allocation153_spill] sm:$0xff]  ;;  %v9526_v6 = vld [vmem:[#allocation152_spill] sm:$0xff] }
 0x4d8   :  { %1322 = vst.msk [vmem:[#allocation2 + $0x19] sm:$0xff] %vm1318_vm2, %v6366_v30  ;;  %1323 = vst.msk [vmem:[#allocation2 + $0x21] sm:$0xff] %vm1318_vm2, %v6368_v54  ;;  %v9500_v30 = vld [vmem:[#allocation49_spill] sm:$0xff]  ;;  %v6621_v54 = vpop.permute.xlu0 %142 }
 0x4d9   :  { %167 = vst.msk [vmem:[#allocation2 + $0x48] sm:$0xff] %vm158_vm1, %v153_v46  ;;  %169 = vst.msk [vmem:[#allocation2 + $0x58] sm:$0xff] %vm158_vm1, %v155_v49  ;;  %v157_v43 = vmul.f32 %v6315_v27, %v6621_v54  ;;  %v9509_v27 = vld [vmem:[#allocation103_spill] sm:$0xff]  ;;  %v9523_v46 = vld [vmem:[#allocation128_spill] sm:$0xff] }
 0x4da   :  { %816 = vst.msk [vmem:[#allocation2 + $0x30] sm:$0xff] %vm809_vm10, %v9485_v16  ;;  %817 = vst.msk [vmem:[#allocation2 + $0x38] sm:$0xff] %vm809_vm10, %v9486_v17 }
 0x4db   :  { %336 = vst.msk [vmem:[#allocation2 + $0x47] sm:$0xff] %vm327_vm4, %v9487_v45  ;;  %337 = vst.msk [vmem:[#allocation2 + $0x4f] sm:$0xff] %vm327_vm4, %v9488_v19 }
 0x4dc   :  { %985 = vst.msk [vmem:[#allocation2 + $0x2f] sm:$0xff] %vm979_vm14, %v9489_v52  ;;  %986 = vst.msk [vmem:[#allocation2 + $0x37] sm:$0xff] %vm979_vm14, %v9490_v40 }
 0x4dd   :  { %506 = vst.msk [vmem:[#allocation2 + $0x46] sm:$0xff] %vm497_vm8, %v9491_v15  ;;  %507 = vst.msk [vmem:[#allocation2 + $0x4e] sm:$0xff] %vm497_vm8, %v9492_v18  ;;  %v9527_v15 = vmov 0.0  }
 0x4de   :  { %1155 = vst.msk [vmem:[#allocation2 + $0x2a] sm:$0xff] %vm1149_vm15, %v9493_v9  ;;  %1156 = vst.msk [vmem:[#allocation2 + $0x32] sm:$0xff] %vm1149_vm15, %v9494_v36 }
 0x4df   :  { %676 = vst.msk [vmem:[#allocation2 + $0x41] sm:$0xff] %vm667_vm9, %v9495_v11  ;;  %677 = vst.msk [vmem:[#allocation2 + $0x49] sm:$0xff] %vm667_vm9, %v9496_v12 }
 0x4e0   :  { %1324 = vst.msk [vmem:[#allocation2 + $0x29] sm:$0xff] %vm1318_vm2, %v6370_v22  ;;  %1325 = vst.msk [vmem:[#allocation2 + $0x31] sm:$0xff] %vm1318_vm2, %v6372_v60  ;;  %v9501_v22 = vld [vmem:[#allocation124_spill] sm:$0xff]  ;;  %v9502_v60 = vld [vmem:[#allocation125_spill] sm:$0xff] }
 0x4e1   :  { %818 = vst.msk [vmem:[#allocation2 + $0x40] sm:$0xff] %vm809_vm10, %v9497_v8  ;;  %819 = vst.msk [vmem:[#allocation2 + $0x48] sm:$0xff] %vm809_vm10, %v9498_v13 }
 0x4e2   :  { %338 = vst.msk [vmem:[#allocation2 + $0x57] sm:$0xff] %vm327_vm4, %v9499_v14  ;;  %339 = vst.msk [vmem:[#allocation2 + $0x5f] sm:$0xff] %vm327_vm4, %v9500_v30 }
 0x4e3   :  { %987 = vst.msk [vmem:[#allocation2 + $0x3f] sm:$0xff] %vm979_vm14, %v9501_v22  ;;  %988 = vst.msk [vmem:[#allocation2 + $0x47] sm:$0xff] %vm979_vm14, %v9502_v60 }
 0x4e4   :  { %508 = vst.msk [vmem:[#allocation2 + $0x56] sm:$0xff] %vm497_vm8, %v9503_v59  ;;  %509 = vst.msk [vmem:[#allocation2 + $0x5e] sm:$0xff] %vm497_vm8, %v9504_v48 }
 0x4e5   :  { %1157 = vst.msk [vmem:[#allocation2 + $0x3a] sm:$0xff] %vm1149_vm15, %v9505_v53  ;;  %1158 = vst.msk [vmem:[#allocation2 + $0x42] sm:$0xff] %vm1149_vm15, %v9506_v63 }
 0x4e6   :  { %678 = vst.msk [vmem:[#allocation2 + $0x51] sm:$0xff] %vm667_vm9, %v9507_v29  ;;  %679 = vst.msk [vmem:[#allocation2 + $0x59] sm:$0xff] %vm667_vm9, %v9508_v50 }
 0x4e7   :  { %1326 = vst.msk [vmem:[#allocation2 + $0x39] sm:$0xff] %vm1318_vm2, %v6374_v21  ;;  %1327 = vst.msk [vmem:[#allocation2 + $0x41] sm:$0xff] %vm1318_vm2, %v6376_v25  ;;  %v9514_v21 = vld [vmem:[#allocation127_spill] sm:$0xff]  ;;  %v9515_v25 = vld [vmem:[#allocation57_spill] sm:$0xff] }
 0x4e8   :  { %171 = vst.msk [vmem:[#allocation2 + $0x68] sm:$0xff] %vm158_vm1, %v157_v43  ;;  %vm1449_vm1 = vcmask 294144  }
 0x4e9   :  { %820 = vst.msk [vmem:[#allocation2 + $0x50] sm:$0xff] %vm809_vm10, %v9509_v27  ;;  %821 = vst.msk [vmem:[#allocation2 + $0x58] sm:$0xff] %vm809_vm10, %v9510_v38 }
 0x4ea   :  { %340 = vst.msk [vmem:[#allocation2 + $0x67] sm:$0xff] %vm327_vm4, %v9511_v2  ;;  %vm1638_vm4 = vcmask 588800  }
 0x4eb   :  { %342 = vst.msk [vmem:[#allocation2 + $0x6f] sm:$0x1] %vm341_vm3, %v9512_v1  ;;  %vm2095_vm3 = vcmask 392512  }
 0x4ec   :  { %989 = vst.msk [vmem:[#allocation2 + $0x4f] sm:$0xff] %vm979_vm14, %v9513_v33  ;;  %990 = vst.msk [vmem:[#allocation2 + $0x57] sm:$0xff] %vm979_vm14, %v9514_v21  ;;  %v6752_v33 = vld [vmem:[%s9082_s3] ss:$0 sm:$0xff]  ;;  %s5020_s3 = smov 40  }
 0x4ed   :  { %510 = vst.msk [vmem:[#allocation2 + $0x66] sm:$0xff] %vm497_vm8, %v9515_v25  ;;  %vm1750_vm8 = vcmask 130112  }
 0x4ee   :  { %512 = vst.msk [vmem:[#allocation2 + $0x6e] sm:$0x3] %vm511_vm5, %v9516_v55  ;;  %vm2179_vm5 = vcmask 458118  }
 0x4ef   :  { %1159 = vst.msk [vmem:[#allocation2 + $0x4a] sm:$0xff] %vm1149_vm15, %v9517_v61  ;;  %1160 = vst.msk [vmem:[#allocation2 + $0x52] sm:$0xff] %vm1149_vm15, %v9518_v39 }
 0x4f0   :  { %680 = vst.msk [vmem:[#allocation2 + $0x61] sm:$0xff] %vm667_vm9, %v9519_v34  ;;  %vm1836_vm9 = vcmask 195712  }
 0x4f1   :  { %682 = vst.msk [vmem:[#allocation2 + $0x69] sm:$0x7f] %vm681_vm6, %v9520_v58  ;;  %vm2181_vm6 = vcmask 458112  }
 0x4f2   :  { %1328 = vst.msk [vmem:[#allocation2 + $0x49] sm:$0xff] %vm1318_vm2, %v6378_v20  ;;  %1329 = vst.msk [vmem:[#allocation2 + $0x51] sm:$0xff] %vm1318_vm2, %v6380_v3 }
 0x4f3   :  { %822 = vst.msk [vmem:[#allocation2 + $0x60] sm:$0xff] %vm809_vm10, %v9521_v51  ;;  %823 = vst.msk [vmem:[#allocation2 + $0x68] sm:$0xff] %vm809_vm10, %v9522_v32  ;;  %v9528_v32 = vld [vmem:[#allocation14_spill] sm:$0xff]  ;;  %vm1764_vm10 = vcmask 122944  }
 0x4f4   :  { %991 = vst.msk [vmem:[#allocation2 + $0x5f] sm:$0xff] %vm979_vm14, %v9523_v46  ;;  %992 = vst.msk [vmem:[#allocation2 + $0x67] sm:$0xff] %vm979_vm14, %v9524_v0  ;;  %vm2008_vm14 = vcmask 326912  }
 0x4f5   :  { %1161 = vst.msk [vmem:[#allocation2 + $0x5a] sm:$0xff] %vm1149_vm15, %v9525_v4  ;;  %1162 = vst.msk [vmem:[#allocation2 + $0x62] sm:$0xff] %vm1149_vm15, %v9526_v6  ;;  %v9529_v4 = vld [vmem:[#allocation22_spill] sm:$0xff]  ;;  %vm1936_vm15 = vcmask 260288  }
 0x4f6   :  { %1330 = vst.msk [vmem:[#allocation2 + $0x59] sm:$0xff] %vm1318_vm2, %v6385_v26  ;;  %1331 = vst.msk [vmem:[#allocation2 + $0x61] sm:$0xff] %vm1318_vm2, %v6391_v62  ;;  %vm2093_vm2 = vcmask 392513  }
 0x4f7   :  { %1639 = vst.msk [vmem:[#allocation3] sm:$0xff] %vm1638_vm4, %v9527_v15  ;;  %1640 = vst.msk [vmem:[#allocation3 + $0x8] sm:$0xff] %vm1638_vm4, %v9527_v15 }
 0x4f8   :  { %1641 = vst.msk [vmem:[#allocation3 + $0x10] sm:$0xff] %vm1638_vm4, %v9527_v15  ;;  %1642 = vst.msk [vmem:[#allocation3 + $0x18] sm:$0xff] %vm1638_vm4, %v9527_v15 }
 0x4f9   :  { %1643 = vst.msk [vmem:[#allocation3 + $0x20] sm:$0xff] %vm1638_vm4, %v9527_v15  ;;  %1644 = vst.msk [vmem:[#allocation3 + $0x28] sm:$0xff] %vm1638_vm4, %v9527_v15 }
 0x4fa   :  { %1645 = vst.msk [vmem:[#allocation3 + $0x30] sm:$0xff] %vm1638_vm4, %v9527_v15  ;;  %1646 = vst.msk [vmem:[#allocation3 + $0x38] sm:$0xff] %vm1638_vm4, %v9527_v15 }
 0x4fb   :  { %1647 = vst.msk [vmem:[#allocation3 + $0x40] sm:$0xff] %vm1638_vm4, %v9527_v15  ;;  %1648 = vst.msk [vmem:[#allocation3 + $0x48] sm:$0xff] %vm1638_vm4, %v9527_v15 }
 0x4fc   :  { %1649 = vst.msk [vmem:[#allocation3 + $0x50] sm:$0xff] %vm1638_vm4, %v9527_v15  ;;  %1650 = vst.msk [vmem:[#allocation3 + $0x58] sm:$0xff] %vm1638_vm4, %v9527_v15 }
 0x4fd   :  { %v1476_v2 = vld [vmem:[#allocation2 + $0x68] sm:$0xff]  ;;  %1651 = vst.msk [vmem:[#allocation3 + $0x60] sm:$0xff] %vm1638_vm4, %v9527_v15  ;;  %1652 = vst.msk [vmem:[#allocation3 + $0x68] sm:$0xff] %vm1638_vm4, %v9527_v15 }
 0x511   :  { %v1411_v20 = vpop.permute.xlu0 %1410 }
 0x512   :  { %1450 = vst.msk [vmem:[#allocation2] sm:$0xff] %vm1449_vm1, %v1411_v20 }
 0x515   :  { %v1413_v3 = vpop.permute.xlu1 %1412 }
 0x516   :  { %1451 = vst.msk [vmem:[#allocation2 + $0x8] sm:$0xff] %vm1449_vm1, %v1413_v3 }
 0x519   :  { %v1415_v7 = vpop.permute.xlu0 %1414  ;;  %v1417_v16 = vpop.permute.xlu1 %1416  ;;  %v1463_v17 = vld [vmem:[#allocation2] sm:$0xff] }
 0x51a   :  { %1452 = vst.msk [vmem:[#allocation2 + $0x10] sm:$0xff] %vm1449_vm1, %v1415_v7  ;;  %1453 = vst.msk [vmem:[#allocation2 + $0x18] sm:$0xff] %vm1449_vm1, %v1417_v16 }
 0x51d   :  { %v1419_v45 = vpop.permute.xlu0 %1418  ;;  %v1421_v19 = vpop.permute.xlu1 %1420  ;;  %v1464_v26 = vld [vmem:[#allocation2 + $0x8] sm:$0xff] }
 0x51e   :  { %1454 = vst.msk [vmem:[#allocation2 + $0x20] sm:$0xff] %vm1449_vm1, %v1419_v45  ;;  %1455 = vst.msk [vmem:[#allocation2 + $0x28] sm:$0xff] %vm1449_vm1, %v1421_v19  ;;  %v1477_v62 = vpack.c.bf16 %v1464_v26, %v1463_v17  ;;  %v9530_v17 = vld [vmem:[#allocation32_spill] sm:$0xff] }
 0x520   :  { %4685 = vmatmul.mubr.msk.bf16.vlgmr.msra.gmra.mrb[0].mxu0 %vm65_vm0, %v1477_v62 }
 0x521   :  { %v1423_v52 = vpop.permute.xlu0 %1422  ;;  %v1425_v40 = vpop.permute.xlu1 %1424  ;;  %4688 = vmatprep.mubr.msk.bf16.mxu0 %vm5019_vm7, %v9527_v15  ;;  %v1465_v18 = vld [vmem:[#allocation2 + $0x10] sm:$0xff]  ;;  %v1466_v49 = vld [vmem:[#allocation2 + $0x18] sm:$0xff] }
 0x522   :  { %1456 = vst.msk [vmem:[#allocation2 + $0x30] sm:$0xff] %vm1449_vm1, %v1423_v52  ;;  %1457 = vst.msk [vmem:[#allocation2 + $0x38] sm:$0xff] %vm1449_vm1, %v1425_v40  ;;  %v1478_v11 = vpack.c.bf16 %v1466_v49, %v1465_v18  ;;  %v9532_v18 = vld [vmem:[#allocation8_spill] sm:$0xff] }
 0x525   :  { %v1427_v9 = vpop.permute.xlu0 %1426  ;;  %v1429_v36 = vpop.permute.xlu1 %1428  ;;  %v1467_v13 = vld [vmem:[#allocation2 + $0x20] sm:$0xff]  ;;  %v1468_v14 = vld [vmem:[#allocation2 + $0x28] sm:$0xff] }
 0x526   :  { %1458 = vst.msk [vmem:[#allocation2 + $0x40] sm:$0xff] %vm1449_vm1, %v1427_v9  ;;  %1459 = vst.msk [vmem:[#allocation2 + $0x48] sm:$0xff] %vm1449_vm1, %v1429_v36  ;;  %v1479_v22 = vpack.c.bf16 %v1468_v14, %v1467_v13  ;;  %v9533_v9 = vld [vmem:[#allocation23_spill] sm:$0xff] }
 0x528   :  { %4689 = vmatmul.mubr.msk.bf16.gmra.mrb[4].mxu0 %vm65_vm0, %v1478_v11 }
 0x529   :  { %v1431_v12 = vpop.permute.xlu0 %1430  ;;  %v1433_v8 = vpop.permute.xlu1 %1432  ;;  %4692 = vmatprep.mubr.msk.bf16.mxu0 %vm5019_vm7, %v9527_v15  ;;  %v1469_v60 = vld [vmem:[#allocation2 + $0x30] sm:$0xff]  ;;  %v1470_v59 = vld [vmem:[#allocation2 + $0x38] sm:$0xff] }
 0x52a   :  { %1460 = vst.msk [vmem:[#allocation2 + $0x50] sm:$0xff] %vm1449_vm1, %v1431_v12  ;;  %1461 = vst.msk [vmem:[#allocation2 + $0x58] sm:$0xff] %vm1449_vm1, %v1433_v8  ;;  %v1480_v48 = vpack.c.bf16 %v1470_v59, %v1469_v60  ;;  %v9534_v12 = vld [vmem:[#allocation9_spill] sm:$0xff] }
 0x52d   :  { %v1435_v30 = vpop.permute.xlu0 %1434  ;;  %v1471_v43 = vld [vmem:[#allocation2 + $0x40] sm:$0xff]  ;;  %v1472_v53 = vld [vmem:[#allocation2 + $0x48] sm:$0xff] }
 0x52e   :  { %1462 = vst.msk [vmem:[#allocation2 + $0x60] sm:$0xff] %vm1449_vm1, %v1435_v30  ;;  %v1481_v63 = vpack.c.bf16 %v1472_v53, %v1471_v43  ;;  %v9535_v30 = vld [vmem:[#allocation35_spill] sm:$0xff]  ;;  %v9536_v53 = vld [vmem:[#allocation24_spill] sm:$0xff]  ;;  %vm2265_vm1 = vcmask 523719  }
 0x530   :  { %4693 = vmatmul.mubr.msk.bf16.gmra.mrb[8].mxu0 %vm65_vm0, %v1479_v22 }
 0x531   :  { %4696 = vmatprep.mubr.msk.bf16.mxu0 %vm5019_vm7, %v9527_v15  ;;  %v1473_v29 = vld [vmem:[#allocation2 + $0x50] sm:$0xff]  ;;  %v1474_v50 = vld [vmem:[#allocation2 + $0x58] sm:$0xff] }
 0x532   :  { %v1482_v27 = vpack.c.bf16 %v1474_v50, %v1473_v29  ;;  %v9537_v50 = vld [vmem:[#allocation16_spill] sm:$0xff] }
 0x535   :  { %v1475_v38 = vld [vmem:[#allocation2 + $0x60] sm:$0xff] }
 0x536   :  { %v1483_v1 = vpack.c.bf16 %v1476_v2, %v1475_v38  ;;  %v9538_v2 = vld [vmem:[#allocation25_spill] sm:$0xff] }
 0x538   :  { %4697 = vmatmul.mubr.msk.bf16.gmra.mrb[12].mxu0 %vm65_vm0, %v1480_v48 }
 0x539   :  { %4700 = vmatprep.mubr.msk.bf16.mxu0 %vm5019_vm7, %v9527_v15 }
 0x540   :  { %4701 = vmatmul.mubr.msk.bf16.gmra.mrb[16].mxu0 %vm65_vm0, %v1481_v63 }
 0x541   :  { %4704 = vmatprep.mubr.msk.bf16.mxu0 %vm5019_vm7, %v9527_v15 }
 0x548   :  { %4705 = vmatmul.mubr.msk.bf16.gmra.mrb[20].mxu0 %vm65_vm0, %v1482_v27 }
 0x549   :  { %4708 = vmatprep.mubr.msk.bf16.mxu0 %vm5019_vm7, %v9527_v15 }
 0x550   :  { %4709 = vmatmul.mubr.msk.bf16.gmra.mrb[24].mxu0 %vm65_vm0, %v1483_v1  ;;  %vm1666_vm0 = vcmask 64512  }
 0x551   :  { %4754 = vmatprep.mubr.msk.bf16.mxu0 %vm5019_vm7, %v9527_v15 }
 0x5f3   :  { %v1569_v21 = vpop.f32.mrb[0].mxu0 }
 0x5f4   :  { %v1570_v25 = vadd.f32 %v6752_v33, %v1569_v21  ;;  %v4686_v55 = vpop.f32.mrb[1].mxu0 }
 0x5f5   :  { %v1572_v61 = vpop.f32.mrb[2].mxu0 }
 0x5f6   :  { %v6755_v39 = vmax.f32 %v1570_v25, 0.0  ;;  %v1573_v34 = vadd.f32 %v6752_v33, %v1572_v61  ;;  %v4687_v58 = vpop.f32.mrb[3].mxu0  ;;  %v9539_v25 = vld [vmem:[#allocation10_spill] sm:$0xff] }
 0x5f7   :  { %v9540_v58 = vld [vmem:[#allocation37_spill] sm:$0xff] }
 0x5f8   :  { %v6758_v51 = vmax.f32 %v1573_v34, 0.0  ;;  %v1680_v46 = vmul.f32 %v6755_v39, %v9528_v32  ;;  %v1653_v0 = vmul.f32 %v6755_v39, %v6457_v44  ;;  %v1766_v45 = vmul.f32 %v6755_v39, %v9530_v17 }
 0x5fa   :  { %1708 = vrot.lane.b32.xlu1 %v1680_v46, %s5007_s30  ;;  %v1681_v6 = vmul.f32 %v6758_v51, %v9529_v4  ;;  %1667 = vst.msk [vmem:[#allocation3 + $0x8] sm:$0xff] %vm1666_vm0, %v1653_v0  ;;  %v1654_v3 = vmul.f32 %v6758_v51, %v6470_v37  ;;  %v9531_v37 = vld [vmem:[#allocation15_spill] sm:$0xff]  ;;  %v1767_v63 = vmul.f32 %v6758_v51, %v9536_v53 }
 0x5fb   :  { %v1577_v20 = vpop.f32.mrb[4].mxu0 }
 0x5fc   :  { %v1578_v7 = vadd.f32 %v6752_v33, %v1577_v20  ;;  %1710 = vrot.lane.b32.xlu0 %v1681_v6, %s5007_s30  ;;  %v4690_v16 = vpop.f32.mrb[5].mxu0  ;;  %1668 = vst.msk [vmem:[#allocation3 + $0x10] sm:$0xff] %vm1666_vm0, %v1654_v3  ;;  %v9541_v6 = vld [vmem:[#allocation26_spill] sm:$0xff] }
 0x5fd   :  { %v1580_v44 = vpop.f32.mrb[6].mxu0 }
 0x5fe   :  { %v6775_v19 = vmax.f32 %v1578_v7, 0.0  ;;  %v1581_v26 = vadd.f32 %v6752_v33, %v1580_v44  ;;  %1794 = vrot.lane.b32.xlu1 %v1766_v45, %s5011_s12  ;;  %v4691_v62 = vpop.f32.mrb[7].mxu0  ;;  %v9542_v7 = vld [vmem:[#allocation17_spill] sm:$0xff]  ;;  %v9543_v45 = vld [vmem:[#allocation27_spill] sm:$0xff] }
 0x5ff   :  { %v9544_v62 = vld [vmem:[#allocation11_spill] sm:$0xff] }
 0x600   :  { %v6779_v52 = vmax.f32 %v1581_v26, 0.0  ;;  %v1682_v40 = vmul.f32 %v6775_v19, %v9531_v37  ;;  %v1655_v49 = vmul.f32 %v6775_v19, %v9532_v18  ;;  %v1768_v22 = vmul.f32 %v6775_v19, %v9535_v30  ;;  %v9547_v30 = vld [vmem:[#allocation18_spill] sm:$0xff] }
 0x602   :  { %1712 = vrot.lane.b32.xlu1 %v1682_v40, %s5007_s30  ;;  %v1683_v36 = vmul.f32 %v6779_v52, %v9533_v9  ;;  %1669 = vst.msk [vmem:[#allocation3 + $0x18] sm:$0xff] %vm1666_vm0, %v1655_v49  ;;  %v1656_v8 = vmul.f32 %v6779_v52, %v9534_v12  ;;  %v1769_v20 = vmul.f32 %v6779_v52, %v9541_v6  ;;  %v9545_v49 = vld [vmem:[#allocation38_spill] sm:$0xff] }
 0x603   :  { %v1585_v11 = vpop.f32.mrb[8].mxu0 }
 0x604   :  { %v1586_v13 = vadd.f32 %v6752_v33, %v1585_v11  ;;  %1714 = vrot.lane.b32.xlu0 %v1683_v36, %s5007_s30  ;;  %v4694_v14 = vpop.f32.mrb[9].mxu0  ;;  %1670 = vst.msk [vmem:[#allocation3 + $0x20] sm:$0xff] %vm1666_vm0, %v1656_v8  ;;  %v9546_v8 = vld [vmem:[#allocation28_spill] sm:$0xff] }
 0x605   :  { %v1588_v60 = vpop.f32.mrb[10].mxu0 }
 0x606   :  { %v6796_v59 = vmax.f32 %v1586_v13, 0.0  ;;  %v1589_v48 = vadd.f32 %v6752_v33, %v1588_v60  ;;  %1798 = vrot.lane.b32.xlu1 %v1768_v22, %s5011_s12  ;;  %v4695_v43 = vpop.f32.mrb[11].mxu0 }
 0x608   :  { %v6802_v29 = vmax.f32 %v1589_v48, 0.0  ;;  %1796 = vrot.lane.b32.xlu0 %v1767_v63, %s5011_s12  ;;  %v1684_v27 = vmul.f32 %v6796_v59, %v9537_v50  ;;  %v1657_v38 = vmul.f32 %v6796_v59, %v6486_v24  ;;  %v1770_v32 = vmul.f32 %v6796_v59, %v9540_v58  ;;  %v9548_v48 = vld [vmem:[#allocation29_spill] sm:$0xff]  ;;  %v9549_v63 = vld [vmem:[#allocation12_spill] sm:$0xff] }
 0x60a   :  { %1716 = vrot.lane.b32.xlu1 %v1684_v27, %s5007_s30  ;;  %v1685_v1 = vmul.f32 %v6802_v29, %v9538_v2  ;;  %1671 = vst.msk [vmem:[#allocation3 + $0x28] sm:$0xff] %vm1666_vm0, %v1657_v38  ;;  %v1658_v55 = vmul.f32 %v6802_v29, %v9539_v25  ;;  %v1771_v13 = vmul.f32 %v6802_v29, %v9546_v8  ;;  %v9550_v2 = vld [vmem:[#allocation39_spill] sm:$0xff]  ;;  %v9558_v8 = vld [vmem:[#allocation20_spill] sm:$0xff] }
 0x60b   :  { %v1593_v21 = vpop.f32.mrb[12].mxu0 }
 0x60c   :  { %v1594_v61 = vadd.f32 %v6752_v33, %v1593_v21  ;;  %1718 = vrot.lane.b32.xlu0 %v1685_v1, %s5007_s30  ;;  %v4698_v34 = vpop.f32.mrb[13].mxu0  ;;  %1672 = vst.msk [vmem:[#allocation3 + $0x30] sm:$0xff] %vm1666_vm0, %v1658_v55 }
 0x60d   :  { %v1596_v24 = vpop.f32.mrb[14].mxu0 }
 0x60e   :  { %v6820_v46 = vmax.f32 %v1594_v61, 0.0  ;;  %v1597_v0 = vadd.f32 %v6752_v33, %v1596_v24  ;;  %1802 = vrot.lane.b32.xlu1 %v1770_v32, %s5011_s12  ;;  %v4699_v4 = vpop.f32.mrb[15].mxu0  ;;  %v9551_v61 = vld [vmem:[#allocation30_spill] sm:$0xff]  ;;  %v9552_v32 = vld [vmem:[#allocation19_spill] sm:$0xff] }
 0x60f   :  { %v9553_v4 = vld [vmem:[#allocation31_spill] sm:$0xff] }
 0x610   :  { %v6826_v3 = vmax.f32 %v1597_v0, 0.0  ;;  %1800 = vrot.lane.b32.xlu0 %v1769_v20, %s5011_s12  ;;  %v1686_v16 = vmul.f32 %v6820_v46, %v9542_v7  ;;  %v1659_v17 = vmul.f32 %v6820_v46, %v6516_v41  ;;  %v1772_v9 = vmul.f32 %v6820_v46, %v9545_v49  ;;  %v9554_v7 = vld [vmem:[#allocation13_spill] sm:$0xff] }
 0x612   :  { %1720 = vrot.lane.b32.xlu1 %v1686_v16, %s5007_s30  ;;  %v1687_v44 = vmul.f32 %v6826_v3, %v9543_v45  ;;  %1673 = vst.msk [vmem:[#allocation3 + $0x38] sm:$0xff] %vm1666_vm0, %v1659_v17  ;;  %v1660_v37 = vmul.f32 %v6826_v3, %v9544_v62  ;;  %v1773_v34 = vmul.f32 %v6826_v3, %v9551_v61 }
 0x613   :  { %v1601_v26 = vpop.f32.mrb[16].mxu0 }
 0x614   :  { %v1602_v40 = vadd.f32 %v6752_v33, %v1601_v26  ;;  %1722 = vrot.lane.b32.xlu0 %v1687_v44, %s5007_s30  ;;  %v4702_v18 = vpop.f32.mrb[17].mxu0  ;;  %1674 = vst.msk [vmem:[#allocation3 + $0x40] sm:$0xff] %vm1666_vm0, %v1660_v37  ;;  %v9555_v44 = vld [vmem:[#allocation40_spill] sm:$0xff] }
 0x615   :  { %v1604_v41 = vpop.f32.mrb[18].mxu0  ;;  %v9556_v18 = vld [vmem:[#allocation33_spill] sm:$0xff] }
 0x616   :  { %v6844_v36 = vmax.f32 %v1602_v40, 0.0  ;;  %v1605_v11 = vadd.f32 %v6752_v33, %v1604_v41  ;;  %1806 = vrot.lane.b32.xlu1 %v1772_v9, %s5011_s12  ;;  %v4703_v12 = vpop.f32.mrb[19].mxu0  ;;  %v9557_v41 = vld [vmem:[#allocation21_spill] sm:$0xff] }
 0x618   :  { %v6850_v14 = vmax.f32 %v1605_v11, 0.0  ;;  %1804 = vrot.lane.b32.xlu0 %v1771_v13, %s5011_s12  ;;  %v1688_v22 = vmul.f32 %v6844_v36, %v9547_v30  ;;  %v1661_v60 = vmul.f32 %v6844_v36, %v6555_v5  ;;  %v1774_v1 = vmul.f32 %v6844_v36, %v9550_v2  ;;  %v9559_v13 = vld [vmem:[#allocation41_spill] sm:$0xff]  ;;  %v9565_v2 = vld [vmem:[#allocation63_spill] sm:$0xff] }
 0x61a   :  { %1724 = vrot.lane.b32.xlu1 %v1688_v22, %s5007_s30  ;;  %v1689_v43 = vmul.f32 %v6850_v14, %v9548_v48  ;;  %1675 = vst.msk [vmem:[#allocation3 + $0x48] sm:$0xff] %vm1666_vm0, %v1661_v60  ;;  %v1662_v50 = vmul.f32 %v6850_v14, %v9549_v63  ;;  %v1775_v49 = vmul.f32 %v6850_v14, %v9556_v18  ;;  %v9560_v22 = vld [vmem:[#allocation34_spill] sm:$0xff]  ;;  %v9563_v63 = vld [vmem:[#allocation61_spill] sm:$0xff] }
 0x61b   :  { %v1609_v53 = vpop.f32.mrb[20].mxu0  ;;  %v9576_v18 = vld [vmem:[#allocation70_spill] sm:$0xff] }
 0x61c   :  { %v1610_v27 = vadd.f32 %v6752_v33, %v1609_v53  ;;  %1726 = vrot.lane.b32.xlu0 %v1689_v43, %s5007_s30  ;;  %v4706_v38 = vpop.f32.mrb[21].mxu0  ;;  %1676 = vst.msk [vmem:[#allocation3 + $0x50] sm:$0xff] %vm1666_vm0, %v1662_v50  ;;  %v9562_v43 = vld [vmem:[#allocation36_spill] sm:$0xff]  ;;  %v1854_v50 = vmul.f32 %v6775_v19, %v9563_v63 }
 0x61d   :  { %v1612_v5 = vpop.f32.mrb[22].mxu0 }
 0x61e   :  { %v6868_v21 = vmax.f32 %v1610_v27, 0.0  ;;  %v1613_v25 = vadd.f32 %v6752_v33, %v1612_v5  ;;  %1810 = vrot.lane.b32.xlu1 %v1774_v1, %s5011_s12  ;;  %v4707_v55 = vpop.f32.mrb[23].mxu0  ;;  %v9564_v27 = vld [vmem:[#allocation59_spill] sm:$0xff]  ;;  %v1856_v1 = vmul.f32 %v6796_v59, %v9565_v2  ;;  %v9566_v5 = vld [vmem:[#allocation60_spill] sm:$0xff] }
 0x61f   :  { %v1853_v38 = vmul.f32 %v6758_v51, %v9564_v27  ;;  %v9567_v55 = vld [vmem:[#allocation65_spill] sm:$0xff] }
 0x620   :  { %v6874_v58 = vmax.f32 %v1613_v25, 0.0  ;;  %1808 = vrot.lane.b32.xlu0 %v1773_v34, %s5011_s12  ;;  %v1690_v24 = vmul.f32 %v6868_v21, %v9552_v32  ;;  %v1663_v0 = vmul.f32 %v6868_v21, %v6588_v47  ;;  %v1776_v26 = vmul.f32 %v6868_v21, %v9555_v44  ;;  %v9568_v34 = vld [vmem:[#allocation62_spill] sm:$0xff] }
 0x621   :  { %v1855_v25 = vmul.f32 %v6779_v52, %v9566_v5  ;;  %v1858_v61 = vmul.f32 %v6820_v46, %v9567_v55  ;;  %v1857_v32 = vmul.f32 %v6802_v29, %v9568_v34 }
 0x622   :  { %1728 = vrot.lane.b32.xlu1 %v1690_v24, %s5007_s30  ;;  %v1691_v6 = vmul.f32 %v6874_v58, %v9553_v4  ;;  %1677 = vst.msk [vmem:[#allocation3 + $0x58] sm:$0xff] %vm1666_vm0, %v1663_v0  ;;  %v1664_v16 = vmul.f32 %v6874_v58, %v9554_v7  ;;  %v1777_v60 = vmul.f32 %v6874_v58, %v9560_v22  ;;  %v9569_v24 = vld [vmem:[#allocation67_spill] sm:$0xff]  ;;  %v9570_v4 = vld [vmem:[#allocation64_spill] sm:$0xff] }
 0x623   :  { %v1617_v20 = vpop.f32.mrb[24].mxu0  ;;  %v1860_v0 = vmul.f32 %v6844_v36, %v9569_v24 }
 0x624   :  { %v1618_v17 = vadd.f32 %v6752_v33, %v1617_v20  ;;  %1730 = vrot.lane.b32.xlu0 %v1691_v6, %s5007_s30  ;;  %v4710_v45 = vpop.f32.mrb[25].mxu0  ;;  %1678 = vst.msk [vmem:[#allocation3 + $0x60] sm:$0xff] %vm1666_vm0, %v1664_v16  ;;  %v1859_v6 = vmul.f32 %v6826_v3, %v9570_v4  ;;  %v9571_v20 = vld [vmem:[#allocation69_spill] sm:$0xff]  ;;  %v9572_v16 = vld [vmem:[#allocation66_spill] sm:$0xff] }
 0x625   :  { %v1620_v47 = vpop.f32.mrb[26].mxu0  ;;  %v1862_v7 = vmul.f32 %v6868_v21, %v9571_v20  ;;  %v9573_v45 = vld [vmem:[#allocation71_spill] sm:$0xff]  ;;  %v9591_v20 = vld [vmem:[#allocation108_spill] sm:$0xff] }
 0x626   :  { %v6892_v62 = vmax.f32 %v1618_v17, 0.0  ;;  %v1621_v37 = vadd.f32 %v6752_v33, %v1620_v47  ;;  %1814 = vrot.lane.b32.xlu1 %v1776_v26, %s5011_s12  ;;  %v4711_v40 = vpop.f32.mrb[27].mxu0  ;;  %v1861_v17 = vmul.f32 %v6850_v14, %v9572_v16  ;;  %v9574_v26 = vld [vmem:[#allocation68_spill] sm:$0xff] }
 0x627   :  { %v1863_v47 = vmul.f32 %v6874_v58, %v9574_v26  ;;  %v9593_v26 = vld [vmem:[#allocation110_spill] sm:$0xff] }
 0x628   :  { %v6898_v9 = vmax.f32 %v1621_v37, 0.0  ;;  %1812 = vrot.lane.b32.xlu0 %v1775_v49, %s5011_s12  ;;  %v1692_v11 = vmul.f32 %v6892_v62, %v9557_v41  ;;  %v1665_v12 = vmul.f32 %v6892_v62, %v6621_v54  ;;  %v1778_v30 = vmul.f32 %v6892_v62, %v9559_v13  ;;  %v9561_v54 = vld [vmem:[#allocation58_spill] sm:$0xff]  ;;  %v9577_v41 = vld [vmem:[#allocation85_spill] sm:$0xff] }
 0x629   :  { %v1852_v48 = vmul.f32 %v6755_v39, %v9561_v54  ;;  %v1864_v44 = vmul.f32 %v6892_v62, %v9573_v45  ;;  %v9575_v37 = vld [vmem:[#allocation82_spill] sm:$0xff] }
 0x62a   :  { %1732 = vrot.lane.b32.xlu1 %v1692_v11, %s5007_s30  ;;  %v1693_v33 = vmul.f32 %v6898_v9, %v9558_v8  ;;  %1679 = vst.msk [vmem:[#allocation3 + $0x68] sm:$0xff] %vm1666_vm0, %v1665_v12  ;;  %v1779_v53 = vmul.f32 %v6898_v9, %v9562_v43  ;;  %v1938_v40 = vmul.f32 %v6755_v39, %v9575_v37  ;;  %v9578_v12 = vld [vmem:[#allocation83_spill] sm:$0xff]  ;;  %v9594_v37 = vld [vmem:[#allocation109_spill] sm:$0xff]  ;;  %vm2267_vm0 = vcmask 523712  }
 0x62b   :  { %v1865_v49 = vmul.f32 %v6898_v9, %v9576_v18  ;;  %v1940_v11 = vmul.f32 %v6775_v19, %v9577_v41  ;;  %v1939_v8 = vmul.f32 %v6758_v51, %v9578_v12  ;;  %v9596_v12 = vld [vmem:[#allocation111_spill] sm:$0xff] }
 0x62c   :  { %1734 = vrot.lane.b32.xlu0 %v1693_v33, %s5007_s30  ;;  %v9579_v33 = vld [vmem:[#allocation87_spill] sm:$0xff]  ;;  %s5021_s30 = smov 48  }
 0x62d   :  { %v1942_v13 = vmul.f32 %v6796_v59, %v9579_v33 }
 0x62e   :  { %1818 = vrot.lane.b32.xlu1 %v1778_v30, %s5011_s12  ;;  %v9580_v30 = vld [vmem:[#allocation84_spill] sm:$0xff] }
 0x62f   :  { %v1941_v22 = vmul.f32 %v6779_v52, %v9580_v30 }
 0x630   :  { %1816 = vrot.lane.b32.xlu0 %v1777_v60, %s5011_s12  ;;  %v9581_v60 = vld [vmem:[#allocation89_spill] sm:$0xff] }
 0x631   :  { %v1944_v54 = vmul.f32 %v6820_v46, %v9581_v60  ;;  %v9598_v60 = vld [vmem:[#allocation113_spill] sm:$0xff] }
 0x632   :  { %1880 = vrot.lane.b32.xlu1 %v1852_v48, %s5015_s28  ;;  %v9582_v48 = vld [vmem:[#allocation86_spill] sm:$0xff] }
 0x633   :  { %v1943_v43 = vmul.f32 %v6802_v29, %v9582_v48 }
 0x634   :  { %1820 = vrot.lane.b32.xlu0 %v1779_v53, %s5011_s12  ;;  %v9583_v53 = vld [vmem:[#allocation91_spill] sm:$0xff]  ;;  %s5022_s12 = smov 56  }
 0x635   :  { %v1946_v63 = vmul.f32 %v6844_v36, %v9583_v53 }
 0x636   :  { %1884 = vrot.lane.b32.xlu1 %v1854_v50, %s5015_s28  ;;  %v9584_v50 = vld [vmem:[#allocation88_spill] sm:$0xff] }
 0x637   :  { %v1945_v27 = vmul.f32 %v6826_v3, %v9584_v50  ;;  %v9600_v50 = vld [vmem:[#allocation115_spill] sm:$0xff] }
 0x638   :  { %1882 = vrot.lane.b32.xlu0 %v1853_v38, %s5015_s28  ;;  %v9585_v38 = vld [vmem:[#allocation93_spill] sm:$0xff] }
 0x639   :  { %v1948_v2 = vmul.f32 %v6868_v21, %v9585_v38 }
 0x63a   :  { %1888 = vrot.lane.b32.xlu1 %v1856_v1, %s5015_s28  ;;  %v9586_v1 = vld [vmem:[#allocation90_spill] sm:$0xff] }
 0x63b   :  { %v1947_v5 = vmul.f32 %v6850_v14, %v9586_v1 }
 0x63c   :  { %1886 = vrot.lane.b32.xlu0 %v1855_v25, %s5015_s28  ;;  %v9587_v25 = vld [vmem:[#allocation95_spill] sm:$0xff] }
 0x63d   :  { %v1950_v55 = vmul.f32 %v6892_v62, %v9587_v25  ;;  %v9602_v25 = vld [vmem:[#allocation117_spill] sm:$0xff] }
 0x63e   :  { %1892 = vrot.lane.b32.xlu1 %v1858_v61, %s5015_s28  ;;  %v9588_v61 = vld [vmem:[#allocation92_spill] sm:$0xff] }
 0x63f   :  { %v1949_v34 = vmul.f32 %v6874_v58, %v9588_v61 }
 0x640   :  { %1890 = vrot.lane.b32.xlu0 %v1857_v32, %s5015_s28  ;;  %v9589_v32 = vld [vmem:[#allocation106_spill] sm:$0xff] }
 0x641   :  { %v2023_v24 = vmul.f32 %v6755_v39, %v9589_v32 }
 0x642   :  { %1896 = vrot.lane.b32.xlu1 %v1860_v0, %s5015_s28  ;;  %v9590_v0 = vld [vmem:[#allocation94_spill] sm:$0xff] }
 0x643   :  { %v1951_v4 = vmul.f32 %v6898_v9, %v9590_v0  ;;  %v9604_v0 = vld [vmem:[#allocation119_spill] sm:$0xff] }
 0x644   :  { %1894 = vrot.lane.b32.xlu0 %v1859_v6, %s5015_s28 }
 0x646   :  { %1900 = vrot.lane.b32.xlu1 %v1862_v7, %s5015_s28  ;;  %v2025_v7 = vmul.f32 %v6775_v19, %v9591_v20  ;;  %v9605_v20 = vld [vmem:[#allocation132_spill] sm:$0xff] }
 0x648   :  { %1898 = vrot.lane.b32.xlu0 %v1861_v17, %s5015_s28  ;;  %v9592_v17 = vld [vmem:[#allocation107_spill] sm:$0xff] }
 0x649   :  { %v2024_v45 = vmul.f32 %v6758_v51, %v9592_v17  ;;  %v9606_v17 = vld [vmem:[#allocation131_spill] sm:$0xff] }
 0x64a   :  { %1904 = vrot.lane.b32.xlu1 %v1864_v44, %s5015_s28 }
 0x64c   :  { %1902 = vrot.lane.b32.xlu0 %v1863_v47, %s5015_s28  ;;  %v2027_v47 = vmul.f32 %v6796_v59, %v9593_v26  ;;  %v9607_v26 = vld [vmem:[#allocation134_spill] sm:$0xff] }
 0x64e   :  { %1966 = vrot.lane.b32.xlu1 %v1938_v40, %s5018_s23  ;;  %v2026_v40 = vmul.f32 %v6779_v52, %v9594_v37 }
 0x650   :  { %1906 = vrot.lane.b32.xlu0 %v1865_v49, %s5015_s28  ;;  %v9595_v49 = vld [vmem:[#allocation112_spill] sm:$0xff] }
 0x651   :  { %v2029_v41 = vmul.f32 %v6820_v46, %v9595_v49 }
 0x652   :  { %1970 = vrot.lane.b32.xlu1 %v1940_v11, %s5018_s23 }
 0x654   :  { %1968 = vrot.lane.b32.xlu0 %v1939_v8, %s5018_s23  ;;  %v2028_v8 = vmul.f32 %v6802_v29, %v9596_v12 }
 0x656   :  { %1974 = vrot.lane.b32.xlu1 %v1942_v13, %s5018_s23  ;;  %v9597_v13 = vld [vmem:[#allocation114_spill] sm:$0xff] }
 0x657   :  { %v2031_v30 = vmul.f32 %v6844_v36, %v9597_v13 }
 0x658   :  { %1972 = vrot.lane.b32.xlu0 %v1941_v22, %s5018_s23 }
 0x65a   :  { %1978 = vrot.lane.b32.xlu1 %v1944_v54, %s5018_s23  ;;  %v2030_v54 = vmul.f32 %v6826_v3, %v9598_v60 }
 0x65c   :  { %1976 = vrot.lane.b32.xlu0 %v1943_v43, %s5018_s23  ;;  %v9599_v43 = vld [vmem:[#allocation116_spill] sm:$0xff] }
 0x65d   :  { %v2033_v53 = vmul.f32 %v6868_v21, %v9599_v43 }
 0x65e   :  { %1982 = vrot.lane.b32.xlu1 %v1946_v63, %s5018_s23 }
 0x660   :  { %1980 = vrot.lane.b32.xlu0 %v1945_v27, %s5018_s23  ;;  %v2032_v27 = vmul.f32 %v6850_v14, %v9600_v50 }
 0x662   :  { %1986 = vrot.lane.b32.xlu1 %v1948_v2, %s5018_s23  ;;  %v9601_v2 = vld [vmem:[#allocation118_spill] sm:$0xff] }
 0x663   :  { %v2035_v1 = vmul.f32 %v6892_v62, %v9601_v2 }
 0x664   :  { %1984 = vrot.lane.b32.xlu0 %v1947_v5, %s5018_s23 }
 0x666   :  { %1990 = vrot.lane.b32.xlu1 %v1950_v55, %s5018_s23  ;;  %v2034_v55 = vmul.f32 %v6874_v58, %v9602_v25 }
 0x668   :  { %1988 = vrot.lane.b32.xlu0 %v1949_v34, %s5018_s23  ;;  %v9603_v34 = vld [vmem:[#allocation130_spill] sm:$0xff] }
 0x669   :  { %v2109_v32 = vmul.f32 %v6755_v39, %v9603_v34 }
 0x66a   :  { %2051 = vrot.lane.b32.xlu1 %v2023_v24, %s5020_s3 }
 0x66c   :  { %1992 = vrot.lane.b32.xlu0 %v1951_v4, %s5018_s23  ;;  %v1709_v6 = vpop.permute.xlu1 %1708  ;;  %v2036_v4 = vmul.f32 %v6898_v9, %v9604_v0 }
 0x66d   :  { %1751 = vst.msk [vmem:[#allocation3 + $0x7] sm:$0xff] %vm1750_vm8, %v1709_v6 }
 0x66e   :  { %v1711_v16 = vpop.permute.xlu0 %1710  ;;  %2055 = vrot.lane.b32.xlu1 %v2025_v7, %s5020_s3  ;;  %v2111_v7 = vmul.f32 %v6775_v19, %v9605_v20 }
 0x66f   :  { %1752 = vst.msk [vmem:[#allocation3 + $0xf] sm:$0xff] %vm1750_vm8, %v1711_v16 }
 0x670   :  { %2053 = vrot.lane.b32.xlu0 %v2024_v45, %s5020_s3  ;;  %v1795_v44 = vpop.permute.xlu1 %1794  ;;  %v2110_v45 = vmul.f32 %v6758_v51, %v9606_v17  ;;  %v9620_v17 = vld [vmem:[#allocation155_spill] sm:$0xff] }
 0x671   :  { %1837 = vst.msk [vmem:[#allocation3 + $0x6] sm:$0xff] %vm1836_vm9, %v1795_v44 }
 0x672   :  { %2059 = vrot.lane.b32.xlu1 %v2027_v47, %s5020_s3  ;;  %v2113_v47 = vmul.f32 %v6796_v59, %v9607_v26  ;;  %v9621_v26 = vld [vmem:[#allocation158_spill] sm:$0xff] }
 0x674   :  { %2057 = vrot.lane.b32.xlu0 %v2026_v40, %s5020_s3  ;;  %v1713_v18 = vpop.permute.xlu1 %1712  ;;  %v9608_v40 = vld [vmem:[#allocation133_spill] sm:$0xff] }
 0x675   :  { %1753 = vst.msk [vmem:[#allocation3 + $0x17] sm:$0xff] %vm1750_vm8, %v1713_v18  ;;  %v2112_v18 = vmul.f32 %v6779_v52, %v9608_v40  ;;  %v9622_v40 = vld [vmem:[#allocation157_spill] sm:$0xff] }
 0x676   :  { %v1715_v11 = vpop.permute.xlu0 %1714  ;;  %2063 = vrot.lane.b32.xlu1 %v2029_v41, %s5020_s3  ;;  %v9609_v41 = vld [vmem:[#allocation136_spill] sm:$0xff] }
 0x677   :  { %1754 = vst.msk [vmem:[#allocation3 + $0x1f] sm:$0xff] %vm1750_vm8, %v1715_v11  ;;  %v2115_v11 = vmul.f32 %v6820_v46, %v9609_v41  ;;  %v9623_v41 = vld [vmem:[#allocation160_spill] sm:$0xff] }
 0x678   :  { %2061 = vrot.lane.b32.xlu0 %v2028_v8, %s5020_s3  ;;  %v1799_v33 = vpop.permute.xlu1 %1798  ;;  %v9610_v8 = vld [vmem:[#allocation135_spill] sm:$0xff] }
 0x679   :  { %1839 = vst.msk [vmem:[#allocation3 + $0x16] sm:$0xff] %vm1836_vm9, %v1799_v33  ;;  %v2114_v33 = vmul.f32 %v6802_v29, %v9610_v8 }
 0x67a   :  { %v1797_v22 = vpop.permute.xlu0 %1796  ;;  %2067 = vrot.lane.b32.xlu1 %v2031_v30, %s5020_s3  ;;  %v9611_v30 = vld [vmem:[#allocation138_spill] sm:$0xff] }
 0x67b   :  { %1838 = vst.msk [vmem:[#allocation3 + $0xe] sm:$0xff] %vm1836_vm9, %v1797_v22  ;;  %v2117_v22 = vmul.f32 %v6844_v36, %v9611_v30 }
 0x67c   :  { %2065 = vrot.lane.b32.xlu0 %v2030_v54, %s5020_s3  ;;  %v1717_v48 = vpop.permute.xlu1 %1716  ;;  %v9612_v54 = vld [vmem:[#allocation137_spill] sm:$0xff] }
 0x67d   :  { %1755 = vst.msk [vmem:[#allocation3 + $0x27] sm:$0xff] %vm1750_vm8, %v1717_v48  ;;  %v2116_v48 = vmul.f32 %v6826_v3, %v9612_v54  ;;  %v4943_v54 = vld [vmem:[%s9083_s4 + $0x8] sm:$0xff]  }
 0x67e   :  { %v1719_v63 = vpop.permute.xlu0 %1718  ;;  %2071 = vrot.lane.b32.xlu1 %v2033_v53, %s5020_s3  ;;  %v9613_v53 = vld [vmem:[#allocation140_spill] sm:$0xff] }
 0x67f   :  { %1756 = vst.msk [vmem:[#allocation3 + $0x2f] sm:$0xff] %vm1750_vm8, %v1719_v63  ;;  %v2119_v63 = vmul.f32 %v6868_v21, %v9613_v53 }
 0x680   :  { %2069 = vrot.lane.b32.xlu0 %v2032_v27, %s5020_s3  ;;  %v1803_v38 = vpop.permute.xlu1 %1802  ;;  %v9614_v27 = vld [vmem:[#allocation139_spill] sm:$0xff] }
 0x681   :  { %1841 = vst.msk [vmem:[#allocation3 + $0x26] sm:$0xff] %vm1836_vm9, %v1803_v38  ;;  %v2118_v38 = vmul.f32 %v6850_v14, %v9614_v27 }
 0x682   :  { %v1801_v5 = vpop.permute.xlu0 %1800  ;;  %2075 = vrot.lane.b32.xlu1 %v2035_v1, %s5020_s3  ;;  %v9615_v1 = vld [vmem:[#allocation142_spill] sm:$0xff] }
 0x683   :  { %1840 = vst.msk [vmem:[#allocation3 + $0x1e] sm:$0xff] %vm1836_vm9, %v1801_v5  ;;  %v2121_v5 = vmul.f32 %v6892_v62, %v9615_v1  ;;  %v9628_v1 = vld [vmem:[#allocation163_spill] sm:$0xff] }
 0x684   :  { %2073 = vrot.lane.b32.xlu0 %v2034_v55, %s5020_s3  ;;  %v1721_v61 = vpop.permute.xlu1 %1720  ;;  %v9616_v55 = vld [vmem:[#allocation141_spill] sm:$0xff] }
 0x685   :  { %1757 = vst.msk [vmem:[#allocation3 + $0x37] sm:$0xff] %vm1750_vm8, %v1721_v61  ;;  %v2120_v61 = vmul.f32 %v6874_v58, %v9616_v55  ;;  %v9629_v55 = vld [vmem:[#allocation166_spill] sm:$0xff] }
 0x686   :  { %v1723_v24 = vpop.permute.xlu0 %1722  ;;  %2137 = vrot.lane.b32.xlu1 %v2109_v32, %s5021_s30  ;;  %v9617_v32 = vld [vmem:[#allocation154_spill] sm:$0xff] }
 0x687   :  { %1758 = vst.msk [vmem:[#allocation3 + $0x3f] sm:$0xff] %vm1750_vm8, %v1723_v24  ;;  %v2195_v24 = vmul.f32 %v6755_v39, %v9617_v32 }
 0x688   :  { %2077 = vrot.lane.b32.xlu0 %v2036_v4, %s5020_s3  ;;  %v1807_v6 = vpop.permute.xlu1 %1806  ;;  %v9618_v4 = vld [vmem:[#allocation143_spill] sm:$0xff] }
 0x689   :  { %1843 = vst.msk [vmem:[#allocation3 + $0x36] sm:$0xff] %vm1836_vm9, %v1807_v6  ;;  %v2122_v6 = vmul.f32 %v6898_v9, %v9618_v4 }
 0x68a   :  { %v1805_v16 = vpop.permute.xlu0 %1804  ;;  %2141 = vrot.lane.b32.xlu1 %v2111_v7, %s5021_s30  ;;  %v9619_v7 = vld [vmem:[#allocation156_spill] sm:$0xff] }
 0x68b   :  { %1842 = vst.msk [vmem:[#allocation3 + $0x2e] sm:$0xff] %vm1836_vm9, %v1805_v16  ;;  %v2197_v16 = vmul.f32 %v6775_v19, %v9619_v7  ;;  %v4946_v7 = vld [vmem:[%s9083_s4 + $0x20] ss:$0 sps:$4 sm:$0xff]  }
 0x68c   :  { %2139 = vrot.lane.b32.xlu0 %v2110_v45, %s5021_s30  ;;  %v1725_v44 = vpop.permute.xlu1 %1724  ;;  %v2196_v45 = vmul.f32 %v6758_v51, %v9620_v17 }
 0x68d   :  { %1759 = vst.msk [vmem:[#allocation3 + $0x47] sm:$0xff] %vm1750_vm8, %v1725_v44 }
 0x68e   :  { %v1727_v37 = vpop.permute.xlu0 %1726  ;;  %2145 = vrot.lane.b32.xlu1 %v2113_v47, %s5021_s30  ;;  %v2199_v47 = vmul.f32 %v6796_v59, %v9621_v26 }
 0x68f   :  { %1760 = vst.msk [vmem:[#allocation3 + $0x4f] sm:$0xff] %vm1750_vm8, %v1727_v37 }
 0x690   :  { %2143 = vrot.lane.b32.xlu0 %v2112_v18, %s5021_s30  ;;  %v1811_v49 = vpop.permute.xlu1 %1810  ;;  %v2198_v18 = vmul.f32 %v6779_v52, %v9622_v40  ;;  %v2285_v40 = vmul.f32 %v6802_v29, %v6423_v10  ;;  %v9634_v10 = vld [vmem:[#allocation170_spill] sm:$0xff] }
 0x691   :  { %1845 = vst.msk [vmem:[#allocation3 + $0x46] sm:$0xff] %vm1836_vm9, %v1811_v49 }
 0x692   :  { %v1809_v12 = vpop.permute.xlu0 %1808  ;;  %2149 = vrot.lane.b32.xlu1 %v2115_v11, %s5021_s30  ;;  %v2201_v11 = vmul.f32 %v6820_v46, %v9623_v41  ;;  %v2289_v41 = vmul.f32 %v6850_v14, %v6443_v56  ;;  %v9636_v56 = vld [vmem:[#allocation172_spill] sm:$0xff] }
 0x693   :  { %1844 = vst.msk [vmem:[#allocation3 + $0x3e] sm:$0xff] %vm1836_vm9, %v1809_v12  ;;  %v4942_v12 = vld [vmem:[%s9083_s4] sm:$0xff]  }
 0x694   :  { %2147 = vrot.lane.b32.xlu0 %v2114_v33, %s5021_s30  ;;  %v1729_v13 = vpop.permute.xlu1 %1728  ;;  %v9624_v33 = vld [vmem:[#allocation159_spill] sm:$0xff]  ;;  %4713 = vmatpush3.bf16.msra.mxu1 %v4942_v12  ;;  %v2291_v12 = vmul.f32 %v6874_v58, %v6451_v31  ;;  %v2292_v31 = vmul.f32 %v6892_v62, %v6441_v35 }
 0x695   :  { %1761 = vst.msk [vmem:[#allocation3 + $0x57] sm:$0xff] %vm1750_vm8, %v1729_v13  ;;  %v2200_v13 = vmul.f32 %v6802_v29, %v9624_v33  ;;  %4714 = vmatprep.subr.bf16.mxu1 %v9527_v15  ;;  %v2286_v29 = vmul.f32 %v6820_v46, %v9634_v10  ;;  %v2293_v33 = vmul.f32 %v6898_v9, %v6464_v57 }
 0x696   :  { %v1731_v60 = vpop.permute.xlu0 %1730  ;;  %2153 = vrot.lane.b32.xlu1 %v2117_v22, %s5021_s30  ;;  %v9625_v22 = vld [vmem:[#allocation162_spill] sm:$0xff] }
 0x697   :  { %1762 = vst.msk [vmem:[#allocation3 + $0x5f] sm:$0xff] %vm1750_vm8, %v1731_v60  ;;  %v2203_v60 = vmul.f32 %v6844_v36, %v9625_v22 }
 0x698   :  { %2151 = vrot.lane.b32.xlu0 %v2116_v48, %s5021_s30  ;;  %v1815_v43 = vpop.permute.xlu1 %1814  ;;  %4715 = vmatpush3.bf16.msra.mxu1 %v4943_v54 }
 0x699   :  { %1847 = vst.msk [vmem:[#allocation3 + $0x56] sm:$0xff] %vm1836_vm9, %v1815_v43  ;;  %v9626_v43 = vld [vmem:[#allocation161_spill] sm:$0xff]  ;;  %4716 = vmatprep.subr.bf16.mxu1 %v9527_v15 }
 0x69a   :  { %v1813_v50 = vpop.permute.xlu0 %1812  ;;  %2157 = vrot.lane.b32.xlu1 %v2119_v63, %s5021_s30  ;;  %v2202_v53 = vmul.f32 %v6826_v3, %v9626_v43 }
 0x69b   :  { %1846 = vst.msk [vmem:[#allocation3 + $0x4e] sm:$0xff] %vm1836_vm9, %v1813_v50  ;;  %v9627_v50 = vld [vmem:[#allocation164_spill] sm:$0xff] }
 0x69c   :  { %2155 = vrot.lane.b32.xlu0 %v2118_v38, %s5021_s30  ;;  %v1733_v2 = vpop.permute.xlu1 %1732  ;;  %v2205_v27 = vmul.f32 %v6868_v21, %v9627_v50  ;;  %v4944_v38 = vld [vmem:[%s9083_s4 + $0x10] sm:$0xff]  }
 0x69d   :  { %1763 = vst.msk [vmem:[#allocation3 + $0x67] sm:$0xff] %vm1750_vm8, %v1733_v2  ;;  %4717 = vmatpush3.bf16.msra.mxu1 %v4944_v38  ;;  %vm2346_vm8 = vcmask 589312  }
 0x69e   :  { %2161 = vrot.lane.b32.xlu1 %v2121_v5, %s5021_s30  ;;  %v1735_v25 = vpop.permute.xlu0 %1734  ;;  %v2204_v5 = vmul.f32 %v6850_v14, %v9628_v1  ;;  %4718 = vmatprep.subr.bf16.mxu1 %v9527_v15  ;;  %v2290_v14 = vmul.f32 %v6868_v21, %v9636_v56 }
 0x69f   :  { %1765 = vst.msk [vmem:[#allocation3 + $0x6f] sm:$0x1] %vm1764_vm10, %v1735_v25 }
 0x6a0   :  { %2159 = vrot.lane.b32.xlu0 %v2120_v61, %s5021_s30  ;;  %v1819_v34 = vpop.permute.xlu1 %1818  ;;  %v2207_v61 = vmul.f32 %v6892_v62, %v9629_v55 }
 0x6a1   :  { %1849 = vst.msk [vmem:[#allocation3 + $0x66] sm:$0xff] %vm1836_vm9, %v1819_v34  ;;  %v4945_v34 = vld [vmem:[%s9083_s4 + $0x18] sm:$0xff]  }
 0x6a2   :  { %2223 = vrot.lane.b32.xlu1 %v2195_v24, %s5022_s12  ;;  %v1817_v0 = vpop.permute.xlu0 %1816  ;;  %v9630_v24 = vld [vmem:[#allocation165_spill] sm:$0xff]  ;;  %4719 = vmatpush3.bf16.msra.mxu1 %v4945_v34 }
 0x6a3   :  { %1848 = vst.msk [vmem:[#allocation3 + $0x5e] sm:$0xff] %vm1836_vm9, %v1817_v0  ;;  %v2206_v0 = vmul.f32 %v6874_v58, %v9630_v24  ;;  %4720 = vmatprep.subr.bf16.mxu1 %v9527_v15  ;;  %vm4265_vm9 = vcmask 74752  }
 0x6a4   :  { %2163 = vrot.lane.b32.xlu0 %v2122_v6, %s5021_s30  ;;  %v1881_v20 = vpop.permute.xlu1 %1880  ;;  %v9631_v6 = vld [vmem:[#allocation168_spill] sm:$0xff] }
 0x6a5   :  { %1923 = vst.msk [vmem:[#allocation3 + $0x1] sm:$0xff] %vm1922_vm11, %v1881_v20  ;;  %v2281_v20 = vmul.f32 %v6758_v51, %v9631_v6  ;;  %v2447_v51 = vsel %vm2445_vm13, %v4946_v7, 0 }
 0x6a6   :  { %2227 = vrot.lane.b32.xlu1 %v2197_v16, %s5022_s12  ;;  %v1821_v39 = vpop.permute.xlu0 %1820  ;;  %4721 = vmatpush3.bf16.msra.mxu1 %v2447_v51 }
 0x6a7   :  { %1851 = vst.msk [vmem:[#allocation3 + $0x6e] sm:$0x3] %vm1850_vm12, %v1821_v39  ;;  %v9632_v39 = vld [vmem:[#allocation167_spill] sm:$0xff] }
 0x6a8   :  { %2225 = vrot.lane.b32.xlu0 %v2196_v45, %s5022_s12  ;;  %v1885_v44 = vpop.permute.xlu1 %1884  ;;  %v2208_v17 = vmul.f32 %v6898_v9, %v9632_v39 }
 0x6a9   :  { %1925 = vst.msk [vmem:[#allocation3 + $0x11] sm:$0xff] %vm1922_vm11, %v1885_v44  ;;  %v2283_v44 = vmul.f32 %v6779_v52, %v6413_v28  ;;  %v9633_v28 = vld [vmem:[#allocation169_spill] sm:$0xff] }
 0x6aa   :  { %2231 = vrot.lane.b32.xlu1 %v2199_v47, %s5022_s12  ;;  %v1883_v37 = vpop.permute.xlu0 %1882  ;;  %v2282_v47 = vmul.f32 %v6775_v19, %v6404_v23  ;;  %v2284_v52 = vmul.f32 %v6796_v59, %v9633_v28  ;;  %v2287_v19 = vmul.f32 %v6826_v3, %v6433_v42  ;;  %v9635_v42 = vld [vmem:[#allocation171_spill] sm:$0xff] }
 0x6ab   :  { %1924 = vst.msk [vmem:[#allocation3 + $0x9] sm:$0xff] %vm1922_vm11, %v1883_v37  ;;  %v2288_v3 = vmul.f32 %v6844_v36, %v9635_v42 }
 0x6ac   :  { %2229 = vrot.lane.b32.xlu0 %v2198_v18, %s5022_s12  ;;  %v1889_v49 = vpop.permute.xlu1 %1888 }
 0x6ad   :  { %1927 = vst.msk [vmem:[#allocation3 + $0x21] sm:$0xff] %vm1922_vm11, %v1889_v49 }
 0x6ae   :  { %2235 = vrot.lane.b32.xlu1 %v2201_v11, %s5022_s12  ;;  %v1887_v8 = vpop.permute.xlu0 %1886 }
 0x6af   :  { %1926 = vst.msk [vmem:[#allocation3 + $0x19] sm:$0xff] %vm1922_vm11, %v1887_v8 }
 0x6b0   :  { %2233 = vrot.lane.b32.xlu0 %v2200_v13, %s5022_s12  ;;  %v1893_v30 = vpop.permute.xlu1 %1892 }
 0x6b1   :  { %1929 = vst.msk [vmem:[#allocation3 + $0x31] sm:$0xff] %vm1922_vm11, %v1893_v30 }
 0x6b2   :  { %2239 = vrot.lane.b32.xlu1 %v2203_v60, %s5022_s12  ;;  %v1891_v48 = vpop.permute.xlu0 %1890 }
 0x6b3   :  { %1928 = vst.msk [vmem:[#allocation3 + $0x29] sm:$0xff] %vm1922_vm11, %v1891_v48 }
 0x6b4   :  { %2237 = vrot.lane.b32.xlu0 %v2202_v53, %s5022_s12  ;;  %v1897_v63 = vpop.permute.xlu1 %1896 }
 0x6b5   :  { %1931 = vst.msk [vmem:[#allocation3 + $0x41] sm:$0xff] %vm1922_vm11, %v1897_v63 }
 0x6b6   :  { %2243 = vrot.lane.b32.xlu1 %v2205_v27, %s5022_s12  ;;  %v1895_v2 = vpop.permute.xlu0 %1894 }
 0x6b7   :  { %1930 = vst.msk [vmem:[#allocation3 + $0x39] sm:$0xff] %vm1922_vm11, %v1895_v2 }
 0x6b8   :  { %2241 = vrot.lane.b32.xlu0 %v2204_v5, %s5022_s12  ;;  %v1901_v25 = vpop.permute.xlu1 %1900 }
 0x6b9   :  { %1933 = vst.msk [vmem:[#allocation3 + $0x51] sm:$0xff] %vm1922_vm11, %v1901_v25 }
 0x6ba   :  { %2247 = vrot.lane.b32.xlu1 %v2207_v61, %s5022_s12  ;;  %v1899_v32 = vpop.permute.xlu0 %1898 }
 0x6bb   :  { %1932 = vst.msk [vmem:[#allocation3 + $0x49] sm:$0xff] %vm1922_vm11, %v1899_v32 }
 0x6bc   :  { %2245 = vrot.lane.b32.xlu0 %v2206_v0, %s5022_s12  ;;  %v1905_v4 = vpop.permute.xlu1 %1904 }
 0x6bd   :  { %1935 = vst.msk [vmem:[#allocation3 + $0x61] sm:$0xff] %vm1922_vm11, %v1905_v4 }
 0x6be   :  { %v1903_v16 = vpop.permute.xlu0 %1902  ;;  %2307 = vrot.lane.b32.xlu1 %v2281_v20, %s5023_s17 }
 0x6bf   :  { %1934 = vst.msk [vmem:[#allocation3 + $0x59] sm:$0xff] %vm1922_vm11, %v1903_v16 }
 0x6c0   :  { %2249 = vrot.lane.b32.xlu0 %v2208_v17, %s5022_s12  ;;  %v1967_v45 = vpop.permute.xlu1 %1966 }
 0x6c1   :  { %2009 = vst.msk [vmem:[#allocation3] sm:$0xff] %vm2008_vm14, %v1967_v45 }
 0x6c2   :  { %v1907_v26 = vpop.permute.xlu0 %1906  ;;  %2311 = vrot.lane.b32.xlu1 %v2283_v44, %s5023_s17 }
 0x6c3   :  { %1937 = vst.msk [vmem:[#allocation3 + $0x69] sm:$0x7f] %vm1936_vm15, %v1907_v26 }
 0x6c4   :  { %2309 = vrot.lane.b32.xlu0 %v2282_v47, %s5023_s17  ;;  %v1971_v37 = vpop.permute.xlu1 %1970 }
 0x6c5   :  { %2011 = vst.msk [vmem:[#allocation3 + $0x10] sm:$0xff] %vm2008_vm14, %v1971_v37 }
 0x6c6   :  { %v1969_v18 = vpop.permute.xlu0 %1968  ;;  %2315 = vrot.lane.b32.xlu1 %v2285_v40, %s5023_s17 }
 0x6c7   :  { %2010 = vst.msk [vmem:[#allocation3 + $0x8] sm:$0xff] %vm2008_vm14, %v1969_v18 }
 0x6c8   :  { %2313 = vrot.lane.b32.xlu0 %v2284_v52, %s5023_s17  ;;  %v1975_v23 = vpop.permute.xlu1 %1974 }
 0x6c9   :  { %2013 = vst.msk [vmem:[#allocation3 + $0x20] sm:$0xff] %vm2008_vm14, %v1975_v23 }
 0x6ca   :  { %v1973_v49 = vpop.permute.xlu0 %1972  ;;  %2319 = vrot.lane.b32.xlu1 %v2287_v19, %s5023_s17 }
 0x6cb   :  { %2012 = vst.msk [vmem:[#allocation3 + $0x18] sm:$0xff] %vm2008_vm14, %v1973_v49 }
 0x6cc   :  { %2317 = vrot.lane.b32.xlu0 %v2286_v29, %s5023_s17  ;;  %v1979_v59 = vpop.permute.xlu1 %1978 }
 0x6cd   :  { %2015 = vst.msk [vmem:[#allocation3 + $0x30] sm:$0xff] %vm2008_vm14, %v1979_v59 }
 0x6ce   :  { %v1977_v11 = vpop.permute.xlu0 %1976  ;;  %2323 = vrot.lane.b32.xlu1 %v2289_v41, %s5023_s17 }
 0x6cf   :  { %2014 = vst.msk [vmem:[#allocation3 + $0x28] sm:$0xff] %vm2008_vm14, %v1977_v11 }
 0x6d0   :  { %2321 = vrot.lane.b32.xlu0 %v2288_v3, %s5023_s17  ;;  %v1983_v46 = vpop.permute.xlu1 %1982 }
 0x6d1   :  { %2017 = vst.msk [vmem:[#allocation3 + $0x40] sm:$0xff] %vm2008_vm14, %v1983_v46 }
 0x6d2   :  { %v1981_v8 = vpop.permute.xlu0 %1980  ;;  %2327 = vrot.lane.b32.xlu1 %v2291_v12, %s5023_s17 }
 0x6d3   :  { %2016 = vst.msk [vmem:[#allocation3 + $0x38] sm:$0xff] %vm2008_vm14, %v1981_v8 }
 0x6d4   :  { %2325 = vrot.lane.b32.xlu0 %v2290_v14, %s5023_s17  ;;  %v1987_v36 = vpop.permute.xlu1 %1986 }
 0x6d5   :  { %2019 = vst.msk [vmem:[#allocation3 + $0x50] sm:$0xff] %vm2008_vm14, %v1987_v36 }
 0x6d6   :  { %v1985_v13 = vpop.permute.xlu0 %1984  ;;  %2331 = vrot.lane.b32.xlu1 %v2293_v33, %s5023_s17 }
 0x6d7   :  { %2018 = vst.msk [vmem:[#allocation3 + $0x48] sm:$0xff] %vm2008_vm14, %v1985_v13 }
 0x6d8   :  { %2329 = vrot.lane.b32.xlu0 %v2292_v31, %s5023_s17  ;;  %v1991_v21 = vpop.permute.xlu1 %1990 }
 0x6d9   :  { %2021 = vst.msk [vmem:[#allocation3 + $0x60] sm:$0xff] %vm2008_vm14, %v1991_v21 }
 0x6da   :  { %v1989_v58 = vpop.permute.xlu0 %1988 }
 0x6db   :  { %2020 = vst.msk [vmem:[#allocation3 + $0x58] sm:$0xff] %vm2008_vm14, %v1989_v58 }
 0x6dc   :  { %v2052_v57 = vpop.permute.xlu1 %2051 }
 0x6dd   :  { %2094 = vst.msk [vmem:[#allocation3 - $0x1] sm:$0xfe] %vm2093_vm2, %v2052_v57 }
 0x6de   :  { %v1993_v9 = vpop.permute.xlu0 %1992 }
 0x6df   :  { %2022 = vst.msk [vmem:[#allocation3 + $0x68] sm:$0xff] %vm2008_vm14, %v1993_v9 }
 0x6e0   :  { %v2056_v30 = vpop.permute.xlu1 %2055 }
 0x6e1   :  { %2097 = vst.msk [vmem:[#allocation3 + $0xf] sm:$0xff] %vm2095_vm3, %v2056_v30 }
 0x6e2   :  { %v2054_v35 = vpop.permute.xlu0 %2053 }
 0x6e3   :  { %2096 = vst.msk [vmem:[#allocation3 + $0x7] sm:$0xff] %vm2095_vm3, %v2054_v35 }
 0x6e4   :  { %v2060_v62 = vpop.permute.xlu1 %2059 }
 0x6e5   :  { %2099 = vst.msk [vmem:[#allocation3 + $0x1f] sm:$0xff] %vm2095_vm3, %v2060_v62 }
 0x6e6   :  { %v2058_v22 = vpop.permute.xlu0 %2057 }
 0x6e7   :  { %2098 = vst.msk [vmem:[#allocation3 + $0x17] sm:$0xff] %vm2095_vm3, %v2058_v22 }
 0x6e8   :  { %v2064_v60 = vpop.permute.xlu1 %2063 }
 0x6e9   :  { %2101 = vst.msk [vmem:[#allocation3 + $0x2f] sm:$0xff] %vm2095_vm3, %v2064_v60 }
 0x6ea   :  { %v2062_v54 = vpop.permute.xlu0 %2061 }
 0x6eb   :  { %2100 = vst.msk [vmem:[#allocation3 + $0x27] sm:$0xff] %vm2095_vm3, %v2062_v54 }
 0x6ec   :  { %v2068_v48 = vpop.permute.xlu1 %2067 }
 0x6ed   :  { %2103 = vst.msk [vmem:[#allocation3 + $0x3f] sm:$0xff] %vm2095_vm3, %v2068_v48 }
 0x6ee   :  { %v2066_v43 = vpop.permute.xlu0 %2065 }
 0x6ef   :  { %2102 = vst.msk [vmem:[#allocation3 + $0x37] sm:$0xff] %vm2095_vm3, %v2066_v43 }
 0x6f0   :  { %v2072_v53 = vpop.permute.xlu1 %2071 }
 0x6f1   :  { %2105 = vst.msk [vmem:[#allocation3 + $0x4f] sm:$0xff] %vm2095_vm3, %v2072_v53 }
 0x6f2   :  { %v2070_v63 = vpop.permute.xlu0 %2069 }
 0x6f3   :  { %2104 = vst.msk [vmem:[#allocation3 + $0x47] sm:$0xff] %vm2095_vm3, %v2070_v63 }
 0x6f4   :  { %v2076_v50 = vpop.permute.xlu1 %2075 }
 0x6f5   :  { %2107 = vst.msk [vmem:[#allocation3 + $0x5f] sm:$0xff] %vm2095_vm3, %v2076_v50 }
 0x6f6   :  { %v2074_v27 = vpop.permute.xlu0 %2073 }
 0x6f7   :  { %2106 = vst.msk [vmem:[#allocation3 + $0x57] sm:$0xff] %vm2095_vm3, %v2074_v27 }
 0x6f8   :  { %v2138_v38 = vpop.permute.xlu1 %2137 }
 0x6f9   :  { %2180 = vst.msk [vmem:[#allocation3 - $0x6] sm:$0xc0] %vm2179_vm5, %v2138_v38  ;;  %v7314_v38 = vld [vmem:[%s9084_s5] ss:$0 sm:$0xff] }
 0x6fa   :  { %v2078_v2 = vpop.permute.xlu0 %2077 }
 0x6fb   :  { %2108 = vst.msk [vmem:[#allocation3 + $0x67] sm:$0xff] %vm2095_vm3, %v2078_v2 }
 0x6fc   :  { %v2142_v1 = vpop.permute.xlu1 %2141 }
 0x6fd   :  { %2183 = vst.msk [vmem:[#allocation3 + $0xa] sm:$0xff] %vm2181_vm6, %v2142_v1 }
 0x6fe   :  { %v2140_v5 = vpop.permute.xlu0 %2139 }
 0x6ff   :  { %2182 = vst.msk [vmem:[#allocation3 + $0x2] sm:$0xff] %vm2181_vm6, %v2140_v5 }
 0x700   :  { %v2146_v25 = vpop.permute.xlu1 %2145 }
 0x701   :  { %2185 = vst.msk [vmem:[#allocation3 + $0x1a] sm:$0xff] %vm2181_vm6, %v2146_v25 }
 0x702   :  { %v2144_v55 = vpop.permute.xlu0 %2143 }
 0x703   :  { %2184 = vst.msk [vmem:[#allocation3 + $0x12] sm:$0xff] %vm2181_vm6, %v2144_v55 }
 0x704   :  { %v2150_v61 = vpop.permute.xlu1 %2149 }
 0x705   :  { %2187 = vst.msk [vmem:[#allocation3 + $0x2a] sm:$0xff] %vm2181_vm6, %v2150_v61 }
 0x706   :  { %v2148_v34 = vpop.permute.xlu0 %2147 }
 0x707   :  { %2186 = vst.msk [vmem:[#allocation3 + $0x22] sm:$0xff] %vm2181_vm6, %v2148_v34 }
 0x708   :  { %v2154_v32 = vpop.permute.xlu1 %2153 }
 0x709   :  { %2189 = vst.msk [vmem:[#allocation3 + $0x3a] sm:$0xff] %vm2181_vm6, %v2154_v32  ;;  %v9638_v32 = vmov 3  }
 0x70a   :  { %v2152_v24 = vpop.permute.xlu0 %2151 }
 0x70b   :  { %2188 = vst.msk [vmem:[#allocation3 + $0x32] sm:$0xff] %vm2181_vm6, %v2152_v24  ;;  %v9639_v24 = vmov 2  }
 0x70c   :  { %v2158_v0 = vpop.permute.xlu1 %2157 }
 0x70d   :  { %2191 = vst.msk [vmem:[#allocation3 + $0x4a] sm:$0xff] %vm2181_vm6, %v2158_v0 }
 0x70e   :  { %v2156_v4 = vpop.permute.xlu0 %2155 }
 0x70f   :  { %2190 = vst.msk [vmem:[#allocation3 + $0x42] sm:$0xff] %vm2181_vm6, %v2156_v4 }
 0x710   :  { %v2162_v6 = vpop.permute.xlu1 %2161 }
 0x711   :  { %2193 = vst.msk [vmem:[#allocation3 + $0x5a] sm:$0xff] %vm2181_vm6, %v2162_v6 }
 0x712   :  { %v2160_v20 = vpop.permute.xlu0 %2159 }
 0x713   :  { %2192 = vst.msk [vmem:[#allocation3 + $0x52] sm:$0xff] %vm2181_vm6, %v2160_v20 }
 0x714   :  { %v2224_v7 = vpop.permute.xlu1 %2223 }
 0x715   :  { %2266 = vst.msk [vmem:[#allocation3 - $0x7] sm:$0x80] %vm2265_vm1, %v2224_v7  ;;  %v9640_v7 = vmov 5  }
 0x716   :  { %v2164_v16 = vpop.permute.xlu0 %2163 }
 0x717   :  { %2194 = vst.msk [vmem:[#allocation3 + $0x62] sm:$0xff] %vm2181_vm6, %v2164_v16  ;;  %v9641_v16 = vmov 4  }
 0x718   :  { %v2228_v39 = vpop.permute.xlu1 %2227 }
 0x719   :  { %2269 = vst.msk [vmem:[#allocation3 + $0x9] sm:$0xff] %vm2267_vm0, %v2228_v39 }
 0x71a   :  { %v2226_v17 = vpop.permute.xlu0 %2225 }
 0x71b   :  { %2268 = vst.msk [vmem:[#allocation3 + $0x1] sm:$0xff] %vm2267_vm0, %v2226_v17 }
 0x71c   :  { %v2232_v51 = vpop.permute.xlu1 %2231 }
 0x71d   :  { %2271 = vst.msk [vmem:[#allocation3 + $0x19] sm:$0xff] %vm2267_vm0, %v2232_v51 }
 0x71e   :  { %v2230_v45 = vpop.permute.xlu0 %2229 }
 0x71f   :  { %2270 = vst.msk [vmem:[#allocation3 + $0x11] sm:$0xff] %vm2267_vm0, %v2230_v45 }
 0x720   :  { %v2236_v44 = vpop.permute.xlu1 %2235 }
 0x721   :  { %2273 = vst.msk [vmem:[#allocation3 + $0x29] sm:$0xff] %vm2267_vm0, %v2236_v44  ;;  %v9643_v44 = vmov 0  }
 0x722   :  { %v2234_v26 = vpop.permute.xlu0 %2233 }
 0x723   :  { %2272 = vst.msk [vmem:[#allocation3 + $0x21] sm:$0xff] %vm2267_vm0, %v2234_v26  ;;  %v9644_v26 = vmov 1  }
 0x724   :  { %v2240_v47 = vpop.permute.xlu1 %2239 }
 0x725   :  { %2275 = vst.msk [vmem:[#allocation3 + $0x39] sm:$0xff] %vm2267_vm0, %v2240_v47 }
 0x726   :  { %v2238_v37 = vpop.permute.xlu0 %2237 }
 0x727   :  { %2274 = vst.msk [vmem:[#allocation3 + $0x31] sm:$0xff] %vm2267_vm0, %v2238_v37 }
 0x728   :  { %v2244_v40 = vpop.permute.xlu1 %2243 }
 0x729   :  { %2277 = vst.msk [vmem:[#allocation3 + $0x49] sm:$0xff] %vm2267_vm0, %v2244_v40 }
 0x72a   :  { %v2242_v18 = vpop.permute.xlu0 %2241 }
 0x72b   :  { %2276 = vst.msk [vmem:[#allocation3 + $0x41] sm:$0xff] %vm2267_vm0, %v2242_v18 }
 0x72c   :  { %v2248_v28 = vpop.permute.xlu1 %2247 }
 0x72d   :  { %2279 = vst.msk [vmem:[#allocation3 + $0x59] sm:$0xff] %vm2267_vm0, %v2248_v28 }
 0x72e   :  { %v2246_v52 = vpop.permute.xlu0 %2245 }
 0x72f   :  { %2278 = vst.msk [vmem:[#allocation3 + $0x51] sm:$0xff] %vm2267_vm0, %v2246_v52 }
 0x730   :  { %v2308_v23 = vpop.permute.xlu1 %2307 }
 0x731   :  { %2347 = vst.msk [vmem:[#allocation3] sm:$0xff] %vm2346_vm8, %v2308_v23 }
 0x732   :  { %v2250_v19 = vpop.permute.xlu0 %2249 }
 0x733   :  { %2280 = vst.msk [vmem:[#allocation3 + $0x61] sm:$0xff] %vm2267_vm0, %v2250_v19 }
 0x734   :  { %v2312_v49 = vpop.permute.xlu1 %2311 }
 0x735   :  { %2349 = vst.msk [vmem:[#allocation3 + $0x10] sm:$0xff] %vm2346_vm8, %v2312_v49 }
 0x736   :  { %v2310_v10 = vpop.permute.xlu0 %2309 }
 0x737   :  { %2348 = vst.msk [vmem:[#allocation3 + $0x8] sm:$0xff] %vm2346_vm8, %v2310_v10 }
 0x738   :  { %v2316_v29 = vpop.permute.xlu1 %2315  ;;  %v2360_v42 = vld [vmem:[#allocation3] sm:$0xff] }
 0x739   :  { %2351 = vst.msk [vmem:[#allocation3 + $0x20] sm:$0xff] %vm2346_vm8, %v2316_v29 }
 0x73a   :  { %v2314_v59 = vpop.permute.xlu0 %2313  ;;  %v2373_v50 = vld [vmem:[#allocation3 + $0x68] sm:$0xff] }
 0x73b   :  { %2350 = vst.msk [vmem:[#allocation3 + $0x18] sm:$0xff] %vm2346_vm8, %v2314_v59 }
 0x73c   :  { %v2320_v41 = vpop.permute.xlu1 %2319  ;;  %v2362_v33 = vld [vmem:[#allocation3 + $0x10] sm:$0xff] }
 0x73d   :  { %2353 = vst.msk [vmem:[#allocation3 + $0x30] sm:$0xff] %vm2346_vm8, %v2320_v41 }
 0x73e   :  { %v2318_v11 = vpop.permute.xlu0 %2317  ;;  %v2361_v3 = vld [vmem:[#allocation3 + $0x8] sm:$0xff] }
 0x73f   :  { %2352 = vst.msk [vmem:[#allocation3 + $0x28] sm:$0xff] %vm2346_vm8, %v2318_v11  ;;  %v2374_v46 = vpack.c.bf16 %v2361_v3, %v2360_v42 }
 0x740   :  { %v2324_v12 = vpop.permute.xlu1 %2323  ;;  %v2364_v57 = vld [vmem:[#allocation3 + $0x20] sm:$0xff] }
 0x741   :  { %2355 = vst.msk [vmem:[#allocation3 + $0x40] sm:$0xff] %vm2346_vm8, %v2324_v12  ;;  %4723 = vmatmul.mubr.msk.bf16.vlgmr.msra.gmra.mrb[0].mxu1 %vm1638_vm4, %v2374_v46 }
 0x742   :  { %v2322_v8 = vpop.permute.xlu0 %2321  ;;  %4726 = vmatprep.mubr.msk.bf16.mxu1 %vm5019_vm7, %v9527_v15  ;;  %v2363_v14 = vld [vmem:[#allocation3 + $0x18] sm:$0xff] }
 0x743   :  { %2354 = vst.msk [vmem:[#allocation3 + $0x38] sm:$0xff] %vm2346_vm8, %v2322_v8  ;;  %v2375_v13 = vpack.c.bf16 %v2363_v14, %v2362_v33 }
 0x744   :  { %v2328_v56 = vpop.permute.xlu1 %2327  ;;  %v2366_v35 = vld [vmem:[#allocation3 + $0x30] sm:$0xff] }
 0x745   :  { %2357 = vst.msk [vmem:[#allocation3 + $0x50] sm:$0xff] %vm2346_vm8, %v2328_v56 }
 0x746   :  { %v2326_v36 = vpop.permute.xlu0 %2325  ;;  %v2365_v58 = vld [vmem:[#allocation3 + $0x28] sm:$0xff] }
 0x747   :  { %2356 = vst.msk [vmem:[#allocation3 + $0x48] sm:$0xff] %vm2346_vm8, %v2326_v36  ;;  %v2376_v9 = vpack.c.bf16 %v2365_v58, %v2364_v57 }
 0x748   :  { %v2332_v31 = vpop.permute.xlu1 %2331  ;;  %v2368_v60 = vld [vmem:[#allocation3 + $0x40] sm:$0xff] }
 0x749   :  { %2359 = vst.msk [vmem:[#allocation3 + $0x60] sm:$0xff] %vm2346_vm8, %v2332_v31  ;;  %4727 = vmatmul.mubr.msk.bf16.gmra.mrb[4].mxu1 %vm1638_vm4, %v2375_v13 }
 0x74a   :  { %v2330_v21 = vpop.permute.xlu0 %2329  ;;  %4730 = vmatprep.mubr.msk.bf16.mxu1 %vm5019_vm7, %v9527_v15  ;;  %v2367_v30 = vld [vmem:[#allocation3 + $0x38] sm:$0xff] }
 0x74b   :  { %2358 = vst.msk [vmem:[#allocation3 + $0x58] sm:$0xff] %vm2346_vm8, %v2330_v21  ;;  %v2377_v62 = vpack.c.bf16 %v2367_v30, %v2366_v35 }
 0x74c   :  { %v2370_v43 = vld [vmem:[#allocation3 + $0x50] sm:$0xff] }
 0x74e   :  { %v2369_v22 = vld [vmem:[#allocation3 + $0x48] sm:$0xff] }
 0x74f   :  { %v2378_v54 = vpack.c.bf16 %v2369_v22, %v2368_v60 }
 0x750   :  { %v2372_v63 = vld [vmem:[#allocation3 + $0x60] sm:$0xff] }
 0x751   :  { %4731 = vmatmul.mubr.msk.bf16.gmra.mrb[8].mxu1 %vm1638_vm4, %v2376_v9  ;;  %v2380_v27 = vpack.c.bf16 %v2373_v50, %v2372_v63 }
 0x752   :  { %4734 = vmatprep.mubr.msk.bf16.mxu1 %vm5019_vm7, %v9527_v15  ;;  %v2371_v48 = vld [vmem:[#allocation3 + $0x58] sm:$0xff] }
 0x753   :  { %v2379_v53 = vpack.c.bf16 %v2371_v48, %v2370_v43 }
 0x759   :  { %4735 = vmatmul.mubr.msk.bf16.gmra.mrb[12].mxu1 %vm1638_vm4, %v2377_v62 }
 0x75a   :  { %4738 = vmatprep.mubr.msk.bf16.mxu1 %vm5019_vm7, %v9527_v15 }
 0x761   :  { %4739 = vmatmul.mubr.msk.bf16.gmra.mrb[16].mxu1 %vm1638_vm4, %v2378_v54 }
 0x762   :  { %4742 = vmatprep.mubr.msk.bf16.mxu1 %vm5019_vm7, %v9527_v15 }
 0x769   :  { %4743 = vmatmul.mubr.msk.bf16.gmra.mrb[20].mxu1 %vm1638_vm4, %v2379_v53 }
 0x76a   :  { %4746 = vmatprep.mubr.msk.bf16.mxu1 %vm5019_vm7, %v9527_v15  ;;  %vm4149_vm7 = vcmask 261120  }
 0x771   :  { %4747 = vmatmul.mubr.msk.bf16.gmra.mrb[24].mxu1 %vm1638_vm4, %v2380_v27  ;;  %vm4172_vm4 = vcmask 253952  }
 0x814   :  { %v2483_v2 = vpop.f32.mrb[0].mxu1 }
 0x815   :  { %v2484_v1 = vadd.f32 %v7314_v38, %v2483_v2  ;;  %v4724_v5 = vpop.f32.mrb[1].mxu1 }
 0x816   :  { %v2486_v25 = vpop.f32.mrb[2].mxu1 }
 0x817   :  { %v7317_v55 = vmax.f32 %v2484_v1, 0.0  ;;  %v4725_v61 = vpop.f32.mrb[3].mxu1  ;;  %v2487_v20 = vadd.f32 %v7314_v38, %v2486_v25 }
 0x819   :  { %9637 = vst [vmem:[#allocation72_spill] sm:$0xff] %v7317_v55  ;;  %2680 = vperm.xlu1 %4807, %v7317_v55   ;;  %2568 = vperm.xlu0 %4806, %v7317_v55   ;;  %v7330_v51 = vmax.f32 %v2487_v20, 0.0 }
 0x81b   :  { %9642 = vst [vmem:[#allocation73_spill] sm:$0xff] %v7330_v51 }
 0x81c   :  { %v2491_v34 = vpop.f32.mrb[4].mxu1 }
 0x81d   :  { %4809 = vset.pattern.permute.xlu1 %v9638_v32  ;;  %4808 = vset.pattern.permute.xlu0 %v9639_v24  ;;  %v4728_v0 = vpop.f32.mrb[5].mxu1  ;;  %v2492_v19 = vadd.f32 %v7314_v38, %v2491_v34 }
 0x81e   :  { %2878 = vperm.xlu1 %4809, %v7317_v55   ;;  %2779 = vperm.xlu0 %4808, %v7317_v55   ;;  %v2494_v4 = vpop.f32.mrb[6].mxu1 }
 0x81f   :  { %v4729_v6 = vpop.f32.mrb[7].mxu1  ;;  %v2495_v49 = vadd.f32 %v7314_v38, %v2494_v4  ;;  %v7354_v29 = vmax.f32 %v2492_v19, 0.0 }
 0x821   :  { %9645 = vst [vmem:[#allocation97_spill] sm:$0xff] %v7354_v29  ;;  %v7356_v59 = vmax.f32 %v2495_v49, 0.0 }
 0x822   :  { %4811 = vset.pattern.permute.xlu1 %v9640_v7  ;;  %4810 = vset.pattern.permute.xlu0 %v9641_v16 }
 0x823   :  { %3076 = vperm.xlu1 %4811, %v7317_v55   ;;  %2977 = vperm.xlu0 %4810, %v7317_v55   ;;  %9646 = vst [vmem:[#allocation96_spill] sm:$0xff] %v7356_v59 }
 0x824   :  { %v2499_v39 = vpop.f32.mrb[8].mxu1 }
 0x825   :  { %v4732_v17 = vpop.f32.mrb[9].mxu1  ;;  %v2500_v13 = vadd.f32 %v7314_v38, %v2499_v39 }
 0x826   :  { %v7332_v45 = vpop.f32.mrb[10].mxu1 }
 0x827   :  { %4812 = vset.pattern.permute.xlu1 %v9643_v44  ;;  %4813 = vset.pattern.permute.xlu0 %v9644_v26  ;;  %v4733_v47 = vpop.f32.mrb[11].mxu1  ;;  %v7383_v31 = vmax.f32 %v2500_v13, 0.0  ;;  %v2503_v62 = vadd.f32 %v7314_v38, %v7332_v45 }
 0x828   :  { %2684 = vperm.xlu0 %4813, %v7330_v51   ;;  %2573 = vperm.xlu1 %4812, %v7330_v51  }
 0x829   :  { %v7405_v22 = vmax.f32 %v2503_v62, 0.0 }
 0x82b   :  { %9647 = vst [vmem:[#allocation42_spill] sm:$0xff] %v7405_v22 }
 0x82c   :  { %4815 = vset.pattern.permute.xlu0 %v9638_v32  ;;  %4814 = vset.pattern.permute.xlu1 %v9639_v24  ;;  %v2507_v37 = vpop.f32.mrb[12].mxu1 }
 0x82d   :  { %v7341_v40 = vadd.f32 %v7314_v38, %v2507_v37  ;;  %2882 = vperm.xlu0 %4815, %v7330_v51   ;;  %2783 = vperm.xlu1 %4814, %v7330_v51   ;;  %v4736_v18 = vpop.f32.mrb[13].mxu1 }
 0x82e   :  { %v2510_v28 = vpop.f32.mrb[14].mxu1 }
 0x82f   :  { %v7346_v52 = vadd.f32 %v7314_v38, %v2510_v28  ;;  %v4737_v23 = vpop.f32.mrb[15].mxu1  ;;  %v7420_v60 = vmax.f32 %v7341_v40, 0.0 }
 0x831   :  { %4817 = vset.pattern.permute.xlu0 %v9640_v7  ;;  %4816 = vset.pattern.permute.xlu1 %v9641_v16  ;;  %9648 = vst [vmem:[#allocation46_spill] sm:$0xff] %v7420_v60  ;;  %v7435_v54 = vmax.f32 %v7346_v52, 0.0 }
 0x832   :  { %3080 = vperm.xlu0 %4817, %v7330_v51   ;;  %2981 = vperm.xlu1 %4816, %v7330_v51  }
 0x833   :  { %9649 = vst [vmem:[#allocation120_spill] sm:$0xff] %v7435_v54 }
 0x834   :  { %v2515_v10 = vpop.f32.mrb[16].mxu1 }
 0x835   :  { %v7359_v41 = vadd.f32 %v7314_v38, %v2515_v10  ;;  %v4740_v11 = vpop.f32.mrb[17].mxu1 }
 0x836   :  { %4824 = vset.pattern.permute.xlu0 %v9643_v44  ;;  %4818 = vset.pattern.permute.xlu1 %v9643_v44  ;;  %v2518_v42 = vpop.f32.mrb[18].mxu1 }
 0x837   :  { %v7364_v3 = vadd.f32 %v7314_v38, %v2518_v42  ;;  %2578 = vperm.xlu1 %4818, %v7354_v29   ;;  %2583 = vperm.xlu0 %4824, %v7356_v59   ;;  %v4741_v46 = vpop.f32.mrb[19].mxu1  ;;  %v7450_v48 = vmax.f32 %v7359_v41, 0.0 }
 0x838   :  { %v9661_v46 = vmov 6  }
 0x839   :  { %v7465_v43 = vmax.f32 %v7364_v3, 0.0 }
 0x83b   :  { %4819 = vset.pattern.permute.xlu1 %v9644_v26  ;;  %4826 = vset.pattern.permute.xlu0 %v9639_v24  ;;  %9650 = vst [vmem:[#allocation121_spill] sm:$0xff] %v7465_v43 }
 0x83c   :  { %2688 = vperm.xlu1 %4819, %v7354_v29   ;;  %2791 = vperm.xlu0 %4826, %v7356_v59   ;;  %v2523_v12 = vpop.f32.mrb[20].mxu1 }
 0x83d   :  { %v7373_v8 = vadd.f32 %v7314_v38, %v2523_v12  ;;  %v4744_v56 = vpop.f32.mrb[21].mxu1 }
 0x83e   :  { %v2526_v14 = vpop.f32.mrb[22].mxu1 }
 0x83f   :  { %v7376_v36 = vadd.f32 %v7314_v38, %v2526_v14  ;;  %v4745_v33 = vpop.f32.mrb[23].mxu1 }
 0x840   :  { %4820 = vset.pattern.permute.xlu1 %v9639_v24  ;;  %4828 = vset.pattern.permute.xlu0 %v9641_v16 }
 0x841   :  { %2787 = vperm.xlu1 %4820, %v7354_v29   ;;  %2989 = vperm.xlu0 %4828, %v7356_v59   ;;  %v7515_v0 = vmax.f32 %v7376_v36, 0.0 }
 0x843   :  { %9652 = vst [vmem:[#allocation50_spill] sm:$0xff] %v7515_v0 }
 0x844   :  { %v2531_v21 = vpop.f32.mrb[24].mxu1 }
 0x845   :  { %v7386_v58 = vadd.f32 %v7314_v38, %v2531_v21  ;;  %4821 = vset.pattern.permute.xlu1 %v9638_v32  ;;  %4831 = vset.pattern.permute.xlu0 %v9644_v26  ;;  %v4748_v57 = vpop.f32.mrb[25].mxu1 }
 0x846   :  { %2886 = vperm.xlu1 %4821, %v7354_v29   ;;  %2696 = vperm.xlu0 %4831, %v7383_v31   ;;  %v2534_v9 = vpop.f32.mrb[26].mxu1 }
 0x847   :  { %v7393_v30 = vadd.f32 %v7314_v38, %v2534_v9  ;;  %v4749_v35 = vpop.f32.mrb[27].mxu1  ;;  %v7488_v38 = vmax.f32 %v7373_v8, 0.0  ;;  %v7542_v47 = vmax.f32 %v7386_v58, 0.0  ;;  %v9671_v58 = vmov 7  }
 0x849   :  { %9651 = vst [vmem:[#allocation52_spill] sm:$0xff] %v7488_v38  ;;  %9655 = vst [vmem:[#allocation74_spill] sm:$0xff] %v7542_v47  ;;  %v7569_v19 = vmax.f32 %v7393_v30, 0.0 }
 0x84a   :  { %4822 = vset.pattern.permute.xlu1 %v9641_v16  ;;  %4833 = vset.pattern.permute.xlu0 %v9638_v32 }
 0x84b   :  { %2985 = vperm.xlu1 %4822, %v7354_v29   ;;  %2894 = vperm.xlu0 %4833, %v7383_v31   ;;  %9659 = vst [vmem:[#allocation44_spill] sm:$0xff] %v7569_v19 }
 0x84f   :  { %4823 = vset.pattern.permute.xlu1 %v9640_v7  ;;  %4835 = vset.pattern.permute.xlu0 %v9640_v7 }
 0x850   :  { %3084 = vperm.xlu1 %4823, %v7354_v29   ;;  %3092 = vperm.xlu0 %4835, %v7383_v31  }
 0x854   :  { %4825 = vset.pattern.permute.xlu1 %v9644_v26  ;;  %4836 = vset.pattern.permute.xlu0 %v9643_v44 }
 0x855   :  { %2692 = vperm.xlu1 %4825, %v7356_v59   ;;  %2593 = vperm.xlu0 %4836, %v7405_v22  }
 0x859   :  { %4827 = vset.pattern.permute.xlu1 %v9638_v32  ;;  %4838 = vset.pattern.permute.xlu0 %v9639_v24 }
 0x85a   :  { %2890 = vperm.xlu1 %4827, %v7356_v59   ;;  %2799 = vperm.xlu0 %4838, %v7405_v22  }
 0x85e   :  { %4829 = vset.pattern.permute.xlu1 %v9640_v7  ;;  %4840 = vset.pattern.permute.xlu0 %v9641_v16 }
 0x85f   :  { %3088 = vperm.xlu1 %4829, %v7356_v59   ;;  %2997 = vperm.xlu0 %4840, %v7405_v22  }
 0x863   :  { %4830 = vset.pattern.permute.xlu1 %v9643_v44  ;;  %4843 = vset.pattern.permute.xlu0 %v9644_v26 }
 0x864   :  { %2588 = vperm.xlu1 %4830, %v7383_v31   ;;  %2704 = vperm.xlu0 %4843, %v7420_v60  }
 0x868   :  { %4832 = vset.pattern.permute.xlu1 %v9639_v24  ;;  %4845 = vset.pattern.permute.xlu0 %v9638_v32 }
 0x869   :  { %2795 = vperm.xlu1 %4832, %v7383_v31   ;;  %2902 = vperm.xlu0 %4845, %v7420_v60  }
 0x86d   :  { %4834 = vset.pattern.permute.xlu1 %v9641_v16  ;;  %4847 = vset.pattern.permute.xlu0 %v9640_v7 }
 0x86e   :  { %2993 = vperm.xlu1 %4834, %v7383_v31   ;;  %3100 = vperm.xlu0 %4847, %v7420_v60  }
 0x872   :  { %4837 = vset.pattern.permute.xlu1 %v9644_v26  ;;  %4848 = vset.pattern.permute.xlu0 %v9643_v44 }
 0x873   :  { %2700 = vperm.xlu1 %4837, %v7405_v22   ;;  %2617 = vperm.xlu0 %4848, %v7435_v54  }
 0x877   :  { %4839 = vset.pattern.permute.xlu1 %v9638_v32  ;;  %4850 = vset.pattern.permute.xlu0 %v9639_v24 }
 0x878   :  { %2898 = vperm.xlu1 %4839, %v7405_v22   ;;  %2821 = vperm.xlu0 %4850, %v7435_v54  }
 0x87c   :  { %4841 = vset.pattern.permute.xlu1 %v9640_v7  ;;  %4852 = vset.pattern.permute.xlu0 %v9641_v16 }
 0x87d   :  { %3096 = vperm.xlu1 %4841, %v7405_v22   ;;  %3019 = vperm.xlu0 %4852, %v7435_v54  }
 0x881   :  { %4842 = vset.pattern.permute.xlu1 %v9643_v44  ;;  %4855 = vset.pattern.permute.xlu0 %v9644_v26 }
 0x882   :  { %2598 = vperm.xlu1 %4842, %v7420_v60   ;;  %2726 = vperm.xlu0 %4855, %v7450_v48  }
 0x886   :  { %4844 = vset.pattern.permute.xlu1 %v9639_v24  ;;  %4857 = vset.pattern.permute.xlu0 %v9638_v32 }
 0x887   :  { %2803 = vperm.xlu1 %4844, %v7420_v60   ;;  %2924 = vperm.xlu0 %4857, %v7450_v48  }
 0x88b   :  { %4846 = vset.pattern.permute.xlu1 %v9641_v16  ;;  %4859 = vset.pattern.permute.xlu0 %v9640_v7 }
 0x88c   :  { %3001 = vperm.xlu1 %4846, %v7420_v60   ;;  %3122 = vperm.xlu0 %4859, %v7450_v48  }
 0x890   :  { %4849 = vset.pattern.permute.xlu1 %v9644_v26  ;;  %4860 = vset.pattern.permute.xlu0 %v9643_v44 }
 0x891   :  { %2722 = vperm.xlu1 %4849, %v7435_v54   ;;  %2627 = vperm.xlu0 %4860, %v7465_v43  }
 0x895   :  { %4851 = vset.pattern.permute.xlu1 %v9638_v32  ;;  %4862 = vset.pattern.permute.xlu0 %v9639_v24 }
 0x896   :  { %2920 = vperm.xlu1 %4851, %v7435_v54   ;;  %2829 = vperm.xlu0 %4862, %v7465_v43  }
 0x898   :  { %v7475_v53 = vpop.permute.xlu0 %2568  ;;  %v7477_v63 = vpop.permute.xlu1 %2680 }
 0x89a   :  { %4853 = vset.pattern.permute.xlu1 %v9640_v7  ;;  %4864 = vset.pattern.permute.xlu0 %v9641_v16 }
 0x89b   :  { %3118 = vperm.xlu1 %4853, %v7435_v54   ;;  %3027 = vperm.xlu0 %4864, %v7465_v43  }
 0x89d   :  { %v7483_v50 = vpop.permute.xlu0 %2779  ;;  %v7485_v27 = vpop.permute.xlu1 %2878 }
 0x89f   :  { %4854 = vset.pattern.permute.xlu1 %v9643_v44  ;;  %4867 = vset.pattern.permute.xlu0 %v9644_v26 }
 0x8a0   :  { %2622 = vperm.xlu1 %4854, %v7450_v48   ;;  %2734 = vperm.xlu0 %4867, %v7488_v38  }
 0x8a2   :  { %v7494_v2 = vpop.permute.xlu0 %2977  ;;  %v7496_v1 = vpop.permute.xlu1 %3076 }
 0x8a4   :  { %4856 = vset.pattern.permute.xlu1 %v9639_v24  ;;  %4869 = vset.pattern.permute.xlu0 %v9638_v32 }
 0x8a5   :  { %2825 = vperm.xlu1 %4856, %v7450_v48   ;;  %2932 = vperm.xlu0 %4869, %v7488_v38  }
 0x8a7   :  { %v7502_v5 = vpop.permute.xlu0 %2684  ;;  %v7504_v25 = vpop.permute.xlu1 %2573 }
 0x8a9   :  { %4858 = vset.pattern.permute.xlu1 %v9641_v16  ;;  %4871 = vset.pattern.permute.xlu0 %v9640_v7 }
 0x8aa   :  { %3023 = vperm.xlu1 %4858, %v7450_v48   ;;  %3130 = vperm.xlu0 %4871, %v7488_v38  }
 0x8ac   :  { %v7510_v61 = vpop.permute.xlu0 %2882  ;;  %v7512_v34 = vpop.permute.xlu1 %2783 }
 0x8ae   :  { %4861 = vset.pattern.permute.xlu1 %v9644_v26  ;;  %4872 = vset.pattern.permute.xlu0 %v9643_v44 }
 0x8af   :  { %2730 = vperm.xlu1 %4861, %v7465_v43   ;;  %2637 = vperm.xlu0 %4872, %v7515_v0  }
 0x8b1   :  { %v7521_v4 = vpop.permute.xlu0 %3080  ;;  %v7523_v6 = vpop.permute.xlu1 %2981 }
 0x8b3   :  { %4863 = vset.pattern.permute.xlu1 %v9638_v32  ;;  %4874 = vset.pattern.permute.xlu0 %v9639_v24 }
 0x8b4   :  { %2928 = vperm.xlu1 %4863, %v7465_v43   ;;  %2837 = vperm.xlu0 %4874, %v7515_v0  }
 0x8b6   :  { %v7529_v20 = vpop.permute.xlu0 %2583  ;;  %v7531_v39 = vpop.permute.xlu1 %2578 }
 0x8b7   :  { %9653 = vst [vmem:[#allocation145_spill] sm:$0xff] %v7531_v39 }
 0x8b8   :  { %4865 = vset.pattern.permute.xlu1 %v9640_v7  ;;  %4876 = vset.pattern.permute.xlu0 %v9641_v16 }
 0x8b9   :  { %3126 = vperm.xlu1 %4865, %v7465_v43   ;;  %3035 = vperm.xlu0 %4876, %v7515_v0  }
 0x8bb   :  { %v7537_v17 = vpop.permute.xlu0 %2791  ;;  %v7539_v45 = vpop.permute.xlu1 %2688 }
 0x8bc   :  { %9654 = vst [vmem:[#allocation144_spill] sm:$0xff] %v7539_v45 }
 0x8bd   :  { %4866 = vset.pattern.permute.xlu1 %v9643_v44  ;;  %4879 = vset.pattern.permute.xlu0 %v9644_v26 }
 0x8be   :  { %2632 = vperm.xlu1 %4866, %v7488_v38   ;;  %2742 = vperm.xlu0 %4879, %v7542_v47  }
 0x8c0   :  { %v7548_v37 = vpop.permute.xlu0 %2989  ;;  %v7550_v40 = vpop.permute.xlu1 %2787 }
 0x8c1   :  { %9656 = vst [vmem:[#allocation75_spill] sm:$0xff] %v7550_v40 }
 0x8c2   :  { %4868 = vset.pattern.permute.xlu1 %v9639_v24  ;;  %4881 = vset.pattern.permute.xlu0 %v9638_v32 }
 0x8c3   :  { %2833 = vperm.xlu1 %4868, %v7488_v38   ;;  %2940 = vperm.xlu0 %4881, %v7542_v47  }
 0x8c5   :  { %v7556_v18 = vpop.permute.xlu0 %2696  ;;  %v7558_v28 = vpop.permute.xlu1 %2886 }
 0x8c6   :  { %9657 = vst [vmem:[#allocation99_spill] sm:$0xff] %v7558_v28  ;;  %v9680_v28 = vmov 8  }
 0x8c7   :  { %4870 = vset.pattern.permute.xlu1 %v9641_v16  ;;  %4883 = vset.pattern.permute.xlu0 %v9640_v7 }
 0x8c8   :  { %3031 = vperm.xlu1 %4870, %v7488_v38   ;;  %3138 = vperm.xlu0 %4883, %v7542_v47  }
 0x8ca   :  { %v7564_v52 = vpop.permute.xlu0 %2894  ;;  %v7566_v23 = vpop.permute.xlu1 %2985 }
 0x8cb   :  { %9658 = vst [vmem:[#allocation98_spill] sm:$0xff] %v7566_v23 }
 0x8cc   :  { %4873 = vset.pattern.permute.xlu1 %v9644_v26  ;;  %4884 = vset.pattern.permute.xlu0 %v9643_v44 }
 0x8cd   :  { %2738 = vperm.xlu1 %4873, %v7515_v0   ;;  %2647 = vperm.xlu0 %4884, %v7569_v19  }
 0x8cf   :  { %v7575_v49 = vpop.permute.xlu0 %3092  ;;  %v7577_v10 = vpop.permute.xlu1 %3084 }
 0x8d0   :  { %9660 = vst [vmem:[#allocation48_spill] sm:$0xff] %v7577_v10 }
 0x8d1   :  { %4875 = vset.pattern.permute.xlu1 %v9638_v32  ;;  %4886 = vset.pattern.permute.xlu0 %v9639_v24 }
 0x8d2   :  { %2936 = vperm.xlu1 %4875, %v7515_v0   ;;  %2845 = vperm.xlu0 %4886, %v7569_v19  }
 0x8d4   :  { %v7583_v41 = vpop.permute.xlu0 %2593  ;;  %v7585_v11 = vpop.permute.xlu1 %2692 }
 0x8d6   :  { %4877 = vset.pattern.permute.xlu1 %v9640_v7  ;;  %4888 = vset.pattern.permute.xlu0 %v9641_v16 }
 0x8d7   :  { %3134 = vperm.xlu1 %4877, %v7515_v0   ;;  %3043 = vperm.xlu0 %4888, %v7569_v19  }
 0x8d9   :  { %v7591_v42 = vpop.permute.xlu0 %2799  ;;  %v7593_v3 = vpop.permute.xlu1 %2890 }
 0x8db   :  { %4878 = vset.pattern.permute.xlu1 %v9643_v44  ;;  %4889 = vset.pattern.permute.xlu0 %v9661_v46 }
 0x8dc   :  { %2642 = vperm.xlu1 %4878, %v7542_v47   ;;  %3175 = vperm.xlu0 %4889, %v7317_v55  }
 0x8de   :  { %v7599_v12 = vpop.permute.xlu0 %2997  ;;  %v7601_v8 = vpop.permute.xlu1 %3088 }
 0x8df   :  { %9662 = vst [vmem:[#allocation122_spill] sm:$0xff] %v7599_v12  ;;  %9663 = vst [vmem:[#allocation123_spill] sm:$0xff] %v7601_v8 }
 0x8e0   :  { %4880 = vset.pattern.permute.xlu1 %v9639_v24  ;;  %3187 = vperm.xlu0 %4889, %v7356_v59  }
 0x8e1   :  { %2841 = vperm.xlu1 %4880, %v7542_v47  }
 0x8e3   :  { %v7606_v56 = vpop.permute.xlu0 %2704  ;;  %v7608_v14 = vpop.permute.xlu1 %2588 }
 0x8e4   :  { %3195 = vperm.xlu0 %4889, %v7405_v22  }
 0x8e5   :  { %4882 = vset.pattern.permute.xlu1 %v9641_v16 }
 0x8e6   :  { %3039 = vperm.xlu1 %4882, %v7542_v47  }
 0x8e8   :  { %v7613_v44 = vpop.permute.xlu0 %2902  ;;  %3217 = vperm.xlu0 %4889, %v7435_v54   ;;  %v7616_v36 = vpop.permute.xlu1 %2795 }
 0x8e9   :  { %9664 = vst [vmem:[#allocation54_spill] sm:$0xff] %v7613_v44 }
 0x8ea   :  { %4885 = vset.pattern.permute.xlu1 %v9644_v26 }
 0x8eb   :  { %2746 = vperm.xlu1 %4885, %v7569_v19  }
 0x8ec   :  { %3225 = vperm.xlu0 %4889, %v7465_v43  }
 0x8ed   :  { %v7621_v24 = vpop.permute.xlu0 %3100  ;;  %v7623_v33 = vpop.permute.xlu1 %2993 }
 0x8ee   :  { %9665 = vst [vmem:[#allocation51_spill] sm:$0xff] %v7621_v24  ;;  %9666 = vst [vmem:[#allocation147_spill] sm:$0xff] %v7623_v33  ;;  %v9716_v24 = vmov 10  }
 0x8ef   :  { %4887 = vset.pattern.permute.xlu1 %v9638_v32 }
 0x8f0   :  { %2944 = vperm.xlu1 %4887, %v7569_v19   ;;  %3233 = vperm.xlu0 %4889, %v7515_v0  }
 0x8f2   :  { %v7628_v16 = vpop.permute.xlu0 %2617  ;;  %v7630_v13 = vpop.permute.xlu1 %2700 }
 0x8f3   :  { %9667 = vst [vmem:[#allocation146_spill] sm:$0xff] %v7628_v16  ;;  %9668 = vst [vmem:[#allocation76_spill] sm:$0xff] %v7630_v13  ;;  %v9226_v13 = vmov 11  }
 0x8f4   :  { %4890 = vset.pattern.permute.xlu1 %v9661_v46  ;;  %3241 = vperm.xlu0 %4889, %v7569_v19  }
 0x8f5   :  { %3179 = vperm.xlu1 %4890, %v7330_v51  }
 0x8f7   :  { %v7635_v26 = vpop.permute.xlu0 %2821  ;;  %v7637_v21 = vpop.permute.xlu1 %2898 }
 0x8f8   :  { %9669 = vst [vmem:[#allocation77_spill] sm:$0xff] %v7635_v26  ;;  %9670 = vst [vmem:[#allocation101_spill] sm:$0xff] %v7637_v21  ;;  %4894 = vset.pattern.permute.xlu0 %v9671_v58 }
 0x8f9   :  { %4891 = vset.pattern.permute.xlu1 %v9640_v7  ;;  %3278 = vperm.xlu0 %4894, %v7330_v51  }
 0x8fa   :  { %3142 = vperm.xlu1 %4891, %v7569_v19  }
 0x8fc   :  { %v7643_v32 = vpop.permute.xlu0 %3019  ;;  %v7645_v57 = vpop.permute.xlu1 %3096 }
 0x8fd   :  { %9672 = vst [vmem:[#allocation100_spill] sm:$0xff] %v7643_v32  ;;  %9673 = vst [vmem:[#allocation45_spill] sm:$0xff] %v7645_v57  ;;  %3290 = vperm.xlu0 %4894, %v7383_v31  }
 0x8fe   :  { %4892 = vset.pattern.permute.xlu1 %v9661_v46 }
 0x8ff   :  { %3183 = vperm.xlu1 %4892, %v7354_v29  }
 0x901   :  { %v7650_v9 = vpop.permute.xlu0 %2726  ;;  %3298 = vperm.xlu0 %4894, %v7420_v60   ;;  %v7653_v30 = vpop.permute.xlu1 %2598 }
 0x902   :  { %9674 = vst [vmem:[#allocation49_spill] sm:$0xff] %v7650_v9 }
 0x903   :  { %3191 = vperm.xlu1 %4892, %v7383_v31  }
 0x905   :  { %3320 = vperm.xlu0 %4894, %v7450_v48  }
 0x906   :  { %v7657_v7 = vpop.permute.xlu0 %2924  ;;  %v7659_v35 = vpop.permute.xlu1 %2803 }
 0x907   :  { %9675 = vst [vmem:[#allocation124_spill] sm:$0xff] %v7657_v7  ;;  %3199 = vperm.xlu1 %4892, %v7420_v60   ;;  %v7899_v7 = vld [vmem:[%s9085_s6 + $0x50] sm:$0xff]  }
 0x908   :  { %9737 = vst [vmem:[#allocation58_spill] sm:$0xff] %v7899_v7 }
 0x909   :  { %3328 = vperm.xlu0 %4894, %v7488_v38  }
 0x90b   :  { %v7663_v62 = vpop.permute.xlu0 %3122  ;;  %3221 = vperm.xlu1 %4892, %v7450_v48   ;;  %v7666_v46 = vpop.permute.xlu1 %3001 }
 0x90c   :  { %9676 = vst [vmem:[#allocation125_spill] sm:$0xff] %v7663_v62  ;;  %9677 = vst [vmem:[#allocation56_spill] sm:$0xff] %v7666_v46 }
 0x90d   :  { %3336 = vperm.xlu0 %4894, %v7542_v47  }
 0x90f   :  { %3229 = vperm.xlu1 %4892, %v7488_v38  }
 0x910   :  { %v7670_v10 = vpop.permute.xlu0 %2627  ;;  %v7672_v23 = vpop.permute.xlu1 %2722 }
 0x911   :  { %9678 = vst [vmem:[#allocation53_spill] sm:$0xff] %v7670_v10  ;;  %9679 = vst [vmem:[#allocation149_spill] sm:$0xff] %v7672_v23  ;;  %4895 = vset.pattern.permute.xlu0 %v9680_v28 }
 0x912   :  { %3373 = vperm.xlu0 %4895, %v7317_v55  }
 0x913   :  { %3237 = vperm.xlu1 %4892, %v7542_v47  }
 0x915   :  { %v7677_v40 = vpop.permute.xlu0 %2829  ;;  %v7679_v39 = vpop.permute.xlu1 %2920 }
 0x916   :  { %9681 = vst [vmem:[#allocation148_spill] sm:$0xff] %v7677_v40  ;;  %9682 = vst [vmem:[#allocation78_spill] sm:$0xff] %v7679_v39  ;;  %3385 = vperm.xlu0 %4895, %v7356_v59  }
 0x917   :  { %4893 = vset.pattern.permute.xlu1 %v9671_v58 }
 0x918   :  { %3274 = vperm.xlu1 %4893, %v7317_v55  }
 0x91a   :  { %v7684_v45 = vpop.permute.xlu0 %3027  ;;  %3393 = vperm.xlu0 %4895, %v7405_v22   ;;  %v7687_v15 = vpop.permute.xlu1 %3118 }
 0x91b   :  { %9683 = vst [vmem:[#allocation79_spill] sm:$0xff] %v7684_v45  ;;  %9684 = vst [vmem:[#allocation103_spill] sm:$0xff] %v7687_v15  ;;  %v5024_v45 = vmov 9  }
 0x91c   :  { %3282 = vperm.xlu1 %4893, %v7354_v29  }
 0x91e   :  { %3415 = vperm.xlu0 %4895, %v7435_v54  }
 0x91f   :  { %v7691_v32 = vpop.permute.xlu0 %2734  ;;  %v7693_v26 = vpop.permute.xlu1 %2622 }
 0x920   :  { %9685 = vst [vmem:[#allocation102_spill] sm:$0xff] %v7691_v32  ;;  %3286 = vperm.xlu1 %4893, %v7356_v59  }
 0x922   :  { %3423 = vperm.xlu0 %4895, %v7465_v43  }
 0x924   :  { %v7697_v58 = vpop.permute.xlu0 %2932  ;;  %3294 = vperm.xlu1 %4893, %v7405_v22   ;;  %v7700_v39 = vpop.permute.xlu1 %2825 }
 0x925   :  { %9686 = vst [vmem:[#allocation47_spill] sm:$0xff] %v7697_v58  ;;  %9687 = vst [vmem:[#allocation43_spill] sm:$0xff] %v7700_v39 }
 0x926   :  { %3431 = vperm.xlu0 %4895, %v7515_v0  }
 0x928   :  { %3316 = vperm.xlu1 %4893, %v7435_v54  }
 0x929   :  { %v7704_v15 = vpop.permute.xlu0 %3130  ;;  %v7706_v16 = vpop.permute.xlu1 %3023 }
 0x92a   :  { %9688 = vst [vmem:[#allocation126_spill] sm:$0xff] %v7704_v15  ;;  %9689 = vst [vmem:[#allocation127_spill] sm:$0xff] %v7706_v16  ;;  %3439 = vperm.xlu0 %4895, %v7569_v19  }
 0x92c   :  { %3324 = vperm.xlu1 %4893, %v7465_v43  }
 0x92e   :  { %v7710_v23 = vpop.permute.xlu0 %2637  ;;  %4898 = vset.pattern.permute.xlu0 %v5024_v45  ;;  %v7712_v57 = vpop.permute.xlu1 %2730 }
 0x92f   :  { %9690 = vst [vmem:[#allocation57_spill] sm:$0xff] %v7710_v23  ;;  %9691 = vst [vmem:[#allocation55_spill] sm:$0xff] %v7712_v57  ;;  %3476 = vperm.xlu0 %4898, %v7330_v51  }
 0x930   :  { %3332 = vperm.xlu1 %4893, %v7515_v0  }
 0x933   :  { %v7716_v40 = vpop.permute.xlu0 %2837  ;;  %3488 = vperm.xlu0 %4898, %v7383_v31   ;;  %v7719_v8 = vpop.permute.xlu1 %2928 }
 0x934   :  { %9692 = vst [vmem:[#allocation151_spill] sm:$0xff] %v7716_v40  ;;  %9693 = vst [vmem:[#allocation150_spill] sm:$0xff] %v7719_v8  ;;  %3340 = vperm.xlu1 %4893, %v7569_v19  }
 0x937   :  { %3496 = vperm.xlu0 %4898, %v7420_v60  }
 0x938   :  { %v7723_v12 = vpop.permute.xlu0 %3035  ;;  %4896 = vset.pattern.permute.xlu1 %v9680_v28  ;;  %v7726_v23 = vpop.permute.xlu1 %3126 }
 0x939   :  { %9694 = vst [vmem:[#allocation80_spill] sm:$0xff] %v7723_v12  ;;  %9695 = vst [vmem:[#allocation81_spill] sm:$0xff] %v7726_v23  ;;  %3377 = vperm.xlu1 %4896, %v7330_v51   ;;  %v9222_v23 = vmov 10  }
 0x93b   :  { %3518 = vperm.xlu0 %4898, %v7450_v48  }
 0x93d   :  { %v7730_v10 = vpop.permute.xlu0 %2742  ;;  %3381 = vperm.xlu1 %4896, %v7354_v29   ;;  %v7733_v40 = vpop.permute.xlu1 %2632 }
 0x93e   :  { %9696 = vst [vmem:[#allocation105_spill] sm:$0xff] %v7730_v10  ;;  %9697 = vst [vmem:[#allocation104_spill] sm:$0xff] %v7733_v40 }
 0x93f   :  { %3526 = vperm.xlu0 %4898, %v7488_v38  }
 0x941   :  { %3389 = vperm.xlu1 %4896, %v7383_v31  }
 0x942   :  { %v7737_v8 = vpop.permute.xlu0 %2940  ;;  %v7739_v12 = vpop.permute.xlu1 %2833 }
 0x943   :  { %9698 = vst [vmem:[#allocation128_spill] sm:$0xff] %v7737_v8  ;;  %9699 = vst [vmem:[#allocation129_spill] sm:$0xff] %v7739_v12  ;;  %3534 = vperm.xlu0 %4898, %v7542_v47   ;;  %v9234_v12 = vmov 13  }
 0x945   :  { %3397 = vperm.xlu1 %4896, %v7420_v60  }
 0x947   :  { %v7743_v28 = vpop.permute.xlu0 %3138  ;;  %4899 = vset.pattern.permute.xlu0 %v9222_v23  ;;  %v7746_v57 = vpop.permute.xlu1 %3031 }
 0x948   :  { %9700 = vst [vmem:[#allocation153_spill] sm:$0xff] %v7743_v28  ;;  %9701 = vst [vmem:[#allocation152_spill] sm:$0xff] %v7746_v57  ;;  %3571 = vperm.xlu0 %4899, %v7317_v55  }
 0x949   :  { %3419 = vperm.xlu1 %4896, %v7450_v48  }
 0x94c   :  { %3617 = vperm.xlu0 %4899, %v7450_v48   ;;  %v7751_v21 = vpop.permute.xlu0 %2647  ;;  %v7753_v15 = vpop.permute.xlu1 %2738 }
 0x94d   :  { %9702 = vst [vmem:[#allocation14_spill] sm:$0xff] %v7753_v15  ;;  %3427 = vperm.xlu1 %4896, %v7488_v38  }
 0x950   :  { %3621 = vperm.xlu0 %4899, %v7465_v43  }
 0x951   :  { %v7757_v28 = vpop.permute.xlu0 %2845  ;;  %3435 = vperm.xlu1 %4896, %v7542_v47   ;;  %v7760_v23 = vpop.permute.xlu1 %2936 }
 0x952   :  { %9703 = vst [vmem:[#allocation22_spill] sm:$0xff] %v7760_v23 }
 0x954   :  { %3583 = vperm.xlu0 %4899, %v7356_v59  }
 0x955   :  { %4897 = vset.pattern.permute.xlu1 %v5024_v45 }
 0x956   :  { %v7763_v8 = vpop.permute.xlu0 %3043  ;;  %3472 = vperm.xlu1 %4897, %v7317_v55   ;;  %v7766_v62 = vpop.permute.xlu1 %3134 }
 0x957   :  { %9704 = vst [vmem:[#allocation32_spill] sm:$0xff] %v7766_v62 }
 0x958   :  { %3629 = vperm.xlu0 %4899, %v7515_v0  }
 0x95a   :  { %3480 = vperm.xlu1 %4897, %v7354_v29  }
 0x95b   :  { %v7770_v15 = vpop.permute.xlu0 %3175  ;;  %v7772_v57 = vpop.permute.xlu1 %2642 }
 0x95c   :  { %9705 = vst [vmem:[#allocation15_spill] sm:$0xff] %v7770_v15  ;;  %9706 = vst [vmem:[#allocation8_spill] sm:$0xff] %v7772_v57  ;;  %3591 = vperm.xlu0 %4899, %v7405_v22  }
 0x95e   :  { %3484 = vperm.xlu1 %4897, %v7356_v59  }
 0x95f   :  { %v7776_v23 = vpop.permute.xlu0 %3187 }
 0x960   :  { %9707 = vst [vmem:[#allocation23_spill] sm:$0xff] %v7776_v23  ;;  %3595 = vperm.xlu0 %4899, %v7420_v60   ;;  %v7779_v45 = vpop.permute.xlu1 %2841 }
 0x961   :  { %9708 = vst [vmem:[#allocation9_spill] sm:$0xff] %v7779_v45 }
 0x962   :  { %3492 = vperm.xlu1 %4897, %v7405_v22  }
 0x963   :  { %v7782_v62 = vpop.permute.xlu0 %3195 }
 0x964   :  { %9709 = vst [vmem:[#allocation35_spill] sm:$0xff] %v7782_v62  ;;  %4914 = vset.pattern.permute.xlu0 %v9226_v13 }
 0x965   :  { %3674 = vperm.xlu0 %4914, %v7330_v51   ;;  %v7786_v15 = vpop.permute.xlu1 %3039 }
 0x966   :  { %9710 = vst [vmem:[#allocation24_spill] sm:$0xff] %v7786_v15  ;;  %3514 = vperm.xlu1 %4897, %v7435_v54  }
 0x967   :  { %v7789_v58 = vpop.permute.xlu0 %3217 }
 0x968   :  { %9711 = vst [vmem:[#allocation16_spill] sm:$0xff] %v7789_v58 }
 0x969   :  { %3720 = vperm.xlu0 %4914, %v7465_v43  }
 0x96a   :  { %3522 = vperm.xlu1 %4897, %v7465_v43   ;;  %v7793_v23 = vpop.permute.xlu1 %2746 }
 0x96b   :  { %v7795_v22 = vpop.permute.xlu0 %3225 }
 0x96c   :  { %9712 = vst [vmem:[#allocation25_spill] sm:$0xff] %v7795_v22 }
 0x96d   :  { %3728 = vperm.xlu0 %4914, %v7515_v0  }
 0x96e   :  { %3530 = vperm.xlu1 %4897, %v7515_v0   ;;  %v9230_v0 = vmov 12  }
 0x96f   :  { %v7799_v13 = vpop.permute.xlu0 %3233  ;;  %v7801_v62 = vpop.permute.xlu1 %2944 }
 0x970   :  { %9713 = vst [vmem:[#allocation10_spill] sm:$0xff] %v7799_v13 }
 0x971   :  { %3732 = vperm.xlu0 %4914, %v7542_v47  }
 0x972   :  { %3538 = vperm.xlu1 %4897, %v7569_v19  }
 0x973   :  { %v7805_v58 = vpop.permute.xlu0 %3241 }
 0x974   :  { %9714 = vst [vmem:[#allocation37_spill] sm:$0xff] %v7805_v58  ;;  %v7807_v15 = vpop.permute.xlu1 %3179  ;;  %v7957_v58 = vld [vmem:[%s9085_s6 + $0x40] sm:$0xff]  }
 0x975   :  { %9715 = vst [vmem:[#allocation26_spill] sm:$0xff] %v7807_v15  ;;  %3736 = vperm.xlu0 %4914, %v7569_v19   ;;  %9750 = vst [vmem:[#allocation67_spill] sm:$0xff] %v7957_v58 }
 0x976   :  { %4900 = vset.pattern.permute.xlu1 %v9716_v24 }
 0x977   :  { %3575 = vperm.xlu1 %4900, %v7330_v51  }
 0x978   :  { %v7812_v22 = vpop.permute.xlu0 %3278 }
 0x979   :  { %9717 = vst [vmem:[#allocation17_spill] sm:$0xff] %v7812_v22  ;;  %4922 = vset.pattern.permute.xlu0 %v9230_v0  ;;  %v7815_v13 = vpop.permute.xlu1 %3142  ;;  %v9722_v0 = vmov 11  }
 0x97a   :  { %3811 = vperm.xlu0 %4922, %v7435_v54  }
 0x97b   :  { %3613 = vperm.xlu1 %4900, %v7435_v54  }
 0x97c   :  { %v7819_v45 = vpop.permute.xlu0 %3290 }
 0x97d   :  { %9718 = vst [vmem:[#allocation27_spill] sm:$0xff] %v7819_v45 }
 0x97e   :  { %3777 = vperm.xlu0 %4922, %v7354_v29   ;;  %v7822_v10 = vpop.permute.xlu1 %3183 }
 0x97f   :  { %9719 = vst [vmem:[#allocation11_spill] sm:$0xff] %v7822_v10  ;;  %3579 = vperm.xlu1 %4900, %v7354_v29  }
 0x980   :  { %v7825_v16 = vpop.permute.xlu0 %3298 }
 0x981   :  { %9720 = vst [vmem:[#allocation38_spill] sm:$0xff] %v7825_v16 }
 0x982   :  { %3793 = vperm.xlu0 %4922, %v7420_v60   ;;  %v7828_v57 = vpop.permute.xlu1 %3191 }
 0x983   :  { %9721 = vst [vmem:[#allocation28_spill] sm:$0xff] %v7828_v57  ;;  %4901 = vset.pattern.permute.xlu1 %v9722_v0 }
 0x984   :  { %v7831_v46 = vpop.permute.xlu0 %3320  ;;  %3670 = vperm.xlu1 %4901, %v7317_v55  }
 0x985   :  { %9723 = vst [vmem:[#allocation18_spill] sm:$0xff] %v7831_v46 }
 0x986   :  { %4927 = vset.pattern.permute.xlu0 %v9234_v12  ;;  %v7835_v45 = vpop.permute.xlu1 %3199  ;;  %v7853_v12 = vld [vmem:[%s9085_s6] sm:$0xff]  }
 0x987   :  { %9724 = vst [vmem:[#allocation29_spill] sm:$0xff] %v7835_v45  ;;  %3872 = vperm.xlu0 %4927, %v7330_v51   ;;  %9729 = vst [vmem:[#allocation31_spill] sm:$0xff] %v7853_v12  ;;  %v9238_v57 = vunpack.c.l.bf16 %v7853_v12 }
 0x988   :  { %v7838_v10 = vpop.permute.xlu0 %3328  ;;  %3712 = vperm.xlu1 %4901, %v7435_v54  }
 0x989   :  { %9725 = vst [vmem:[#allocation12_spill] sm:$0xff] %v7838_v10  ;;  %v7858_v10 = vld [vmem:[%s9085_s6 + $0x18] sm:$0xff]  }
 0x98a   :  { %v7841_v16 = vpop.permute.xlu1 %3221  ;;  %9730 = vst [vmem:[#allocation13_spill] sm:$0xff] %v7858_v10  ;;  %v9239_v32 = vunpack.c.h.bf16 %v7858_v10 }
 0x98b   :  { %9726 = vst [vmem:[#allocation39_spill] sm:$0xff] %v7841_v16  ;;  %3876 = vperm.xlu0 %4927, %v7354_v29  }
 0x98c   :  { %v7844_v60 = vpop.permute.xlu0 %3336  ;;  %3716 = vperm.xlu1 %4901, %v7450_v48   ;;  %v2707_v15 = vmul.f32 %v7477_v63, %v9239_v32 }
 0x98d   :  { %9727 = vst [vmem:[#allocation30_spill] sm:$0xff] %v7844_v60  ;;  %v7867_v60 = vld [vmem:[%s9085_s6 + $0x38] sm:$0xff]  }
 0x98e   :  { %v7847_v46 = vpop.permute.xlu1 %3229  ;;  %9732 = vst [vmem:[#allocation33_spill] sm:$0xff] %v7867_v60  ;;  %v9747_v44 = vunpack.c.h.bf16 %v7867_v60 }
 0x98f   :  { %9728 = vst [vmem:[#allocation19_spill] sm:$0xff] %v7847_v46  ;;  %3880 = vperm.xlu0 %4927, %v7356_v59   ;;  %v7872_v46 = vld [vmem:[%s9085_s6 + $0x20] sm:$0xff]  }
 0x990   :  { %4902 = vset.pattern.permute.xlu1 %v9716_v24  ;;  %9733 = vst [vmem:[#allocation21_spill] sm:$0xff] %v7872_v46  ;;  %v9741_v32 = vunpack.c.l.bf16 %v7872_v46  ;;  %v2807_v54 = vmul.f32 %v9747_v44, %v7512_v34 }
 0x991   :  { %v7861_v16 = vpop.permute.xlu0 %3373  ;;  %3625 = vperm.xlu1 %4902, %v7488_v38  }
 0x992   :  { %9731 = vst [vmem:[#allocation40_spill] sm:$0xff] %v7861_v16  ;;  %v7874_v45 = vpop.permute.xlu1 %3237  ;;  %v2708_v16 = vmul.f32 %v9741_v32, %v7502_v5  ;;  %v7935_v5 = vld [vmem:[%s9085_s6 + $0x90] sm:$0xff]   ;;  %v9746_v32 = vmov 12  }
 0x993   :  { %9734 = vst [vmem:[#allocation20_spill] sm:$0xff] %v7874_v45  ;;  %3884 = vperm.xlu0 %4927, %v7383_v31   ;;  %v2601_v45 = vmul.f32 %v9238_v57, %v7475_v53  ;;  %v9739_v53 = vunpack.c.l.bf16 %v7867_v60  ;;  %v7912_v57 = vld [vmem:[%s9085_s6 + $0x88] sm:$0xff]   ;;  %9745 = vst [vmem:[#allocation60_spill] sm:$0xff] %v7935_v5 }
 0x994   :  { %9740 = vst [vmem:[#allocation61_spill] sm:$0xff] %v7912_v57 }
 0x995   :  { %v7882_v40 = vpop.permute.xlu0 %3385  ;;  %4903 = vset.pattern.permute.xlu1 %v9722_v0  ;;  %v2806_v63 = vmul.f32 %v9739_v53, %v7483_v50  ;;  %v7928_v50 = vld [vmem:[%s9085_s6 + $0x30] sm:$0xff]  }
 0x996   :  { %9735 = vst [vmem:[#allocation41_spill] sm:$0xff] %v7882_v40  ;;  %3678 = vperm.xlu1 %4903, %v7354_v29   ;;  %v7904_v29 = vld [vmem:[%s9085_s6 + $0x70] sm:$0xff]   ;;  %v9742_v40 = vunpack.c.h.bf16 %v7853_v12 }
 0x997   :  { %3930 = vperm.xlu0 %4927, %v7542_v47   ;;  %v7894_v22 = vpop.permute.xlu1 %3274  ;;  %9738 = vst [vmem:[#allocation36_spill] sm:$0xff] %v7904_v29  ;;  %v7923_v47 = vld [vmem:[%s9085_s6 + $0x58] sm:$0xff]  }
 0x998   :  { %9736 = vst [vmem:[#allocation34_spill] sm:$0xff] %v7894_v22  ;;  %v2602_v22 = vmul.f32 %v9742_v40, %v7504_v25  ;;  %9743 = vst [vmem:[#allocation59_spill] sm:$0xff] %v7923_v47  ;;  %v2714_v25 = vadd.f32 %v2707_v15, %v2601_v45  ;;  %v7970_v15 = vld [vmem:[%s9085_s6 + $0x28] sm:$0xff]   ;;  %v9757_v33 = vunpack.c.l.bf16 %v7923_v47 }
 0x999   :  { %v7930_v53 = vpop.permute.xlu0 %3393 }
 0x99a   :  { %9744 = vst [vmem:[#allocation63_spill] sm:$0xff] %v7930_v53  ;;  %4904 = vset.pattern.permute.xlu1 %v9746_v32  ;;  %v7946_v53 = vld [vmem:[%s9085_s6 + $0x8] sm:$0xff]   ;;  %v2813_v44 = vadd.f32 %v2806_v63, %v2714_v25  ;;  %v2715_v40 = vadd.f32 %v2708_v16, %v2602_v22  ;;  %v9250_v16 = vunpack.c.l.bf16 %v7858_v10  ;;  %v9753_v63 = vunpack.c.h.bf16 %v7928_v50 }
 0x99b   :  { %9748 = vst [vmem:[#allocation65_spill] sm:$0xff] %v7946_v53  ;;  %3934 = vperm.xlu0 %4927, %v7569_v19   ;;  %3769 = vperm.xlu1 %4904, %v7317_v55   ;;  %v7950_v39 = vpop.permute.xlu1 %3282  ;;  %v9754_v32 = vunpack.c.h.bf16 %v7899_v7  ;;  %v2906_v34 = vmul.f32 %v9757_v33, %v7510_v61  ;;  %v8029_v61 = vld [vmem:[%s9085_s6 + $0x48] sm:$0xff]   ;;  %v8034_v33 = vld [vmem:[%s9085_s6 + $0x80] sm:$0xff]  }
 0x99c   :  { %9749 = vst [vmem:[#allocation62_spill] sm:$0xff] %v7950_v39  ;;  %v7965_v39 = vld [vmem:[%s9085_s6 + $0x78] sm:$0xff]   ;;  %v2755_v25 = vmul.f32 %v9753_v63, %v7793_v23  ;;  %v2814_v55 = vadd.f32 %v2807_v54, %v2715_v40  ;;  %v7995_v54 = vld [vmem:[%s9085_s6 + $0x60] sm:$0xff]   ;;  %v8016_v63 = vld [vmem:[%s9085_s6 + $0x10] sm:$0xff]  }
 0x99d   :  { %9751 = vst [vmem:[#allocation64_spill] sm:$0xff] %v7965_v39  ;;  %v7972_v45 = vpop.permute.xlu0 %3415  ;;  %v2905_v60 = vmul.f32 %v7485_v27, %v9754_v32  ;;  %v8000_v27 = vld [vmem:[%s9085_s6 + $0x98] sm:$0xff]   ;;  %v2656_v32 = vmul.f32 %v7751_v21, %v9250_v16  ;;  %v8021_v21 = vld [vmem:[%s9085_s6 + $0x68] sm:$0xff]  }
 0x99e   :  { %9752 = vst [vmem:[#allocation69_spill] sm:$0xff] %v7972_v45  ;;  %v9248_v45 = vmov 14   ;;  %v2913_v16 = vadd.f32 %v2906_v34, %v2814_v55  ;;  %v8052_v55 = vld [vmem:[%s9085_s6 + $0xa0] sm:$0xff]  }
 0x99f   :  { %4933 = vset.pattern.permute.xlu0 %v9248_v45  ;;  %3773 = vperm.xlu1 %4904, %v7330_v51   ;;  %v7987_v22 = vpop.permute.xlu1 %3286  ;;  %v2912_v40 = vadd.f32 %v2905_v60, %v2813_v44  ;;  %v9756_v45 = vunpack.c.l.bf16 %v7904_v29  ;;  %v2762_v9 = vadd.f32 %v2755_v25, %v2656_v32  ;;  %v9773_v25 = vunpack.c.h.bf16 %v7957_v58 }
 0x9a0   :  { %9755 = vst [vmem:[#allocation66_spill] sm:$0xff] %v7987_v22  ;;  %3971 = vperm.xlu0 %4933, %v7330_v51   ;;  %v9759_v51 = vunpack.c.h.bf16 %v7904_v29 }
 0x9a1   :  { %v3004_v23 = vmul.f32 %v9756_v45, %v7494_v2  ;;  %v8023_v60 = vpop.permute.xlu0 %3423  ;;  %v9764_v45 = vunpack.c.l.bf16 %v8016_v63 }
 0x9a2   :  { %9758 = vst [vmem:[#allocation71_spill] sm:$0xff] %v8023_v60  ;;  %v3005_v2 = vmul.f32 %v9759_v51, %v7523_v6  ;;  %v9761_v51 = vunpack.c.l.bf16 %v7899_v7  ;;  %v9763_v60 = vunpack.c.l.bf16 %v7970_v15 }
 0x9a3   :  { %3815 = vperm.xlu1 %4904, %v7450_v48   ;;  %v8044_v47 = vpop.permute.xlu1 %3294  ;;  %v3011_v34 = vadd.f32 %v3004_v23, %v2912_v40  ;;  %v9765_v23 = vunpack.c.h.bf16 %v8021_v21 }
 0x9a4   :  { %9760 = vst [vmem:[#allocation68_spill] sm:$0xff] %v8044_v47  ;;  %v2854_v6 = vmul.f32 %v7757_v28, %v9761_v51  ;;  %4017 = vperm.xlu0 %4933, %v7465_v43   ;;  %v2710_v44 = vmul.f32 %v9763_v60, %v7585_v11  ;;  %v2605_v47 = vmul.f32 %v9764_v45, %v7608_v14  ;;  %v9766_v51 = vunpack.c.h.bf16 %v7912_v57 }
 0x9a5   :  { %v8061_v22 = vpop.permute.xlu0 %3431  ;;  %v2953_v40 = vmul.f32 %v9765_v23, %v7801_v62  ;;  %v3012_v46 = vadd.f32 %v3005_v2, %v2913_v16  ;;  %v9768_v14 = vunpack.c.h.bf16 %v7946_v53  ;;  %v9769_v62 = vunpack.c.h.bf16 %v7970_v15 }
 0x9a6   :  { %9762 = vst [vmem:[#allocation82_spill] sm:$0xff] %v8061_v22  ;;  %v2861_v28 = vadd.f32 %v2854_v6, %v2762_v9  ;;  %v3103_v32 = vmul.f32 %v7496_v1, %v9766_v51  ;;  %v9256_v22 = vunpack.c.h.bf16 %v8052_v55  ;;  %v9770_v1 = vunpack.c.l.bf16 %v8029_v61 }
 0x9a7   :  { %4905 = vset.pattern.permute.xlu1 %v9716_v24  ;;  %v8078_v11 = vpop.permute.xlu1 %3316  ;;  %v2604_v9 = vmul.f32 %v9768_v14, %v7529_v20  ;;  %v2711_v60 = vmul.f32 %v9769_v62, %v7556_v18  ;;  %v9771_v45 = vunpack.c.l.bf16 %v7935_v5  ;;  %v9257_v18 = vunpack.c.l.bf16 %v7912_v57 }
 0x9a8   :  { %9767 = vst [vmem:[#allocation70_spill] sm:$0xff] %v8078_v11  ;;  %v2810_v16 = vmul.f32 %v9770_v1, %v7616_v36  ;;  %4021 = vperm.xlu0 %4933, %v7488_v38   ;;  %3587 = vperm.xlu1 %4905, %v7383_v31   ;;  %v8100_v14 = vadd.f32 %v3103_v32, %v3011_v34  ;;  %v9775_v23 = vunpack.c.h.bf16 %v7995_v54  ;;  %v8116_v34 = vld [vmem:[%s9085_s6 + $0xc0] sm:$0xff]  }
 0x9a9   :  { %v3104_v6 = vmul.f32 %v9771_v45, %v7521_v4  ;;  %v8098_v51 = vpop.permute.xlu0 %3439  ;;  %v2717_v36 = vadd.f32 %v2710_v44, %v2604_v9  ;;  %v2718_v62 = vadd.f32 %v2711_v60, %v2605_v47  ;;  %v2960_v1 = vadd.f32 %v2953_v40, %v2861_v28 }
 0x9aa   :  { %9772 = vst [vmem:[#allocation85_spill] sm:$0xff] %v8100_v14  ;;  %v2809_v2 = vmul.f32 %v9773_v25, %v7537_v17  ;;  %v9774_v4 = vunpack.c.h.bf16 %v7965_v39  ;;  %v2909_v20 = vmul.f32 %v9775_v23, %v7564_v52  ;;  %v3151_v52 = vmul.f32 %v9256_v22, %v7815_v13  ;;  %v9788_v22 = vld [vmem:[#allocation49_spill] sm:$0xff]  ;;  %v9815_v14 = vld [vmem:[#allocation56_spill] sm:$0xff] }
 0x9ab   :  { %v8118_v47 = vadd.f32 %v3104_v6, %v3012_v46  ;;  %v8120_v44 = vpop.permute.xlu1 %3324  ;;  %v2817_v32 = vadd.f32 %v2810_v16, %v2718_v62  ;;  %v9777_v46 = vunpack.c.h.bf16 %v8000_v27  ;;  %v9778_v28 = vunpack.c.h.bf16 %v8016_v63 }
 0x9ac   :  { %v8108_v45 = vmul.f32 %v9774_v4, %v7548_v37  ;;  %9776 = vst [vmem:[#allocation83_spill] sm:$0xff] %v8120_v44  ;;  %v3052_v37 = vmul.f32 %v7763_v8, %v9257_v18  ;;  %4033 = vperm.xlu0 %4933, %v7569_v19   ;;  %4906 = vset.pattern.permute.xlu1 %v9722_v0  ;;  %v9779_v8 = vunpack.c.l.bf16 %v7858_v10  ;;  %v9780_v13 = vunpack.c.h.bf16 %v8029_v61  ;;  %v9789_v18 = vld [vmem:[#allocation21_spill] sm:$0xff]  ;;  %v9801_v44 = vld [vmem:[#allocation104_spill] sm:$0xff] }
 0x9ad   :  { %v8134_v25 = vmul.f32 %v9777_v46, %v7575_v49  ;;  %v8139_v40 = vmul.f32 %v9778_v28, %v7583_v41  ;;  %3682 = vperm.xlu1 %4906, %v7356_v59   ;;  %v8150_v16 = vadd.f32 %v2809_v2, %v2717_v36  ;;  %v8155_v49 = vld [vmem:[%s9085_s6 + $0xa8] sm:$0xff]   ;;  %v9782_v36 = vunpack.c.l.bf16 %v7899_v7  ;;  %v9791_v7 = vld [vmem:[#allocation43_spill] sm:$0xff] }
 0x9ae   :  { %v2607_v9 = vmul.f32 %v7653_v30, %v9779_v8  ;;  %v8148_v60 = vmul.f32 %v9780_v13, %v7591_v42  ;;  %v8161_v30 = vld [vmem:[%s9085_s6 + $0xc8] sm:$0xff]   ;;  %v3059_v6 = vadd.f32 %v3052_v37, %v2960_v1  ;;  %v8163_v23 = vpop.permute.xlu0 %3476  ;;  %v9781_v42 = vunpack.c.h.bf16 %v7928_v50  ;;  %v8178_v1 = vld [vmem:[%s9085_s6 + $0xd8] sm:$0xff]  }
 0x9af   :  { %v2812_v62 = vmul.f32 %v7659_v35, %v9782_v36  ;;  %v9783_v4 = vunpack.c.h.bf16 %v7853_v12  ;;  %v8183_v37 = vld [vmem:[%s9085_s6 + $0xf8] sm:$0xff]   ;;  %v9785_v35 = vunpack.c.l.bf16 %v7995_v54  ;;  %v9263_v17 = vmov 15   ;;  %v9792_v12 = vld [vmem:[#allocation33_spill] sm:$0xff] }
 0x9b0   :  { %v2713_v2 = vmul.f32 %v9781_v42, %v7606_v56  ;;  %v8185_v56 = vpop.permute.xlu1 %3332  ;;  %v9786_v13 = vld [vmem:[#allocation147_spill] sm:$0xff]  ;;  %v9787_v42 = vunpack.c.l.bf16 %v8034_v33  ;;  %4937 = vset.pattern.permute.xlu0 %v9263_v17  ;;  %v9790_v28 = vunpack.c.l.bf16 %v9789_v18  ;;  %v9793_v10 = vunpack.c.h.bf16 %v9792_v12 }
 0x9b1   :  { %v2651_v46 = vmul.f32 %v9783_v4, %v7693_v26  ;;  %9784 = vst [vmem:[#allocation87_spill] sm:$0xff] %v8185_v56  ;;  %v8190_v8 = vmul.f32 %v9785_v35, %v7593_v3  ;;  %v2916_v26 = vadd.f32 %v2909_v20, %v2817_v32  ;;  %v3158_v4 = vadd.f32 %v3151_v52, %v3059_v6  ;;  %v9794_v20 = vld [vmem:[#allocation120_spill] sm:$0xff]  ;;  %v9795_v32 = vld [vmem:[#allocation54_spill] sm:$0xff] }
 0x9b2   :  { %v3008_v36 = vmul.f32 %v9787_v42, %v9786_v13  ;;  %v2750_v41 = vmul.f32 %v9790_v28, %v9788_v22  ;;  %v2720_v11 = vadd.f32 %v2713_v2, %v2607_v9  ;;  %v2849_v19 = vmul.f32 %v9793_v10, %v9791_v7  ;;  %4108 = vperm.xlu0 %4937, %v9794_v20   ;;  %v8211_v35 = vld [vmem:[%s9085_s6 + $0xb8] sm:$0xff]   ;;  %v9798_v9 = vld [vmem:[#allocation37_spill] sm:$0xff]  ;;  %v8218_v28 = vpop.permute.xlu0 %3488 }
 0x9b3   :  { %3724 = vperm.xlu1 %4906, %v7488_v38   ;;  %v9796_v52 = vunpack.c.h.bf16 %v8021_v21  ;;  %v9797_v22 = vunpack.c.l.bf16 %v8116_v34  ;;  %v9269_v10 = vunpack.c.h.bf16 %v8178_v1  ;;  %v9802_v38 = vunpack.c.h.bf16 %v7946_v53  ;;  %v9809_v53 = vld [vmem:[#allocation102_spill] sm:$0xff] }
 0x9b4   :  { %v2819_v13 = vadd.f32 %v2812_v62, %v2720_v11  ;;  %v2757_v42 = vadd.f32 %v2750_v41, %v2651_v46  ;;  %v3341_v12 = vpop.permute.xlu1 %3340  ;;  %v3015_v56 = vadd.f32 %v3008_v36, %v2916_v26  ;;  %v8235_v11 = vld [vmem:[%s9085_s6 + $0x100] sm:$0xff]   ;;  %v9808_v7 = vmov 12  }
 0x9b5   :  { %v2911_v6 = vmul.f32 %v9796_v52, %v9795_v32  ;;  %v3250_v2 = vmul.f32 %v9798_v9, %v9797_v22  ;;  %v9799_v32 = vld [vmem:[#allocation26_spill] sm:$0xff]  ;;  %v9800_v52 = vunpack.c.h.bf16 %v8155_v49  ;;  %v2653_v22 = vmul.f32 %v9802_v38, %v9801_v44  ;;  %v8230_v9 = vld [vmem:[%s9085_s6 + $0xe0] sm:$0xff]   ;;  %v9806_v38 = vld [vmem:[#allocation17_spill] sm:$0xff] }
 0x9b6   :  { %v3349_v62 = vmul.f32 %v9269_v10, %v3341_v12  ;;  %v9803_v46 = vld [vmem:[#allocation124_spill] sm:$0xff]  ;;  %v9804_v26 = vld [vmem:[#allocation59_spill] sm:$0xff]  ;;  %v9807_v44 = vunpack.c.l.bf16 %v8161_v30  ;;  %4078 = vperm.xlu0 %4937, %v7356_v59   ;;  %v9811_v12 = vld [vmem:[#allocation129_spill] sm:$0xff]  ;;  %v9812_v10 = vunpack.c.h.bf16 %v7957_v58 }
 0x9b7   :  { %v3203_v3 = vmul.f32 %v9800_v52, %v9799_v32  ;;  %v3257_v41 = vadd.f32 %v3250_v2, %v3158_v4  ;;  %v9805_v36 = vunpack.c.l.bf16 %v9804_v26  ;;  %v2856_v52 = vadd.f32 %v2849_v19, %v2757_v42  ;;  %4907 = vset.pattern.permute.xlu1 %v9808_v7 }
 0x9b8   :  { %v3302_v17 = vmul.f32 %v9807_v44, %v9806_v38  ;;  %v9810_v4 = vunpack.c.l.bf16 %v7970_v15  ;;  %v2851_v26 = vmul.f32 %v9812_v10, %v9811_v12  ;;  %v9813_v19 = vunpack.c.l.bf16 %v8183_v37  ;;  %3819 = vperm.xlu1 %4907, %v7465_v43   ;;  %v9816_v10 = vld [vmem:[#allocation8_spill] sm:$0xff] }
 0x9b9   :  { %v2948_v32 = vmul.f32 %v9805_v36, %v9803_v46  ;;  %v3356_v46 = vadd.f32 %v3349_v62, %v3257_v41  ;;  %v8257_v36 = vpop.permute.xlu0 %3496  ;;  %v2918_v38 = vadd.f32 %v2911_v6, %v2819_v13  ;;  %v9814_v44 = vunpack.c.l.bf16 %v7912_v57  ;;  %v3378_v13 = vpop.permute.xlu1 %3377  ;;  %v8334_v57 = vld [vmem:[%s9085_s6 + $0xf0] sm:$0xff]  }
 0x9ba   :  { %v2752_v2 = vmul.f32 %v9810_v4, %v9809_v53  ;;  %v3448_v42 = vmul.f32 %v8098_v51, %v9813_v19  ;;  %v3210_v53 = vadd.f32 %v3203_v3, %v8118_v47  ;;  %v9817_v12 = vunpack.c.h.bf16 %v8016_v63  ;;  %v8271_v51 = vld [vmem:[%s9085_s6 + $0xd0] sm:$0xff]   ;;  %v9819_v47 = vld [vmem:[#allocation28_spill] sm:$0xff]  ;;  %4082 = vperm.xlu0 %4937, %v7383_v31  }
 0x9bb   :  { %v3010_v59 = vmul.f32 %v9815_v14, %v9814_v44  ;;  %v3114_v6 = vadd.f32 %v8134_v25, %v3015_v56  ;;  %v2955_v14 = vadd.f32 %v2948_v32, %v2856_v52  ;;  %v9820_v3 = vunpack.c.l.bf16 %v8211_v35  ;;  %v9822_v44 = vld [vmem:[#allocation127_spill] sm:$0xff]  ;;  %v9824_v4 = vld [vmem:[#allocation105_spill] sm:$0xff] }
 0x9bc   :  { %v2759_v58 = vadd.f32 %v2752_v2, %v2653_v22  ;;  %v2655_v7 = vmul.f32 %v9817_v12, %v9816_v10  ;;  %v8274_v41 = vadd.f32 %v3448_v42, %v3356_v46  ;;  %v3309_v62 = vadd.f32 %v3302_v17, %v3210_v53  ;;  %v9826_v32 = vld [vmem:[#allocation9_spill] sm:$0xff] }
 0x9bd   :  { %v3206_v22 = vmul.f32 %v9820_v3, %v9819_v47  ;;  %v9821_v2 = vunpack.c.h.bf16 %v8230_v9  ;;  %v9823_v10 = vunpack.c.h.bf16 %v7904_v29  ;;  %v9825_v25 = vunpack.c.l.bf16 %v7928_v50  ;;  %v8291_v46 = vpop.permute.xlu0 %3518  ;;  %v8310_v47 = vld [vmem:[%s9085_s6 + $0x108] sm:$0xff]  }
 0x9be   :  { %9818 = vst [vmem:[#allocation84_spill] sm:$0xff] %v8274_v41  ;;  %v2858_v42 = vadd.f32 %v2851_v26, %v2759_v58  ;;  %v9827_v17 = vunpack.c.h.bf16 %v8029_v61  ;;  %v9828_v53 = vmov 13   ;;  %v9829_v3 = vunpack.c.l.bf16 %v8235_v11  ;;  %v9831_v26 = vld [vmem:[#allocation51_spill] sm:$0xff]  ;;  %v9842_v41 = vld [vmem:[#allocation152_spill] sm:$0xff] }
 0x9bf   :  { %v3401_v19 = vmul.f32 %v9821_v2, %v3378_v13  ;;  %v3047_v12 = vmul.f32 %v9823_v10, %v9822_v44  ;;  %v2754_v56 = vmul.f32 %v9825_v25, %v9824_v4  ;;  %4908 = vset.pattern.permute.xlu1 %v9828_v53  ;;  %v3017_v13 = vadd.f32 %v3010_v59, %v2918_v38  ;;  %v9830_v10 = vld [vmem:[#allocation72_spill] sm:$0xff] }
 0x9c0   :  { %v2853_v52 = vmul.f32 %v9827_v17, %v9826_v32  ;;  %v3500_v2 = vmul.f32 %v9829_v3, %v8163_v23  ;;  %3868 = vperm.xlu1 %4908, %v9830_v10   ;;  %v2915_v58 = vadd.f32 %v8190_v8, %v8150_v16  ;;  %v9832_v4 = vunpack.c.h.bf16 %v8052_v55  ;;  %v9833_v32 = vld [vmem:[#allocation47_spill] sm:$0xff]  ;;  %v8312_v23 = vpop.permute.xlu1 %3381  ;;  %v8320_v8 = vld [vmem:[%s9085_s6 + $0xb0] sm:$0xff]  }
 0x9c1   :  { %v3408_v44 = vadd.f32 %v3401_v19, %v3309_v62  ;;  %v9834_v17 = vunpack.c.l.bf16 %v7995_v54  ;;  %v2761_v38 = vadd.f32 %v2754_v56, %v2655_v7  ;;  %9835 = vst [vmem:[#allocation89_spill] sm:$0xff] %v8312_v23  ;;  %v9836_v62 = vld [vmem:[#allocation76_spill] sm:$0xff]  ;;  %v9837_v19 = vunpack.c.l.bf16 %v7928_v50  ;;  %v9839_v7 = vld [vmem:[#allocation29_spill] sm:$0xff] }
 0x9c2   :  { %v3109_v25 = vmul.f32 %v9832_v4, %v9831_v26  ;;  %v3213_v3 = vadd.f32 %v3206_v22, %v3114_v6  ;;  %v9838_v26 = vunpack.c.l.bf16 %v8116_v34  ;;  %v9840_v4 = vld [vmem:[#allocation46_spill] sm:$0xff]  ;;  %v9843_v50 = vunpack.c.h.bf16 %v7965_v39  ;;  %v8336_v6 = vpop.permute.xlu0 %3526  ;;  %v9844_v22 = vld [vmem:[#allocation27_spill] sm:$0xff] }
 0x9c3   :  { %v2950_v59 = vmul.f32 %v9834_v17, %v9833_v32  ;;  %v2712_v16 = vmul.f32 %v9837_v19, %v9836_v62  ;;  %4090 = vperm.xlu0 %4937, %v9840_v4   ;;  %v8326_v32 = vadd.f32 %v3500_v2, %v3408_v44  ;;  %v3054_v17 = vadd.f32 %v3047_v12, %v2955_v14 }
 0x9c4   :  { %v3208_v56 = vmul.f32 %v9839_v7, %v9838_v26  ;;  %v3049_v62 = vmul.f32 %v9843_v50, %v9842_v41  ;;  %v2860_v19 = vadd.f32 %v2853_v52, %v2761_v38  ;;  %v9845_v26 = vunpack.c.h.bf16 %v8271_v51  ;;  %v8346_v41 = vld [vmem:[%s9085_s6 + $0x110] sm:$0xff]   ;;  %3910 = vperm.xlu1 %4908, %v9794_v20   ;;  %v3390_v12 = vpop.permute.xlu1 %3389 }
 0x9c5   :  { %9841 = vst [vmem:[#allocation86_spill] sm:$0xff] %v8326_v32  ;;  %v2957_v23 = vadd.f32 %v2950_v59, %v2858_v42  ;;  %v3116_v2 = vadd.f32 %v3109_v25, %v3017_v13  ;;  %v9846_v42 = vld [vmem:[#allocation125_spill] sm:$0xff]  ;;  %v9847_v52 = vunpack.c.l.bf16 %v7935_v5  ;;  %v9848_v59 = vld [vmem:[#allocation128_spill] sm:$0xff]  ;;  %v9849_v38 = vunpack.c.l.bf16 %v8021_v21  ;;  %v9850_v25 = vld [vmem:[#allocation39_spill] sm:$0xff] }
 0x9c6   :  { %v3305_v7 = vmul.f32 %v9845_v26, %v9844_v22  ;;  %v9851_v22 = vunpack.c.h.bf16 %v8155_v49  ;;  %v2719_v14 = vadd.f32 %v2712_v16, %v8139_v40  ;;  %v9852_v32 = vunpack.c.l.bf16 %v8334_v57 }
 0x9c7   :  { %v3146_v44 = vmul.f32 %v9847_v52, %v9846_v42  ;;  %v2952_v50 = vmul.f32 %v9849_v38, %v9848_v59  ;;  %v3215_v29 = vadd.f32 %v3208_v56, %v3116_v2  ;;  %v3056_v10 = vadd.f32 %v3049_v62, %v2957_v23  ;;  %v8363_v59 = vpop.permute.xlu0 %3534  ;;  %v9853_v38 = vld [vmem:[#allocation24_spill] sm:$0xff] }
 0x9c8   :  { %v3245_v26 = vmul.f32 %v9851_v22, %v9850_v25  ;;  %v3312_v4 = vadd.f32 %v3305_v7, %v3213_v3  ;;  %v3404_v20 = vmul.f32 %v9852_v32, %v3390_v12  ;;  %v9281_v43 = vunpack.c.h.bf16 %v8346_v41  ;;  %v9855_v25 = vld [vmem:[#allocation38_spill] sm:$0xff]  ;;  %3914 = vperm.xlu1 %4908, %v7450_v48   ;;  %v3398_v2 = vpop.permute.xlu1 %3397  ;;  %v9860_v12 = vld [vmem:[#allocation19_spill] sm:$0xff] }
 0x9c9   :  { %v2959_v42 = vadd.f32 %v2952_v50, %v2860_v19  ;;  %v3153_v52 = vadd.f32 %v3146_v44, %v3054_v17  ;;  %v9854_v13 = vunpack.c.h.bf16 %v8034_v33  ;;  %v9856_v22 = vunpack.c.h.bf16 %v8178_v1  ;;  %v9858_v32 = vld [vmem:[#allocation126_spill] sm:$0xff] }
 0x9ca   :  { %v9857_v16 = vunpack.c.h.bf16 %v8310_v47  ;;  %v3411_v56 = vadd.f32 %v3404_v20, %v3312_v4  ;;  %v8376_v23 = vadd.f32 %v8108_v45, %v2915_v58  ;;  %v9859_v17 = vunpack.c.l.bf16 %v8000_v27 }
 0x9cb   :  { %v3051_v5 = vmul.f32 %v9854_v13, %v9853_v38  ;;  %v3307_v40 = vmul.f32 %v9856_v22, %v9855_v25  ;;  %v9284_v19 = vunpack.c.l.bf16 %v8155_v49  ;;  %v3252_v7 = vadd.f32 %v3245_v26, %v3153_v52  ;;  %v9863_v38 = vld [vmem:[#allocation18_spill] sm:$0xff] }
 0x9cc   :  { %v3503_v3 = vmul.f32 %v9857_v16, %v8218_v28  ;;  %v3148_v62 = vmul.f32 %v9859_v17, %v9858_v32  ;;  %v9861_v44 = vunpack.c.h.bf16 %v8320_v8  ;;  %v9862_v20 = vunpack.c.l.bf16 %v8183_v37  ;;  %4909 = vset.pattern.permute.xlu1 %v9716_v24 }
 0x9cd   :  { %v3314_v13 = vadd.f32 %v3307_v40, %v3215_v29  ;;  %v2818_v45 = vadd.f32 %v8148_v60, %v2719_v14  ;;  %v9282_v58 = vunpack.c.h.bf16 %v8211_v35  ;;  %v9864_v25 = vunpack.c.l.bf16 %v8161_v30  ;;  %v8398_v29 = vld [vmem:[%s9085_s6 + $0xe8] sm:$0xff]   ;;  %v8406_v14 = vld [vmem:[%s9085_s6 + $0x118] sm:$0xff]  }
 0x9ce   :  { %v3247_v50 = vmul.f32 %v9861_v44, %v9860_v12  ;;  %v3406_v28 = vmul.f32 %v3398_v2, %v9862_v20  ;;  %v8387_v4 = vadd.f32 %v3503_v3, %v3411_v56  ;;  %v9287_v26 = vunpack.c.l.bf16 %v8271_v51  ;;  %v8408_v3 = vpop.permute.xlu0 %3571  ;;  %v9867_v56 = vld [vmem:[#allocation153_spill] sm:$0xff]  ;;  %v3420_v2 = vpop.permute.xlu1 %3419 }
 0x9cf   :  { %v3344_v22 = vmul.f32 %v9864_v25, %v9863_v38  ;;  %v3058_v52 = vadd.f32 %v3051_v5, %v2959_v42  ;;  %v3155_v16 = vadd.f32 %v3148_v62, %v3056_v10  ;;  %v3505_v40 = vmul.f32 %v9281_v43, %v8257_v36  ;;  %v9865_v5 = vld [vmem:[#allocation101_spill] sm:$0xff]  ;;  %v9869_v62 = vld [vmem:[#allocation74_spill] sm:$0xff] }
 0x9d0   :  { %v3413_v60 = vadd.f32 %v3406_v28, %v3314_v13  ;;  %v9866_v10 = vunpack.c.l.bf16 %v8021_v21  ;;  %v9868_v32 = vunpack.c.l.bf16 %v8052_v55  ;;  %3633 = vperm.xlu1 %4909, %v9869_v62   ;;  %v9285_v12 = vunpack.c.h.bf16 %v8406_v14  ;;  %v9870_v13 = vld [vmem:[#allocation20_spill] sm:$0xff] }
 0x9d1   :  { %v3351_v36 = vadd.f32 %v3344_v22, %v3252_v7  ;;  %v3254_v44 = vadd.f32 %v3247_v50, %v3155_v16  ;;  %v3249_v20 = vmul.f32 %v9282_v58, %v9870_v13  ;;  %v9871_v28 = vunpack.c.h.bf16 %v8230_v9  ;;  %v9872_v22 = vld [vmem:[#allocation12_spill] sm:$0xff]  ;;  %v9874_v13 = vld [vmem:[#allocation55_spill] sm:$0xff] }
 0x9d2   :  { %v2910_v42 = vmul.f32 %v9866_v10, %v9865_v5  ;;  %v3150_v17 = vmul.f32 %v9868_v32, %v9867_v56  ;;  %v8424_v21 = vadd.f32 %v3505_v40, %v3413_v60  ;;  %v9286_v5 = vunpack.c.h.bf16 %v8398_v29  ;;  %v3618_v40 = vpop.permute.xlu0 %3617  ;;  %v9876_v58 = vld [vmem:[#allocation15_spill] sm:$0xff] }
 0x9d3   :  { %v3443_v38 = vmul.f32 %v9871_v28, %v3420_v2  ;;  %v9283_v10 = vunpack.c.h.bf16 %v8116_v34  ;;  %v3346_v50 = vmul.f32 %v9287_v26, %v9872_v22  ;;  %v9873_v56 = vunpack.c.l.bf16 %v8235_v11 }
 0x9d4   :  { %v3157_v16 = vadd.f32 %v3150_v17, %v3058_v52  ;;  %v2917_v60 = vadd.f32 %v2910_v42, %v2818_v45  ;;  %v9875_v28 = vunpack.c.h.bf16 %v9789_v18  ;;  %v3202_v7 = vmul.f32 %v9284_v19, %v9876_v58  ;;  %4910 = vset.pattern.permute.xlu1 %v9722_v0  ;;  %v3428_v52 = vpop.permute.xlu1 %3427  ;;  %v9877_v42 = vld [vmem:[#allocation53_spill] sm:$0xff]  ;;  %v9880_v58 = vld [vmem:[#allocation34_spill] sm:$0xff] }
 0x9d5   :  { %v3542_v32 = vmul.f32 %v9873_v56, %v8291_v46  ;;  %v3450_v2 = vadd.f32 %v3443_v38, %v3351_v36  ;;  %v3641_v25 = vmul.f32 %v9285_v12, %v3618_v40  ;;  %v3353_v46 = vadd.f32 %v3346_v50, %v3254_v44  ;;  %3686 = vperm.xlu1 %4910, %v7383_v31   ;;  %v9878_v36 = vld [vmem:[#allocation65_spill] sm:$0xff] }
 0x9d6   :  { %v2751_v43 = vmul.f32 %v9875_v28, %v9874_v13  ;;  %v3256_v17 = vadd.f32 %v3249_v20, %v3157_v16  ;;  %v3445_v45 = vmul.f32 %v9286_v5, %v3428_v52  ;;  %v9879_v38 = vunpack.c.l.bf16 %v9878_v36  ;;  %v9881_v20 = vld [vmem:[#allocation30_spill] sm:$0xff]  ;;  %v9886_v12 = vld [vmem:[#allocation85_spill] sm:$0xff]  ;;  %v9907_v36 = vld [vmem:[#allocation59_spill] sm:$0xff] }
 0x9d7   :  { %v3549_v22 = vadd.f32 %v3542_v32, %v3450_v2  ;;  %v3301_v13 = vmul.f32 %v9880_v58, %v9283_v10  ;;  %v9882_v44 = vunpack.c.l.bf16 %v8178_v1  ;;  %v9883_v16 = vunpack.c.l.bf16 %v8310_v47 }
 0x9d8   :  { %v2652_v56 = vmul.f32 %v9879_v38, %v9877_v42  ;;  %v3452_v52 = vadd.f32 %v3445_v45, %v3353_v46  ;;  %v8464_v42 = vpop.permute.xlu0 %3621  ;;  %v9884_v38 = vld [vmem:[#allocation122_spill] sm:$0xff]  ;;  %v9885_v58 = vunpack.c.h.bf16 %v8034_v33  ;;  %v3209_v5 = vadd.f32 %v3202_v7, %v9886_v12  ;;  %v3436_v28 = vpop.permute.xlu1 %3435 }
 0x9d9   :  { %v3348_v50 = vmul.f32 %v9882_v44, %v9881_v20  ;;  %v3544_v32 = vmul.f32 %v9883_v16, %v8336_v6  ;;  %v8462_v2 = vadd.f32 %v3641_v25, %v3549_v22  ;;  %v9887_v20 = vld [vmem:[#allocation14_spill] sm:$0xff]  ;;  %v9888_v44 = vunpack.c.h.bf16 %v7970_v15  ;;  %v9891_v16 = vld [vmem:[#allocation123_spill] sm:$0xff]  ;;  %v9894_v15 = vld [vmem:[#allocation148_spill] sm:$0xff] }
 0x9da   :  { %v3009_v10 = vmul.f32 %v9885_v58, %v9884_v38  ;;  %v2758_v19 = vadd.f32 %v2751_v43, %v2652_v56  ;;  %v9889_v25 = vunpack.c.h.bf16 %v8334_v57  ;;  %v9890_v46 = vmov 12   ;;  %v9893_v38 = vld [vmem:[#allocation96_spill] sm:$0xff] }
 0x9db   :  { %v2753_v40 = vmul.f32 %v9888_v44, %v9887_v20  ;;  %v3355_v6 = vadd.f32 %v3348_v50, %v3256_v17  ;;  %4911 = vset.pattern.permute.xlu1 %v9890_v46  ;;  %v8477_v45 = vadd.f32 %v3544_v32, %v3452_v52  ;;  %v9892_v43 = vunpack.c.l.bf16 %v8000_v27  ;;  %v9895_v20 = vld [vmem:[#allocation67_spill] sm:$0xff]  ;;  %v9897_v44 = vld [vmem:[#allocation57_spill] sm:$0xff] }
 0x9dc   :  { %v3447_v22 = vmul.f32 %v9889_v25, %v3436_v28  ;;  %v3016_v12 = vadd.f32 %v3009_v10, %v2917_v60  ;;  %v3308_v7 = vadd.f32 %v3301_v13, %v3209_v5  ;;  %3781 = vperm.xlu1 %4911, %v9893_v38   ;;  %v9896_v17 = vunpack.c.l.bf16 %v9895_v20  ;;  %v9900_v10 = vld [vmem:[#allocation45_spill] sm:$0xff]  ;;  %v9902_v13 = vld [vmem:[#allocation23_spill] sm:$0xff]  ;;  %v9904_v20 = vld [vmem:[#allocation40_spill] sm:$0xff] }
 0x9dd   :  { %v3106_v56 = vmul.f32 %v9892_v43, %v9891_v16  ;;  %v9898_v28 = vunpack.c.l.bf16 %v8016_v63  ;;  %v9899_v32 = vunpack.c.l.bf16 %v8346_v41  ;;  %v3584_v16 = vpop.permute.xlu0 %3583  ;;  %v9901_v5 = vunpack.c.l.bf16 %v8052_v55  ;;  %v9913_v63 = vld [vmem:[#allocation52_spill] sm:$0xff] }
 0x9de   :  { %v2850_v50 = vmul.f32 %v9896_v17, %v9894_v15  ;;  %v3454_v26 = vadd.f32 %v3447_v22, %v3355_v6  ;;  %v9903_v43 = vunpack.c.h.bf16 %v8320_v8  ;;  %v9905_v15 = vunpack.c.l.bf16 %v8230_v9 }
 0x9df   :  { %v2654_v25 = vmul.f32 %v9898_v28, %v9897_v44  ;;  %v3546_v52 = vmul.f32 %v9899_v32, %v8363_v59  ;;  %v3108_v60 = vmul.f32 %v9901_v5, %v9900_v10  ;;  %v9906_v28 = vld [vmem:[#allocation150_spill] sm:$0xff]  ;;  %v9908_v59 = vunpack.c.h.bf16 %v9907_v36  ;;  %v3473_v32 = vpop.permute.xlu1 %3472 }
 0x9e0   :  { %v3205_v58 = vmul.f32 %v9903_v43, %v9902_v13  ;;  %v3400_v17 = vmul.f32 %v9905_v15, %v9904_v20  ;;  %v2857_v44 = vadd.f32 %v2850_v50, %v2758_v19  ;;  %v3113_v55 = vadd.f32 %v3106_v56, %v8376_v23  ;;  %v9910_v10 = vld [vmem:[#allocation66_spill] sm:$0xff]  ;;  %3823 = vperm.xlu1 %4911, %v9913_v63   ;;  %v9914_v50 = vld [vmem:[#allocation151_spill] sm:$0xff] }
 0x9e1   :  { %v2949_v6 = vmul.f32 %v9908_v59, %v9906_v28  ;;  %v2760_v22 = vadd.f32 %v2753_v40, %v2654_v25  ;;  %v8506_v18 = vadd.f32 %v3546_v52, %v3454_v26  ;;  %v9911_v5 = vunpack.c.l.bf16 %v8271_v51  ;;  %v9916_v26 = vld [vmem:[#allocation35_spill] sm:$0xff]  ;;  %v8522_v56 = vpop.permute.xlu0 %3629 }
 0x9e2   :  { %v3407_v43 = vadd.f32 %v3400_v17, %v3308_v7  ;;  %v9912_v20 = vunpack.c.h.bf16 %v8183_v37  ;;  %v9915_v40 = vunpack.c.l.bf16 %v8029_v61  ;;  %v9917_v52 = vunpack.c.h.bf16 %v8211_v35 }
 0x9e3   :  { %9909 = vst [vmem:[#allocation91_spill] sm:$0xff] %v8506_v18  ;;  %v3304_v13 = vmul.f32 %v9911_v5, %v9910_v10  ;;  %v3115_v28 = vadd.f32 %v3108_v60, %v3016_v12  ;;  %v3212_v59 = vadd.f32 %v3205_v58, %v3113_v55  ;;  %v9918_v7 = vunpack.c.l.bf16 %v8406_v14  ;;  %v8538_v12 = vld [vmem:[%s9085_s6 + $0x130] sm:$0xff]   ;;  %v9924_v60 = vld [vmem:[#allocation60_spill] sm:$0xff]  ;;  %v9943_v18 = vld [vmem:[#allocation83_spill] sm:$0xff] }
 0x9e4   :  { %v3499_v15 = vmul.f32 %v3473_v32, %v9912_v20  ;;  %v2852_v25 = vmul.f32 %v9915_v40, %v9914_v50  ;;  %v3207_v23 = vmul.f32 %v9917_v52, %v9916_v26  ;;  %v2956_v10 = vadd.f32 %v2949_v6, %v2857_v44  ;;  %v9919_v20 = vld [vmem:[#allocation22_spill] sm:$0xff]  ;;  %v9921_v50 = vld [vmem:[#allocation68_spill] sm:$0xff]  ;;  %v8533_v26 = vpop.permute.xlu1 %3480  ;;  %4912 = vset.pattern.permute.xlu1 %v9828_v53 }
 0x9e5   :  { %v3598_v17 = vmul.f32 %v9918_v7, %v8408_v3  ;;  %v9920_v19 = vunpack.c.h.bf16 %v7995_v54  ;;  %v9922_v40 = vunpack.c.l.bf16 %v8178_v1  ;;  %9923 = vst [vmem:[#allocation88_spill] sm:$0xff] %v8533_v26  ;;  %v3311_v58 = vadd.f32 %v3304_v13, %v3212_v59  ;;  %v9925_v54 = vld [vmem:[#allocation79_spill] sm:$0xff] }
 0x9e6   :  { %v3506_v32 = vadd.f32 %v3499_v15, %v3407_v43  ;;  %v2859_v5 = vadd.f32 %v2852_v25, %v2760_v22  ;;  %v9289_v44 = vunpack.c.h.bf16 %v9924_v60  ;;  %v9926_v6 = vunpack.c.l.bf16 %v7965_v39  ;;  %v8550_v55 = vld [vmem:[%s9085_s6 + $0x120] sm:$0xff]   ;;  %v3592_v43 = vpop.permute.xlu0 %3591  ;;  %v9927_v15 = vld [vmem:[#allocation121_spill] sm:$0xff] }
 0x9e7   :  { %v2951_v61 = vmul.f32 %v9920_v19, %v9919_v20  ;;  %v3306_v36 = vmul.f32 %v9922_v40, %v9921_v50  ;;  %v3214_v1 = vadd.f32 %v3207_v23, %v3115_v28  ;;  %3918 = vperm.xlu1 %4912, %v9927_v15   ;;  %v9292_v13 = vunpack.c.l.bf16 %v8320_v8  ;;  %v9928_v19 = vld [vmem:[#allocation41_spill] sm:$0xff] }
 0x9e8   :  { %v8541_v3 = vadd.f32 %v3598_v17, %v3506_v32  ;;  %v3048_v22 = vmul.f32 %v9926_v6, %v9925_v54  ;;  %v9929_v25 = vunpack.c.h.bf16 %v8398_v29  ;;  %v9930_v23 = vld [vmem:[#allocation81_spill] sm:$0xff]  ;;  %v3485_v50 = vpop.permute.xlu1 %3484  ;;  %v9931_v6 = vunpack.c.l.bf16 %v8310_v47 }
 0x9e9   :  { %v3147_v28 = vmul.f32 %v9289_v44, %v9930_v23  ;;  %v2958_v32 = vadd.f32 %v2951_v61, %v2859_v5  ;;  %v3313_v20 = vadd.f32 %v3306_v36, %v3214_v1  ;;  %v8565_v40 = vld [vmem:[%s9085_s6 + $0x128] sm:$0xff]   ;;  %v9933_v7 = vunpack.c.l.bf16 %v8034_v33 }
 0x9ea   :  { %v3403_v52 = vmul.f32 %v9929_v25, %v9928_v19  ;;  %v3055_v17 = vadd.f32 %v3048_v22, %v2956_v10  ;;  %v3502_v19 = vmul.f32 %v9931_v6, %v3485_v50  ;;  %v9932_v25 = vld [vmem:[#allocation80_spill] sm:$0xff]  ;;  %v9934_v22 = vld [vmem:[#allocation63_spill] sm:$0xff]  ;;  %v9935_v59 = vunpack.c.h.bf16 %v8334_v57  ;;  %v3596_v61 = vpop.permute.xlu0 %3595  ;;  %v9937_v44 = vld [vmem:[#allocation25_spill] sm:$0xff] }
 0x9eb   :  { %v3050_v10 = vmul.f32 %v9933_v7, %v9932_v25  ;;  %v9936_v1 = vmov 14   ;;  %v9939_v7 = vunpack.c.l.bf16 %v8538_v12  ;;  %v9940_v25 = vld [vmem:[#allocation72_spill] sm:$0xff]  ;;  %v9942_v5 = vunpack.c.h.bf16 %v8000_v27 }
 0x9ec   :  { %v3410_v54 = vadd.f32 %v3403_v52, %v3311_v58  ;;  %v3405_v23 = vmul.f32 %v9935_v59, %v9934_v22  ;;  %4913 = vset.pattern.permute.xlu1 %v9936_v1  ;;  %v3246_v58 = vmul.f32 %v9292_v13, %v9937_v44  ;;  %v9938_v52 = vunpack.c.h.bf16 %v8550_v55  ;;  %v9941_v36 = vld [vmem:[#allocation32_spill] sm:$0xff]  ;;  %v3493_v39 = vpop.permute.xlu1 %3492 }
 0x9ed   :  { %v3604_v6 = vmul.f32 %v3596_v61, %v9939_v7  ;;  %3967 = vperm.xlu1 %4913, %v9940_v25   ;;  %v3154_v59 = vadd.f32 %v3147_v28, %v3055_v17  ;;  %v3057_v22 = vadd.f32 %v3050_v10, %v2958_v32  ;;  %v3149_v26 = vmul.f32 %v9942_v5, %v9941_v36  ;;  %v9947_v32 = vld [vmem:[#allocation10_spill] sm:$0xff]  ;;  %v9950_v5 = vld [vmem:[#allocation120_spill] sm:$0xff] }
 0x9ee   :  { %v3601_v50 = vmul.f32 %v9938_v52, %v3584_v16  ;;  %v3509_v33 = vadd.f32 %v3502_v19, %v3410_v54  ;;  %v3412_v60 = vadd.f32 %v3405_v23, %v3313_v20  ;;  %v9944_v44 = vunpack.c.h.bf16 %v8161_v30 }
 0x9ef   :  { %v8593_v16 = vadd.f32 %v3604_v6, %v8424_v21  ;;  %v9946_v54 = vunpack.c.l.bf16 %v8346_v41  ;;  %v9296_v17 = vunpack.c.l.bf16 %v8398_v29  ;;  %v3253_v28 = vadd.f32 %v3246_v58, %v3154_v59 }
 0x9f0   :  { %v3345_v13 = vmul.f32 %v9944_v44, %v9943_v18  ;;  %v8597_v61 = vadd.f32 %v3601_v50, %v3509_v33  ;;  %v9948_v27 = vunpack.c.l.bf16 %v8211_v35  ;;  %v9949_v10 = vunpack.c.h.bf16 %v8565_v40  ;;  %v3675_v18 = vpop.permute.xlu0 %3674  ;;  %v8606_v21 = vpop.permute.xlu1 %3514  ;;  %v9951_v50 = vld [vmem:[#allocation87_spill] sm:$0xff] }
 0x9f1   :  { %9945 = vst [vmem:[#allocation93_spill] sm:$0xff] %v8593_v16  ;;  %v3504_v19 = vmul.f32 %v9946_v54, %v3493_v39  ;;  %4009 = vperm.xlu1 %4913, %v9950_v5   ;;  %v3156_v52 = vadd.f32 %v3149_v26, %v3057_v22  ;;  %v9952_v33 = vunpack.c.h.bf16 %v8271_v51  ;;  %v9953_v35 = vld [vmem:[#allocation71_spill] sm:$0xff] }
 0x9f2   :  { %v3248_v20 = vmul.f32 %v9948_v27, %v9947_v32  ;;  %v3603_v23 = vmul.f32 %v9949_v10, %v3592_v43  ;;  %v3352_v39 = vadd.f32 %v3345_v13, %v3253_v28  ;;  %v3444_v59 = vmul.f32 %v9296_v17, %v9953_v35  ;;  %v8622_v26 = vld [vmem:[%s9085_s6 + $0x138] sm:$0xff]   ;;  %v8630_v28 = vld [vmem:[%s9085_s6 + $0x140] sm:$0xff]  }
 0x9f3   :  { %v3511_v36 = vadd.f32 %v3504_v19, %v3412_v60  ;;  %v3347_v7 = vmul.f32 %v9952_v33, %v9951_v50  ;;  %v9294_v60 = vunpack.c.l.bf16 %v8550_v55  ;;  %v9295_v43 = vunpack.c.h.bf16 %v8235_v11  ;;  %9954 = vst [vmem:[#allocation90_spill] sm:$0xff] %v8622_v26  ;;  %v9955_v32 = vld [vmem:[#allocation82_spill] sm:$0xff] }
 0x9f4   :  { %v3255_v6 = vadd.f32 %v3248_v20, %v3156_v52  ;;  %v3721_v51 = vpop.permute.xlu0 %3720  ;;  %v3523_v13 = vpop.permute.xlu1 %3522  ;;  %v9293_v44 = vunpack.c.h.bf16 %v8622_v26  ;;  %v3451_v54 = vadd.f32 %v3444_v59, %v3352_v39  ;;  %v9956_v27 = vunpack.c.l.bf16 %v8334_v57  ;;  %v9957_v52 = vld [vmem:[#allocation44_spill] sm:$0xff] }
 0x9f5   :  { %v8611_v58 = vadd.f32 %v3603_v23, %v3511_v36  ;;  %4013 = vperm.xlu1 %4913, %v7450_v48   ;;  %v3543_v19 = vmul.f32 %v9295_v43, %v3523_v13  ;;  %v3642_v10 = vmul.f32 %v9294_v60, %v8464_v42  ;;  %v9299_v23 = vunpack.c.l.bf16 %v8565_v40  ;;  %v9974_v60 = vld [vmem:[#allocation31_spill] sm:$0xff] }
 0x9f6   :  { %v3354_v22 = vadd.f32 %v3347_v7, %v3255_v6  ;;  %v3446_v20 = vmul.f32 %v9956_v27, %v9955_v32  ;;  %v9297_v5 = vunpack.c.h.bf16 %v8630_v28  ;;  %v3741_v50 = vmul.f32 %v9293_v44, %v3721_v51  ;;  %v9973_v44 = vld [vmem:[#allocation146_spill] sm:$0xff] }
 0x9f7   :  { %v3550_v36 = vadd.f32 %v3543_v19, %v3451_v54  ;;  %v9958_v7 = vunpack.c.h.bf16 %v8310_v47  ;;  %v3644_v42 = vmul.f32 %v9299_v23, %v8522_v56  ;;  %v4548_v19 = vunpack.c.l.bf16 %v8622_v26  ;;  %v9977_v23 = vld [vmem:[#allocation33_spill] sm:$0xff] }
 0x9f8   :  { %v3531_v39 = vpop.permute.xlu1 %3530  ;;  %v3453_v57 = vadd.f32 %v3446_v20, %v3354_v22  ;;  %v3729_v35 = vpop.permute.xlu0 %3728  ;;  %v9959_v22 = vld [vmem:[#allocation42_spill] sm:$0xff]  ;;  %v9961_v32 = vunpack.c.h.bf16 %v8406_v14  ;;  %v9975_v43 = vunpack.c.l.bf16 %v9974_v60  ;;  %v9978_v16 = vunpack.c.l.bf16 %v9977_v23 }
 0x9f9   :  { %4915 = vset.pattern.permute.xlu1 %v9716_v24  ;;  %v3649_v33 = vadd.f32 %v3642_v10, %v3550_v36  ;;  %v3545_v6 = vmul.f32 %v9958_v7, %v3531_v39  ;;  %v3743_v51 = vmul.f32 %v9297_v5, %v3729_v35  ;;  %v3698_v20 = vmul.f32 %v4548_v19, %v3675_v18  ;;  %v9962_v10 = vld [vmem:[#allocation86_spill] sm:$0xff] }
 0x9fa   :  { %3637 = vperm.xlu1 %4915, %v9957_v52   ;;  %v9965_v18 = vmov 15   ;;  %v2650_v17 = vmul.f32 %v9975_v43, %v9973_v44 }
 0x9fb   :  { %v3552_v59 = vadd.f32 %v3545_v6, %v3453_v57  ;;  %v8649_v24 = vadd.f32 %v3741_v50, %v3649_v33  ;;  %v9963_v50 = vld [vmem:[#allocation50_spill] sm:$0xff]  ;;  %v9964_v6 = vld [vmem:[#allocation97_spill] sm:$0xff] }
 0x9fc   :  { %v8652_v13 = vpop.permute.xlu1 %3538 }
 0x9fd   :  { %v3651_v54 = vadd.f32 %v3644_v42, %v3552_v59  ;;  %v9966_v59 = vld [vmem:[#allocation73_spill] sm:$0xff] }
 0x9fe   :  { %4916 = vset.pattern.permute.xlu1 %v9722_v0 }
 0x9ff   :  { %3690 = vperm.xlu1 %4916, %v9959_v22   ;;  %v8657_v47 = vadd.f32 %v3743_v51, %v3651_v54  ;;  %v9967_v54 = vunpack.c.h.bf16 %v8550_v55 }
 0xa00   :  { %v3576_v56 = vpop.permute.xlu1 %3575 }
 0xa01   :  { %9960 = vst [vmem:[#allocation95_spill] sm:$0xff] %v8657_v47  ;;  %v3599_v27 = vmul.f32 %v9961_v32, %v3576_v56  ;;  %v9298_v32 = vunpack.c.h.bf16 %v8538_v12 }
 0xa03   :  { %4917 = vset.pattern.permute.xlu1 %v9890_v46  ;;  %v3606_v36 = vadd.f32 %v3599_v27, %v9962_v10  ;;  %v8689_v10 = vld [vmem:[%s9085_s6 + $0x150] sm:$0xff]  }
 0xa04   :  { %3785 = vperm.xlu1 %4917, %v7383_v31   ;;  %v8665_v39 = vpop.permute.xlu1 %3613 }
 0xa05   :  { %v3705_v33 = vadd.f32 %v3698_v20, %v3606_v36  ;;  %v9969_v36 = vld [vmem:[#allocation46_spill] sm:$0xff] }
 0xa08   :  { %3827 = vperm.xlu1 %4917, %v9963_v50   ;;  %v8668_v57 = vpop.permute.xlu1 %3579 }
 0xa0c   :  { %4918 = vset.pattern.permute.xlu1 %v9828_v53  ;;  %v3671_v7 = vpop.permute.xlu1 %3670 }
 0xa0d   :  { %3922 = vperm.xlu1 %4918, %v9913_v63  }
 0xa10   :  { %v8674_v35 = vpop.permute.xlu1 %3712 }
 0xa11   :  { %4919 = vset.pattern.permute.xlu1 %v9936_v1 }
 0xa12   :  { %3975 = vperm.xlu1 %4919, %v9964_v6  }
 0xa14   :  { %v3717_v42 = vpop.permute.xlu1 %3716 }
 0xa15   :  { %v3740_v43 = vmul.f32 %v4548_v19, %v3717_v42  ;;  %v9983_v19 = vld [vmem:[#allocation36_spill] sm:$0xff] }
 0xa16   :  { %4920 = vset.pattern.permute.xlu1 %v9965_v18  ;;  %v9984_v42 = vunpack.c.l.bf16 %v9983_v19  ;;  %v3733_v19 = vpop.permute.xlu0 %3732 }
 0xa17   :  { %4066 = vperm.xlu1 %4920, %v9940_v25   ;;  %v3697_v25 = vmul.f32 %v3671_v7, %v9298_v32  ;;  %v4561_v7 = vunpack.c.h.bf16 %v8689_v10  ;;  %v9976_v32 = vld [vmem:[#allocation77_spill] sm:$0xff] }
 0xa18   :  { %v3626_v51 = vpop.permute.xlu1 %3625  ;;  %v2848_v60 = vmul.f32 %v9978_v16, %v9976_v32  ;;  %v9982_v16 = vld [vmem:[#allocation100_spill] sm:$0xff] }
 0xa19   :  { %v3643_v56 = vmul.f32 %v9967_v54, %v3626_v51  ;;  %v9972_v51 = vld [vmem:[#allocation149_spill] sm:$0xff]  ;;  %v3704_v5 = vadd.f32 %v3697_v25, %v8541_v3  ;;  %v9979_v25 = vld [vmem:[#allocation58_spill] sm:$0xff]  ;;  %v3046_v32 = vmul.f32 %v9984_v42, %v9982_v16 }
 0xa1b   :  { %4070 = vperm.xlu1 %4920, %v9966_v59   ;;  %v3650_v27 = vadd.f32 %v3643_v56, %v8477_v45  ;;  %v9970_v59 = vld [vmem:[#allocation13_spill] sm:$0xff]  ;;  %v9300_v45 = vunpack.c.l.bf16 %v8689_v10 }
 0xa1c   :  { %v8684_v20 = vpop.permute.xlu1 %3678 }
 0xa1d   :  { %9968 = vst [vmem:[#allocation92_spill] sm:$0xff] %v8684_v20 }
 0xa1f   :  { %4112 = vperm.xlu1 %4920, %v7450_v48   ;;  %v9971_v48 = vunpack.c.h.bf16 %v9970_v59 }
 0xa20   :  { %v3770_v56 = vpop.permute.xlu1 %3769 }
 0xa21   :  { %v2749_v54 = vmul.f32 %v9972_v51, %v9971_v48 }
 0xa23   :  { %4921 = vset.pattern.permute.xlu1 %v9722_v0  ;;  %v3796_v0 = vmul.f32 %v9300_v45, %v3770_v56  ;;  %v2756_v59 = vadd.f32 %v2749_v54, %v2650_v17  ;;  %v9980_v56 = vunpack.c.h.bf16 %v9979_v25  ;;  %v9981_v45 = vld [vmem:[#allocation78_spill] sm:$0xff]  ;;  %v3747_v17 = vadd.f32 %v3740_v43, %v8462_v2  ;;  %v9988_v2 = vld [vmem:[#allocation103_spill] sm:$0xff]  ;;  %v9989_v43 = vld [vmem:[#allocation16_spill] sm:$0xff] }
 0xa24   :  { %3694 = vperm.xlu1 %4921, %v9969_v36   ;;  %v3774_v51 = vpop.permute.xlu1 %3773 }
 0xa25   :  { %v8708_v48 = vadd.f32 %v3796_v0, %v3704_v5  ;;  %v3797_v44 = vmul.f32 %v4561_v7, %v3774_v51  ;;  %v2855_v3 = vadd.f32 %v2848_v60, %v2756_v59  ;;  %v2947_v47 = vmul.f32 %v9981_v45, %v9980_v56  ;;  %v9986_v51 = vld [vmem:[#allocation61_spill] sm:$0xff] }
 0xa26   :  { %v9985_v45 = vunpack.c.l.bf16 %v8565_v40  ;;  %v9987_v60 = vunpack.c.h.bf16 %v9986_v51 }
 0xa27   :  { %v8717_v26 = vadd.f32 %v3797_v44, %v3705_v33  ;;  %v2954_v54 = vadd.f32 %v2947_v47, %v2855_v3  ;;  %v4552_v47 = vunpack.c.l.bf16 %v8630_v28  ;;  %v9990_v44 = vunpack.c.l.bf16 %v8155_v49  ;;  %v8752_v49 = vld [vmem:[%s9085_s6 + $0x158] sm:$0xff]  }
 0xa28   :  { %4923 = vset.pattern.permute.xlu1 %v9890_v46  ;;  %v3816_v20 = vpop.permute.xlu1 %3815 }
 0xa29   :  { %3789 = vperm.xlu1 %4923, %v9959_v22   ;;  %v3839_v5 = vmul.f32 %v4561_v7, %v3816_v20  ;;  %v3053_v59 = vadd.f32 %v3046_v32, %v2954_v54  ;;  %v3145_v20 = vmul.f32 %v9988_v2, %v9987_v60  ;;  %v3244_v3 = vmul.f32 %v9990_v44, %v9989_v43 }
 0xa2a   :  { %v4564_v60 = vunpack.c.l.bf16 %v8752_v49 }
 0xa2b   :  { %v8721_v23 = vadd.f32 %v3839_v5, %v3747_v17  ;;  %v3152_v56 = vadd.f32 %v3145_v20, %v3053_v59  ;;  %v9991_v17 = vunpack.c.h.bf16 %v8116_v34  ;;  %v9992_v5 = vld [vmem:[#allocation70_spill] sm:$0xff]  ;;  %v9995_v59 = vunpack.c.h.bf16 %v8183_v37 }
 0xa2c   :  { %v3588_v0 = vpop.permute.xlu1 %3587  ;;  %v9996_v20 = vunpack.c.l.bf16 %v8406_v14 }
 0xa2d   :  { %3831 = vperm.xlu1 %4923, %v9869_v62   ;;  %v3602_v33 = vmul.f32 %v9985_v45, %v3588_v0  ;;  %v3343_v54 = vmul.f32 %v9992_v5, %v9991_v17  ;;  %v3251_v42 = vadd.f32 %v3244_v3, %v3152_v56  ;;  %v9993_v0 = vld [vmem:[#allocation69_spill] sm:$0xff]  ;;  %v9994_v45 = vunpack.c.l.bf16 %v8230_v9 }
 0xa2e   :  { %v3541_v51 = vmul.f32 %v8606_v21, %v9995_v59  ;;  %v8770_v9 = vld [vmem:[%s9085_s6 + $0x168] sm:$0xff]   ;;  %v9998_v5 = vunpack.c.l.bf16 %v8689_v10 }
 0xa2f   :  { %v8735_v7 = vadd.f32 %v3602_v33, %v8387_v4  ;;  %v3350_v32 = vadd.f32 %v3343_v54, %v3251_v42  ;;  %v3442_v33 = vmul.f32 %v9994_v45, %v9993_v0  ;;  %v3860_v44 = vunpack.c.h.bf16 %v8770_v9 }
 0xa30   :  { %v3683_v25 = vpop.permute.xlu1 %3682 }
 0xa31   :  { %4924 = vset.pattern.permute.xlu1 %v9828_v53  ;;  %v3700_v16 = vmul.f32 %v4552_v47, %v3683_v25  ;;  %v3449_v2 = vadd.f32 %v3442_v33, %v3350_v32 }
 0xa32   :  { %3926 = vperm.xlu1 %4924, %v9963_v50  }
 0xa33   :  { %v8746_v4 = vadd.f32 %v3700_v16, %v8597_v61  ;;  %v3548_v21 = vadd.f32 %v3541_v51, %v3449_v2 }
 0xa36   :  { %4925 = vset.pattern.permute.xlu1 %v9936_v1 }
 0xa37   :  { %3979 = vperm.xlu1 %4925, %v9893_v38   ;;  %v3725_v38 = vpop.permute.xlu1 %3724 }
 0xa38   :  { %v3742_v34 = vmul.f32 %v4552_v47, %v3725_v38  ;;  %v3640_v47 = vmul.f32 %v9996_v20, %v8665_v39  ;;  %v10000_v20 = vld [vmem:[#allocation91_spill] sm:$0xff] }
 0xa3a   :  { %v3749_v61 = vadd.f32 %v3742_v34, %v3650_v27  ;;  %v3647_v39 = vadd.f32 %v3640_v47, %v3548_v21  ;;  %v10001_v21 = vunpack.c.h.bf16 %v8630_v28 }
 0xa3b   :  { %4926 = vset.pattern.permute.xlu1 %v9965_v18  ;;  %v3820_v43 = vpop.permute.xlu1 %3819 }
 0xa3c   :  { %4074 = vperm.xlu1 %4926, %v9964_v6   ;;  %v8761_v6 = vpop.permute.xlu0 %3736  ;;  %v3840_v37 = vmul.f32 %v4564_v60, %v3820_v43 }
 0xa3e   :  { %v3847_v14 = vadd.f32 %v3840_v37, %v8649_v24 }
 0xa3f   :  { %v3869_v25 = vpop.permute.xlu1 %3868 }
 0xa40   :  { %4116 = vperm.xlu1 %4926, %v9927_v15   ;;  %v9997_v15 = vunpack.c.h.bf16 %v8538_v12  ;;  %v3812_v3 = vpop.permute.xlu0 %3811  ;;  %v3895_v17 = vmul.f32 %v3869_v25, %v3860_v44 }
 0xa41   :  { %v3838_v54 = vmul.f32 %v9998_v5, %v3812_v3  ;;  %v4947_v5 = vld [vmem:[%s9087_s8] sm:$0xff]  }
 0xa42   :  { %v3739_v27 = vmul.f32 %v8674_v35, %v9997_v15  ;;  %v3902_v35 = vadd.f32 %v3895_v17, %v8708_v48  ;;  %v8797_v48 = vld [vmem:[%s9085_s6 + $0x148] sm:$0xff]   ;;  %4751 = vmatpush3.bf16.msra.mxu0 %v4947_v5 }
 0xa43   :  { %v3911_v24 = vpop.permute.xlu1 %3910  ;;  %v4556_v33 = vunpack.c.l.bf16 %v8797_v48 }
 0xa44   :  { %4928 = vset.pattern.permute.xlu1 %v9890_v46  ;;  %v3746_v56 = vadd.f32 %v3739_v27, %v3647_v39  ;;  %v8789_v46 = vld [vmem:[%s9085_s6 + $0x170] sm:$0xff]   ;;  %v3937_v42 = vmul.f32 %v3911_v24, %v3860_v44  ;;  %v8801_v0 = vpop.permute.xlu0 %3777 }
 0xa45   :  { %3835 = vperm.xlu1 %4928, %v9957_v52   ;;  %v4572_v38 = vunpack.c.l.bf16 %v8789_v46  ;;  %v3744_v2 = vmul.f32 %v4556_v33, %v3733_v19 }
 0xa46   :  { %v3845_v16 = vadd.f32 %v3838_v54, %v3746_v56 }
 0xa47   :  { %v3915_v10 = vpop.permute.xlu1 %3914 }
 0xa48   :  { %v3944_v32 = vadd.f32 %v3937_v42, %v3845_v16  ;;  %v3938_v34 = vmul.f32 %v4572_v38, %v3915_v10  ;;  %v8812_v43 = vpop.permute.xlu0 %3793  ;;  %v10002_v16 = vmov 0.0  }
 0xa49   :  { %4929 = vset.pattern.permute.xlu1 %v9828_v53  ;;  %4752 = vmatprep.subr.bf16.mxu0 %v10002_v16  ;;  %v10015_v16 = vunpack.c.h.bf16 %v8346_v41 }
 0xa4a   :  { %3888 = vperm.xlu1 %4929, %v9959_v22   ;;  %v3945_v45 = vadd.f32 %v3938_v34, %v8721_v23 }
 0xa4c   :  { %v8825_v19 = vpop.permute.xlu0 %3872 }
 0xa4e   :  { %4930 = vset.pattern.permute.xlu1 %v9936_v1 }
 0xa4f   :  { %3983 = vperm.xlu1 %4930, %v7383_v31   ;;  %v3634_v59 = vpop.permute.xlu1 %3633  ;;  %v9999_v31 = vunpack.c.h.bf16 %v8565_v40  ;;  %v4565_v40 = vunpack.c.h.bf16 %v8752_v49 }
 0xa50   :  { %v8832_v25 = vpop.permute.xlu0 %3876 }
 0xa51   :  { %v3645_v51 = vmul.f32 %v9999_v31, %v3634_v59 }
 0xa53   :  { %4025 = vperm.xlu1 %4930, %v9963_v50   ;;  %v3652_v47 = vadd.f32 %v3645_v51, %v10000_v20  ;;  %v10003_v51 = vld [vmem:[#allocation144_spill] sm:$0xff] }
 0xa54   :  { %v3687_v23 = vpop.permute.xlu1 %3686  ;;  %v8849_v54 = vpop.permute.xlu0 %3880 }
 0xa55   :  { %v8815_v37 = vadd.f32 %v3744_v2, %v3652_v47  ;;  %v3701_v15 = vmul.f32 %v10001_v21, %v3687_v23  ;;  %v10004_v2 = vld [vmem:[#allocation21_spill] sm:$0xff] }
 0xa56   :  { %v10005_v20 = vunpack.c.h.bf16 %v10004_v2  ;;  %v10006_v21 = vld [vmem:[#allocation145_spill] sm:$0xff] }
 0xa57   :  { %4931 = vset.pattern.permute.xlu1 %v9965_v18  ;;  %v8821_v27 = vadd.f32 %v3701_v15, %v8735_v7  ;;  %v10007_v15 = vld [vmem:[#allocation65_spill] sm:$0xff] }
 0xa58   :  { %4120 = vperm.xlu1 %4931, %v9913_v63   ;;  %v8859_v59 = vpop.permute.xlu0 %3884  ;;  %v2709_v47 = vmul.f32 %v10005_v20, %v10003_v51  ;;  %v10017_v51 = vld [vmem:[#allocation64_spill] sm:$0xff] }
 0xa59   :  { %v10018_v2 = vunpack.c.l.bf16 %v10017_v51 }
 0xa5b   :  { %v3782_v44 = vpop.permute.xlu1 %3781 }
 0xa5c   :  { %4932 = vset.pattern.permute.xlu1 %v9828_v53  ;;  %v3799_v39 = vmul.f32 %v4565_v40, %v3782_v44  ;;  %v4573_v53 = vunpack.c.h.bf16 %v8789_v46  ;;  %v10009_v44 = vld [vmem:[#allocation75_spill] sm:$0xff] }
 0xa5d   :  { %3892 = vperm.xlu1 %4932, %v9969_v36  }
 0xa5e   :  { %v8828_v63 = vadd.f32 %v3799_v39, %v8746_v4  ;;  %v8841_v4 = vld [vmem:[%s9085_s6 + $0x188] sm:$0xff]  }
 0xa5f   :  { %v3824_v28 = vpop.permute.xlu1 %3823 }
 0xa60   :  { %v3841_v3 = vmul.f32 %v4565_v40, %v3824_v28 }
 0xa61   :  { %4934 = vset.pattern.permute.xlu1 %v9936_v1 }
 0xa62   :  { %3987 = vperm.xlu1 %4934, %v9959_v22   ;;  %v8834_v7 = vadd.f32 %v3841_v3, %v3749_v61  ;;  %v4584_v61 = vunpack.c.l.bf16 %v8841_v4 }
 0xa66   :  { %4029 = vperm.xlu1 %4934, %v9869_v62   ;;  %v3919_v56 = vpop.permute.xlu1 %3918 }
 0xa67   :  { %v3939_v17 = vmul.f32 %v4573_v53, %v3919_v56 }
 0xa69   :  { %v8851_v24 = vadd.f32 %v3939_v17, %v3847_v14  ;;  %v10012_v17 = vld [vmem:[#allocation99_spill] sm:$0xff] }
 0xa6a   :  { %4935 = vset.pattern.permute.xlu1 %v9965_v18 }
 0xa6b   :  { %4124 = vperm.xlu1 %4935, %v9963_v50   ;;  %v4585_v50 = vunpack.c.h.bf16 %v8841_v4 }
 0xa6c   :  { %v3968_v42 = vpop.permute.xlu1 %3967 }
 0xa6d   :  { %v3994_v10 = vmul.f32 %v4584_v61, %v3968_v42  ;;  %v3547_v42 = vmul.f32 %v10015_v16, %v8652_v13  ;;  %v10022_v13 = vld [vmem:[#allocation84_spill] sm:$0xff] }
 0xa6f   :  { %v8856_v34 = vadd.f32 %v3994_v10, %v3902_v35  ;;  %4936 = vset.pattern.permute.xlu1 %v9936_v1  ;;  %v10008_v35 = vunpack.c.l.bf16 %v10007_v15  ;;  %v10010_v1 = vld [vmem:[#allocation67_spill] sm:$0xff]  ;;  %v8884_v10 = vpop.permute.xlu0 %3930  ;;  %v10019_v15 = vld [vmem:[#allocation48_spill] sm:$0xff] }
 0xa70   :  { %3991 = vperm.xlu1 %4936, %v9969_v36   ;;  %v4010_v31 = vpop.permute.xlu1 %4009  ;;  %v10011_v39 = vunpack.c.l.bf16 %v10010_v1 }
 0xa71   :  { %v4036_v14 = vmul.f32 %v4584_v61, %v4010_v31  ;;  %v2603_v40 = vmul.f32 %v10008_v35, %v10006_v21  ;;  %v10020_v35 = vld [vmem:[#allocation60_spill] sm:$0xff] }
 0xa72   :  { %v2808_v28 = vmul.f32 %v10011_v39, %v10009_v44  ;;  %v3554_v44 = vadd.f32 %v3547_v42, %v10022_v13 }
 0xa73   :  { %v8866_v23 = vadd.f32 %v4036_v14, %v3944_v32  ;;  %v2716_v56 = vadd.f32 %v2709_v47, %v2603_v40  ;;  %v10013_v32 = vld [vmem:[#allocation59_spill] sm:$0xff]  ;;  %v10016_v14 = vld [vmem:[#allocation98_spill] sm:$0xff]  ;;  %v10021_v40 = vunpack.c.h.bf16 %v10020_v35 }
 0xa74   :  { %4938 = vset.pattern.permute.xlu1 %v9965_v18  ;;  %v4014_v36 = vpop.permute.xlu1 %4013  ;;  %v10014_v5 = vunpack.c.h.bf16 %v10013_v32  ;;  %v3006_v20 = vmul.f32 %v10018_v2, %v10016_v14  ;;  %v8911_v32 = vld [vmem:[%s9085_s6 + $0x160] sm:$0xff]   ;;  %v10028_v14 = vld [vmem:[#allocation89_spill] sm:$0xff] }
 0xa75   :  { %v4037_v3 = vmul.f32 %v4585_v50, %v4014_v36  ;;  %4086 = vperm.xlu1 %4938, %v9959_v22   ;;  %v2815_v18 = vadd.f32 %v2808_v28, %v2716_v56  ;;  %v4557_v22 = vunpack.c.h.bf16 %v8797_v48  ;;  %v3105_v41 = vmul.f32 %v10021_v40, %v10019_v15  ;;  %v10024_v28 = vld [vmem:[#allocation11_spill] sm:$0xff]  ;;  %v8905_v56 = vpop.permute.xlu0 %3934 }
 0xa76   :  { %v2907_v61 = vmul.f32 %v10014_v5, %v10012_v17  ;;  %v10025_v36 = vunpack.c.l.bf16 %v8320_v8  ;;  %v10026_v5 = vld [vmem:[#allocation62_spill] sm:$0xff]  ;;  %v4568_v2 = vunpack.c.l.bf16 %v8911_v32 }
 0xa77   :  { %v8886_v31 = vadd.f32 %v4037_v3, %v3945_v45  ;;  %v10023_v45 = vunpack.c.l.bf16 %v8538_v12 }
 0xa78   :  { %v2914_v21 = vadd.f32 %v2907_v61, %v2815_v18  ;;  %v3204_v3 = vmul.f32 %v10025_v36, %v10024_v28  ;;  %v10027_v61 = vunpack.c.h.bf16 %v8161_v30  ;;  %v10031_v30 = vunpack.c.h.bf16 %v8235_v11  ;;  %v8942_v11 = vld [vmem:[%s9085_s6 + $0x178] sm:$0xff]  }
 0xa79   :  { %4128 = vperm.xlu1 %4938, %v9869_v62   ;;  %v3638_v47 = vpop.permute.xlu1 %3637  ;;  %v3745_v62 = vmul.f32 %v4557_v22, %v8761_v6  ;;  %v3972_v35 = vpop.permute.xlu0 %3971 }
 0xa7a   :  { %v3646_v1 = vmul.f32 %v3638_v47, %v10023_v45  ;;  %v3013_v39 = vadd.f32 %v3006_v20, %v2914_v21  ;;  %v3303_v8 = vmul.f32 %v10027_v61, %v10026_v5  ;;  %v10030_v21 = vld [vmem:[#allocation88_spill] sm:$0xff]  ;;  %v4576_v5 = vunpack.c.l.bf16 %v8942_v11 }
 0xa7b   :  { %v3501_v15 = vmul.f32 %v10031_v30, %v10030_v21  ;;  %v10033_v45 = vld [vmem:[#allocation92_spill] sm:$0xff] }
 0xa7c   :  { %v3653_v17 = vadd.f32 %v3646_v1, %v3554_v44  ;;  %v3112_v12 = vadd.f32 %v3105_v41, %v3013_v39  ;;  %v10034_v1 = vld [vmem:[#allocation90_spill] sm:$0xff] }
 0xa7d   :  { %4132 = vperm.xlu1 %4938, %v9957_v52   ;;  %v10029_v52 = vunpack.c.l.bf16 %v8398_v29  ;;  %v10035_v39 = vunpack.c.h.bf16 %v10034_v1 }
 0xa7e   :  { %v3691_v16 = vpop.permute.xlu1 %3690  ;;  %v8916_v42 = vadd.f32 %v3745_v62, %v3653_v17  ;;  %v3211_v18 = vadd.f32 %v3204_v3, %v3112_v12  ;;  %v8944_v62 = vpop.permute.xlu0 %4017  ;;  %v10036_v17 = vld [vmem:[#allocation95_spill] sm:$0xff] }
 0xa7f   :  { %v3702_v6 = vmul.f32 %v4556_v33, %v3691_v16  ;;  %v3402_v51 = vmul.f32 %v10029_v52, %v10028_v14  ;;  %v10032_v33 = vunpack.c.l.bf16 %v8550_v55  ;;  %v3699_v28 = vmul.f32 %v10035_v39, %v10033_v45 }
 0xa80   :  { %v3310_v47 = vadd.f32 %v3303_v8, %v3211_v18  ;;  %v8956_v8 = vld [vmem:[%s9085_s6 + $0x190] sm:$0xff]   ;;  %v3897_v52 = vmul.f32 %v4573_v53, %v8832_v25  ;;  %v4948_v25 = vld [vmem:[%s9087_s8 + $0x8] sm:$0xff]   ;;  %v3896_v53 = vmul.f32 %v4572_v38, %v8825_v19 }
 0xa81   :  { %v8925_v20 = vadd.f32 %v3702_v6, %v8611_v58  ;;  %v3600_v13 = vmul.f32 %v10032_v33, %v8668_v57  ;;  %v4588_v49 = vunpack.c.l.bf16 %v8956_v8  ;;  %4753 = vmatpush3.bf16.msra.mxu0 %v4948_v25 }
 0xa82   :  { %v3409_v41 = vadd.f32 %v3402_v51, %v3310_v47  ;;  %v8958_v18 = vpop.permute.xlu0 %4021 }
 0xa83   :  { %v3786_v40 = vpop.permute.xlu1 %3785 }
 0xa84   :  { %v3800_v44 = vmul.f32 %v4568_v2, %v3786_v40  ;;  %v3508_v29 = vadd.f32 %v3501_v15, %v3409_v41  ;;  %v3903_v40 = vadd.f32 %v3896_v53, %v8717_v26 }
 0xa86   :  { %v8937_v58 = vadd.f32 %v3800_v44, %v8821_v27  ;;  %v3607_v3 = vadd.f32 %v3600_v13, %v3508_v29  ;;  %v3798_v27 = vmul.f32 %v4564_v60, %v8801_v0  ;;  %v8972_v47 = vpop.permute.xlu0 %4033  ;;  %v3995_v13 = vmul.f32 %v4585_v50, %v3972_v35 }
 0xa87   :  { %v3828_v36 = vpop.permute.xlu1 %3827 }
 0xa88   :  { %v3842_v55 = vmul.f32 %v4568_v2, %v3828_v36  ;;  %v3706_v57 = vadd.f32 %v3699_v28, %v3607_v3  ;;  %v8970_v2 = vld [vmem:[%s9085_s6 + $0x1a0] sm:$0xff]   ;;  %v4002_v1 = vadd.f32 %v3995_v13, %v3903_v40 }
 0xa89   :  { %v4058_v30 = vunpack.c.h.bf16 %v8970_v2 }
 0xa8a   :  { %v8947_v12 = vadd.f32 %v3842_v55, %v10036_v17  ;;  %v3805_v6 = vadd.f32 %v3798_v27, %v3706_v57  ;;  %v4109_v29 = vpop.permute.xlu0 %4108 }
 0xa8b   :  { %v4135_v28 = vmul.f32 %v4109_v29, %v4058_v30 }
 0xa8c   :  { %v3923_v61 = vpop.permute.xlu1 %3922  ;;  %v3904_v0 = vadd.f32 %v3897_v52, %v3805_v6 }
 0xa8d   :  { %v3940_v16 = vmul.f32 %v4576_v5, %v3923_v61  ;;  %v4142_v19 = vadd.f32 %v4135_v28, %v8866_v23  ;;  %v4589_v23 = vunpack.c.h.bf16 %v8956_v8  ;;  %v4038_v8 = vmul.f32 %v4588_v49, %v8944_v62  ;;  %v9015_v62 = vld [vmem:[%s9085_s6 + $0x198] sm:$0xff]  }
 0xa8e   :  { %v4079_v25 = vpop.permute.xlu0 %4078 }
 0xa8f   :  { %v8961_v14 = vadd.f32 %v3940_v16, %v8834_v7  ;;  %v4650_v7 = vld [vmem:[%s9085_s6 + $0x1a8] sm:$0xff]   ;;  %v9002_v16 = vld [vmem:[%s9085_s6 + $0x1b0] sm:$0xff]  }
 0xa90   :  { %v4596_v33 = vunpack.c.l.bf16 %v4650_v7 }
 0xa91   :  { %v3976_v60 = vpop.permute.xlu1 %3975 }
 0xa92   :  { %v3996_v51 = vmul.f32 %v4588_v49, %v3976_v60  ;;  %v4600_v60 = vunpack.c.l.bf16 %v9002_v16  ;;  %v4577_v49 = vunpack.c.h.bf16 %v8942_v11  ;;  %v4039_v11 = vmul.f32 %v4589_v23, %v8958_v18 }
 0xa93   :  { %v3767_v18 = vunpack.c.l.bf16 %v8770_v9  ;;  %v4652_v9 = vld [vmem:[%s9085_s6 + $0x1b8] sm:$0xff]  }
 0xa94   :  { %v4003_v21 = vadd.f32 %v3996_v51, %v3904_v0  ;;  %v4597_v51 = vunpack.c.h.bf16 %v4650_v7 }
 0xa95   :  { %v3802_v48 = vmul.f32 %v8812_v43, %v3767_v18 }
 0xa96   :  { %v4067_v15 = vpop.permute.xlu1 %4066 }
 0xa97   :  { %v4093_v41 = vmul.f32 %v4067_v15, %v4058_v30  ;;  %v4096_v15 = vmul.f32 %v4600_v60, %v4079_v25 }
 0xa99   :  { %v4100_v44 = vadd.f32 %v4093_v41, %v8856_v34  ;;  %v4174_v34 = vsel %vm4149_vm7, %v4142_v19, 0.0  ;;  %v4083_v19 = vpop.permute.xlu0 %4082 }
 0xa9a   :  { %v4071_v45 = vpop.permute.xlu1 %4070 }
 0xa9b   :  { %v4094_v39 = vmul.f32 %v4596_v33, %v4071_v45  ;;  %v4150_v36 = vsel %vm4149_vm7, %v4100_v44, 0.0 }
 0xa9d   :  { %v4101_v46 = vadd.f32 %v4094_v39, %v4002_v1 }
 0xa9e   :  { %v4113_v38 = vpop.permute.xlu1 %4112 }
 0xa9f   :  { %v4151_v26 = vsel %vm4149_vm7, %v4101_v46, 0.0  ;;  %v4136_v3 = vmul.f32 %v4596_v33, %v4113_v38  ;;  %v3899_v46 = vmul.f32 %v4577_v49, %v8859_v59  ;;  %v4601_v38 = vunpack.c.h.bf16 %v9002_v16 }
 0xaa0   :  { %v4152_v55 = vadd.f32 %v4151_v26, %v4150_v36  ;;  %v4046_v59 = vadd.f32 %v4039_v11, %v8961_v14  ;;  %v4569_v14 = vunpack.c.h.bf16 %v8911_v32  ;;  %v4593_v32 = vunpack.c.h.bf16 %v9015_v62 }
 0xaa1   :  { %v4143_v4 = vadd.f32 %v4136_v3, %v8886_v31  ;;  %v3898_v31 = vmul.f32 %v4576_v5, %v8849_v54  ;;  %v4045_v54 = vadd.f32 %v4038_v8, %v8851_v24  ;;  %v4592_v24 = vunpack.c.l.bf16 %v9015_v62 }
 0xaa2   :  { %v3906_v26 = vadd.f32 %v3899_v46, %v8937_v58  ;;  %v4091_v46 = vpop.permute.xlu0 %4090 }
 0xaa3   :  { %v4175_v50 = vsel %vm4149_vm7, %v4143_v4, 0.0  ;;  %v3695_v35 = vpop.permute.xlu1 %3694  ;;  %v3905_v0 = vadd.f32 %v3898_v31, %v8828_v63 }
 0xaa4   :  { %v4176_v57 = vadd.f32 %v4175_v50, %v4174_v34 }
 0xaa8   :  { %v8994_v17 = vpop.permute.xlu1 %3789 }
 0xaac   :  { %v8996_v27 = vpop.permute.xlu1 %3831 }
 0xab1   :  { %v3927_v61 = vpop.permute.xlu1 %3926 }
 0xab6   :  { %v3980_v6 = vpop.permute.xlu1 %3979 }
 0xab7   :  { %v3997_v52 = vmul.f32 %v4589_v23, %v3980_v6  ;;  %v4646_v23 = vld [vmem:[%s9085_s6 + $0x180] sm:$0xff]  }
 0xab9   :  { %v4004_v53 = vadd.f32 %v3997_v52, %v3905_v0 }
 0xabb   :  { %v4075_v30 = vpop.permute.xlu1 %4074  ;;  %v4103_v41 = vadd.f32 %v4096_v15, %v4004_v53  ;;  %v3941_v53 = vmul.f32 %v4577_v49, %v3927_v61  ;;  %v3703_v15 = vmul.f32 %v4557_v22, %v3695_v35  ;;  %v4580_v22 = vunpack.c.l.bf16 %v4646_v23 }
 0xabc   :  { %v4095_v40 = vmul.f32 %v4597_v51, %v4075_v30  ;;  %v3801_v35 = vmul.f32 %v4569_v14, %v8994_v17 }
 0xabd   :  { %v4155_v45 = vsel %vm4149_vm7, %v4103_v41, 0.0  ;;  %v4581_v41 = vunpack.c.h.bf16 %v4646_v23 }
 0xabe   :  { %v4102_v33 = vadd.f32 %v4095_v40, %v4003_v21  ;;  %v3808_v17 = vadd.f32 %v3801_v35, %v8925_v20 }
 0xabf   :  { %v4117_v13 = vpop.permute.xlu1 %4116 }
 0xac0   :  { %v4153_v44 = vsel %vm4149_vm7, %v4102_v33, 0.0  ;;  %v4137_v5 = vmul.f32 %v4597_v51, %v4117_v13  ;;  %v10037_v33 = vld [vmem:[#allocation93_spill] sm:$0xff] }
 0xac1   :  { %v4154_v29 = vadd.f32 %v4153_v44, %v4152_v55  ;;  %v4097_v55 = vmul.f32 %v4601_v38, %v4083_v19  ;;  %v3710_v13 = vadd.f32 %v3703_v15, %v10037_v33 }
 0xac2   :  { %v4144_v63 = vadd.f32 %v4137_v5, %v4045_v54 }
 0xac3   :  { %v4156_v7 = vadd.f32 %v4155_v45, %v4154_v29  ;;  %v3843_v29 = vmul.f32 %v4569_v14, %v8996_v27  ;;  %v3942_v27 = vmul.f32 %v4580_v22, %v8884_v10 }
 0xac4   :  { %v4177_v1 = vsel %vm4149_vm7, %v4144_v63, 0.0  ;;  %v3836_v39 = vpop.permute.xlu1 %3835  ;;  %v3809_v63 = vadd.f32 %v3802_v48, %v3710_v13  ;;  %v4169_v13 = vld [vmem:[%s9086_s7] sm:$0x1] }
 0xac5   :  { %v4178_v28 = vadd.f32 %v4177_v1, %v4176_v57  ;;  %v4605_v1 = vunpack.c.h.bf16 %v4652_v9 }
 0xac9   :  { %v3889_v21 = vpop.permute.xlu1 %3888 }
 0xaca   :  { %v3900_v45 = vmul.f32 %v4580_v22, %v3889_v21  ;;  %v4099_v21 = vmul.f32 %v4605_v1, %v4091_v46 }
 0xace   :  { %v3984_v36 = vpop.permute.xlu1 %3983 }
 0xacf   :  { %v3998_v3 = vmul.f32 %v4592_v24, %v3984_v36  ;;  %v3850_v36 = vadd.f32 %v3843_v29, %v8815_v37 }
 0xad1   :  { %v4005_v4 = vadd.f32 %v3998_v3, %v3906_v26  ;;  %v3949_v11 = vadd.f32 %v3942_v27, %v3850_v36 }
 0xad2   :  { %v4026_v34 = vpop.permute.xlu1 %4025 }
 0xad3   :  { %v4104_v50 = vadd.f32 %v4097_v55, %v4005_v4  ;;  %v4040_v40 = vmul.f32 %v4592_v24, %v4026_v34  ;;  %v4604_v24 = vunpack.c.l.bf16 %v4652_v9 }
 0xad5   :  { %v4157_v57 = vsel %vm4149_vm7, %v4104_v50, 0.0 }
 0xad6   :  { %v9024_v31 = vadd.f32 %v4157_v57, %v4156_v7  ;;  %v3943_v57 = vmul.f32 %v4581_v41, %v8905_v56 }
 0xad7   :  { %v4121_v6 = vpop.permute.xlu1 %4120 }
 0xad8   :  { %v4138_v52 = vmul.f32 %v4600_v60, %v4121_v6  ;;  %v3948_v60 = vadd.f32 %v3941_v53, %v8947_v12  ;;  %v3965_v12 = vunpack.c.l.bf16 %v8970_v2  ;;  %v3907_v2 = vadd.f32 %v3900_v45, %v3808_v17 }
 0xada   :  { %v4145_v16 = vadd.f32 %v4138_v52, %v4046_v59  ;;  %v4047_v61 = vadd.f32 %v4040_v40, %v3948_v60 }
 0xadc   :  { %v4179_v0 = vsel %vm4149_vm7, %v4145_v16, 0.0  ;;  %v3893_v51 = vpop.permute.xlu1 %3892 }
 0xadd   :  { %v4180_v58 = vadd.f32 %v4179_v0, %v4178_v28  ;;  %v3901_v54 = vmul.f32 %v4581_v41, %v3893_v51  ;;  %v4042_v0 = vmul.f32 %v8972_v47, %v3965_v12 }
 0xadf   :  { %v3908_v19 = vadd.f32 %v3901_v54, %v3809_v63  ;;  %v4193_v54 = vld [vmem:[%s9086_s7] sm:$0x1]  ;;  %s4977_s7 = scalar_lea.vmem %s4274_s29, 32 }
 0xae0   :  { %v4410_v63 = vld [vmem:[%s9088_s9] ss:$0 sm:$0xff]  ;;  %p4978_p0 = scmp.ne.s32.totalorder %s4274_s29, %s4977_s7  ;;  %p4983_p2 = scmp.lt.s32.totalorder %s4977_s7, %s4977_s7 }
 0xae1   :  { %v3988_v25 = vpop.permute.xlu1 %3987 }
 0xae2   :  { %v3999_v62 = vmul.f32 %v4593_v32, %v3988_v25  ;;  %p4984_p3 = por %p4983_p2, %p4982_p1 }
 0xae4   :  { %v4006_v4 = vadd.f32 %v3999_v62, %v3907_v2  ;;  %p4985_p4 = pnand %p4984_p3, %p4978_p0 }
 0xae5   :  { %v4030_v30 = vpop.permute.xlu1 %4029 }
 0xae6   :  { %v4041_v34 = vmul.f32 %v4593_v32, %v4030_v30 }
 0xae8   :  { %v4048_v52 = vadd.f32 %v4041_v34, %v3949_v11 }
 0xaea   :  { %v4125_v8 = vpop.permute.xlu1 %4124 }
 0xaeb   :  { %v4139_v44 = vmul.f32 %v4601_v38, %v4125_v8  ;;  %v3844_v38 = vmul.f32 %v3836_v39, %v3767_v18 }
 0xaed   :  { %v4146_v5 = vadd.f32 %v4139_v44, %v4047_v61  ;;  %v3851_v55 = vadd.f32 %v3844_v38, %v8916_v42 }
 0xaef   :  { %v4181_v7 = vsel %vm4149_vm7, %v4146_v5, 0.0  ;;  %v3992_v43 = vpop.permute.xlu1 %3991  ;;  %v3950_v59 = vadd.f32 %v3943_v57, %v3851_v55 }
 0xaf0   :  { %v4182_v28 = vadd.f32 %v4181_v7, %v4180_v58  ;;  %v4000_v49 = vmul.f32 %v3992_v43, %v3965_v12 }
 0xaf1   :  { %v4049_v53 = vadd.f32 %v4042_v0, %v3950_v59 }
 0xaf2   :  { %v4007_v26 = vadd.f32 %v4000_v49, %v3908_v19 }
 0xaf4   :  { %v4087_v3 = vpop.permute.xlu1 %4086  ;;  %v4106_v20 = vadd.f32 %v4099_v21, %v4007_v26 }
 0xaf5   :  { %v4098_v50 = vmul.f32 %v4604_v24, %v4087_v3 }
 0xaf6   :  { %v4161_v42 = vsel %vm4149_vm7, %v4106_v20, 0.0 }
 0xaf7   :  { %v4105_v39 = vadd.f32 %v4098_v50, %v4006_v4 }
 0xaf8   :  { %v4129_v6 = vpop.permute.xlu1 %4128 }
 0xaf9   :  { %v4159_v37 = vsel %vm4149_vm7, %v4105_v39, 0.0  ;;  %v4140_v16 = vmul.f32 %v4604_v24, %v4129_v6 }
 0xafa   :  { %v4160_v10 = vadd.f32 %v4159_v37, %v9024_v31 }
 0xafb   :  { %v4147_v51 = vadd.f32 %v4140_v16, %v4048_v52 }
 0xafc   :  { %v4162_v58 = vadd.f32 %v4161_v42, %v4160_v10  ;;  %v4133_v25 = vpop.permute.xlu1 %4132 }
 0xafd   :  { %v4183_v56 = vsel %vm4149_vm7, %v4147_v51, 0.0  ;;  %v4141_v30 = vmul.f32 %v4605_v1, %v4133_v25 }
 0xafe   :  { %v4163_v15 = vrot.slane %v4162_v58, 4  ;;  %v4184_v40 = vadd.f32 %v4183_v56, %v4182_v28 }
 0xaff   :  { %v4148_v18 = vadd.f32 %v4141_v30, %v4049_v53 }
 0xb00   :  { %v4164_v23 = vadd.f32 %v4163_v15, %v4162_v58 }
 0xb01   :  { %v4185_v14 = vsel %vm4149_vm7, %v4148_v18, 0.0 }
 0xb02   :  { %v4165_v60 = vrot.slane %v4164_v23, 2  ;;  %v4186_v8 = vadd.f32 %v4185_v14, %v4184_v40 }
 0xb04   :  { %v4166_v31 = vadd.f32 %v4165_v60, %v4164_v23  ;;  %v4187_v41 = vrot.slane %v4186_v8, 4 }
 0xb06   :  { %v4167_v47 = vrot.slane %v4166_v31, 1  ;;  %v4188_v33 = vadd.f32 %v4187_v41, %v4186_v8 }
 0xb08   :  { %v4168_v61 = vadd.f32 %v4167_v47, %v4166_v31  ;;  %v4189_v44 = vrot.slane %v4188_v33, 2 }
 0xb0a   :  { %v4170_v48 = vadd.f32 %v4169_v13, %v4168_v61  ;;  %v4190_v22 = vadd.f32 %v4189_v44, %v4188_v33 }
 0xb0c   :  { %v4171_v9 = vmax.f32 %v4170_v48, 0.0  ;;  %v4191_v35 = vrot.slane %v4190_v22, 1 }
 0xb0e   :  { %4173 = vst.msk [vmem:[#allocation4] sm:$0x1] %vm4172_vm4, %v4171_v9  ;;  %v4192_v32 = vadd.f32 %v4191_v35, %v4190_v22 }
 0xb10   :  { %v4194_v5 = vadd.f32 %v4193_v54, %v4192_v32 }
 0xb12   :  { %v4195_v12 = vmax.f32 %v4194_v5, 0.0 }
 0xb14   :  { %4196 = vst.msk [vmem:[#allocation4 + $0x1] sm:$0x1] %vm4172_vm4, %v4195_v12 }
 0xb1b   :  { %v4197_v29 = vld [vmem:[#allocation4] sm:$0x3] }
 0xb1c   :  { %v4198_v45 = vpack.c.bf16 %v4197_v29, %v4197_v29 }
 0xb1e   :  { %4755 = vmatmul.mubr.msk.bf16.vlgmr.msra.gmra.mrb[28].mxu0 %vm4149_vm7, %v4198_v45 }
 0xbf1   :  { %v4259_v7 = vpop.f32.mrb[28].mxu0 }
 0xbf2   :  { %v4260_v43 = vadd.f32 %v4410_v63, %v4259_v7  ;;  %v4756_v1 = vpop.f32.mrb[29].mxu0 }
 0xbf3   :  { %v4262_v28 = vpop.f32.mrb[30].mxu0 }
 0xbf4   :  { %v4757_v49 = vpop.f32.mrb[31].mxu0  ;;  %4266 = vst.msk [vmem:[#allocation5] sm:$0x3] %vm4265_vm9, %v4260_v43 }
 0xbf5   :  { %4988 = shalt.err (!%p4985_p4)
}
 0xbf6   :  { %s4989_s9 = scalar_lea.hbm %s9089_s10, 32 }
 0xbf7   :  { %p4990_p5 = scmp.ne.s32.totalorder %s9089_s10, %s4989_s9  ;;  %p4993_p6 = scmp.lt.u32.totalorder %s4989_s9, %s9089_s10 }
 0xbf9   :  { %p4995_p7 = pnand %p4993_p6, %p4990_p5 }
 0xbfb   :  { %4998 = shalt.err (!%p4995_p7)
}
 0xbfc   :  { %4276 = dma.vmem_to_hbm [thread:$0]  %s4274_s29, 32, %s9089_s10, [#allocation6]  }
 0xbfd   :  { %4999 = dma.done.wait [#allocation6], 32  }
 0xbfe   :  { %5000 = vsyncadd [#allocation6], 4294967264 }
 0xbff   :  { %4280 = vsyncpa [#allocation6], 1 }

</bundles_post_ra>
